<compile_context>
chip_gen: v7x
topology: tpu7x:2x2x1
jax: 0.10.0
libtpu: 0.0.40
codegen_flags: <defaults>
</compile_context>

<pallas_src>
import functools
import math

import jax
import jax.numpy as jnp
from jax import lax
from jax.experimental import pallas as pl
from jax.experimental.pallas import tpu as pltpu

HIDDEN = 32            # config.hidden_dim (== channel count C of the input)
NUM_HEADS = 8          # nn.MultiheadAttention(..., num_heads=8)
MEMORY_CAPACITY = 1000
LN_EPS = 1e-5


# ----------------------------- in-kernel math helpers -----------------------------

def _erf(x):
    # Abramowitz & Stegun 7.1.26 rational approximation (max abs err ~1.5e-7);
    # used because torch.nn.GELU() default is the exact-erf GELU.
    a1, a2, a3, a4, a5 = 0.254829592, -0.284496736, 1.421413741, -1.453152027, 1.061405429
    p = 0.3275911
    z = jnp.abs(x)
    t = 1.0 / (1.0 + p * z)
    poly = ((((a5 * t + a4) * t + a3) * t + a2) * t + a1) * t
    y = 1.0 - poly * jnp.exp(-z * z)
    return jnp.where(x >= 0, y, -y)


def _gelu(x):
    return 0.5 * x * (1.0 + _erf(x * 0.7071067811865476))


def _sigmoid(x):
    return 1.0 / (1.0 + jnp.exp(-x))


# ----------------------------- kernel 1: fused multi-head attention -----------------------------

def _mha_kernel(x_ref, mem_ref, wq_ref, wk_ref, wv_ref, bq_ref, bk_ref, bv_ref,
                wo_ref, bo_ref, o_ref, *, num_heads, scale):
    x = x_ref[0]          # [S, E]  (query tokens for this batch element)
    mem = mem_ref[0]      # [M, E]  (working-memory tokens = key/value)
    S, E = x.shape

    acc = jnp.zeros((S, E), jnp.float32) + bo_ref[...]      # output-proj bias
    for h in range(num_heads):                              # static unroll (nh = 8)
        qh = jnp.dot(x, wq_ref[h], preferred_element_type=jnp.float32) + bq_ref[h]    # [S, dh]
        kh = jnp.dot(mem, wk_ref[h], preferred_element_type=jnp.float32) + bk_ref[h]  # [M, dh]
        vh = jnp.dot(mem, wv_ref[h], preferred_element_type=jnp.float32) + bv_ref[h]  # [M, dh]
        # scores = qh @ kh^T  (contraction on the trailing head_dim)
        s = lax.dot_general(qh, kh, (((1,), (1,)), ((), ())),
                            preferred_element_type=jnp.float32) * scale               # [S, M]
        m = jnp.max(s, axis=-1, keepdims=True)
        p = jnp.exp(s - m)
        p = p / jnp.sum(p, axis=-1, keepdims=True)
        oh = jnp.dot(p, vh, preferred_element_type=jnp.float32)                       # [S, dh]
        # accumulate the output projection per head (avoids materializing a concat)
        acc = acc + jnp.dot(oh, wo_ref[h], preferred_element_type=jnp.float32)        # [S, E]
    o_ref[0] = acc


def mha_forward(x_bse, mem_bme, p):
    B, S, E = x_bse.shape
    M = mem_bme.shape[1]
    nh = NUM_HEADS
    assert E % nh == 0
    dh = E // nh
    scale = 1.0 / math.sqrt(dh)
    kern = functools.partial(_mha_kernel, num_heads=nh, scale=scale)

    def full(shape):
        return pl.BlockSpec(shape, lambda b: (0,) * len(shape))

    return pl.pallas_call(
        kern,
        out_shape=jax.ShapeDtypeStruct((B, S, E), jnp.float32),
        grid=(B,),
        in_specs=[
            pl.BlockSpec((1, S, E), lambda b: (b, 0, 0)),     # query tokens
            pl.BlockSpec((1, M, E), lambda b: (b, 0, 0)),     # working memory
            full((nh, E, dh)), full((nh, E, dh)), full((nh, E, dh)),
            full((nh, 1, dh)), full((nh, 1, dh)), full((nh, 1, dh)),
            full((nh, dh, E)), full((1, E)),
        ],
        out_specs=pl.BlockSpec((1, S, E), lambda b: (b, 0, 0)),
        compiler_params=pltpu.CompilerParams(dimension_semantics=("parallel",)),
    )(x_bse, mem_bme, p["wq_h"], p["wk_h"], p["wv_h"],
      p["bq_h"], p["bk_h"], p["bv_h"], p["wo_h"], p["bo"])


# ----------------------------- kernel 2: fused 2-layer GRU -----------------------------

def _gru_kernel(x_ref, wih0_ref, whh0_ref, bih0_ref, bhh0_ref,
                wih1_ref, whh1_ref, bih1_ref, bhh1_ref, o_ref):
    S, B, E = x_ref.shape

    # hoist weights/biases out of the serial time loop (loop-invariant VMEM loads)
    wih0 = wih0_ref[...]; whh0 = whh0_ref[...]
    bih0 = bih0_ref[...]; bhh0 = bhh0_ref[...]
    wih1 = wih1_ref[...]; whh1 = whh1_ref[...]
    bih1 = bih1_ref[...]; bhh1 = bhh1_ref[...]

    def cell(x_t, h_prev, wih, whh, bih, bhh):
        # PyTorch GRU gate ordering: [reset | update | new]
        gi = jnp.dot(x_t, wih, preferred_element_type=jnp.float32) + bih      # [B, 3E]
        gh = jnp.dot(h_prev, whh, preferred_element_type=jnp.float32) + bhh   # [B, 3E]
        r = _sigmoid(gi[:, 0 * E:1 * E] + gh[:, 0 * E:1 * E])
        z = _sigmoid(gi[:, 1 * E:2 * E] + gh[:, 1 * E:2 * E])
        n = jnp.tanh(gi[:, 2 * E:3 * E] + r * gh[:, 2 * E:3 * E])
        return (1.0 - z) * n + z * h_prev

    def step(t, carry):
        h0, h1 = carry
        x_t = x_ref[t]                              # [B, E] (time-major input)
        h0 = cell(x_t, h0, wih0, whh0, bih0, bhh0)  # layer 0
        h1 = cell(h0, h1, wih1, whh1, bih1, bhh1)   # layer 1 (stacked)
        o_ref[t] = h1                               # last layer's hidden at time t
        return (h0, h1)

    h_init = jnp.zeros((B, E), jnp.float32)
    lax.fori_loop(0, S, step, (h_init, h_init))


def gru_forward(x_sbe, p):
    S, B, E = x_sbe.shape
    G = 3 * E

    def full(shape):
        return pl.BlockSpec(shape, lambda i: (0,) * len(shape))

    return pl.pallas_call(
        _gru_kernel,
        out_shape=jax.ShapeDtypeStruct((S, B, E), jnp.float32),
        grid=(1,),
        in_specs=[
            full((S, B, E)),
            full((E, G)), full((E, G)), full((1, G)), full((1, G)),
            full((E, G)), full((E, G)), full((1, G)), full((1, G)),
        ],
        out_specs=full((S, B, E)),
        compiler_params=pltpu.CompilerParams(dimension_semantics=("arbitrary",)),
    )(x_sbe, p["wih0_t"], p["whh0_t"], p["bih0"], p["bhh0"],
      p["wih1_t"], p["whh1_t"], p["bih1"], p["bhh1"])


# ----------------------------- kernel 3: fused MLP + LayerNorm + GELU + residual -----------------------------

def _mlp_kernel(ctx_ref, tmp_ref, xres_ref, w1a_ref, w1b_ref, b1_ref,
                g_ref, beta_ref, w2_ref, b2_ref, o_ref):
    # Linear(2E -> E) with the concat folded into two partial matmuls
    y = (jnp.dot(ctx_ref[...], w1a_ref[...], preferred_element_type=jnp.float32)
         + jnp.dot(tmp_ref[...], w1b_ref[...], preferred_element_type=jnp.float32)
         + b1_ref[...])
    # LayerNorm(E)
    mean = jnp.mean(y, axis=-1, keepdims=True)
    c = y - mean
    var = jnp.mean(c * c, axis=-1, keepdims=True)
    yn = c * lax.rsqrt(var + LN_EPS) * g_ref[...] + beta_ref[...]
    # GELU (exact-erf form) + Linear(E -> E) + residual
    a = _gelu(yn)
    z = jnp.dot(a, w2_ref[...], preferred_element_type=jnp.float32) + b2_ref[...]
    o_ref[...] = z + xres_ref[...]


def mlp_residual_forward(ctx_rows, tmp_rows, xres_rows, p):
    R, E = ctx_rows.shape
    ntile = 2 if (R % 16 == 0) else 1           # 2-way parallel rows → both v7x TCs busy
    tm = R // ntile

    def full(shape):
        return pl.BlockSpec(shape, lambda i: (0,) * len(shape))

    row_spec = pl.BlockSpec((tm, E), lambda i: (i, 0))
    return pl.pallas_call(
        _mlp_kernel,
        out_shape=jax.ShapeDtypeStruct((R, E), jnp.float32),
        grid=(ntile,),
        in_specs=[row_spec, row_spec, row_spec,
                  full((E, E)), full((E, E)), full((1, E)),
                  full((1, E)), full((1, E)),
                  full((E, E)), full((1, E))],
        out_specs=row_spec,
        compiler_params=pltpu.CompilerParams(dimension_semantics=("parallel",)),
    )(ctx_rows, tmp_rows, xres_rows, p["w1a"], p["w1b"], p["b1"],
      p["ln_g"], p["ln_b"], p["w2"], p["b2"])


# ----------------------------- parameters -----------------------------

def init_params(key, hd=HIDDEN):
    nh = NUM_HEADS
    dh = hd // nh
    keys = iter(jax.random.split(key, 32))

    def w(shape, scale=0.1):
        return scale * jax.random.normal(next(keys), shape, jnp.float32)

    # nn.MultiheadAttention(embed_dim=hd, num_heads=8): in_proj [3E,E]+[3E], out_proj [E,E]+[E]
    in_proj_w = w((3 * hd, hd)); in_proj_b = w((3 * hd,))
    out_proj_w = w((hd, hd));    out_proj_b = w((hd,))
    # nn.GRU(hd, hd, num_layers=2): weight_ih/hh [3E,E], bias_ih/hh [3E] per layer
    gru_raw = {}
    for l in range(2):
        gru_raw[f"wih{l}"] = w((3 * hd, hd))
        gru_raw[f"whh{l}"] = w((3 * hd, hd))
        gru_raw[f"bih{l}"] = w((3 * hd,))
        gru_raw[f"bhh{l}"] = w((3 * hd,))
    # context_mlp: Linear(2E,E) + LayerNorm(E) + GELU + Linear(E,E)
    w1 = w((hd, 2 * hd)); b1 = w((hd,))
    ln_g = jnp.ones((hd,), jnp.float32); ln_b = jnp.zeros((hd,), jnp.float32)
    w2 = w((hd, hd)); b2 = w((hd,))

    p = {}
    # --- attention, pre-arranged per head for right-multiplication inside the kernel ---
    wq, wk, wv = in_proj_w[:hd], in_proj_w[hd:2 * hd], in_proj_w[2 * hd:]
    bq, bk, bv = in_proj_b[:hd], in_proj_b[hd:2 * hd], in_proj_b[2 * hd:]

    def split_heads_w(wm):   # [E_out, E_in] -> [nh, E_in, dh]
        return jnp.transpose(wm.T.reshape(hd, nh, dh), (1, 0, 2))

    def split_heads_b(bvec):  # [E] -> [nh, 1, dh]
        return bvec.reshape(nh, 1, dh)

    p["wq_h"] = split_heads_w(wq); p["wk_h"] = split_heads_w(wk); p["wv_h"] = split_heads_w(wv)
    p["bq_h"] = split_heads_b(bq); p["bk_h"] = split_heads_b(bk); p["bv_h"] = split_heads_b(bv)
    p["wo_h"] = out_proj_w.T.reshape(nh, dh, hd)
    p["bo"] = out_proj_b.reshape(1, hd)
    # --- GRU, transposed for right-multiplication ---
    for l in range(2):
        p[f"wih{l}_t"] = gru_raw[f"wih{l}"].T
        p[f"whh{l}_t"] = gru_raw[f"whh{l}"].T
        p[f"bih{l}"] = gru_raw[f"bih{l}"].reshape(1, 3 * hd)
        p[f"bhh{l}"] = gru_raw[f"bhh{l}"].reshape(1, 3 * hd)
    # --- MLP, with W1 split by input-channel group (ctx part / gru part) ---
    p["w1a"] = w1[:, :hd].T
    p["w1b"] = w1[:, hd:].T
    p["b1"] = b1.reshape(1, hd)
    p["ln_g"] = ln_g.reshape(1, hd)
    p["ln_b"] = ln_b.reshape(1, hd)
    p["w2"] = w2.T
    p["b2"] = b2.reshape(1, hd)
    return p


# ----------------------------- forward -----------------------------

def short_term_memory_forward(x_nchw, p, memory=None):
    """Mirrors ShortTermMemory.forward. Returns (output[B,C,H,W], new_working_memory)."""
    B, C, H, W = x_nchw.shape
    S, E = H * W, C
    x = x_nchw.astype(jnp.float32)
    x_flat = jnp.transpose(x.reshape(B, C, S), (0, 2, 1))         # [B, S, E] == flatten(2).transpose(1,2)

    # working-memory bookkeeping (module state) — plain JAX, not kernel work
    if memory is None:
        memory = x_flat
    else:
        memory = jnp.concatenate([memory, x_flat], axis=1)
        if memory.shape[1] > MEMORY_CAPACITY:
            memory = memory[:, -MEMORY_CAPACITY:, :]

    ctx = mha_forward(x_flat, memory, p)                          # [B, S, E]
    ctx_tm = jnp.transpose(ctx, (1, 0, 2))                        # [S, B, E] (time-major for GRU)
    tmp_tm = gru_forward(ctx_tm, p)                               # [S, B, E]
    x_tm = jnp.transpose(x_flat, (1, 0, 2))                       # [S, B, E]

    out_rows = mlp_residual_forward(ctx_tm.reshape(S * B, E),
                                    tmp_tm.reshape(S * B, E),
                                    x_tm.reshape(S * B, E), p)    # [S*B, E]
    out = jnp.transpose(out_rows.reshape(S, B, E), (1, 2, 0)).reshape(B, C, H, W)
    return out, memory


# ----------------------------- pure-JAX reference (for a numerical sanity check) -----------------------------

def _reference_forward(x_nchw, p):
    B, C, H, W = x_nchw.shape
    S, E = H * W, C
    nh, dh = NUM_HEADS, C // NUM_HEADS
    x_flat = jnp.transpose(x_nchw.reshape(B, C, S), (0, 2, 1))
    mem = x_flat  # first call: working_memory == x_flat

    def proj(t, w_h, b_h):
        return jnp.einsum("bme,hed->bhmd", t, w_h) + b_h[None]
    q = proj(x_flat, p["wq_h"], p["bq_h"])
    k = proj(mem, p["wk_h"], p["bk_h"])
    v = proj(mem, p["wv_h"], p["bv_h"])
    s = jnp.einsum("bhqd,bhkd->bhqk", q, k) / jnp.sqrt(jnp.float32(dh))
    a = jax.nn.softmax(s, axis=-1)
    o = jnp.einsum("bhqk,bhkd->bhqd", a, v)
    ctx = jnp.einsum("bhqd,hde->bqe", o, p["wo_h"]) + p["bo"]

    def cell(x_t, h, wih, whh, bih, bhh):
        gi = x_t @ wih + bih
        gh = h @ whh + bhh
        r = jax.nn.sigmoid(gi[:, :E] + gh[:, :E])
        z = jax.nn.sigmoid(gi[:, E:2 * E] + gh[:, E:2 * E])
        n = jnp.tanh(gi[:, 2 * E:] + r * gh[:, 2 * E:])
        return (1.0 - z) * n + z * h

    def scan_fn(carry, x_t):
        h0, h1 = carry
        h0 = cell(x_t, h0, p["wih0_t"], p["whh0_t"], p["bih0"], p["bhh0"])
        h1 = cell(h0, h1, p["wih1_t"], p["whh1_t"], p["bih1"], p["bhh1"])
        return (h0, h1), h1

    ctx_tm = jnp.transpose(ctx, (1, 0, 2))
    zeros = jnp.zeros((B, E), jnp.float32)
    _, y_tm = lax.scan(scan_fn, (zeros, zeros), ctx_tm)
    tmp = jnp.transpose(y_tm, (1, 0, 2))

    y = ctx @ p["w1a"] + tmp @ p["w1b"] + p["b1"]
    mean = y.mean(-1, keepdims=True)
    var = ((y - mean) ** 2).mean(-1, keepdims=True)
    yn = (y - mean) / jnp.sqrt(var + LN_EPS) * p["ln_g"] + p["ln_b"]
    ge = 0.5 * yn * (1.0 + jax.scipy.special.erf(yn / jnp.sqrt(2.0)))
    z = ge @ p["w2"] + p["b2"]
    out = z + x_flat
    return jnp.transpose(out, (0, 2, 1)).reshape(B, C, H, W)


# ----------------------------- main -----------------------------

if __name__ == "__main__":
    key = jax.random.PRNGKey(0)
    pkey, xkey = jax.random.split(key)
    params = init_params(pkey)

    # hidden_dim == channel count (attention embed_dim = C); small spatial -> S = 64 tokens
    B, C, H, W = 2, HIDDEN, 8, 8
    x = jax.random.normal(xkey, (B, C, H, W), jnp.float32)

    fwd = jax.jit(lambda xx: short_term_memory_forward(xx, params)[0])
    out = fwd(x)
    jax.block_until_ready(out)

    assert out.shape == (B, C, H, W), out.shape
    assert bool(jnp.all(jnp.isfinite(out)))

    ref = _reference_forward(x, params)
    max_err = float(jnp.max(jnp.abs(out - ref)))
    assert max_err < 1e-3, f"kernel vs reference mismatch: {max_err}"

    print("KERNEL_OK")
</pallas_src>

<mosaic_0001>
module attributes {stable_mosaic.version = 11 : i64} {
  func.func @_gru_kernel(%arg0: i32, %arg1: memref<64x2x32xf32, #tpu.memory_space<vmem>>, %arg2: memref<32x96xf32, #tpu.memory_space<vmem>>, %arg3: memref<32x96xf32, #tpu.memory_space<vmem>>, %arg4: memref<1x96xf32, #tpu.memory_space<vmem>>, %arg5: memref<1x96xf32, #tpu.memory_space<vmem>>, %arg6: memref<32x96xf32, #tpu.memory_space<vmem>>, %arg7: memref<32x96xf32, #tpu.memory_space<vmem>>, %arg8: memref<1x96xf32, #tpu.memory_space<vmem>>, %arg9: memref<1x96xf32, #tpu.memory_space<vmem>>, %arg10: memref<64x2x32xf32, #tpu.memory_space<vmem>>) attributes {dimension_semantics = [#tpu.dimension_semantics<arbitrary>], iteration_bounds = array<i64: 1>, scalar_prefetch = 0 : i64, scratch_operands = 0 : i64, tpu.core_type = #tpu.core_type<tc>, window_params = [{pipeline_mode = #tpu.pipeline_mode<synchronous>, transform_indices = @transform_0, window_bounds = array<i64: 64, 2, 32>}, {pipeline_mode = #tpu.pipeline_mode<synchronous>, transform_indices = @transform_1, window_bounds = array<i64: 32, 96>}, {pipeline_mode = #tpu.pipeline_mode<synchronous>, transform_indices = @transform_2, window_bounds = array<i64: 32, 96>}, {pipeline_mode = #tpu.pipeline_mode<synchronous>, transform_indices = @transform_3, window_bounds = array<i64: 1, 96>}, {pipeline_mode = #tpu.pipeline_mode<synchronous>, transform_indices = @transform_4, window_bounds = array<i64: 1, 96>}, {pipeline_mode = #tpu.pipeline_mode<synchronous>, transform_indices = @transform_5, window_bounds = array<i64: 32, 96>}, {pipeline_mode = #tpu.pipeline_mode<synchronous>, transform_indices = @transform_6, window_bounds = array<i64: 32, 96>}, {pipeline_mode = #tpu.pipeline_mode<synchronous>, transform_indices = @transform_7, window_bounds = array<i64: 1, 96>}, {pipeline_mode = #tpu.pipeline_mode<synchronous>, transform_indices = @transform_8, window_bounds = array<i64: 1, 96>}, {pipeline_mode = #tpu.pipeline_mode<synchronous>, transform_indices = @transform_9, window_bounds = array<i64: 64, 2, 32>}]} {
    %c0 = arith.constant 0 : index
    %c0_0 = arith.constant 0 : index
    %0 = vector.load %arg2[%c0, %c0_0] : memref<32x96xf32, #tpu.memory_space<vmem>>, vector<32x96xf32>
    %c0_1 = arith.constant 0 : index
    %c0_2 = arith.constant 0 : index
    %1 = vector.load %arg3[%c0_1, %c0_2] : memref<32x96xf32, #tpu.memory_space<vmem>>, vector<32x96xf32>
    %c0_3 = arith.constant 0 : index
    %c0_4 = arith.constant 0 : index
    %2 = vector.load %arg4[%c0_3, %c0_4] : memref<1x96xf32, #tpu.memory_space<vmem>>, vector<1x96xf32>
    %c0_5 = arith.constant 0 : index
    %c0_6 = arith.constant 0 : index
    %3 = vector.load %arg5[%c0_5, %c0_6] : memref<1x96xf32, #tpu.memory_space<vmem>>, vector<1x96xf32>
    %c0_7 = arith.constant 0 : index
    %c0_8 = arith.constant 0 : index
    %4 = vector.load %arg6[%c0_7, %c0_8] : memref<32x96xf32, #tpu.memory_space<vmem>>, vector<32x96xf32>
    %c0_9 = arith.constant 0 : index
    %c0_10 = arith.constant 0 : index
    %5 = vector.load %arg7[%c0_9, %c0_10] : memref<32x96xf32, #tpu.memory_space<vmem>>, vector<32x96xf32>
    %c0_11 = arith.constant 0 : index
    %c0_12 = arith.constant 0 : index
    %6 = vector.load %arg8[%c0_11, %c0_12] : memref<1x96xf32, #tpu.memory_space<vmem>>, vector<1x96xf32>
    %c0_13 = arith.constant 0 : index
    %c0_14 = arith.constant 0 : index
    %7 = vector.load %arg9[%c0_13, %c0_14] : memref<1x96xf32, #tpu.memory_space<vmem>>, vector<1x96xf32>
    %cst = arith.constant 0.000000e+00 : f32
    %8 = vector.broadcast %cst : f32 to vector<2x32xf32>
    %c0_i32 = arith.constant 0 : i32
    %c64_i32 = arith.constant 64 : i32
    %9 = arith.addi %c0_i32, %c64_i32 : i32
    %c1_i32 = arith.constant 1 : i32
    %10:2 = scf.for %arg11 = %c0_i32 to %9 step %c1_i32 iter_args(%arg12 = %8, %arg13 = %8) -> (vector<2x32xf32>, vector<2x32xf32>)  : i32 {
      %11 = arith.index_cast %arg11 : i32 to index
      %c0_16 = arith.constant 0 : index
      %c0_17 = arith.constant 0 : index
      %12 = vector.load %arg1[%11, %c0_16, %c0_17] : memref<64x2x32xf32, #tpu.memory_space<vmem>>, vector<1x2x32xf32>
      %13 = vector.shape_cast %12 : vector<1x2x32xf32> to vector<2x32xf32>
      %cst_18 = arith.constant dense<0.000000e+00> : vector<2x96xf32>
      %14 = tpu.matmul %13, %0, %cst_18 {dimension_numbers = #tpu.dot_dimension_numbers<[1], [0], [0], [1], [0, 0, 1, 1], [], []>} : vector<2x32xf32>, vector<32x96xf32>, vector<2x96xf32> -> vector<2x96xf32>
      %15 = vector.broadcast %2 : vector<1x96xf32> to vector<2x96xf32>
      %16 = arith.addf %14, %15 : vector<2x96xf32>
      %cst_19 = arith.constant dense<0.000000e+00> : vector<2x96xf32>
      %17 = tpu.matmul %arg12, %1, %cst_19 {dimension_numbers = #tpu.dot_dimension_numbers<[1], [0], [0], [1], [0, 0, 1, 1], [], []>} : vector<2x32xf32>, vector<32x96xf32>, vector<2x96xf32> -> vector<2x96xf32>
      %18 = vector.broadcast %3 : vector<1x96xf32> to vector<2x96xf32>
      %19 = arith.addf %17, %18 : vector<2x96xf32>
      %20 = vector.extract_strided_slice %16 {offsets = [0, 0], sizes = [2, 32], strides = [1, 1]} : vector<2x96xf32> to vector<2x32xf32>
      %21 = vector.extract_strided_slice %19 {offsets = [0, 0], sizes = [2, 32], strides = [1, 1]} : vector<2x96xf32> to vector<2x32xf32>
      %22 = arith.addf %20, %21 : vector<2x32xf32>
      %cst_20 = arith.constant 0.000000e+00 : f32
      %23 = vector.broadcast %cst_20 : f32 to vector<2x32xf32>
      %24 = arith.subf %23, %22 : vector<2x32xf32>
      %25 = math.exp %24 : vector<2x32xf32>
      %cst_21 = arith.constant 1.000000e+00 : f32
      %26 = vector.broadcast %cst_21 : f32 to vector<2x32xf32>
      %27 = arith.addf %26, %25 : vector<2x32xf32>
      %cst_22 = arith.constant 1.000000e+00 : f32
      %28 = vector.broadcast %cst_22 : f32 to vector<2x32xf32>
      %29 = arith.divf %28, %27 : vector<2x32xf32>
      %30 = vector.extract_strided_slice %16 {offsets = [0, 32], sizes = [2, 32], strides = [1, 1]} : vector<2x96xf32> to vector<2x32xf32>
      %31 = vector.extract_strided_slice %19 {offsets = [0, 32], sizes = [2, 32], strides = [1, 1]} : vector<2x96xf32> to vector<2x32xf32>
      %32 = arith.addf %30, %31 : vector<2x32xf32>
      %cst_23 = arith.constant 0.000000e+00 : f32
      %33 = vector.broadcast %cst_23 : f32 to vector<2x32xf32>
      %34 = arith.subf %33, %32 : vector<2x32xf32>
      %35 = math.exp %34 : vector<2x32xf32>
      %cst_24 = arith.constant 1.000000e+00 : f32
      %36 = vector.broadcast %cst_24 : f32 to vector<2x32xf32>
      %37 = arith.addf %36, %35 : vector<2x32xf32>
      %cst_25 = arith.constant 1.000000e+00 : f32
      %38 = vector.broadcast %cst_25 : f32 to vector<2x32xf32>
      %39 = arith.divf %38, %37 : vector<2x32xf32>
      %40 = vector.extract_strided_slice %16 {offsets = [0, 64], sizes = [2, 32], strides = [1, 1]} : vector<2x96xf32> to vector<2x32xf32>
      %41 = vector.extract_strided_slice %19 {offsets = [0, 64], sizes = [2, 32], strides = [1, 1]} : vector<2x96xf32> to vector<2x32xf32>
      %42 = arith.mulf %29, %41 : vector<2x32xf32>
      %43 = arith.addf %40, %42 : vector<2x32xf32>
      %44 = math.tanh %43 : vector<2x32xf32>
      %cst_26 = arith.constant 1.000000e+00 : f32
      %45 = vector.broadcast %cst_26 : f32 to vector<2x32xf32>
      %46 = arith.subf %45, %39 : vector<2x32xf32>
      %47 = arith.mulf %46, %44 : vector<2x32xf32>
      %48 = arith.mulf %39, %arg12 : vector<2x32xf32>
      %49 = arith.addf %47, %48 : vector<2x32xf32>
      %cst_27 = arith.constant dense<0.000000e+00> : vector<2x96xf32>
      %50 = tpu.matmul %49, %4, %cst_27 {dimension_numbers = #tpu.dot_dimension_numbers<[1], [0], [0], [1], [0, 0, 1, 1], [], []>} : vector<2x32xf32>, vector<32x96xf32>, vector<2x96xf32> -> vector<2x96xf32>
      %51 = vector.broadcast %6 : vector<1x96xf32> to vector<2x96xf32>
      %52 = arith.addf %50, %51 : vector<2x96xf32>
      %cst_28 = arith.constant dense<0.000000e+00> : vector<2x96xf32>
      %53 = tpu.matmul %arg13, %5, %cst_28 {dimension_numbers = #tpu.dot_dimension_numbers<[1], [0], [0], [1], [0, 0, 1, 1], [], []>} : vector<2x32xf32>, vector<32x96xf32>, vector<2x96xf32> -> vector<2x96xf32>
      %54 = vector.broadcast %7 : vector<1x96xf32> to vector<2x96xf32>
      %55 = arith.addf %53, %54 : vector<2x96xf32>
      %56 = vector.extract_strided_slice %52 {offsets = [0, 0], sizes = [2, 32], strides = [1, 1]} : vector<2x96xf32> to vector<2x32xf32>
      %57 = vector.extract_strided_slice %55 {offsets = [0, 0], sizes = [2, 32], strides = [1, 1]} : vector<2x96xf32> to vector<2x32xf32>
      %58 = arith.addf %56, %57 : vector<2x32xf32>
      %cst_29 = arith.constant 0.000000e+00 : f32
      %59 = vector.broadcast %cst_29 : f32 to vector<2x32xf32>
      %60 = arith.subf %59, %58 : vector<2x32xf32>
      %61 = math.exp %60 : vector<2x32xf32>
      %cst_30 = arith.constant 1.000000e+00 : f32
      %62 = vector.broadcast %cst_30 : f32 to vector<2x32xf32>
      %63 = arith.addf %62, %61 : vector<2x32xf32>
      %cst_31 = arith.constant 1.000000e+00 : f32
      %64 = vector.broadcast %cst_31 : f32 to vector<2x32xf32>
      %65 = arith.divf %64, %63 : vector<2x32xf32>
      %66 = vector.extract_strided_slice %52 {offsets = [0, 32], sizes = [2, 32], strides = [1, 1]} : vector<2x96xf32> to vector<2x32xf32>
      %67 = vector.extract_strided_slice %55 {offsets = [0, 32], sizes = [2, 32], strides = [1, 1]} : vector<2x96xf32> to vector<2x32xf32>
      %68 = arith.addf %66, %67 : vector<2x32xf32>
      %cst_32 = arith.constant 0.000000e+00 : f32
      %69 = vector.broadcast %cst_32 : f32 to vector<2x32xf32>
      %70 = arith.subf %69, %68 : vector<2x32xf32>
      %71 = math.exp %70 : vector<2x32xf32>
      %cst_33 = arith.constant 1.000000e+00 : f32
      %72 = vector.broadcast %cst_33 : f32 to vector<2x32xf32>
      %73 = arith.addf %72, %71 : vector<2x32xf32>
      %cst_34 = arith.constant 1.000000e+00 : f32
      %74 = vector.broadcast %cst_34 : f32 to vector<2x32xf32>
      %75 = arith.divf %74, %73 : vector<2x32xf32>
      %76 = vector.extract_strided_slice %52 {offsets = [0, 64], sizes = [2, 32], strides = [1, 1]} : vector<2x96xf32> to vector<2x32xf32>
      %77 = vector.extract_strided_slice %55 {offsets = [0, 64], sizes = [2, 32], strides = [1, 1]} : vector<2x96xf32> to vector<2x32xf32>
      %78 = arith.mulf %65, %77 : vector<2x32xf32>
      %79 = arith.addf %76, %78 : vector<2x32xf32>
      %80 = math.tanh %79 : vector<2x32xf32>
      %cst_35 = arith.constant 1.000000e+00 : f32
      %81 = vector.broadcast %cst_35 : f32 to vector<2x32xf32>
      %82 = arith.subf %81, %75 : vector<2x32xf32>
      %83 = arith.mulf %82, %80 : vector<2x32xf32>
      %84 = arith.mulf %75, %arg13 : vector<2x32xf32>
      %85 = arith.addf %83, %84 : vector<2x32xf32>
      %86 = arith.index_cast %arg11 : i32 to index
      %c0_36 = arith.constant 0 : index
      %c0_37 = arith.constant 0 : index
      %87 = vector.load %arg10[%86, %c0_36, %c0_37] : memref<64x2x32xf32, #tpu.memory_space<vmem>>, vector<1x2x32xf32>
      %88 = vector.shape_cast %87 : vector<1x2x32xf32> to vector<2x32xf32>
      %89 = vector.shape_cast %85 : vector<2x32xf32> to vector<1x2x32xf32>
      tpu.vector_store %arg10[%86, %c0_36, %c0_37], %89 {strides = array<i32>} : memref<64x2x32xf32, #tpu.memory_space<vmem>>, vector<1x2x32xf32>,
      scf.yield %49, %85 : vector<2x32xf32>, vector<2x32xf32>
    }
    %c64_i32_15 = arith.constant 64 : i32
    return
  }
  func.func @transform_0(%arg0: i32) -> (i32, i32, i32) {
    %c0_i32 = arith.constant 0 : i32
    %c0_i32_0 = arith.constant 0 : i32
    %c0_i32_1 = arith.constant 0 : i32
    %c0_i32_2 = arith.constant 0 : i32
    return %c0_i32, %c0_i32_0, %c0_i32_1 : i32, i32, i32
  }
  func.func @transform_1(%arg0: i32) -> (i32, i32) {
    %c0_i32 = arith.constant 0 : i32
    %c0_i32_0 = arith.constant 0 : i32
    %c0_i32_1 = arith.constant 0 : i32
    return %c0_i32, %c0_i32_0 : i32, i32
  }
  func.func @transform_2(%arg0: i32) -> (i32, i32) {
    %c0_i32 = arith.constant 0 : i32
    %c0_i32_0 = arith.constant 0 : i32
    %c0_i32_1 = arith.constant 0 : i32
    return %c0_i32, %c0_i32_0 : i32, i32
  }
  func.func @transform_3(%arg0: i32) -> (i32, i32) {
    %c0_i32 = arith.constant 0 : i32
    %c0_i32_0 = arith.constant 0 : i32
    %c0_i32_1 = arith.constant 0 : i32
    return %c0_i32, %c0_i32_0 : i32, i32
  }
  func.func @transform_4(%arg0: i32) -> (i32, i32) {
    %c0_i32 = arith.constant 0 : i32
    %c0_i32_0 = arith.constant 0 : i32
    %c0_i32_1 = arith.constant 0 : i32
    return %c0_i32, %c0_i32_0 : i32, i32
  }
  func.func @transform_5(%arg0: i32) -> (i32, i32) {
    %c0_i32 = arith.constant 0 : i32
    %c0_i32_0 = arith.constant 0 : i32
    %c0_i32_1 = arith.constant 0 : i32
    return %c0_i32, %c0_i32_0 : i32, i32
  }
  func.func @transform_6(%arg0: i32) -> (i32, i32) {
    %c0_i32 = arith.constant 0 : i32
    %c0_i32_0 = arith.constant 0 : i32
    %c0_i32_1 = arith.constant 0 : i32
    return %c0_i32, %c0_i32_0 : i32, i32
  }
  func.func @transform_7(%arg0: i32) -> (i32, i32) {
    %c0_i32 = arith.constant 0 : i32
    %c0_i32_0 = arith.constant 0 : i32
    %c0_i32_1 = arith.constant 0 : i32
    return %c0_i32, %c0_i32_0 : i32, i32
  }
  func.func @transform_8(%arg0: i32) -> (i32, i32) {
    %c0_i32 = arith.constant 0 : i32
    %c0_i32_0 = arith.constant 0 : i32
    %c0_i32_1 = arith.constant 0 : i32
    return %c0_i32, %c0_i32_0 : i32, i32
  }
  func.func @transform_9(%arg0: i32) -> (i32, i32, i32) {
    %c0_i32 = arith.constant 0 : i32
    %c0_i32_0 = arith.constant 0 : i32
    %c0_i32_1 = arith.constant 0 : i32
    %c0_i32_2 = arith.constant 0 : i32
    return %c0_i32, %c0_i32_0, %c0_i32_1 : i32, i32, i32
  }
}

module attributes {stable_mosaic.version = 11 : i64} {
  func.func @_mha_kernel(%arg0: i32, %arg1: memref<1x64x32xf32, #tpu.memory_space<vmem>>, %arg2: memref<1x64x32xf32, #tpu.memory_space<vmem>>, %arg3: memref<8x32x4xf32, #tpu.memory_space<vmem>>, %arg4: memref<8x32x4xf32, #tpu.memory_space<vmem>>, %arg5: memref<8x32x4xf32, #tpu.memory_space<vmem>>, %arg6: memref<8x1x4xf32, #tpu.memory_space<vmem>>, %arg7: memref<8x1x4xf32, #tpu.memory_space<vmem>>, %arg8: memref<8x1x4xf32, #tpu.memory_space<vmem>>, %arg9: memref<8x4x32xf32, #tpu.memory_space<vmem>>, %arg10: memref<1x32xf32, #tpu.memory_space<vmem>>, %arg11: memref<1x64x32xf32, #tpu.memory_space<vmem>>) attributes {dimension_semantics = [#tpu.dimension_semantics<parallel>], iteration_bounds = array<i64: 2>, scalar_prefetch = 0 : i64, scratch_operands = 0 : i64, tpu.core_type = #tpu.core_type<tc>, window_params = [{transform_indices = @transform_0, window_bounds = array<i64: 1, 64, 32>}, {transform_indices = @transform_1, window_bounds = array<i64: 1, 64, 32>}, {pipeline_mode = #tpu.pipeline_mode<synchronous>, transform_indices = @transform_2, window_bounds = array<i64: 8, 32, 4>}, {pipeline_mode = #tpu.pipeline_mode<synchronous>, transform_indices = @transform_3, window_bounds = array<i64: 8, 32, 4>}, {pipeline_mode = #tpu.pipeline_mode<synchronous>, transform_indices = @transform_4, window_bounds = array<i64: 8, 32, 4>}, {pipeline_mode = #tpu.pipeline_mode<synchronous>, transform_indices = @transform_5, window_bounds = array<i64: 8, 1, 4>}, {pipeline_mode = #tpu.pipeline_mode<synchronous>, transform_indices = @transform_6, window_bounds = array<i64: 8, 1, 4>}, {pipeline_mode = #tpu.pipeline_mode<synchronous>, transform_indices = @transform_7, window_bounds = array<i64: 8, 1, 4>}, {pipeline_mode = #tpu.pipeline_mode<synchronous>, transform_indices = @transform_8, window_bounds = array<i64: 8, 4, 32>}, {pipeline_mode = #tpu.pipeline_mode<synchronous>, transform_indices = @transform_9, window_bounds = array<i64: 1, 32>}, {transform_indices = @transform_10, window_bounds = array<i64: 1, 64, 32>}]} {
    %c0 = arith.constant 0 : index
    %c0_0 = arith.constant 0 : index
    %c0_1 = arith.constant 0 : index
    %0 = vector.load %arg1[%c0, %c0_0, %c0_1] : memref<1x64x32xf32, #tpu.memory_space<vmem>>, vector<1x64x32xf32>
    %1 = vector.shape_cast %0 : vector<1x64x32xf32> to vector<64x32xf32>
    %c0_2 = arith.constant 0 : index
    %c0_3 = arith.constant 0 : index
    %c0_4 = arith.constant 0 : index
    %2 = vector.load %arg2[%c0_2, %c0_3, %c0_4] : memref<1x64x32xf32, #tpu.memory_space<vmem>>, vector<1x64x32xf32>
    %3 = vector.shape_cast %2 : vector<1x64x32xf32> to vector<64x32xf32>
    %cst = arith.constant 0.000000e+00 : f32
    %4 = vector.broadcast %cst : f32 to vector<64x32xf32>
    %c0_5 = arith.constant 0 : index
    %c0_6 = arith.constant 0 : index
    %5 = vector.load %arg10[%c0_5, %c0_6] : memref<1x32xf32, #tpu.memory_space<vmem>>, vector<1x32xf32>
    %6 = vector.broadcast %5 : vector<1x32xf32> to vector<64x32xf32>
    %7 = arith.addf %4, %6 : vector<64x32xf32>
    %c0_7 = arith.constant 0 : index
    %c0_8 = arith.constant 0 : index
    %c0_9 = arith.constant 0 : index
    %8 = vector.load %arg3[%c0_7, %c0_8, %c0_9] : memref<8x32x4xf32, #tpu.memory_space<vmem>>, vector<1x32x4xf32>
    %9 = vector.shape_cast %8 : vector<1x32x4xf32> to vector<32x4xf32>
    %cst_10 = arith.constant dense<0.000000e+00> : vector<64x4xf32>
    %10 = tpu.matmul %1, %9, %cst_10 {dimension_numbers = #tpu.dot_dimension_numbers<[1], [0], [0], [1], [0, 0, 1, 1], [], []>} : vector<64x32xf32>, vector<32x4xf32>, vector<64x4xf32> -> vector<64x4xf32>
    %c0_11 = arith.constant 0 : index
    %c0_12 = arith.constant 0 : index
    %c0_13 = arith.constant 0 : index
    %11 = vector.load %arg6[%c0_11, %c0_12, %c0_13] : memref<8x1x4xf32, #tpu.memory_space<vmem>>, vector<1x1x4xf32>
    %12 = vector.shape_cast %11 : vector<1x1x4xf32> to vector<1x4xf32>
    %13 = vector.broadcast %12 : vector<1x4xf32> to vector<64x4xf32>
    %14 = arith.addf %10, %13 : vector<64x4xf32>
    %c0_14 = arith.constant 0 : index
    %c0_15 = arith.constant 0 : index
    %c0_16 = arith.constant 0 : index
    %15 = vector.load %arg4[%c0_14, %c0_15, %c0_16] : memref<8x32x4xf32, #tpu.memory_space<vmem>>, vector<1x32x4xf32>
    %16 = vector.shape_cast %15 : vector<1x32x4xf32> to vector<32x4xf32>
    %cst_17 = arith.constant dense<0.000000e+00> : vector<64x4xf32>
    %17 = tpu.matmul %3, %16, %cst_17 {dimension_numbers = #tpu.dot_dimension_numbers<[1], [0], [0], [1], [0, 0, 1, 1], [], []>} : vector<64x32xf32>, vector<32x4xf32>, vector<64x4xf32> -> vector<64x4xf32>
    %c0_18 = arith.constant 0 : index
    %c0_19 = arith.constant 0 : index
    %c0_20 = arith.constant 0 : index
    %18 = vector.load %arg7[%c0_18, %c0_19, %c0_20] : memref<8x1x4xf32, #tpu.memory_space<vmem>>, vector<1x1x4xf32>
    %19 = vector.shape_cast %18 : vector<1x1x4xf32> to vector<1x4xf32>
    %20 = vector.broadcast %19 : vector<1x4xf32> to vector<64x4xf32>
    %21 = arith.addf %17, %20 : vector<64x4xf32>
    %c0_21 = arith.constant 0 : index
    %c0_22 = arith.constant 0 : index
    %c0_23 = arith.constant 0 : index
    %22 = vector.load %arg5[%c0_21, %c0_22, %c0_23] : memref<8x32x4xf32, #tpu.memory_space<vmem>>, vector<1x32x4xf32>
    %23 = vector.shape_cast %22 : vector<1x32x4xf32> to vector<32x4xf32>
    %cst_24 = arith.constant dense<0.000000e+00> : vector<64x4xf32>
    %24 = tpu.matmul %3, %23, %cst_24 {dimension_numbers = #tpu.dot_dimension_numbers<[1], [0], [0], [1], [0, 0, 1, 1], [], []>} : vector<64x32xf32>, vector<32x4xf32>, vector<64x4xf32> -> vector<64x4xf32>
    %c0_25 = arith.constant 0 : index
    %c0_26 = arith.constant 0 : index
    %c0_27 = arith.constant 0 : index
    %25 = vector.load %arg8[%c0_25, %c0_26, %c0_27] : memref<8x1x4xf32, #tpu.memory_space<vmem>>, vector<1x1x4xf32>
    %26 = vector.shape_cast %25 : vector<1x1x4xf32> to vector<1x4xf32>
    %27 = vector.broadcast %26 : vector<1x4xf32> to vector<64x4xf32>
    %28 = arith.addf %24, %27 : vector<64x4xf32>
    %cst_28 = arith.constant dense<0.000000e+00> : vector<64x64xf32>
    %29 = tpu.matmul %14, %21, %cst_28 {dimension_numbers = #tpu.dot_dimension_numbers<[1], [1], [0], [0], [0, 0, 1, 0], [], []>} : vector<64x4xf32>, vector<64x4xf32>, vector<64x64xf32> -> vector<64x64xf32>
    %cst_29 = arith.constant 5.000000e-01 : f32
    %30 = vector.broadcast %cst_29 : f32 to vector<64x64xf32>
    %31 = arith.mulf %29, %30 : vector<64x64xf32>
    %cst_30 = arith.constant dense<0xFF800000> : vector<64xf32>
    %32 = vector.multi_reduction <maximumf>, %31, %cst_30 [1] : vector<64x64xf32> to vector<64xf32>
    %33 = vector.shape_cast %32 : vector<64xf32> to vector<64x1xf32>
    %34 = vector.broadcast %33 : vector<64x1xf32> to vector<64x64xf32>
    %35 = arith.subf %31, %34 : vector<64x64xf32>
    %36 = math.exp %35 : vector<64x64xf32>
    %cst_31 = arith.constant dense<0.000000e+00> : vector<64xf32>
    %37 = vector.multi_reduction <add>, %36, %cst_31 [1] : vector<64x64xf32> to vector<64xf32>
    %38 = vector.shape_cast %37 : vector<64xf32> to vector<64x1xf32>
    %39 = vector.broadcast %38 : vector<64x1xf32> to vector<64x64xf32>
    %40 = arith.divf %36, %39 : vector<64x64xf32>
    %cst_32 = arith.constant dense<0.000000e+00> : vector<64x4xf32>
    %41 = tpu.matmul %40, %28, %cst_32 {dimension_numbers = #tpu.dot_dimension_numbers<[1], [0], [0], [1], [0, 0, 1, 1], [], []>} : vector<64x64xf32>, vector<64x4xf32>, vector<64x4xf32> -> vector<64x4xf32>
    %c0_33 = arith.constant 0 : index
    %c0_34 = arith.constant 0 : index
    %c0_35 = arith.constant 0 : index
    %42 = vector.load %arg9[%c0_33, %c0_34, %c0_35] : memref<8x4x32xf32, #tpu.memory_space<vmem>>, vector<1x4x32xf32>
    %43 = vector.shape_cast %42 : vector<1x4x32xf32> to vector<4x32xf32>
    %cst_36 = arith.constant dense<0.000000e+00> : vector<64x32xf32>
    %44 = tpu.matmul %41, %43, %cst_36 {dimension_numbers = #tpu.dot_dimension_numbers<[1], [0], [0], [1], [0, 0, 1, 1], [], []>} : vector<64x4xf32>, vector<4x32xf32>, vector<64x32xf32> -> vector<64x32xf32>
    %45 = arith.addf %7, %44 : vector<64x32xf32>
    %c1 = arith.constant 1 : index
    %c0_37 = arith.constant 0 : index
    %c0_38 = arith.constant 0 : index
    %46 = vector.load %arg3[%c1, %c0_37, %c0_38] : memref<8x32x4xf32, #tpu.memory_space<vmem>>, vector<1x32x4xf32>
    %47 = vector.shape_cast %46 : vector<1x32x4xf32> to vector<32x4xf32>
    %cst_39 = arith.constant dense<0.000000e+00> : vector<64x4xf32>
    %48 = tpu.matmul %1, %47, %cst_39 {dimension_numbers = #tpu.dot_dimension_numbers<[1], [0], [0], [1], [0, 0, 1, 1], [], []>} : vector<64x32xf32>, vector<32x4xf32>, vector<64x4xf32> -> vector<64x4xf32>
    %c1_40 = arith.constant 1 : index
    %c0_41 = arith.constant 0 : index
    %c0_42 = arith.constant 0 : index
    %49 = vector.load %arg6[%c1_40, %c0_41, %c0_42] : memref<8x1x4xf32, #tpu.memory_space<vmem>>, vector<1x1x4xf32>
    %50 = vector.shape_cast %49 : vector<1x1x4xf32> to vector<1x4xf32>
    %51 = vector.broadcast %50 : vector<1x4xf32> to vector<64x4xf32>
    %52 = arith.addf %48, %51 : vector<64x4xf32>
    %c1_43 = arith.constant 1 : index
    %c0_44 = arith.constant 0 : index
    %c0_45 = arith.constant 0 : index
    %53 = vector.load %arg4[%c1_43, %c0_44, %c0_45] : memref<8x32x4xf32, #tpu.memory_space<vmem>>, vector<1x32x4xf32>
    %54 = vector.shape_cast %53 : vector<1x32x4xf32> to vector<32x4xf32>
    %cst_46 = arith.constant dense<0.000000e+00> : vector<64x4xf32>
    %55 = tpu.matmul %3, %54, %cst_46 {dimension_numbers = #tpu.dot_dimension_numbers<[1], [0], [0], [1], [0, 0, 1, 1], [], []>} : vector<64x32xf32>, vector<32x4xf32>, vector<64x4xf32> -> vector<64x4xf32>
    %c1_47 = arith.constant 1 : index
    %c0_48 = arith.constant 0 : index
    %c0_49 = arith.constant 0 : index
    %56 = vector.load %arg7[%c1_47, %c0_48, %c0_49] : memref<8x1x4xf32, #tpu.memory_space<vmem>>, vector<1x1x4xf32>
    %57 = vector.shape_cast %56 : vector<1x1x4xf32> to vector<1x4xf32>
    %58 = vector.broadcast %57 : vector<1x4xf32> to vector<64x4xf32>
    %59 = arith.addf %55, %58 : vector<64x4xf32>
    %c1_50 = arith.constant 1 : index
    %c0_51 = arith.constant 0 : index
    %c0_52 = arith.constant 0 : index
    %60 = vector.load %arg5[%c1_50, %c0_51, %c0_52] : memref<8x32x4xf32, #tpu.memory_space<vmem>>, vector<1x32x4xf32>
    %61 = vector.shape_cast %60 : vector<1x32x4xf32> to vector<32x4xf32>
    %cst_53 = arith.constant dense<0.000000e+00> : vector<64x4xf32>
    %62 = tpu.matmul %3, %61, %cst_53 {dimension_numbers = #tpu.dot_dimension_numbers<[1], [0], [0], [1], [0, 0, 1, 1], [], []>} : vector<64x32xf32>, vector<32x4xf32>, vector<64x4xf32> -> vector<64x4xf32>
    %c1_54 = arith.constant 1 : index
    %c0_55 = arith.constant 0 : index
    %c0_56 = arith.constant 0 : index
    %63 = vector.load %arg8[%c1_54, %c0_55, %c0_56] : memref<8x1x4xf32, #tpu.memory_space<vmem>>, vector<1x1x4xf32>
    %64 = vector.shape_cast %63 : vector<1x1x4xf32> to vector<1x4xf32>
    %65 = vector.broadcast %64 : vector<1x4xf32> to vector<64x4xf32>
    %66 = arith.addf %62, %65 : vector<64x4xf32>
    %cst_57 = arith.constant dense<0.000000e+00> : vector<64x64xf32>
    %67 = tpu.matmul %52, %59, %cst_57 {dimension_numbers = #tpu.dot_dimension_numbers<[1], [1], [0], [0], [0, 0, 1, 0], [], []>} : vector<64x4xf32>, vector<64x4xf32>, vector<64x64xf32> -> vector<64x64xf32>
    %cst_58 = arith.constant 5.000000e-01 : f32
    %68 = vector.broadcast %cst_58 : f32 to vector<64x64xf32>
    %69 = arith.mulf %67, %68 : vector<64x64xf32>
    %cst_59 = arith.constant dense<0xFF800000> : vector<64xf32>
    %70 = vector.multi_reduction <maximumf>, %69, %cst_59 [1] : vector<64x64xf32> to vector<64xf32>
    %71 = vector.shape_cast %70 : vector<64xf32> to vector<64x1xf32>
    %72 = vector.broadcast %71 : vector<64x1xf32> to vector<64x64xf32>
    %73 = arith.subf %69, %72 : vector<64x64xf32>
    %74 = math.exp %73 : vector<64x64xf32>
    %cst_60 = arith.constant dense<0.000000e+00> : vector<64xf32>
    %75 = vector.multi_reduction <add>, %74, %cst_60 [1] : vector<64x64xf32> to vector<64xf32>
    %76 = vector.shape_cast %75 : vector<64xf32> to vector<64x1xf32>
    %77 = vector.broadcast %76 : vector<64x1xf32> to vector<64x64xf32>
    %78 = arith.divf %74, %77 : vector<64x64xf32>
    %cst_61 = arith.constant dense<0.000000e+00> : vector<64x4xf32>
    %79 = tpu.matmul %78, %66, %cst_61 {dimension_numbers = #tpu.dot_dimension_numbers<[1], [0], [0], [1], [0, 0, 1, 1], [], []>} : vector<64x64xf32>, vector<64x4xf32>, vector<64x4xf32> -> vector<64x4xf32>
    %c1_62 = arith.constant 1 : index
    %c0_63 = arith.constant 0 : index
    %c0_64 = arith.constant 0 : index
    %80 = vector.load %arg9[%c1_62, %c0_63, %c0_64] : memref<8x4x32xf32, #tpu.memory_space<vmem>>, vector<1x4x32xf32>
    %81 = vector.shape_cast %80 : vector<1x4x32xf32> to vector<4x32xf32>
    %cst_65 = arith.constant dense<0.000000e+00> : vector<64x32xf32>
    %82 = tpu.matmul %79, %81, %cst_65 {dimension_numbers = #tpu.dot_dimension_numbers<[1], [0], [0], [1], [0, 0, 1, 1], [], []>} : vector<64x4xf32>, vector<4x32xf32>, vector<64x32xf32> -> vector<64x32xf32>
    %83 = arith.addf %45, %82 : vector<64x32xf32>
    %c2 = arith.constant 2 : index
    %c0_66 = arith.constant 0 : index
    %c0_67 = arith.constant 0 : index
    %84 = vector.load %arg3[%c2, %c0_66, %c0_67] : memref<8x32x4xf32, #tpu.memory_space<vmem>>, vector<1x32x4xf32>
    %85 = vector.shape_cast %84 : vector<1x32x4xf32> to vector<32x4xf32>
    %cst_68 = arith.constant dense<0.000000e+00> : vector<64x4xf32>
    %86 = tpu.matmul %1, %85, %cst_68 {dimension_numbers = #tpu.dot_dimension_numbers<[1], [0], [0], [1], [0, 0, 1, 1], [], []>} : vector<64x32xf32>, vector<32x4xf32>, vector<64x4xf32> -> vector<64x4xf32>
    %c2_69 = arith.constant 2 : index
    %c0_70 = arith.constant 0 : index
    %c0_71 = arith.constant 0 : index
    %87 = vector.load %arg6[%c2_69, %c0_70, %c0_71] : memref<8x1x4xf32, #tpu.memory_space<vmem>>, vector<1x1x4xf32>
    %88 = vector.shape_cast %87 : vector<1x1x4xf32> to vector<1x4xf32>
    %89 = vector.broadcast %88 : vector<1x4xf32> to vector<64x4xf32>
    %90 = arith.addf %86, %89 : vector<64x4xf32>
    %c2_72 = arith.constant 2 : index
    %c0_73 = arith.constant 0 : index
    %c0_74 = arith.constant 0 : index
    %91 = vector.load %arg4[%c2_72, %c0_73, %c0_74] : memref<8x32x4xf32, #tpu.memory_space<vmem>>, vector<1x32x4xf32>
    %92 = vector.shape_cast %91 : vector<1x32x4xf32> to vector<32x4xf32>
    %cst_75 = arith.constant dense<0.000000e+00> : vector<64x4xf32>
    %93 = tpu.matmul %3, %92, %cst_75 {dimension_numbers = #tpu.dot_dimension_numbers<[1], [0], [0], [1], [0, 0, 1, 1], [], []>} : vector<64x32xf32>, vector<32x4xf32>, vector<64x4xf32> -> vector<64x4xf32>
    %c2_76 = arith.constant 2 : index
    %c0_77 = arith.constant 0 : index
    %c0_78 = arith.constant 0 : index
    %94 = vector.load %arg7[%c2_76, %c0_77, %c0_78] : memref<8x1x4xf32, #tpu.memory_space<vmem>>, vector<1x1x4xf32>
    %95 = vector.shape_cast %94 : vector<1x1x4xf32> to vector<1x4xf32>
    %96 = vector.broadcast %95 : vector<1x4xf32> to vector<64x4xf32>
    %97 = arith.addf %93, %96 : vector<64x4xf32>
    %c2_79 = arith.constant 2 : index
    %c0_80 = arith.constant 0 : index
    %c0_81 = arith.constant 0 : index
    %98 = vector.load %arg5[%c2_79, %c0_80, %c0_81] : memref<8x32x4xf32, #tpu.memory_space<vmem>>, vector<1x32x4xf32>
    %99 = vector.shape_cast %98 : vector<1x32x4xf32> to vector<32x4xf32>
    %cst_82 = arith.constant dense<0.000000e+00> : vector<64x4xf32>
    %100 = tpu.matmul %3, %99, %cst_82 {dimension_numbers = #tpu.dot_dimension_numbers<[1], [0], [0], [1], [0, 0, 1, 1], [], []>} : vector<64x32xf32>, vector<32x4xf32>, vector<64x4xf32> -> vector<64x4xf32>
    %c2_83 = arith.constant 2 : index
    %c0_84 = arith.constant 0 : index
    %c0_85 = arith.constant 0 : index
    %101 = vector.load %arg8[%c2_83, %c0_84, %c0_85] : memref<8x1x4xf32, #tpu.memory_space<vmem>>, vector<1x1x4xf32>
    %102 = vector.shape_cast %101 : vector<1x1x4xf32> to vector<1x4xf32>
    %103 = vector.broadcast %102 : vector<1x4xf32> to vector<64x4xf32>
    %104 = arith.addf %100, %103 : vector<64x4xf32>
    %cst_86 = arith.constant dense<0.000000e+00> : vector<64x64xf32>
    %105 = tpu.matmul %90, %97, %cst_86 {dimension_numbers = #tpu.dot_dimension_numbers<[1], [1], [0], [0], [0, 0, 1, 0], [], []>} : vector<64x4xf32>, vector<64x4xf32>, vector<64x64xf32> -> vector<64x64xf32>
    %cst_87 = arith.constant 5.000000e-01 : f32
    %106 = vector.broadcast %cst_87 : f32 to vector<64x64xf32>
    %107 = arith.mulf %105, %106 : vector<64x64xf32>
    %cst_88 = arith.constant dense<0xFF800000> : vector<64xf32>
    %108 = vector.multi_reduction <maximumf>, %107, %cst_88 [1] : vector<64x64xf32> to vector<64xf32>
    %109 = vector.shape_cast %108 : vector<64xf32> to vector<64x1xf32>
    %110 = vector.broadcast %109 : vector<64x1xf32> to vector<64x64xf32>
    %111 = arith.subf %107, %110 : vector<64x64xf32>
    %112 = math.exp %111 : vector<64x64xf32>
    %cst_89 = arith.constant dense<0.000000e+00> : vector<64xf32>
    %113 = vector.multi_reduction <add>, %112, %cst_89 [1] : vector<64x64xf32> to vector<64xf32>
    %114 = vector.shape_cast %113 : vector<64xf32> to vector<64x1xf32>
    %115 = vector.broadcast %114 : vector<64x1xf32> to vector<64x64xf32>
    %116 = arith.divf %112, %115 : vector<64x64xf32>
    %cst_90 = arith.constant dense<0.000000e+00> : vector<64x4xf32>
    %117 = tpu.matmul %116, %104, %cst_90 {dimension_numbers = #tpu.dot_dimension_numbers<[1], [0], [0], [1], [0, 0, 1, 1], [], []>} : vector<64x64xf32>, vector<64x4xf32>, vector<64x4xf32> -> vector<64x4xf32>
    %c2_91 = arith.constant 2 : index
    %c0_92 = arith.constant 0 : index
    %c0_93 = arith.constant 0 : index
    %118 = vector.load %arg9[%c2_91, %c0_92, %c0_93] : memref<8x4x32xf32, #tpu.memory_space<vmem>>, vector<1x4x32xf32>
    %119 = vector.shape_cast %118 : vector<1x4x32xf32> to vector<4x32xf32>
    %cst_94 = arith.constant dense<0.000000e+00> : vector<64x32xf32>
    %120 = tpu.matmul %117, %119, %cst_94 {dimension_numbers = #tpu.dot_dimension_numbers<[1], [0], [0], [1], [0, 0, 1, 1], [], []>} : vector<64x4xf32>, vector<4x32xf32>, vector<64x32xf32> -> vector<64x32xf32>
    %121 = arith.addf %83, %120 : vector<64x32xf32>
    %c3 = arith.constant 3 : index
    %c0_95 = arith.constant 0 : index
    %c0_96 = arith.constant 0 : index
    %122 = vector.load %arg3[%c3, %c0_95, %c0_96] : memref<8x32x4xf32, #tpu.memory_space<vmem>>, vector<1x32x4xf32>
    %123 = vector.shape_cast %122 : vector<1x32x4xf32> to vector<32x4xf32>
    %cst_97 = arith.constant dense<0.000000e+00> : vector<64x4xf32>
    %124 = tpu.matmul %1, %123, %cst_97 {dimension_numbers = #tpu.dot_dimension_numbers<[1], [0], [0], [1], [0, 0, 1, 1], [], []>} : vector<64x32xf32>, vector<32x4xf32>, vector<64x4xf32> -> vector<64x4xf32>
    %c3_98 = arith.constant 3 : index
    %c0_99 = arith.constant 0 : index
    %c0_100 = arith.constant 0 : index
    %125 = vector.load %arg6[%c3_98, %c0_99, %c0_100] : memref<8x1x4xf32, #tpu.memory_space<vmem>>, vector<1x1x4xf32>
    %126 = vector.shape_cast %125 : vector<1x1x4xf32> to vector<1x4xf32>
    %127 = vector.broadcast %126 : vector<1x4xf32> to vector<64x4xf32>
    %128 = arith.addf %124, %127 : vector<64x4xf32>
    %c3_101 = arith.constant 3 : index
    %c0_102 = arith.constant 0 : index
    %c0_103 = arith.constant 0 : index
    %129 = vector.load %arg4[%c3_101, %c0_102, %c0_103] : memref<8x32x4xf32, #tpu.memory_space<vmem>>, vector<1x32x4xf32>
    %130 = vector.shape_cast %129 : vector<1x32x4xf32> to vector<32x4xf32>
    %cst_104 = arith.constant dense<0.000000e+00> : vector<64x4xf32>
    %131 = tpu.matmul %3, %130, %cst_104 {dimension_numbers = #tpu.dot_dimension_numbers<[1], [0], [0], [1], [0, 0, 1, 1], [], []>} : vector<64x32xf32>, vector<32x4xf32>, vector<64x4xf32> -> vector<64x4xf32>
    %c3_105 = arith.constant 3 : index
    %c0_106 = arith.constant 0 : index
    %c0_107 = arith.constant 0 : index
    %132 = vector.load %arg7[%c3_105, %c0_106, %c0_107] : memref<8x1x4xf32, #tpu.memory_space<vmem>>, vector<1x1x4xf32>
    %133 = vector.shape_cast %132 : vector<1x1x4xf32> to vector<1x4xf32>
    %134 = vector.broadcast %133 : vector<1x4xf32> to vector<64x4xf32>
    %135 = arith.addf %131, %134 : vector<64x4xf32>
    %c3_108 = arith.constant 3 : index
    %c0_109 = arith.constant 0 : index
    %c0_110 = arith.constant 0 : index
    %136 = vector.load %arg5[%c3_108, %c0_109, %c0_110] : memref<8x32x4xf32, #tpu.memory_space<vmem>>, vector<1x32x4xf32>
    %137 = vector.shape_cast %136 : vector<1x32x4xf32> to vector<32x4xf32>
    %cst_111 = arith.constant dense<0.000000e+00> : vector<64x4xf32>
    %138 = tpu.matmul %3, %137, %cst_111 {dimension_numbers = #tpu.dot_dimension_numbers<[1], [0], [0], [1], [0, 0, 1, 1], [], []>} : vector<64x32xf32>, vector<32x4xf32>, vector<64x4xf32> -> vector<64x4xf32>
    %c3_112 = arith.constant 3 : index
    %c0_113 = arith.constant 0 : index
    %c0_114 = arith.constant 0 : index
    %139 = vector.load %arg8[%c3_112, %c0_113, %c0_114] : memref<8x1x4xf32, #tpu.memory_space<vmem>>, vector<1x1x4xf32>
    %140 = vector.shape_cast %139 : vector<1x1x4xf32> to vector<1x4xf32>
    %141 = vector.broadcast %140 : vector<1x4xf32> to vector<64x4xf32>
    %142 = arith.addf %138, %141 : vector<64x4xf32>
    %cst_115 = arith.constant dense<0.000000e+00> : vector<64x64xf32>
    %143 = tpu.matmul %128, %135, %cst_115 {dimension_numbers = #tpu.dot_dimension_numbers<[1], [1], [0], [0], [0, 0, 1, 0], [], []>} : vector<64x4xf32>, vector<64x4xf32>, vector<64x64xf32> -> vector<64x64xf32>
    %cst_116 = arith.constant 5.000000e-01 : f32
    %144 = vector.broadcast %cst_116 : f32 to vector<64x64xf32>
    %145 = arith.mulf %143, %144 : vector<64x64xf32>
    %cst_117 = arith.constant dense<0xFF800000> : vector<64xf32>
    %146 = vector.multi_reduction <maximumf>, %145, %cst_117 [1] : vector<64x64xf32> to vector<64xf32>
    %147 = vector.shape_cast %146 : vector<64xf32> to vector<64x1xf32>
    %148 = vector.broadcast %147 : vector<64x1xf32> to vector<64x64xf32>
    %149 = arith.subf %145, %148 : vector<64x64xf32>
    %150 = math.exp %149 : vector<64x64xf32>
    %cst_118 = arith.constant dense<0.000000e+00> : vector<64xf32>
    %151 = vector.multi_reduction <add>, %150, %cst_118 [1] : vector<64x64xf32> to vector<64xf32>
    %152 = vector.shape_cast %151 : vector<64xf32> to vector<64x1xf32>
    %153 = vector.broadcast %152 : vector<64x1xf32> to vector<64x64xf32>
    %154 = arith.divf %150, %153 : vector<64x64xf32>
    %cst_119 = arith.constant dense<0.000000e+00> : vector<64x4xf32>
    %155 = tpu.matmul %154, %142, %cst_119 {dimension_numbers = #tpu.dot_dimension_numbers<[1], [0], [0], [1], [0, 0, 1, 1], [], []>} : vector<64x64xf32>, vector<64x4xf32>, vector<64x4xf32> -> vector<64x4xf32>
    %c3_120 = arith.constant 3 : index
    %c0_121 = arith.constant 0 : index
    %c0_122 = arith.constant 0 : index
    %156 = vector.load %arg9[%c3_120, %c0_121, %c0_122] : memref<8x4x32xf32, #tpu.memory_space<vmem>>, vector<1x4x32xf32>
    %157 = vector.shape_cast %156 : vector<1x4x32xf32> to vector<4x32xf32>
    %cst_123 = arith.constant dense<0.000000e+00> : vector<64x32xf32>
    %158 = tpu.matmul %155, %157, %cst_123 {dimension_numbers = #tpu.dot_dimension_numbers<[1], [0], [0], [1], [0, 0, 1, 1], [], []>} : vector<64x4xf32>, vector<4x32xf32>, vector<64x32xf32> -> vector<64x32xf32>
    %159 = arith.addf %121, %158 : vector<64x32xf32>
    %c4 = arith.constant 4 : index
    %c0_124 = arith.constant 0 : index
    %c0_125 = arith.constant 0 : index
    %160 = vector.load %arg3[%c4, %c0_124, %c0_125] : memref<8x32x4xf32, #tpu.memory_space<vmem>>, vector<1x32x4xf32>
    %161 = vector.shape_cast %160 : vector<1x32x4xf32> to vector<32x4xf32>
    %cst_126 = arith.constant dense<0.000000e+00> : vector<64x4xf32>
    %162 = tpu.matmul %1, %161, %cst_126 {dimension_numbers = #tpu.dot_dimension_numbers<[1], [0], [0], [1], [0, 0, 1, 1], [], []>} : vector<64x32xf32>, vector<32x4xf32>, vector<64x4xf32> -> vector<64x4xf32>
    %c4_127 = arith.constant 4 : index
    %c0_128 = arith.constant 0 : index
    %c0_129 = arith.constant 0 : index
    %163 = vector.load %arg6[%c4_127, %c0_128, %c0_129] : memref<8x1x4xf32, #tpu.memory_space<vmem>>, vector<1x1x4xf32>
    %164 = vector.shape_cast %163 : vector<1x1x4xf32> to vector<1x4xf32>
    %165 = vector.broadcast %164 : vector<1x4xf32> to vector<64x4xf32>
    %166 = arith.addf %162, %165 : vector<64x4xf32>
    %c4_130 = arith.constant 4 : index
    %c0_131 = arith.constant 0 : index
    %c0_132 = arith.constant 0 : index
    %167 = vector.load %arg4[%c4_130, %c0_131, %c0_132] : memref<8x32x4xf32, #tpu.memory_space<vmem>>, vector<1x32x4xf32>
    %168 = vector.shape_cast %167 : vector<1x32x4xf32> to vector<32x4xf32>
    %cst_133 = arith.constant dense<0.000000e+00> : vector<64x4xf32>
    %169 = tpu.matmul %3, %168, %cst_133 {dimension_numbers = #tpu.dot_dimension_numbers<[1], [0], [0], [1], [0, 0, 1, 1], [], []>} : vector<64x32xf32>, vector<32x4xf32>, vector<64x4xf32> -> vector<64x4xf32>
    %c4_134 = arith.constant 4 : index
    %c0_135 = arith.constant 0 : index
    %c0_136 = arith.constant 0 : index
    %170 = vector.load %arg7[%c4_134, %c0_135, %c0_136] : memref<8x1x4xf32, #tpu.memory_space<vmem>>, vector<1x1x4xf32>
    %171 = vector.shape_cast %170 : vector<1x1x4xf32> to vector<1x4xf32>
    %172 = vector.broadcast %171 : vector<1x4xf32> to vector<64x4xf32>
    %173 = arith.addf %169, %172 : vector<64x4xf32>
    %c4_137 = arith.constant 4 : index
    %c0_138 = arith.constant 0 : index
    %c0_139 = arith.constant 0 : index
    %174 = vector.load %arg5[%c4_137, %c0_138, %c0_139] : memref<8x32x4xf32, #tpu.memory_space<vmem>>, vector<1x32x4xf32>
    %175 = vector.shape_cast %174 : vector<1x32x4xf32> to vector<32x4xf32>
    %cst_140 = arith.constant dense<0.000000e+00> : vector<64x4xf32>
    %176 = tpu.matmul %3, %175, %cst_140 {dimension_numbers = #tpu.dot_dimension_numbers<[1], [0], [0], [1], [0, 0, 1, 1], [], []>} : vector<64x32xf32>, vector<32x4xf32>, vector<64x4xf32> -> vector<64x4xf32>
    %c4_141 = arith.constant 4 : index
    %c0_142 = arith.constant 0 : index
    %c0_143 = arith.constant 0 : index
    %177 = vector.load %arg8[%c4_141, %c0_142, %c0_143] : memref<8x1x4xf32, #tpu.memory_space<vmem>>, vector<1x1x4xf32>
    %178 = vector.shape_cast %177 : vector<1x1x4xf32> to vector<1x4xf32>
    %179 = vector.broadcast %178 : vector<1x4xf32> to vector<64x4xf32>
    %180 = arith.addf %176, %179 : vector<64x4xf32>
    %cst_144 = arith.constant dense<0.000000e+00> : vector<64x64xf32>
    %181 = tpu.matmul %166, %173, %cst_144 {dimension_numbers = #tpu.dot_dimension_numbers<[1], [1], [0], [0], [0, 0, 1, 0], [], []>} : vector<64x4xf32>, vector<64x4xf32>, vector<64x64xf32> -> vector<64x64xf32>
    %cst_145 = arith.constant 5.000000e-01 : f32
    %182 = vector.broadcast %cst_145 : f32 to vector<64x64xf32>
    %183 = arith.mulf %181, %182 : vector<64x64xf32>
    %cst_146 = arith.constant dense<0xFF800000> : vector<64xf32>
    %184 = vector.multi_reduction <maximumf>, %183, %cst_146 [1] : vector<64x64xf32> to vector<64xf32>
    %185 = vector.shape_cast %184 : vector<64xf32> to vector<64x1xf32>
    %186 = vector.broadcast %185 : vector<64x1xf32> to vector<64x64xf32>
    %187 = arith.subf %183, %186 : vector<64x64xf32>
    %188 = math.exp %187 : vector<64x64xf32>
    %cst_147 = arith.constant dense<0.000000e+00> : vector<64xf32>
    %189 = vector.multi_reduction <add>, %188, %cst_147 [1] : vector<64x64xf32> to vector<64xf32>
    %190 = vector.shape_cast %189 : vector<64xf32> to vector<64x1xf32>
    %191 = vector.broadcast %190 : vector<64x1xf32> to vector<64x64xf32>
    %192 = arith.divf %188, %191 : vector<64x64xf32>
    %cst_148 = arith.constant dense<0.000000e+00> : vector<64x4xf32>
    %193 = tpu.matmul %192, %180, %cst_148 {dimension_numbers = #tpu.dot_dimension_numbers<[1], [0], [0], [1], [0, 0, 1, 1], [], []>} : vector<64x64xf32>, vector<64x4xf32>, vector<64x4xf32> -> vector<64x4xf32>
    %c4_149 = arith.constant 4 : index
    %c0_150 = arith.constant 0 : index
    %c0_151 = arith.constant 0 : index
    %194 = vector.load %arg9[%c4_149, %c0_150, %c0_151] : memref<8x4x32xf32, #tpu.memory_space<vmem>>, vector<1x4x32xf32>
    %195 = vector.shape_cast %194 : vector<1x4x32xf32> to vector<4x32xf32>
    %cst_152 = arith.constant dense<0.000000e+00> : vector<64x32xf32>
    %196 = tpu.matmul %193, %195, %cst_152 {dimension_numbers = #tpu.dot_dimension_numbers<[1], [0], [0], [1], [0, 0, 1, 1], [], []>} : vector<64x4xf32>, vector<4x32xf32>, vector<64x32xf32> -> vector<64x32xf32>
    %197 = arith.addf %159, %196 : vector<64x32xf32>
    %c5 = arith.constant 5 : index
    %c0_153 = arith.constant 0 : index
    %c0_154 = arith.constant 0 : index
    %198 = vector.load %arg3[%c5, %c0_153, %c0_154] : memref<8x32x4xf32, #tpu.memory_space<vmem>>, vector<1x32x4xf32>
    %199 = vector.shape_cast %198 : vector<1x32x4xf32> to vector<32x4xf32>
    %cst_155 = arith.constant dense<0.000000e+00> : vector<64x4xf32>
    %200 = tpu.matmul %1, %199, %cst_155 {dimension_numbers = #tpu.dot_dimension_numbers<[1], [0], [0], [1], [0, 0, 1, 1], [], []>} : vector<64x32xf32>, vector<32x4xf32>, vector<64x4xf32> -> vector<64x4xf32>
    %c5_156 = arith.constant 5 : index
    %c0_157 = arith.constant 0 : index
    %c0_158 = arith.constant 0 : index
    %201 = vector.load %arg6[%c5_156, %c0_157, %c0_158] : memref<8x1x4xf32, #tpu.memory_space<vmem>>, vector<1x1x4xf32>
    %202 = vector.shape_cast %201 : vector<1x1x4xf32> to vector<1x4xf32>
    %203 = vector.broadcast %202 : vector<1x4xf32> to vector<64x4xf32>
    %204 = arith.addf %200, %203 : vector<64x4xf32>
    %c5_159 = arith.constant 5 : index
    %c0_160 = arith.constant 0 : index
    %c0_161 = arith.constant 0 : index
    %205 = vector.load %arg4[%c5_159, %c0_160, %c0_161] : memref<8x32x4xf32, #tpu.memory_space<vmem>>, vector<1x32x4xf32>
    %206 = vector.shape_cast %205 : vector<1x32x4xf32> to vector<32x4xf32>
    %cst_162 = arith.constant dense<0.000000e+00> : vector<64x4xf32>
    %207 = tpu.matmul %3, %206, %cst_162 {dimension_numbers = #tpu.dot_dimension_numbers<[1], [0], [0], [1], [0, 0, 1, 1], [], []>} : vector<64x32xf32>, vector<32x4xf32>, vector<64x4xf32> -> vector<64x4xf32>
    %c5_163 = arith.constant 5 : index
    %c0_164 = arith.constant 0 : index
    %c0_165 = arith.constant 0 : index
    %208 = vector.load %arg7[%c5_163, %c0_164, %c0_165] : memref<8x1x4xf32, #tpu.memory_space<vmem>>, vector<1x1x4xf32>
    %209 = vector.shape_cast %208 : vector<1x1x4xf32> to vector<1x4xf32>
    %210 = vector.broadcast %209 : vector<1x4xf32> to vector<64x4xf32>
    %211 = arith.addf %207, %210 : vector<64x4xf32>
    %c5_166 = arith.constant 5 : index
    %c0_167 = arith.constant 0 : index
    %c0_168 = arith.constant 0 : index
    %212 = vector.load %arg5[%c5_166, %c0_167, %c0_168] : memref<8x32x4xf32, #tpu.memory_space<vmem>>, vector<1x32x4xf32>
    %213 = vector.shape_cast %212 : vector<1x32x4xf32> to vector<32x4xf32>
    %cst_169 = arith.constant dense<0.000000e+00> : vector<64x4xf32>
    %214 = tpu.matmul %3, %213, %cst_169 {dimension_numbers = #tpu.dot_dimension_numbers<[1], [0], [0], [1], [0, 0, 1, 1], [], []>} : vector<64x32xf32>, vector<32x4xf32>, vector<64x4xf32> -> vector<64x4xf32>
    %c5_170 = arith.constant 5 : index
    %c0_171 = arith.constant 0 : index
    %c0_172 = arith.constant 0 : index
    %215 = vector.load %arg8[%c5_170, %c0_171, %c0_172] : memref<8x1x4xf32, #tpu.memory_space<vmem>>, vector<1x1x4xf32>
    %216 = vector.shape_cast %215 : vector<1x1x4xf32> to vector<1x4xf32>
    %217 = vector.broadcast %216 : vector<1x4xf32> to vector<64x4xf32>
    %218 = arith.addf %214, %217 : vector<64x4xf32>
    %cst_173 = arith.constant dense<0.000000e+00> : vector<64x64xf32>
    %219 = tpu.matmul %204, %211, %cst_173 {dimension_numbers = #tpu.dot_dimension_numbers<[1], [1], [0], [0], [0, 0, 1, 0], [], []>} : vector<64x4xf32>, vector<64x4xf32>, vector<64x64xf32> -> vector<64x64xf32>
    %cst_174 = arith.constant 5.000000e-01 : f32
    %220 = vector.broadcast %cst_174 : f32 to vector<64x64xf32>
    %221 = arith.mulf %219, %220 : vector<64x64xf32>
    %cst_175 = arith.constant dense<0xFF800000> : vector<64xf32>
    %222 = vector.multi_reduction <maximumf>, %221, %cst_175 [1] : vector<64x64xf32> to vector<64xf32>
    %223 = vector.shape_cast %222 : vector<64xf32> to vector<64x1xf32>
    %224 = vector.broadcast %223 : vector<64x1xf32> to vector<64x64xf32>
    %225 = arith.subf %221, %224 : vector<64x64xf32>
    %226 = math.exp %225 : vector<64x64xf32>
    %cst_176 = arith.constant dense<0.000000e+00> : vector<64xf32>
    %227 = vector.multi_reduction <add>, %226, %cst_176 [1] : vector<64x64xf32> to vector<64xf32>
    %228 = vector.shape_cast %227 : vector<64xf32> to vector<64x1xf32>
    %229 = vector.broadcast %228 : vector<64x1xf32> to vector<64x64xf32>
    %230 = arith.divf %226, %229 : vector<64x64xf32>
    %cst_177 = arith.constant dense<0.000000e+00> : vector<64x4xf32>
    %231 = tpu.matmul %230, %218, %cst_177 {dimension_numbers = #tpu.dot_dimension_numbers<[1], [0], [0], [1], [0, 0, 1, 1], [], []>} : vector<64x64xf32>, vector<64x4xf32>, vector<64x4xf32> -> vector<64x4xf32>
    %c5_178 = arith.constant 5 : index
    %c0_179 = arith.constant 0 : index
    %c0_180 = arith.constant 0 : index
    %232 = vector.load %arg9[%c5_178, %c0_179, %c0_180] : memref<8x4x32xf32, #tpu.memory_space<vmem>>, vector<1x4x32xf32>
    %233 = vector.shape_cast %232 : vector<1x4x32xf32> to vector<4x32xf32>
    %cst_181 = arith.constant dense<0.000000e+00> : vector<64x32xf32>
    %234 = tpu.matmul %231, %233, %cst_181 {dimension_numbers = #tpu.dot_dimension_numbers<[1], [0], [0], [1], [0, 0, 1, 1], [], []>} : vector<64x4xf32>, vector<4x32xf32>, vector<64x32xf32> -> vector<64x32xf32>
    %235 = arith.addf %197, %234 : vector<64x32xf32>
    %c6 = arith.constant 6 : index
    %c0_182 = arith.constant 0 : index
    %c0_183 = arith.constant 0 : index
    %236 = vector.load %arg3[%c6, %c0_182, %c0_183] : memref<8x32x4xf32, #tpu.memory_space<vmem>>, vector<1x32x4xf32>
    %237 = vector.shape_cast %236 : vector<1x32x4xf32> to vector<32x4xf32>
    %cst_184 = arith.constant dense<0.000000e+00> : vector<64x4xf32>
    %238 = tpu.matmul %1, %237, %cst_184 {dimension_numbers = #tpu.dot_dimension_numbers<[1], [0], [0], [1], [0, 0, 1, 1], [], []>} : vector<64x32xf32>, vector<32x4xf32>, vector<64x4xf32> -> vector<64x4xf32>
    %c6_185 = arith.constant 6 : index
    %c0_186 = arith.constant 0 : index
    %c0_187 = arith.constant 0 : index
    %239 = vector.load %arg6[%c6_185, %c0_186, %c0_187] : memref<8x1x4xf32, #tpu.memory_space<vmem>>, vector<1x1x4xf32>
    %240 = vector.shape_cast %239 : vector<1x1x4xf32> to vector<1x4xf32>
    %241 = vector.broadcast %240 : vector<1x4xf32> to vector<64x4xf32>
    %242 = arith.addf %238, %241 : vector<64x4xf32>
    %c6_188 = arith.constant 6 : index
    %c0_189 = arith.constant 0 : index
    %c0_190 = arith.constant 0 : index
    %243 = vector.load %arg4[%c6_188, %c0_189, %c0_190] : memref<8x32x4xf32, #tpu.memory_space<vmem>>, vector<1x32x4xf32>
    %244 = vector.shape_cast %243 : vector<1x32x4xf32> to vector<32x4xf32>
    %cst_191 = arith.constant dense<0.000000e+00> : vector<64x4xf32>
    %245 = tpu.matmul %3, %244, %cst_191 {dimension_numbers = #tpu.dot_dimension_numbers<[1], [0], [0], [1], [0, 0, 1, 1], [], []>} : vector<64x32xf32>, vector<32x4xf32>, vector<64x4xf32> -> vector<64x4xf32>
    %c6_192 = arith.constant 6 : index
    %c0_193 = arith.constant 0 : index
    %c0_194 = arith.constant 0 : index
    %246 = vector.load %arg7[%c6_192, %c0_193, %c0_194] : memref<8x1x4xf32, #tpu.memory_space<vmem>>, vector<1x1x4xf32>
    %247 = vector.shape_cast %246 : vector<1x1x4xf32> to vector<1x4xf32>
    %248 = vector.broadcast %247 : vector<1x4xf32> to vector<64x4xf32>
    %249 = arith.addf %245, %248 : vector<64x4xf32>
    %c6_195 = arith.constant 6 : index
    %c0_196 = arith.constant 0 : index
    %c0_197 = arith.constant 0 : index
    %250 = vector.load %arg5[%c6_195, %c0_196, %c0_197] : memref<8x32x4xf32, #tpu.memory_space<vmem>>, vector<1x32x4xf32>
    %251 = vector.shape_cast %250 : vector<1x32x4xf32> to vector<32x4xf32>
    %cst_198 = arith.constant dense<0.000000e+00> : vector<64x4xf32>
    %252 = tpu.matmul %3, %251, %cst_198 {dimension_numbers = #tpu.dot_dimension_numbers<[1], [0], [0], [1], [0, 0, 1, 1], [], []>} : vector<64x32xf32>, vector<32x4xf32>, vector<64x4xf32> -> vector<64x4xf32>
    %c6_199 = arith.constant 6 : index
    %c0_200 = arith.constant 0 : index
    %c0_201 = arith.constant 0 : index
    %253 = vector.load %arg8[%c6_199, %c0_200, %c0_201] : memref<8x1x4xf32, #tpu.memory_space<vmem>>, vector<1x1x4xf32>
    %254 = vector.shape_cast %253 : vector<1x1x4xf32> to vector<1x4xf32>
    %255 = vector.broadcast %254 : vector<1x4xf32> to vector<64x4xf32>
    %256 = arith.addf %252, %255 : vector<64x4xf32>
    %cst_202 = arith.constant dense<0.000000e+00> : vector<64x64xf32>
    %257 = tpu.matmul %242, %249, %cst_202 {dimension_numbers = #tpu.dot_dimension_numbers<[1], [1], [0], [0], [0, 0, 1, 0], [], []>} : vector<64x4xf32>, vector<64x4xf32>, vector<64x64xf32> -> vector<64x64xf32>
    %cst_203 = arith.constant 5.000000e-01 : f32
    %258 = vector.broadcast %cst_203 : f32 to vector<64x64xf32>
    %259 = arith.mulf %257, %258 : vector<64x64xf32>
    %cst_204 = arith.constant dense<0xFF800000> : vector<64xf32>
    %260 = vector.multi_reduction <maximumf>, %259, %cst_204 [1] : vector<64x64xf32> to vector<64xf32>
    %261 = vector.shape_cast %260 : vector<64xf32> to vector<64x1xf32>
    %262 = vector.broadcast %261 : vector<64x1xf32> to vector<64x64xf32>
    %263 = arith.subf %259, %262 : vector<64x64xf32>
    %264 = math.exp %263 : vector<64x64xf32>
    %cst_205 = arith.constant dense<0.000000e+00> : vector<64xf32>
    %265 = vector.multi_reduction <add>, %264, %cst_205 [1] : vector<64x64xf32> to vector<64xf32>
    %266 = vector.shape_cast %265 : vector<64xf32> to vector<64x1xf32>
    %267 = vector.broadcast %266 : vector<64x1xf32> to vector<64x64xf32>
    %268 = arith.divf %264, %267 : vector<64x64xf32>
    %cst_206 = arith.constant dense<0.000000e+00> : vector<64x4xf32>
    %269 = tpu.matmul %268, %256, %cst_206 {dimension_numbers = #tpu.dot_dimension_numbers<[1], [0], [0], [1], [0, 0, 1, 1], [], []>} : vector<64x64xf32>, vector<64x4xf32>, vector<64x4xf32> -> vector<64x4xf32>
    %c6_207 = arith.constant 6 : index
    %c0_208 = arith.constant 0 : index
    %c0_209 = arith.constant 0 : index
    %270 = vector.load %arg9[%c6_207, %c0_208, %c0_209] : memref<8x4x32xf32, #tpu.memory_space<vmem>>, vector<1x4x32xf32>
    %271 = vector.shape_cast %270 : vector<1x4x32xf32> to vector<4x32xf32>
    %cst_210 = arith.constant dense<0.000000e+00> : vector<64x32xf32>
    %272 = tpu.matmul %269, %271, %cst_210 {dimension_numbers = #tpu.dot_dimension_numbers<[1], [0], [0], [1], [0, 0, 1, 1], [], []>} : vector<64x4xf32>, vector<4x32xf32>, vector<64x32xf32> -> vector<64x32xf32>
    %273 = arith.addf %235, %272 : vector<64x32xf32>
    %c7 = arith.constant 7 : index
    %c0_211 = arith.constant 0 : index
    %c0_212 = arith.constant 0 : index
    %274 = vector.load %arg3[%c7, %c0_211, %c0_212] : memref<8x32x4xf32, #tpu.memory_space<vmem>>, vector<1x32x4xf32>
    %275 = vector.shape_cast %274 : vector<1x32x4xf32> to vector<32x4xf32>
    %cst_213 = arith.constant dense<0.000000e+00> : vector<64x4xf32>
    %276 = tpu.matmul %1, %275, %cst_213 {dimension_numbers = #tpu.dot_dimension_numbers<[1], [0], [0], [1], [0, 0, 1, 1], [], []>} : vector<64x32xf32>, vector<32x4xf32>, vector<64x4xf32> -> vector<64x4xf32>
    %c7_214 = arith.constant 7 : index
    %c0_215 = arith.constant 0 : index
    %c0_216 = arith.constant 0 : index
    %277 = vector.load %arg6[%c7_214, %c0_215, %c0_216] : memref<8x1x4xf32, #tpu.memory_space<vmem>>, vector<1x1x4xf32>
    %278 = vector.shape_cast %277 : vector<1x1x4xf32> to vector<1x4xf32>
    %279 = vector.broadcast %278 : vector<1x4xf32> to vector<64x4xf32>
    %280 = arith.addf %276, %279 : vector<64x4xf32>
    %c7_217 = arith.constant 7 : index
    %c0_218 = arith.constant 0 : index
    %c0_219 = arith.constant 0 : index
    %281 = vector.load %arg4[%c7_217, %c0_218, %c0_219] : memref<8x32x4xf32, #tpu.memory_space<vmem>>, vector<1x32x4xf32>
    %282 = vector.shape_cast %281 : vector<1x32x4xf32> to vector<32x4xf32>
    %cst_220 = arith.constant dense<0.000000e+00> : vector<64x4xf32>
    %283 = tpu.matmul %3, %282, %cst_220 {dimension_numbers = #tpu.dot_dimension_numbers<[1], [0], [0], [1], [0, 0, 1, 1], [], []>} : vector<64x32xf32>, vector<32x4xf32>, vector<64x4xf32> -> vector<64x4xf32>
    %c7_221 = arith.constant 7 : index
    %c0_222 = arith.constant 0 : index
    %c0_223 = arith.constant 0 : index
    %284 = vector.load %arg7[%c7_221, %c0_222, %c0_223] : memref<8x1x4xf32, #tpu.memory_space<vmem>>, vector<1x1x4xf32>
    %285 = vector.shape_cast %284 : vector<1x1x4xf32> to vector<1x4xf32>
    %286 = vector.broadcast %285 : vector<1x4xf32> to vector<64x4xf32>
    %287 = arith.addf %283, %286 : vector<64x4xf32>
    %c7_224 = arith.constant 7 : index
    %c0_225 = arith.constant 0 : index
    %c0_226 = arith.constant 0 : index
    %288 = vector.load %arg5[%c7_224, %c0_225, %c0_226] : memref<8x32x4xf32, #tpu.memory_space<vmem>>, vector<1x32x4xf32>
    %289 = vector.shape_cast %288 : vector<1x32x4xf32> to vector<32x4xf32>
    %cst_227 = arith.constant dense<0.000000e+00> : vector<64x4xf32>
    %290 = tpu.matmul %3, %289, %cst_227 {dimension_numbers = #tpu.dot_dimension_numbers<[1], [0], [0], [1], [0, 0, 1, 1], [], []>} : vector<64x32xf32>, vector<32x4xf32>, vector<64x4xf32> -> vector<64x4xf32>
    %c7_228 = arith.constant 7 : index
    %c0_229 = arith.constant 0 : index
    %c0_230 = arith.constant 0 : index
    %291 = vector.load %arg8[%c7_228, %c0_229, %c0_230] : memref<8x1x4xf32, #tpu.memory_space<vmem>>, vector<1x1x4xf32>
    %292 = vector.shape_cast %291 : vector<1x1x4xf32> to vector<1x4xf32>
    %293 = vector.broadcast %292 : vector<1x4xf32> to vector<64x4xf32>
    %294 = arith.addf %290, %293 : vector<64x4xf32>
    %cst_231 = arith.constant dense<0.000000e+00> : vector<64x64xf32>
    %295 = tpu.matmul %280, %287, %cst_231 {dimension_numbers = #tpu.dot_dimension_numbers<[1], [1], [0], [0], [0, 0, 1, 0], [], []>} : vector<64x4xf32>, vector<64x4xf32>, vector<64x64xf32> -> vector<64x64xf32>
    %cst_232 = arith.constant 5.000000e-01 : f32
    %296 = vector.broadcast %cst_232 : f32 to vector<64x64xf32>
    %297 = arith.mulf %295, %296 : vector<64x64xf32>
    %cst_233 = arith.constant dense<0xFF800000> : vector<64xf32>
    %298 = vector.multi_reduction <maximumf>, %297, %cst_233 [1] : vector<64x64xf32> to vector<64xf32>
    %299 = vector.shape_cast %298 : vector<64xf32> to vector<64x1xf32>
    %300 = vector.broadcast %299 : vector<64x1xf32> to vector<64x64xf32>
    %301 = arith.subf %297, %300 : vector<64x64xf32>
    %302 = math.exp %301 : vector<64x64xf32>
    %cst_234 = arith.constant dense<0.000000e+00> : vector<64xf32>
    %303 = vector.multi_reduction <add>, %302, %cst_234 [1] : vector<64x64xf32> to vector<64xf32>
    %304 = vector.shape_cast %303 : vector<64xf32> to vector<64x1xf32>
    %305 = vector.broadcast %304 : vector<64x1xf32> to vector<64x64xf32>
    %306 = arith.divf %302, %305 : vector<64x64xf32>
    %cst_235 = arith.constant dense<0.000000e+00> : vector<64x4xf32>
    %307 = tpu.matmul %306, %294, %cst_235 {dimension_numbers = #tpu.dot_dimension_numbers<[1], [0], [0], [1], [0, 0, 1, 1], [], []>} : vector<64x64xf32>, vector<64x4xf32>, vector<64x4xf32> -> vector<64x4xf32>
    %c7_236 = arith.constant 7 : index
    %c0_237 = arith.constant 0 : index
    %c0_238 = arith.constant 0 : index
    %308 = vector.load %arg9[%c7_236, %c0_237, %c0_238] : memref<8x4x32xf32, #tpu.memory_space<vmem>>, vector<1x4x32xf32>
    %309 = vector.shape_cast %308 : vector<1x4x32xf32> to vector<4x32xf32>
    %cst_239 = arith.constant dense<0.000000e+00> : vector<64x32xf32>
    %310 = tpu.matmul %307, %309, %cst_239 {dimension_numbers = #tpu.dot_dimension_numbers<[1], [0], [0], [1], [0, 0, 1, 1], [], []>} : vector<64x4xf32>, vector<4x32xf32>, vector<64x32xf32> -> vector<64x32xf32>
    %311 = arith.addf %273, %310 : vector<64x32xf32>
    %c0_240 = arith.constant 0 : index
    %c0_241 = arith.constant 0 : index
    %c0_242 = arith.constant 0 : index
    %312 = vector.load %arg11[%c0_240, %c0_241, %c0_242] : memref<1x64x32xf32, #tpu.memory_space<vmem>>, vector<1x64x32xf32>
    %313 = vector.shape_cast %312 : vector<1x64x32xf32> to vector<64x32xf32>
    %314 = vector.shape_cast %311 : vector<64x32xf32> to vector<1x64x32xf32>
    tpu.vector_store %arg11[%c0_240, %c0_241, %c0_242], %314 {strides = array<i32>} : memref<1x64x32xf32, #tpu.memory_space<vmem>>, vector<1x64x32xf32>,
    return
  }
  func.func @transform_0(%arg0: i32) -> (i32, i32, i32) {
    %c0_i32 = arith.constant 0 : i32
    %c0_i32_0 = arith.constant 0 : i32
    %c0_i32_1 = arith.constant 0 : i32
    return %arg0, %c0_i32, %c0_i32_0 : i32, i32, i32
  }
  func.func @transform_1(%arg0: i32) -> (i32, i32, i32) {
    %c0_i32 = arith.constant 0 : i32
    %c0_i32_0 = arith.constant 0 : i32
    %c0_i32_1 = arith.constant 0 : i32
    return %arg0, %c0_i32, %c0_i32_0 : i32, i32, i32
  }
  func.func @transform_2(%arg0: i32) -> (i32, i32, i32) {
    %c0_i32 = arith.constant 0 : i32
    %c0_i32_0 = arith.constant 0 : i32
    %c0_i32_1 = arith.constant 0 : i32
    %c0_i32_2 = arith.constant 0 : i32
    return %c0_i32, %c0_i32_0, %c0_i32_1 : i32, i32, i32
  }
  func.func @transform_3(%arg0: i32) -> (i32, i32, i32) {
    %c0_i32 = arith.constant 0 : i32
    %c0_i32_0 = arith.constant 0 : i32
    %c0_i32_1 = arith.constant 0 : i32
    %c0_i32_2 = arith.constant 0 : i32
    return %c0_i32, %c0_i32_0, %c0_i32_1 : i32, i32, i32
  }
  func.func @transform_4(%arg0: i32) -> (i32, i32, i32) {
    %c0_i32 = arith.constant 0 : i32
    %c0_i32_0 = arith.constant 0 : i32
    %c0_i32_1 = arith.constant 0 : i32
    %c0_i32_2 = arith.constant 0 : i32
    return %c0_i32, %c0_i32_0, %c0_i32_1 : i32, i32, i32
  }
  func.func @transform_5(%arg0: i32) -> (i32, i32, i32) {
    %c0_i32 = arith.constant 0 : i32
    %c0_i32_0 = arith.constant 0 : i32
    %c0_i32_1 = arith.constant 0 : i32
    %c0_i32_2 = arith.constant 0 : i32
    return %c0_i32, %c0_i32_0, %c0_i32_1 : i32, i32, i32
  }
  func.func @transform_6(%arg0: i32) -> (i32, i32, i32) {
    %c0_i32 = arith.constant 0 : i32
    %c0_i32_0 = arith.constant 0 : i32
    %c0_i32_1 = arith.constant 0 : i32
    %c0_i32_2 = arith.constant 0 : i32
    return %c0_i32, %c0_i32_0, %c0_i32_1 : i32, i32, i32
  }
  func.func @transform_7(%arg0: i32) -> (i32, i32, i32) {
    %c0_i32 = arith.constant 0 : i32
    %c0_i32_0 = arith.constant 0 : i32
    %c0_i32_1 = arith.constant 0 : i32
    %c0_i32_2 = arith.constant 0 : i32
    return %c0_i32, %c0_i32_0, %c0_i32_1 : i32, i32, i32
  }
  func.func @transform_8(%arg0: i32) -> (i32, i32, i32) {
    %c0_i32 = arith.constant 0 : i32
    %c0_i32_0 = arith.constant 0 : i32
    %c0_i32_1 = arith.constant 0 : i32
    %c0_i32_2 = arith.constant 0 : i32
    return %c0_i32, %c0_i32_0, %c0_i32_1 : i32, i32, i32
  }
  func.func @transform_9(%arg0: i32) -> (i32, i32) {
    %c0_i32 = arith.constant 0 : i32
    %c0_i32_0 = arith.constant 0 : i32
    %c0_i32_1 = arith.constant 0 : i32
    return %c0_i32, %c0_i32_0 : i32, i32
  }
  func.func @transform_10(%arg0: i32) -> (i32, i32, i32) {
    %c0_i32 = arith.constant 0 : i32
    %c0_i32_0 = arith.constant 0 : i32
    %c0_i32_1 = arith.constant 0 : i32
    return %arg0, %c0_i32, %c0_i32_0 : i32, i32, i32
  }
}

module attributes {stable_mosaic.version = 11 : i64} {
  func.func @_mlp_kernel(%arg0: i32, %arg1: memref<64x32xf32, #tpu.memory_space<vmem>>, %arg2: memref<64x32xf32, #tpu.memory_space<vmem>>, %arg3: memref<64x32xf32, #tpu.memory_space<vmem>>, %arg4: memref<32x32xf32, #tpu.memory_space<vmem>>, %arg5: memref<32x32xf32, #tpu.memory_space<vmem>>, %arg6: memref<1x32xf32, #tpu.memory_space<vmem>>, %arg7: memref<1x32xf32, #tpu.memory_space<vmem>>, %arg8: memref<1x32xf32, #tpu.memory_space<vmem>>, %arg9: memref<32x32xf32, #tpu.memory_space<vmem>>, %arg10: memref<1x32xf32, #tpu.memory_space<vmem>>, %arg11: memref<64x32xf32, #tpu.memory_space<vmem>>) attributes {dimension_semantics = [#tpu.dimension_semantics<parallel>], iteration_bounds = array<i64: 2>, scalar_prefetch = 0 : i64, scratch_operands = 0 : i64, tpu.core_type = #tpu.core_type<tc>, window_params = [{transform_indices = @transform_0, window_bounds = array<i64: 64, 32>}, {transform_indices = @transform_1, window_bounds = array<i64: 64, 32>}, {transform_indices = @transform_2, window_bounds = array<i64: 64, 32>}, {pipeline_mode = #tpu.pipeline_mode<synchronous>, transform_indices = @transform_3, window_bounds = array<i64: 32, 32>}, {pipeline_mode = #tpu.pipeline_mode<synchronous>, transform_indices = @transform_4, window_bounds = array<i64: 32, 32>}, {pipeline_mode = #tpu.pipeline_mode<synchronous>, transform_indices = @transform_5, window_bounds = array<i64: 1, 32>}, {pipeline_mode = #tpu.pipeline_mode<synchronous>, transform_indices = @transform_6, window_bounds = array<i64: 1, 32>}, {pipeline_mode = #tpu.pipeline_mode<synchronous>, transform_indices = @transform_7, window_bounds = array<i64: 1, 32>}, {pipeline_mode = #tpu.pipeline_mode<synchronous>, transform_indices = @transform_8, window_bounds = array<i64: 32, 32>}, {pipeline_mode = #tpu.pipeline_mode<synchronous>, transform_indices = @transform_9, window_bounds = array<i64: 1, 32>}, {transform_indices = @transform_10, window_bounds = array<i64: 64, 32>}]} {
    %c0 = arith.constant 0 : index
    %c0_0 = arith.constant 0 : index
    %0 = vector.load %arg1[%c0, %c0_0] : memref<64x32xf32, #tpu.memory_space<vmem>>, vector<64x32xf32>
    %c0_1 = arith.constant 0 : index
    %c0_2 = arith.constant 0 : index
    %1 = vector.load %arg4[%c0_1, %c0_2] : memref<32x32xf32, #tpu.memory_space<vmem>>, vector<32x32xf32>
    %cst = arith.constant dense<0.000000e+00> : vector<64x32xf32>
    %2 = tpu.matmul %0, %1, %cst {dimension_numbers = #tpu.dot_dimension_numbers<[1], [0], [0], [1], [0, 0, 1, 1], [], []>} : vector<64x32xf32>, vector<32x32xf32>, vector<64x32xf32> -> vector<64x32xf32>
    %c0_3 = arith.constant 0 : index
    %c0_4 = arith.constant 0 : index
    %3 = vector.load %arg2[%c0_3, %c0_4] : memref<64x32xf32, #tpu.memory_space<vmem>>, vector<64x32xf32>
    %c0_5 = arith.constant 0 : index
    %c0_6 = arith.constant 0 : index
    %4 = vector.load %arg5[%c0_5, %c0_6] : memref<32x32xf32, #tpu.memory_space<vmem>>, vector<32x32xf32>
    %cst_7 = arith.constant dense<0.000000e+00> : vector<64x32xf32>
    %5 = tpu.matmul %3, %4, %cst_7 {dimension_numbers = #tpu.dot_dimension_numbers<[1], [0], [0], [1], [0, 0, 1, 1], [], []>} : vector<64x32xf32>, vector<32x32xf32>, vector<64x32xf32> -> vector<64x32xf32>
    %6 = arith.addf %2, %5 : vector<64x32xf32>
    %c0_8 = arith.constant 0 : index
    %c0_9 = arith.constant 0 : index
    %7 = vector.load %arg6[%c0_8, %c0_9] : memref<1x32xf32, #tpu.memory_space<vmem>>, vector<1x32xf32>
    %8 = vector.broadcast %7 : vector<1x32xf32> to vector<64x32xf32>
    %9 = arith.addf %6, %8 : vector<64x32xf32>
    %cst_10 = arith.constant dense<0.000000e+00> : vector<64xf32>
    %10 = vector.multi_reduction <add>, %9, %cst_10 [1] : vector<64x32xf32> to vector<64xf32>
    %11 = vector.shape_cast %10 : vector<64xf32> to vector<64x1xf32>
    %cst_11 = arith.constant 3.200000e+01 : f32
    %12 = vector.broadcast %cst_11 : f32 to vector<64x1xf32>
    %13 = arith.divf %11, %12 : vector<64x1xf32>
    %14 = vector.broadcast %13 : vector<64x1xf32> to vector<64x32xf32>
    %15 = arith.subf %9, %14 : vector<64x32xf32>
    %16 = arith.mulf %15, %15 : vector<64x32xf32>
    %cst_12 = arith.constant dense<0.000000e+00> : vector<64xf32>
    %17 = vector.multi_reduction <add>, %16, %cst_12 [1] : vector<64x32xf32> to vector<64xf32>
    %18 = vector.shape_cast %17 : vector<64xf32> to vector<64x1xf32>
    %cst_13 = arith.constant 3.200000e+01 : f32
    %19 = vector.broadcast %cst_13 : f32 to vector<64x1xf32>
    %20 = arith.divf %18, %19 : vector<64x1xf32>
    %cst_14 = arith.constant 9.99999974E-6 : f32
    %21 = vector.broadcast %cst_14 : f32 to vector<64x1xf32>
    %22 = arith.addf %20, %21 : vector<64x1xf32>
    %23 = math.rsqrt %22 : vector<64x1xf32>
    %24 = vector.broadcast %23 : vector<64x1xf32> to vector<64x32xf32>
    %25 = arith.mulf %15, %24 : vector<64x32xf32>
    %c0_15 = arith.constant 0 : index
    %c0_16 = arith.constant 0 : index
    %26 = vector.load %arg7[%c0_15, %c0_16] : memref<1x32xf32, #tpu.memory_space<vmem>>, vector<1x32xf32>
    %27 = vector.broadcast %26 : vector<1x32xf32> to vector<64x32xf32>
    %28 = arith.mulf %25, %27 : vector<64x32xf32>
    %c0_17 = arith.constant 0 : index
    %c0_18 = arith.constant 0 : index
    %29 = vector.load %arg8[%c0_17, %c0_18] : memref<1x32xf32, #tpu.memory_space<vmem>>, vector<1x32xf32>
    %30 = vector.broadcast %29 : vector<1x32xf32> to vector<64x32xf32>
    %31 = arith.addf %28, %30 : vector<64x32xf32>
    %cst_19 = arith.constant 5.000000e-01 : f32
    %32 = vector.broadcast %cst_19 : f32 to vector<64x32xf32>
    %33 = arith.mulf %32, %31 : vector<64x32xf32>
    %cst_20 = arith.constant 0.707106769 : f32
    %34 = vector.broadcast %cst_20 : f32 to vector<64x32xf32>
    %35 = arith.mulf %31, %34 : vector<64x32xf32>
    %36 = math.absf %35 : vector<64x32xf32>
    %cst_21 = arith.constant 0.327591091 : f32
    %37 = vector.broadcast %cst_21 : f32 to vector<64x32xf32>
    %38 = arith.mulf %37, %36 : vector<64x32xf32>
    %cst_22 = arith.constant 1.000000e+00 : f32
    %39 = vector.broadcast %cst_22 : f32 to vector<64x32xf32>
    %40 = arith.addf %39, %38 : vector<64x32xf32>
    %cst_23 = arith.constant 1.000000e+00 : f32
    %41 = vector.broadcast %cst_23 : f32 to vector<64x32xf32>
    %42 = arith.divf %41, %40 : vector<64x32xf32>
    %cst_24 = arith.constant 1.06140542 : f32
    %43 = vector.broadcast %cst_24 : f32 to vector<64x32xf32>
    %44 = arith.mulf %43, %42 : vector<64x32xf32>
    %cst_25 = arith.constant -1.45315206 : f32
    %45 = vector.broadcast %cst_25 : f32 to vector<64x32xf32>
    %46 = arith.addf %44, %45 : vector<64x32xf32>
    %47 = arith.mulf %46, %42 : vector<64x32xf32>
    %cst_26 = arith.constant 1.42141378 : f32
    %48 = vector.broadcast %cst_26 : f32 to vector<64x32xf32>
    %49 = arith.addf %47, %48 : vector<64x32xf32>
    %50 = arith.mulf %49, %42 : vector<64x32xf32>
    %cst_27 = arith.constant -0.284496725 : f32
    %51 = vector.broadcast %cst_27 : f32 to vector<64x32xf32>
    %52 = arith.addf %50, %51 : vector<64x32xf32>
    %53 = arith.mulf %52, %42 : vector<64x32xf32>
    %cst_28 = arith.constant 0.254829586 : f32
    %54 = vector.broadcast %cst_28 : f32 to vector<64x32xf32>
    %55 = arith.addf %53, %54 : vector<64x32xf32>
    %56 = arith.mulf %55, %42 : vector<64x32xf32>
    %cst_29 = arith.constant 0.000000e+00 : f32
    %57 = vector.broadcast %cst_29 : f32 to vector<64x32xf32>
    %58 = arith.subf %57, %36 : vector<64x32xf32>
    %59 = arith.mulf %58, %36 : vector<64x32xf32>
    %60 = math.exp %59 : vector<64x32xf32>
    %61 = arith.mulf %56, %60 : vector<64x32xf32>
    %cst_30 = arith.constant 1.000000e+00 : f32
    %62 = vector.broadcast %cst_30 : f32 to vector<64x32xf32>
    %63 = arith.subf %62, %61 : vector<64x32xf32>
    %cst_31 = arith.constant 0.000000e+00 : f32
    %64 = vector.broadcast %cst_31 : f32 to vector<64x32xf32>
    %65 = arith.cmpf oge, %35, %64 : vector<64x32xf32>
    %cst_32 = arith.constant 0.000000e+00 : f32
    %66 = vector.broadcast %cst_32 : f32 to vector<64x32xf32>
    %67 = arith.subf %66, %63 : vector<64x32xf32>
    %68 = arith.select %65, %63, %67 : vector<64x32xi1>, vector<64x32xf32>
    %cst_33 = arith.constant 1.000000e+00 : f32
    %69 = vector.broadcast %cst_33 : f32 to vector<64x32xf32>
    %70 = arith.addf %69, %68 : vector<64x32xf32>
    %71 = arith.mulf %33, %70 : vector<64x32xf32>
    %c0_34 = arith.constant 0 : index
    %c0_35 = arith.constant 0 : index
    %72 = vector.load %arg9[%c0_34, %c0_35] : memref<32x32xf32, #tpu.memory_space<vmem>>, vector<32x32xf32>
    %cst_36 = arith.constant dense<0.000000e+00> : vector<64x32xf32>
    %73 = tpu.matmul %71, %72, %cst_36 {dimension_numbers = #tpu.dot_dimension_numbers<[1], [0], [0], [1], [0, 0, 1, 1], [], []>} : vector<64x32xf32>, vector<32x32xf32>, vector<64x32xf32> -> vector<64x32xf32>
    %c0_37 = arith.constant 0 : index
    %c0_38 = arith.constant 0 : index
    %74 = vector.load %arg10[%c0_37, %c0_38] : memref<1x32xf32, #tpu.memory_space<vmem>>, vector<1x32xf32>
    %75 = vector.broadcast %74 : vector<1x32xf32> to vector<64x32xf32>
    %76 = arith.addf %73, %75 : vector<64x32xf32>
    %c0_39 = arith.constant 0 : index
    %c0_40 = arith.constant 0 : index
    %77 = vector.load %arg3[%c0_39, %c0_40] : memref<64x32xf32, #tpu.memory_space<vmem>>, vector<64x32xf32>
    %78 = arith.addf %76, %77 : vector<64x32xf32>
    %c0_41 = arith.constant 0 : index
    %c0_42 = arith.constant 0 : index
    %79 = vector.load %arg11[%c0_41, %c0_42] : memref<64x32xf32, #tpu.memory_space<vmem>>, vector<64x32xf32>
    tpu.vector_store %arg11[%c0_41, %c0_42], %78 {strides = array<i32>} : memref<64x32xf32, #tpu.memory_space<vmem>>, vector<64x32xf32>,
    return
  }
  func.func @transform_0(%arg0: i32) -> (i32, i32) {
    %c0_i32 = arith.constant 0 : i32
    %c0_i32_0 = arith.constant 0 : i32
    return %arg0, %c0_i32 : i32, i32
  }
  func.func @transform_1(%arg0: i32) -> (i32, i32) {
    %c0_i32 = arith.constant 0 : i32
    %c0_i32_0 = arith.constant 0 : i32
    return %arg0, %c0_i32 : i32, i32
  }
  func.func @transform_2(%arg0: i32) -> (i32, i32) {
    %c0_i32 = arith.constant 0 : i32
    %c0_i32_0 = arith.constant 0 : i32
    return %arg0, %c0_i32 : i32, i32
  }
  func.func @transform_3(%arg0: i32) -> (i32, i32) {
    %c0_i32 = arith.constant 0 : i32
    %c0_i32_0 = arith.constant 0 : i32
    %c0_i32_1 = arith.constant 0 : i32
    return %c0_i32, %c0_i32_0 : i32, i32
  }
  func.func @transform_4(%arg0: i32) -> (i32, i32) {
    %c0_i32 = arith.constant 0 : i32
    %c0_i32_0 = arith.constant 0 : i32
    %c0_i32_1 = arith.constant 0 : i32
    return %c0_i32, %c0_i32_0 : i32, i32
  }
  func.func @transform_5(%arg0: i32) -> (i32, i32) {
    %c0_i32 = arith.constant 0 : i32
    %c0_i32_0 = arith.constant 0 : i32
    %c0_i32_1 = arith.constant 0 : i32
    return %c0_i32, %c0_i32_0 : i32, i32
  }
  func.func @transform_6(%arg0: i32) -> (i32, i32) {
    %c0_i32 = arith.constant 0 : i32
    %c0_i32_0 = arith.constant 0 : i32
    %c0_i32_1 = arith.constant 0 : i32
    return %c0_i32, %c0_i32_0 : i32, i32
  }
  func.func @transform_7(%arg0: i32) -> (i32, i32) {
    %c0_i32 = arith.constant 0 : i32
    %c0_i32_0 = arith.constant 0 : i32
    %c0_i32_1 = arith.constant 0 : i32
    return %c0_i32, %c0_i32_0 : i32, i32
  }
  func.func @transform_8(%arg0: i32) -> (i32, i32) {
    %c0_i32 = arith.constant 0 : i32
    %c0_i32_0 = arith.constant 0 : i32
    %c0_i32_1 = arith.constant 0 : i32
    return %c0_i32, %c0_i32_0 : i32, i32
  }
  func.func @transform_9(%arg0: i32) -> (i32, i32) {
    %c0_i32 = arith.constant 0 : i32
    %c0_i32_0 = arith.constant 0 : i32
    %c0_i32_1 = arith.constant 0 : i32
    return %c0_i32, %c0_i32_0 : i32, i32
  }
  func.func @transform_10(%arg0: i32) -> (i32, i32) {
    %c0_i32 = arith.constant 0 : i32
    %c0_i32_0 = arith.constant 0 : i32
    return %arg0, %c0_i32 : i32, i32
  }
}

</mosaic_0001>

<bundles_post_ra>
// kernel: _lambda_.4
= control target key start
LH: loop header
LB: loop body
LE: loop exit
PB: predicated region body
PF: predicated region fallthrough
CT: control target
= control target key end

     0   :  { %v781_v20 = vmov 0.0   ;;  %v783_v21 = vmov 0.0   ;;  %s785_s23 = smov 0   ;;  %s852_s0 = inlined_call_operand.vmem [shape: f32[64,2,32], index: 0, kind: input, shape index: {}]   ;;  %s853_s1 = inlined_call_operand.vmem [shape: f32[32,96], index: 1, kind: input, shape index: {}]   ;;  %s854_s2 = inlined_call_operand.vmem [shape: f32[32,96], index: 2, kind: input, shape index: {}]   ;;  %s855_s3 = inlined_call_operand.vmem [shape: f32[1,96], index: 3, kind: input, shape index: {}]   ;;  %s856_s9 = inlined_call_operand.vmem [shape: f32[64,2,32], index: 9, kind: output, shape index: {}]   ;;  %s857_s4 = inlined_call_operand.vmem [shape: f32[1,96], index: 4, kind: input, shape index: {}]   ;;  %s858_s5 = inlined_call_operand.vmem [shape: f32[32,96], index: 5, kind: input, shape index: {}]   ;;  %s859_s6 = inlined_call_operand.vmem [shape: f32[32,96], index: 6, kind: input, shape index: {}]   ;;  %s860_s7 = inlined_call_operand.vmem [shape: f32[1,96], index: 7, kind: input, shape index: {}]   ;;  %s861_s8 = inlined_call_operand.vmem [shape: f32[1,96], index: 8, kind: input, shape index: {}]  }
   0x1   :  { %v684_v0 = vld [vmem:[%s853_s1] sm:$0xff]  ;;  %v689_v1 = vld [vmem:[%s853_s1 + $0x8] sm:$0xff]  ;;  %v694_v2 = vld [vmem:[%s853_s1 + $0x10] sm:$0xff] }
   0x2   :  { %v699_v3 = vld [vmem:[%s853_s1 + $0x18] sm:$0xff]  ;;  %v704_v4 = vld [vmem:[%s854_s2] sm:$0xff]  ;;  %v709_v5 = vld [vmem:[%s854_s2 + $0x8] sm:$0xff] }
   0x3   :  { %v714_v6 = vld [vmem:[%s854_s2 + $0x10] sm:$0xff]  ;;  %v719_v7 = vld [vmem:[%s854_s2 + $0x18] sm:$0xff]  ;;  %v724_v8 = vld [vmem:[%s855_s3] ss:$0 sm:$0xff] }
   0x4   :  { %v729_v9 = vld [vmem:[%s857_s4] ss:$0 sm:$0xff]  ;;  %v739_v11 = vld [vmem:[%s858_s5 + $0x8] sm:$0xff]  ;;  %v744_v12 = vld [vmem:[%s858_s5 + $0x10] sm:$0xff] }
   0x5   :  { %v734_v10 = vld [vmem:[%s858_s5] sm:$0xff]  ;;  %v749_v13 = vld [vmem:[%s858_s5 + $0x18] sm:$0xff]  ;;  %v759_v15 = vld [vmem:[%s859_s6 + $0x8] sm:$0xff] }
   0x6   :  { %v754_v14 = vld [vmem:[%s859_s6] sm:$0xff]  ;;  %v764_v16 = vld [vmem:[%s859_s6 + $0x10] sm:$0xff]  ;;  %v769_v17 = vld [vmem:[%s859_s6 + $0x18] sm:$0xff] }
   0x7   :  { %v774_v18 = vld [vmem:[%s860_s7] ss:$0 sm:$0xff] }
   0x8   :  { %v779_v19 = vld [vmem:[%s861_s8] ss:$0 sm:$0xff] }
   0x9 LB: > { %v538_v22 = vpack.c.bf16 %v689_v1, %v684_v0  ;;  %v544_v23 = vpack.c.bf16 %v709_v5, %v704_v4  ;;  %v626_v24 = vmov 0.0|0.0   ;;  %s627_s6 = smov 96   ;;  %v541_v25 = vpack.c.bf16 %v699_v3, %v694_v2  ;;  %s464_s7 = sshll.u32 %s624_s23, 1  ;;  %s624_s23 = sphi %s785_s23, %s57_s23   ;;  %v620_v21 = vphi %v783_v21, %v249_v21   ;;  %v616_v20 = vphi %v781_v20, %v437_v20  }
   0xa   : > { %537 = vmatprep.subr.bf16.mxu0 %v626_v24  ;;  %543 = vmatprep.subr.bf16.mxu1 %v626_v24  ;;  %v547_v26 = vpack.c.bf16 %v719_v7, %v714_v6  ;;  %s61_s1 = scalar_lea.vmem %s852_s0, %s464_s7  ;;  %vm628_vm0 = vmmov 0   ;;  %v629_v27 = vmov 0.0   ;;  %vm69_vm1 = vcmask 261120   ;;  %s630_s25 = smov 64  }
   0xb   : > { %150 = vrot.lane.b32.xlu0 %v620_v21, %s627_s6  ;;  %539 = vmatpush3.bf16.msra.mxu0 %v538_v22  ;;  %v62_v28 = vld [vmem:[%s61_s1] sm:$0x3]  ;;  %v556_v46 = vpack.c.bf16 %v759_v15, %v754_v14  ;;  %v550_v47 = vpack.c.bf16 %v739_v11, %v734_v10  ;;  %v559_v48 = vpack.c.bf16 %v769_v17, %v764_v16  ;;  %s442_s28 = scalar_lea.vmem %s856_s9, %s464_s7  ;;  %vm443_vm2 = vcmask 254976   ;;  %s57_s23 = sadd.s32 1, %s624_s23  }
   0xc   : > { %545 = vmatpush3.bf16.msra.mxu1 %v544_v23  ;;  %540 = vmatprep.subr.bf16.mxu0 %v626_v24  ;;  %v553_v49 = vpack.c.bf16 %v749_v13, %v744_v12  ;;  %p54_p0 = scmp.ge.s32.totalorder %s57_s23, 64  }
   0xd   : > { %546 = vmatprep.subr.bf16.mxu1 %v626_v24  ;;  %501 = vmatprep.mubr.msk.f32.mxu0 %vm628_vm0, %v629_v27 }
   0xe   : > { %512 = vmatprep.mubr.msk.f32.mxu1 %vm628_vm0, %v629_v27 }
   0xf   : > { %542 = vmatpush3.bf16.msra.mxu0 %v541_v25 }
  0x10   : > { %548 = vmatpush3.bf16.msra.mxu1 %v547_v26  ;;  %549 = vmatprep.subr.bf16.mxu0 %v626_v24 }
  0x11   : > { %555 = vmatprep.subr.bf16.mxu1 %v626_v24 }
  0x12   : > { %502 = vmatmul.mubr.msk.f32.vlgmr.msra.gmra.mrb[0].mxu0 %vm69_vm1, %v62_v28 }
  0x13   : > { %523 = vmatprep.mubr.msk.f32.mxu0 %vm628_vm0, %v629_v27  ;;  %551 = vmatpush3.bf16.msra.mxu0 %v550_v47 }
  0x14   : > { %552 = vmatprep.subr.bf16.mxu0 %v626_v24 }
  0x17   : > { %554 = vmatpush3.bf16.msra.mxu0 %v553_v49 }
  0x7d   : > { %v151_v29 = vpop.permute.xlu0 %150 }
  0x7e   : > { %513 = vmatmul.mubr.msk.f32.vlgmr.msra.gmra.mrb[0].mxu1 %vm69_vm1, %v151_v29 }
  0x7f   : > { %534 = vmatprep.mubr.msk.f32.mxu1 %vm628_vm0, %v629_v27  ;;  %557 = vmatpush3.bf16.msra.mxu1 %v556_v46 }
  0x80   : > { %558 = vmatprep.subr.bf16.mxu1 %v626_v24 }
  0x83   : > { %560 = vmatpush3.bf16.msra.mxu1 %v559_v48 }
  0xe5   : > { %v139_v30 = vpop.f32.mrb[0].mxu0 }
  0xe6   : > { %v503_v31 = vpop.f32.mrb[1].mxu0  ;;  %v140_v35 = vadd.f32 %v724_v8, %v139_v30 }
 0x151   : > { %v220_v32 = vpop.f32.mrb[0].mxu1 }
 0x152   : > { %v221_v33 = vadd.f32 %v729_v9, %v220_v32  ;;  %v514_v34 = vpop.f32.mrb[1].mxu1 }
 0x154   : > { %232 = vrot.lane.b32.xlu0 %v221_v33, %s630_s25  ;;  %v224_v36 = vadd.f32 %v221_v33, %v140_v35 }
 0x156   : > { %v225_v37 = vsub.f32 0.0, %v224_v36 }
 0x158   : > { %v226_v38 = vmul.f32 1.442695, %v225_v37  ;;  %338 = vrot.lane.b32.xlu0 %v616_v20, %s627_s6 }
 0x15a   : > { %590 = vpow2.f32 %v226_v38 }
 0x164   : > { %v591_v39 = vpop.eup %590 }
 0x165   : > { %v228_v40 = vadd.f32 1.0, %v591_v39 }
 0x167   : > { %592 = vrcp.f32 %v228_v40 }
 0x171   : > { %v593_v41 = vpop.eup %592 }
 0x172   : > { %v242_v52 = vsub.f32 1.0, %v593_v41  ;;  %v248_v54 = vmul.f32 %v620_v21, %v593_v41 }
 0x1c6   : > { %v233_v42 = vpop.permute.xlu0 %232 }
 0x1c7   : > { %v235_v43 = vmul.f32 %v593_v41, %v233_v42 }
 0x1c9   : > { %237 = vrot.lane.b32.xlu1 %v235_v43, %s630_s25 }
 0x1ca   : > { %v339_v50 = vpop.permute.xlu0 %338 }
 0x1cb   : > { %535 = vmatmul.mubr.msk.f32.vlgmr.msra.gmra.mrb[2].mxu1 %vm69_vm1, %v339_v50 }
 0x23b   : > { %v238_v44 = vpop.permute.xlu1 %237 }
 0x23c   : > { %v240_v45 = vadd.f32 %v238_v44, %v140_v35 }
 0x23e   : > { %594 = vtanh.f32 %v240_v45 }
 0x248   : > { %v595_v51 = vpop.eup %594 }
 0x249   : > { %244 = vrot.lane.b32.xlu1 %v595_v51, %s627_s6 }
 0x29e   : > { %v408_v56 = vpop.f32.mrb[2].mxu1 }
 0x29f   : > { %v409_v57 = vadd.f32 %v779_v19, %v408_v56  ;;  %v536_v58 = vpop.f32.mrb[3].mxu1 }
 0x2a1   : > { %420 = vrot.lane.b32.xlu0 %v409_v57, %s630_s25 }
 0x2bb   : > { %v245_v53 = vpop.permute.xlu1 %244 }
 0x2bc   : > { %v247_v55 = vmul.f32 %v245_v53, %v242_v52 }
 0x2be   : > { %v249_v21 = vadd.f32 %v248_v54, %v247_v55  }
 0x2c0   : > { %257 = vrot.lane.b32.xlu1 %v249_v21, %s627_s6 }
 0x313   : > { %v421_v26 = vpop.permute.xlu0 %420 }
 0x332   : > { %v258_v59 = vpop.permute.xlu1 %257 }
 0x333   : > { %524 = vmatmul.mubr.msk.f32.vlgmr.msra.gmra.mrb[2].mxu0 %vm69_vm1, %v258_v59 }
 0x406   : > { %v327_v60 = vpop.f32.mrb[2].mxu0 }
 0x407   : > { %v328_v61 = vadd.f32 %v774_v18, %v327_v60  ;;  %v525_v62 = vpop.f32.mrb[3].mxu0 }
 0x409   : > { %v412_v63 = vadd.f32 %v409_v57, %v328_v61 }
 0x40b   : > { %v413_v22 = vsub.f32 0.0, %v412_v63 }
 0x40d   : > { %v414_v23 = vmul.f32 1.442695, %v413_v22 }
 0x40f   : > { %596 = vpow2.f32 %v414_v23 }
 0x419   : > { %v597_v24 = vpop.eup %596 }
 0x41a   : > { %v416_v25 = vadd.f32 1.0, %v597_v24 }
 0x41c   : > { %598 = vrcp.f32 %v416_v25 }
 0x426   : > { %v599_v27 = vpop.eup %598 }
 0x427   : > { %v423_v28 = vmul.f32 %v599_v27, %v421_v26  ;;  %v430_v32 = vsub.f32 1.0, %v599_v27  ;;  %v436_v34 = vmul.f32 %v616_v20, %v599_v27 }
 0x429   : > { %425 = vrot.lane.b32.xlu1 %v423_v28, %s630_s25 }
 0x49b   : > { %v426_v29 = vpop.permute.xlu1 %425 }
 0x49c   : > { %v428_v30 = vadd.f32 %v426_v29, %v328_v61 }
 0x49e   : > { %600 = vtanh.f32 %v428_v30 }
 0x4a8   : > { %v601_v31 = vpop.eup %600 }
 0x4a9   : > { %432 = vrot.lane.b32.xlu0 %v601_v31, %s627_s6 }
 0x51b   : > { %v433_v33 = vpop.permute.xlu0 %432 }
 0x51c   : > { %v435_v35 = vmul.f32 %v433_v33, %v430_v32 }
 0x51e   : > { %v437_v20 = vadd.f32 %v436_v34, %v435_v35  }
 0x520   : > { %439 = vrot.lane.b32.xlu1 %v437_v20, %s627_s6 }
 0x58d   :  { %56 = sbr.rel (!%p54_p0) target bundleno = 9 (0x9), region = 65 }
 0x592   : > { %v440_v36 = vpop.permute.xlu1 %439 }
 0x593   : > { %444 = vst.msk [vmem:[%s442_s28] sm:$0x3] %vm443_vm2, %v440_v36 }

// kernel: _lambda_.5
= control target key start
LH: loop header
LB: loop body
LE: loop exit
PB: predicated region body
PF: predicated region fallthrough
CT: control target
= control target key end

     0   :  { %s1594_s13 = smov 0   ;;  %s1931_s0 = inlined_call_operand.vmem [shape: f32[128,32], index: 0, kind: input, shape index: {}]   ;;  %s1932_s1 = inlined_call_operand.vmem [shape: f32[128,32], index: 1, kind: input, shape index: {}]   ;;  %s1933_s2 = inlined_call_operand.vmem [shape: f32[128,32], index: 2, kind: input, shape index: {}]   ;;  %s1934_s3 = inlined_call_operand.vmem [shape: f32[32,32], index: 3, kind: input, shape index: {}]   ;;  %s1935_s4 = inlined_call_operand.vmem [shape: f32[32,32], index: 4, kind: input, shape index: {}]   ;;  %s1936_s5 = inlined_call_operand.vmem [shape: f32[1,32], index: 5, kind: input, shape index: {}]   ;;  %s1937_s6 = inlined_call_operand.vmem [shape: f32[1,32], index: 6, kind: input, shape index: {}]   ;;  %s1938_s7 = inlined_call_operand.vmem [shape: f32[1,32], index: 7, kind: input, shape index: {}]   ;;  %s1939_s8 = inlined_call_operand.vmem [shape: f32[32,32], index: 8, kind: input, shape index: {}]   ;;  %s1940_s9 = inlined_call_operand.vmem [shape: f32[1,32], index: 9, kind: input, shape index: {}]   ;;  %s1941_s10 = inlined_call_operand.vmem [shape: f32[128,32], index: 10, kind: output, shape index: {}]  }
   0x1 LB: > { %s1300_s14 = sadd.s32 4294967295, %s1537_s13   ;;  %p1304_p0 = scmp.ge.s32.totalorder %s1537_s13, 1  ;;  %s1537_s13 = sphi %s1594_s13, %s20_s13  }
   0x2   : > { %p335_p1 = scmp.lt.s32.totalorder %s1537_s13, 3 }
   0x4   : > { %p336_p2 = pnand %p1304_p0, %p335_p1 }
   0x5   : > { %v427_v0 = vld [vmem:[%s1935_s4] sm:$0xff] (!%p336_p2)  ;;  %v428_v1 = vld [vmem:[%s1935_s4 + $0x8] sm:$0xff] (!%p336_p2)  ;;  %v429_v2 = vld [vmem:[%s1935_s4 + $0x10] sm:$0xff] (!%p336_p2)  ;;  %s1305_s21 = sshll.u32 (!%p336_p2), %s1300_s14, 3  ;;  %vm431_vm0 = vcmask (!%p336_p2), 261120  }
   0x6   : > { %339 = sbr.rel (%p336_p2) target bundleno = 845 (0x34d), region = 60  ;;  %v1439_v3 = vpack.c.bf16 (!%p336_p2), %v428_v1, %v427_v0  ;;  %v430_v4 = vld [vmem:[%s1935_s4 + $0x18] sm:$0xff] (!%p336_p2)  ;;  %p384_p3 = scmp.lt.s32.totalorder (!%p336_p2), %s1305_s21, 15  ;;  %v415_v6 = vld [vmem:[%s1934_s3] sm:$0xff] (!%p336_p2)  ;;  %v416_v7 = vld [vmem:[%s1934_s3 + $0x8] sm:$0xff] (!%p336_p2) }
   0x7   : > { %v1443_v5 = vpack.c.bf16 (!%p336_p2), %v430_v4, %v429_v2  ;;  %v1447_v8 = vpack.c.bf16 (!%p336_p2), %v416_v7, %v415_v6  ;;  %v417_v9 = vld [vmem:[%s1934_s3 + $0x10] sm:$0xff] (!%p336_p2)  ;;  %v418_v10 = vld [vmem:[%s1934_s3 + $0x18] sm:$0xff] (!%p336_p2)  ;;  %v1329_v31 = vld [vmem:[%s1936_s5] ss:$0 sm:$0xff] (!%p336_p2) }
   0x8   : > { %1440 = vmatprep.subr.bf16.mxu0 (!%p336_p2), %v1439_v3  ;;  %1463 = vmatprep.subr.bf16.mxu1 (!%p336_p2), %v1439_v3  ;;  %v1451_v14 = vpack.c.bf16 (!%p336_p2), %v418_v10, %v417_v9 }
   0x9   : > { %1442 = vmatpush3.bf16.msra.mxu0 (!%p336_p2), %v1439_v3  ;;  %1465 = vmatpush3.bf16.msra.mxu1 (!%p336_p2), %v1439_v3 }
   0xa   : > { %1444 = vmatprep.subr.bf16.mxu0 (!%p336_p2), %v1443_v5  ;;  %1464 = vmatprep.subr.bf16.mxu1 (!%p336_p2), %v1443_v5 }
   0xd   : > { %s1943_s21 = smov (!%p384_p3, %s1305_s21), 15  ;;  %1446 = vmatpush3.bf16.msra.mxu0 %v1443_v5  ;;  %1466 = vmatpush3.bf16.msra.mxu1 %v1443_v5 }
   0xe   : > { %s1620_s28 = sshll.u32 %s1943_s21, 3  ;;  %1448 = vmatprep.subr.bf16.mxu0 %v1447_v8 }
   0xf   : > { %s393_s11 = scalar_lea.vmem %s1932_s1, %s1620_s28  ;;  %s387_s19 = scalar_lea.vmem %s1931_s0, %s1620_s28 }
  0x10   : > { %v419_v11 = vld [vmem:[%s393_s11] sm:$0xff]  ;;  %v420_v12 = vld [vmem:[%s393_s11 + $0x8] sm:$0xff]  ;;  %v421_v13 = vld [vmem:[%s393_s11 + $0x10] sm:$0xff]  ;;  %s1893_s18 = scalar_lea.vmem %s1933_s2, %s1620_s28  ;;  %s1904_s23 = scalar_lea.vmem %s1941_s10, %s1620_s28 }
  0x11   : > { %1387 = vmatprep.mubr.msk.f32.mxu0 %vm431_vm0, %v419_v11  ;;  %v423_v15 = vld [vmem:[%s393_s11 + $0x20] sm:$0xff]  ;;  %v424_v16 = vld [vmem:[%s393_s11 + $0x28] sm:$0xff]  ;;  %v425_v17 = vld [vmem:[%s393_s11 + $0x30] sm:$0xff] }
  0x12   : > { %1393 = vmatprep.mubr.msk.f32.mxu1 %vm431_vm0, %v423_v15  ;;  %1388 = vmatmul.mubr.msk.f32.vlgmr.msra.gmra.mrb[0].mxu0 %vm431_vm0, %v420_v12  ;;  %v422_v18 = vld [vmem:[%s393_s11 + $0x18] sm:$0xff]  ;;  %v407_v19 = vld [vmem:[%s387_s19] sm:$0xff]  ;;  %v408_v21 = vld [vmem:[%s387_s19 + $0x8] sm:$0xff] }
  0x13   : > { %1450 = vmatpush3.bf16.msra.mxu0 %v1447_v8  ;;  %1390 = vmatprep.mubr.msk.f32.mxu0 %vm431_vm0, %v421_v13  ;;  %v426_v20 = vld [vmem:[%s393_s11 + $0x38] sm:$0xff]  ;;  %v409_v22 = vld [vmem:[%s387_s19 + $0x10] sm:$0xff]  ;;  %v411_v24 = vld [vmem:[%s387_s19 + $0x20] sm:$0xff] }
  0x14   : > { %1452 = vmatprep.subr.bf16.mxu0 %v1451_v14  ;;  %1394 = vmatmul.mubr.msk.f32.vlgmr.msra.gmra.mrb[0].mxu1 %vm431_vm0, %v424_v16  ;;  %v410_v23 = vld [vmem:[%s387_s19 + $0x18] sm:$0xff]  ;;  %v412_v25 = vld [vmem:[%s387_s19 + $0x28] sm:$0xff]  ;;  %v413_v26 = vld [vmem:[%s387_s19 + $0x30] sm:$0xff] }
  0x15   : > { %1396 = vmatprep.mubr.msk.f32.mxu1 %vm431_vm0, %v425_v17  ;;  %v414_v27 = vld [vmem:[%s387_s19 + $0x38] sm:$0xff] }
  0x16   : > { %1391 = vmatmul.mubr.msk.f32.gmra.mrb[2].mxu0 %vm431_vm0, %v422_v18 }
  0x17   : > { %1454 = vmatpush3.bf16.msra.mxu0 %v1451_v14  ;;  %1407 = vmatprep.mubr.msk.f32.mxu0 %vm431_vm0, %v407_v19 }
  0x18   : > { %1397 = vmatmul.mubr.msk.f32.gmra.mrb[2].mxu1 %vm431_vm0, %v426_v20 }
  0x1a   : > { %1408 = vmatmul.mubr.msk.f32.vlgmr.msra.gmra.mrb[0].mxu0 %vm431_vm0, %v408_v21 }
  0x1b   : > { %1410 = vmatprep.mubr.msk.f32.mxu0 %vm431_vm0, %v409_v22 }
  0x1e   : > { %1411 = vmatmul.mubr.msk.f32.gmra.mrb[2].mxu0 %vm431_vm0, %v410_v23 }
  0x1f   : > { %1413 = vmatprep.mubr.msk.f32.mxu0 %vm431_vm0, %v411_v24 }
  0x22   : > { %1414 = vmatmul.mubr.msk.f32.gmra.mrb[4].mxu0 %vm431_vm0, %v412_v25 }
  0x23   : > { %1416 = vmatprep.mubr.msk.f32.mxu0 %vm431_vm0, %v413_v26 }
  0x26   : > { %1417 = vmatmul.mubr.msk.f32.gmra.mrb[6].mxu0 %vm431_vm0, %v414_v27 }
  0xe7   : > { %v1395_v28 = vpop.f32.mrb[0].mxu1 }
  0xe8   : > { %v542_v29 = vpop.f32.mrb[1].mxu1 }
  0xeb   : > { %v1398_v30 = vpop.f32.mrb[2].mxu1 }
  0xec   : > { %v552_v32 = vpop.f32.mrb[3].mxu1 }
  0xed   : > { %v1409_v33 = vpop.f32.mrb[0].mxu0 }
  0xee   : > { %v651_v34 = vpop.f32.mrb[1].mxu0  ;;  %v698_v36 = vadd.f32 %v1409_v33, %v1329_v31 }
  0xef   : > { %v697_v35 = vadd.f32 %v1329_v31, %v651_v34 }
  0xf0   : > { %v708_v43 = vsel %vm431_vm0, %v698_v36, 0.0 }
  0xf1   : > { %v1412_v37 = vpop.f32.mrb[2].mxu0  ;;  %v705_v38 = vsel %vm431_vm0, %v697_v35, 0.0 }
  0xf2   : > { %706 = vadd.xlane.f32.xlu0 %v705_v38  ;;  %v661_v39 = vpop.f32.mrb[3].mxu0  ;;  %v700_v41 = vadd.f32 %v1412_v37, %v1329_v31  ;;  %v1056_v37 = vld [vmem:[%s1939_s8] sm:$0xff]  ;;  %v1057_v38 = vld [vmem:[%s1939_s8 + $0x8] sm:$0xff] }
  0xf3   : > { %v699_v40 = vadd.f32 %v1329_v31, %v661_v39  ;;  %v1058_v39 = vld [vmem:[%s1939_s8 + $0x10] sm:$0xff] }
  0xf4   : > { %v714_v49 = vsel %vm431_vm0, %v700_v41, 0.0 }
  0xf5   : > { %v1415_v42 = vpop.f32.mrb[4].mxu0  ;;  %v711_v44 = vsel %vm431_vm0, %v699_v40, 0.0 }
  0xf6   : > { %v677_v45 = vadd.f32 %v1415_v42, %v1395_v28  ;;  %709 = vadd.xlane.f32.xlu0 %v708_v43  ;;  %712 = vadd.xlane.f32.xlu1 %v711_v44  ;;  %v671_v46 = vpop.f32.mrb[5].mxu0 }
  0xf7   : > { %v672_v47 = vadd.f32 %v671_v46, %v542_v29 }
  0xf8   : > { %v702_v51 = vadd.f32 %v1329_v31, %v677_v45 }
  0xf9   : > { %v1418_v48 = vpop.f32.mrb[6].mxu0  ;;  %v701_v50 = vadd.f32 %v1329_v31, %v672_v47 }
  0xfa   : > { %v687_v52 = vadd.f32 %v1418_v48, %v1398_v30  ;;  %715 = vadd.xlane.f32.xlu1 %v714_v49  ;;  %v681_v53 = vpop.f32.mrb[7].mxu0  ;;  %v720_v56 = vsel %vm431_vm0, %v702_v51, 0.0 }
  0xfb   : > { %v682_v54 = vadd.f32 %v681_v53, %v552_v32  ;;  %v717_v55 = vsel %vm431_vm0, %v701_v50, 0.0 }
  0xfc   : > { %718 = vadd.xlane.f32.xlu0 %v717_v55  ;;  %v704_v58 = vadd.f32 %v1329_v31, %v687_v52 }
  0xfd   : > { %v703_v57 = vadd.f32 %v1329_v31, %v682_v54 }
  0xfe   : > { %721 = vadd.xlane.f32.xlu1 %v720_v56  ;;  %v726_v60 = vsel %vm431_vm0, %v704_v58, 0.0 }
  0xff   : > { %v723_v59 = vsel %vm431_vm0, %v703_v57, 0.0 }
 0x100   : > { %724 = vadd.xlane.f32.xlu0 %v723_v59 }
 0x102   : > { %727 = vadd.xlane.f32.xlu1 %v726_v60 }
 0x17f   : > { %v707_v61 = vpop.xlane.xlu0 %706 }
 0x180   : > { %v730_v62 = vmul.f32 0.03125, %v707_v61 }
 0x182   : > { %v1663_v63 = vsub.f32 %v697_v35, %v730_v62  ;;  %v1718_v62 = vld [vmem:[%s1937_s6] ss:$0 sm:$0xff] }
 0x183   : > { %v710_v0 = vpop.xlane.xlu0 %709  ;;  %v713_v1 = vpop.xlane.xlu1 %712 }
 0x184   : > { %v731_v2 = vmul.f32 0.03125, %v710_v0  ;;  %v732_v3 = vmul.f32 0.03125, %v713_v1  ;;  %v746_v4 = vmul.f32 %v1663_v63, %v1663_v63 }
 0x186   : > { %v1667_v5 = vsub.f32 %v698_v36, %v731_v2  ;;  %v1669_v6 = vsub.f32 %v699_v40, %v732_v3  ;;  %v754_v7 = vsel %vm431_vm0, %v746_v4, 0.0  ;;  %v1455_v40 = vpack.c.bf16 %v1057_v38, %v1056_v37  ;;  %v1724_v4 = vld [vmem:[%s1938_s7] ss:$0 sm:$0xff] }
 0x187   : > { %v716_v8 = vpop.xlane.xlu1 %715  ;;  %755 = vadd.xlane.f32.xlu0 %v754_v7 }
 0x188   : > { %v733_v9 = vmul.f32 0.03125, %v716_v8  ;;  %v747_v10 = vmul.f32 %v1667_v5, %v1667_v5  ;;  %v748_v11 = vmul.f32 %v1669_v6, %v1669_v6  ;;  %1456 = vmatprep.subr.bf16.mxu1 %v1455_v40 }
 0x189   : > { %v719_v12 = vpop.xlane.xlu0 %718  ;;  %1458 = vmatpush3.bf16.msra.mxu1 %v1455_v40 }
 0x18a   : > { %v1676_v13 = vsub.f32 %v700_v41, %v733_v9  ;;  %v734_v14 = vmul.f32 0.03125, %v719_v12  ;;  %v757_v15 = vsel %vm431_vm0, %v747_v10, 0.0  ;;  %v760_v16 = vsel %vm431_vm0, %v748_v11, 0.0  ;;  %v1059_v41 = vld [vmem:[%s1939_s8 + $0x18] sm:$0xff] }
 0x18b   : > { %v722_v17 = vpop.xlane.xlu1 %721  ;;  %758 = vadd.xlane.f32.xlu1 %v757_v15  ;;  %761 = vadd.xlane.f32.xlu0 %v760_v16  ;;  %v1459_v42 = vpack.c.bf16 %v1059_v41, %v1058_v39 }
 0x18c   : > { %v1680_v18 = vsub.f32 %v701_v50, %v734_v14  ;;  %v735_v19 = vmul.f32 0.03125, %v722_v17  ;;  %v749_v20 = vmul.f32 %v1676_v13, %v1676_v13 }
 0x18d   : > { %v725_v21 = vpop.xlane.xlu0 %724  ;;  %1460 = vmatprep.subr.bf16.mxu1 %v1459_v42 }
 0x18e   : > { %v1684_v22 = vsub.f32 %v702_v51, %v735_v19  ;;  %v736_v23 = vmul.f32 0.03125, %v725_v21  ;;  %v763_v24 = vsel %vm431_vm0, %v749_v20, 0.0  ;;  %v750_v25 = vmul.f32 %v1680_v18, %v1680_v18  ;;  %1462 = vmatpush3.bf16.msra.mxu1 %v1459_v42 }
 0x18f   : > { %764 = vadd.xlane.f32.xlu1 %v763_v24  ;;  %v728_v26 = vpop.xlane.xlu1 %727 }
 0x190   : > { %v1689_v27 = vsub.f32 %v703_v57, %v736_v23  ;;  %v737_v28 = vmul.f32 0.03125, %v728_v26  ;;  %v766_v29 = vsel %vm431_vm0, %v750_v25, 0.0  ;;  %v751_v30 = vmul.f32 %v1684_v22, %v1684_v22 }
 0x191   : > { %767 = vadd.xlane.f32.xlu0 %v766_v29 }
 0x192   : > { %v1694_v31 = vsub.f32 %v704_v58, %v737_v28  ;;  %v769_v32 = vsel %vm431_vm0, %v751_v30, 0.0  ;;  %v752_v33 = vmul.f32 %v1689_v27, %v1689_v27 }
 0x193   : > { %770 = vadd.xlane.f32.xlu1 %v769_v32 }
 0x194   : > { %v772_v34 = vsel %vm431_vm0, %v752_v33, 0.0  ;;  %v753_v35 = vmul.f32 %v1694_v31, %v1694_v31 }
 0x195   : > { %773 = vadd.xlane.f32.xlu0 %v772_v34 }
 0x196   : > { %v775_v36 = vsel %vm431_vm0, %v753_v35, 0.0 }
 0x197   : > { %776 = vadd.xlane.f32.xlu1 %v775_v36 }
 0x214   : > { %v756_v43 = vpop.xlane.xlu0 %755 }
 0x215   : > { %v778_v44 = vmul.f32 0.03125, %v756_v43 }
 0x217   : > { %v786_v45 = vadd.f32 1e-05, %v778_v44 }
 0x218   : > { %v759_v46 = vpop.xlane.xlu1 %758  ;;  %v762_v47 = vpop.xlane.xlu0 %761 }
 0x219   : > { %1483 = vrsqrt.f32 %v786_v45  ;;  %v779_v48 = vmul.f32 0.03125, %v759_v46  ;;  %v780_v49 = vmul.f32 0.03125, %v762_v47 }
 0x21b   : > { %v787_v50 = vadd.f32 1e-05, %v779_v48  ;;  %v788_v51 = vadd.f32 1e-05, %v780_v49 }
 0x21c   : > { %v765_v52 = vpop.xlane.xlu1 %764 }
 0x21d   : > { %1485 = vrsqrt.f32 %v787_v50  ;;  %v781_v53 = vmul.f32 0.03125, %v765_v52 }
 0x21e   : > { %1487 = vrsqrt.f32 %v788_v51  ;;  %v768_v54 = vpop.xlane.xlu0 %767 }
 0x21f   : > { %v789_v55 = vadd.f32 1e-05, %v781_v53  ;;  %v782_v56 = vmul.f32 0.03125, %v768_v54 }
 0x220   : > { %v771_v57 = vpop.xlane.xlu1 %770 }
 0x221   : > { %1489 = vrsqrt.f32 %v789_v55  ;;  %v790_v58 = vadd.f32 1e-05, %v782_v56  ;;  %v783_v59 = vmul.f32 0.03125, %v771_v57 }
 0x222   : > { %v774_v60 = vpop.xlane.xlu0 %773 }
 0x223   : > { %v1484_v61 = vpop.eup %1483  ;;  %v791_v0 = vadd.f32 1e-05, %v783_v59  ;;  %v784_v1 = vmul.f32 0.03125, %v774_v60  ;;  %1491 = vrsqrt.f32 %v790_v58 }
 0x224   : > { %v802_v2 = vmul.f32 %v1484_v61, %v1663_v63  ;;  %v777_v3 = vpop.xlane.xlu1 %776 }
 0x225   : > { %v792_v7 = vadd.f32 1e-05, %v784_v1  ;;  %v785_v8 = vmul.f32 0.03125, %v777_v3  ;;  %1493 = vrsqrt.f32 %v791_v0 }
 0x226   : > { %v817_v9 = vmul.f32 %v1718_v62, %v802_v2 }
 0x227   : > { %v1486_v10 = vpop.eup %1485  ;;  %1495 = vrsqrt.f32 %v792_v7  ;;  %v793_v15 = vadd.f32 1e-05, %v785_v8 }
 0x228   : > { %v1488_v11 = vpop.eup %1487  ;;  %v803_v12 = vmul.f32 %v1486_v10, %v1667_v5  ;;  %v832_v14 = vadd.f32 %v1724_v4, %v817_v9 }
 0x229   : > { %v804_v63 = vmul.f32 %v1488_v11, %v1669_v6  ;;  %1497 = vrsqrt.f32 %v793_v15 }
 0x22a   : > { %v818_v16 = vmul.f32 %v1718_v62, %v803_v12  ;;  %v1731_v17 = vmul.f32 0.70710677, %v832_v14  ;;  %v1783_v0 = vmul.f32 0.5, %v832_v14 }
 0x22b   : > { %v1490_v19 = vpop.eup %1489  ;;  %v819_v20 = vmul.f32 %v1718_v62, %v804_v63 }
 0x22c   : > { %v833_v21 = vadd.f32 %v1724_v4, %v818_v16  ;;  %v805_v23 = vmul.f32 %v1490_v19, %v1676_v13  ;;  %v856_v24 = vand.u32 2147483647, %v1731_v17  ;;  %vm1016_vm1 = vcmp.ge.f32.partialorder %v1731_v17, 0.0 }
 0x22d   : > { %v1738_v5 = vadd.f32 %v1724_v4, %v819_v20  ;;  %v1492_v25 = vpop.eup %1491 }
 0x22e   : > { %v1740_v6 = vmul.f32 0.70710677, %v833_v21  ;;  %v864_v26 = vmul.f32 0.3275911, %v856_v24  ;;  %v820_v29 = vmul.f32 %v1718_v62, %v805_v23  ;;  %v806_v34 = vmul.f32 %v1492_v25, %v1680_v18 }
 0x22f   : > { %v1743_v28 = vmul.f32 0.70710677, %v1738_v5  ;;  %v1494_v30 = vpop.eup %1493  ;;  %v968_v18 = vsub.f32 0.0, %v856_v24  ;;  %v1789_v9 = vmul.f32 0.5, %v833_v21 }
 0x230   : > { %v857_v32 = vand.u32 2147483647, %v1740_v6  ;;  %v872_v33 = vadd.f32 1.0, %v864_v26  ;;  %v1750_v36 = vadd.f32 %v1724_v4, %v820_v29  ;;  %v807_v38 = vmul.f32 %v1494_v30, %v1684_v22 }
 0x231   : > { %v1496_v13 = vpop.eup %1495  ;;  %v858_v35 = vand.u32 2147483647, %v1743_v28  ;;  %v821_v44 = vmul.f32 %v1718_v62, %v806_v34  ;;  %v976_v53 = vmul.f32 %v968_v18, %v856_v24  ;;  %vm1017_vm2 = vcmp.ge.f32.partialorder %v1740_v6, 0.0 }
 0x232   : > { %v865_v37 = vmul.f32 0.3275911, %v857_v32  ;;  %1499 = vrcp.f32 %v872_v33  ;;  %v808_v41 = vmul.f32 %v1496_v13, %v1689_v27  ;;  %v1755_v42 = vmul.f32 0.70710677, %v1750_v36 }
 0x233   : > { %v866_v39 = vmul.f32 0.3275911, %v858_v35  ;;  %v1498_v46 = vpop.eup %1497  ;;  %v969_v47 = vsub.f32 0.0, %v857_v32  ;;  %v1760_v48 = vadd.f32 %v1724_v4, %v821_v44  ;;  %v822_v22 = vmul.f32 %v1718_v62, %v807_v38 }
 0x234   : > { %v873_v40 = vadd.f32 1.0, %v865_v37  ;;  %v859_v45 = vand.u32 2147483647, %v1755_v42  ;;  %v823_v27 = vmul.f32 %v1718_v62, %v808_v41  ;;  %v809_v52 = vmul.f32 %v1498_v46, %v1694_v31 }
 0x235   : > { %v874_v43 = vadd.f32 1.0, %v866_v39  ;;  %v1765_v50 = vmul.f32 0.70710677, %v1760_v48  ;;  %v1768_v51 = vadd.f32 %v1724_v4, %v822_v22  ;;  %v977_v56 = vmul.f32 %v969_v47, %v857_v32 }
 0x236   : > { %1501 = vrcp.f32 %v873_v40  ;;  %v867_v49 = vmul.f32 0.3275911, %v859_v45  ;;  %v1772_v55 = vadd.f32 %v1724_v4, %v823_v27  ;;  %v970_v60 = vsub.f32 0.0, %v858_v35 }
 0x237   : > { %1503 = vrcp.f32 %v874_v43  ;;  %v860_v57 = vand.u32 2147483647, %v1765_v50  ;;  %v1776_v58 = vmul.f32 0.70710677, %v1768_v51  ;;  %v984_v2 = vmul.f32 1.442695, %v976_v53 }
 0x238   : > { %v875_v54 = vadd.f32 1.0, %v867_v49  ;;  %v1781_v61 = vmul.f32 0.70710677, %v1772_v55  ;;  %v824_v8 = vmul.f32 %v1718_v62, %v809_v52  ;;  %v986_v10 = vmul.f32 1.442695, %v977_v56 }
 0x239   : > { %v868_v1 = vmul.f32 0.3275911, %v860_v57  ;;  %v861_v3 = vand.u32 2147483647, %v1776_v58  ;;  %v978_v15 = vmul.f32 %v970_v60, %v858_v35  ;;  %v971_v14 = vsub.f32 0.0, %v859_v45 }
 0x23a   : > { %1505 = vrcp.f32 %v875_v54  ;;  %v862_v7 = vand.u32 2147483647, %v1781_v61  ;;  %v972_v25 = vsub.f32 0.0, %v860_v57  ;;  %v1799_v29 = vadd.f32 %v1724_v4, %v824_v8 }
 0x23b   : > { %v876_v12 = vadd.f32 1.0, %v868_v1  ;;  %v869_v16 = vmul.f32 0.3275911, %v861_v3  ;;  %v973_v33 = vsub.f32 0.0, %v861_v3  ;;  %v988_v34 = vmul.f32 1.442695, %v978_v15 }
 0x23c   : > { %v1778_v59 = vpop.eup %1499  ;;  %v870_v19 = vmul.f32 0.3275911, %v862_v7  ;;  %v979_v35 = vmul.f32 %v971_v14, %v859_v45  ;;  %v980_v39 = vmul.f32 %v972_v25, %v860_v57  ;;  %v974_v41 = vsub.f32 0.0, %v862_v7 }
 0x23d   : > { %v896_v31 = vmul.f32 1.0614054, %v1778_v59  ;;  %1507 = vrcp.f32 %v876_v12  ;;  %v877_v21 = vadd.f32 1.0, %v869_v16  ;;  %v1807_v43 = vmul.f32 0.70710677, %v1799_v29 }
 0x23e   : > { %v878_v26 = vadd.f32 1.0, %v870_v19  ;;  %1509 = vpow2.f32 %v984_v2  ;;  %v981_v46 = vmul.f32 %v973_v33, %v861_v3  ;;  %v990_v22 = vmul.f32 1.442695, %v979_v35 }
 0x23f   : > { %v904_v11 = vadd.f32 -1.4531521, %v896_v31  ;;  %1511 = vrcp.f32 %v877_v21  ;;  %v1811_v49 = vand.u32 2147483647, %v1807_v43  ;;  %v992_v54 = vmul.f32 1.442695, %v980_v39 }
 0x240   : > { %v1791_v63 = vpop.eup %1501  ;;  %1513 = vrcp.f32 %v878_v26  ;;  %v1816_v56 = vmul.f32 0.5, %v1738_v5  ;;  %v982_v60 = vmul.f32 %v974_v41, %v862_v7  ;;  %vm1018_vm3 = vcmp.ge.f32.partialorder %v1743_v28, 0.0 }
 0x241   : > { %v1793_v20 = vpop.eup %1503  ;;  %v912_v23 = vmul.f32 %v1778_v59, %v904_v11  ;;  %v897_v24 = vmul.f32 1.0614054, %v1791_v63  ;;  %1515 = vpow2.f32 %v986_v10  ;;  %v871_v31 = vmul.f32 0.3275911, %v1811_v49 }
 0x242   : > { %v898_v62 = vmul.f32 1.0614054, %v1793_v20  ;;  %1517 = vpow2.f32 %v988_v34  ;;  %v994_v10 = vmul.f32 1.442695, %v981_v46  ;;  %v996_v25 = vmul.f32 1.442695, %v982_v60 }
 0x243   : > { %v920_v30 = vadd.f32 1.4214138, %v912_v23  ;;  %v905_v32 = vadd.f32 -1.4531521, %v897_v24  ;;  %1519 = vpow2.f32 %v990_v22  ;;  %v879_v5 = vadd.f32 1.0, %v871_v31 }
 0x244   : > { %v906_v13 = vadd.f32 -1.4531521, %v898_v62  ;;  %v1803_v40 = vpop.eup %1505  ;;  %1521 = vpow2.f32 %v992_v54  ;;  %vm1019_vm4 = vcmp.ge.f32.partialorder %v1755_v42, 0.0  ;;  %vm1020_vm5 = vcmp.ge.f32.partialorder %v1765_v50, 0.0 }
 0x245   : > { %v928_v37 = vmul.f32 %v1778_v59, %v920_v30  ;;  %v913_v38 = vmul.f32 %v1791_v63, %v905_v32  ;;  %v899_v45 = vmul.f32 1.0614054, %v1803_v40  ;;  %1523 = vrcp.f32 %v879_v5 }
 0x246   : > { %v914_v4 = vmul.f32 %v1793_v20, %v906_v13  ;;  %1525 = vpow2.f32 %v994_v10  ;;  %vm1021_vm6 = vcmp.ge.f32.partialorder %v1776_v58, 0.0  ;;  %vm1022_vm7 = vcmp.ge.f32.partialorder %v1781_v61, 0.0 }
 0x247   : > { %v936_v44 = vadd.f32 -0.28449672, %v928_v37  ;;  %v921_v18 = vadd.f32 1.4214138, %v913_v38  ;;  %v907_v53 = vadd.f32 -1.4531521, %v899_v45  ;;  %v1820_v1 = vpop.eup %1507  ;;  %1527 = vpow2.f32 %v996_v25 }
 0x248   : > { %v922_v47 = vadd.f32 1.4214138, %v914_v4  ;;  %v900_v12 = vmul.f32 1.0614054, %v1820_v1  ;;  %v1510_v15 = vpop.eup %1509  ;;  %v975_v45 = vsub.f32 0.0, %v1811_v49  ;;  %vm1023_vm8 = vcmp.ge.f32.partialorder %v1807_v43, 0.0 }
 0x249   : > { %v944_v27 = vmul.f32 %v1778_v59, %v936_v44  ;;  %v929_v52 = vmul.f32 %v1791_v63, %v921_v18  ;;  %v915_v8 = vmul.f32 %v1803_v40, %v907_v53  ;;  %v1827_v19 = vpop.eup %1511 }
 0x24a   : > { %v930_v57 = vmul.f32 %v1793_v20, %v922_v47  ;;  %v908_v24 = vadd.f32 -1.4531521, %v900_v12  ;;  %v1830_v62 = vpop.eup %1513  ;;  %v901_v32 = vmul.f32 1.0614054, %v1827_v19 }
 0x24b   : > { %v952_v2 = vadd.f32 0.2548296, %v944_v27  ;;  %v937_v3 = vadd.f32 -0.28449672, %v929_v52  ;;  %v923_v16 = vadd.f32 1.4214138, %v915_v8 }
 0x24c   : > { %v938_v11 = vadd.f32 -0.28449672, %v930_v57  ;;  %v916_v13 = vmul.f32 %v1820_v1, %v908_v24  ;;  %v902_v34 = vmul.f32 1.0614054, %v1830_v62  ;;  %v909_v39 = vadd.f32 -1.4531521, %v901_v32 }
 0x24d   : > { %v960_v14 = vmul.f32 %v1778_v59, %v952_v2  ;;  %v945_v7 = vmul.f32 %v1791_v63, %v937_v3  ;;  %v931_v30 = vmul.f32 %v1803_v40, %v923_v16  ;;  %v1516_v59 = vpop.eup %1515 }
 0x24e   : > { %v946_v23 = vmul.f32 %v1793_v20, %v938_v11  ;;  %v1518_v4 = vpop.eup %1517  ;;  %v924_v44 = vadd.f32 1.4214138, %v916_v13  ;;  %v910_v18 = vadd.f32 -1.4531521, %v902_v34  ;;  %v917_v27 = vmul.f32 %v1827_v19, %v909_v39 }
 0x24f   : > { %v1000_v21 = vmul.f32 %v1510_v15, %v960_v14  ;;  %v953_v26 = vadd.f32 0.2548296, %v945_v7  ;;  %v939_v38 = vadd.f32 -0.28449672, %v931_v30  ;;  %v1520_v31 = vpop.eup %1519  ;;  %v983_v14 = vmul.f32 %v975_v45, %v1811_v49 }
 0x250   : > { %v954_v33 = vadd.f32 0.2548296, %v946_v23  ;;  %v918_v53 = vmul.f32 %v1830_v62, %v910_v18  ;;  %v925_v60 = vadd.f32 1.4214138, %v917_v27  ;;  %v1522_v11 = vpop.eup %1521 }
 0x251   : > { %v1008_v35 = vsub.f32 1.0, %v1000_v21  ;;  %v961_v37 = vmul.f32 %v1791_v63, %v953_v26  ;;  %v947_v22 = vmul.f32 %v1803_v40, %v939_v38  ;;  %v932_v63 = vmul.f32 %v1820_v1, %v924_v44  ;;  %v1850_v7 = vpop.eup %1523 }
 0x252   : > { %v962_v41 = vmul.f32 %v1793_v20, %v954_v33  ;;  %v926_v10 = vadd.f32 1.4214138, %v918_v53  ;;  %v933_v15 = vmul.f32 %v1827_v19, %v925_v60  ;;  %v1526_v30 = vpop.eup %1525  ;;  %v998_v39 = vmul.f32 1.442695, %v983_v14 }
 0x253   : > { %v1024_v46 = vsub.f32 0.0, %v1008_v35  ;;  %v1001_v47 = vmul.f32 %v1516_v59, %v961_v37  ;;  %v955_v57 = vadd.f32 0.2548296, %v947_v22  ;;  %v940_v8 = vadd.f32 -0.28449672, %v932_v63  ;;  %v1528_v18 = vpop.eup %1527 }
 0x254   : > { %v1002_v52 = vmul.f32 %v1518_v4, %v962_v41  ;;  %v934_v24 = vmul.f32 %v1830_v62, %v926_v10  ;;  %v941_v26 = vadd.f32 -0.28449672, %v933_v15  ;;  %1529 = vpow2.f32 %v998_v39 }
 0x255   : > { %v1032_v54 = vsel %vm1016_vm1, %v1008_v35, %v1024_v46  ;;  %v1009_v20 = vsub.f32 1.0, %v1001_v47  ;;  %v963_v5 = vmul.f32 %v1803_v40, %v955_v57  ;;  %v948_v23 = vmul.f32 %v1820_v1, %v940_v8 }
 0x256   : > { %v1040_v2 = vadd.f32 1.0, %v1032_v54  ;;  %v1010_v3 = vsub.f32 1.0, %v1002_v52  ;;  %v903_v40 = vmul.f32 1.0614054, %v1850_v7  ;;  %v942_v59 = vadd.f32 -0.28449672, %v934_v24 }
 0x257   : > { %v1025_v12 = vsub.f32 0.0, %v1009_v20  ;;  %v1003_v21 = vmul.f32 %v1520_v31, %v963_v5  ;;  %v949_v34 = vmul.f32 %v1827_v19, %v941_v26  ;;  %v844_v31 = vmul.f32 0.5, %v1760_v48 }
 0x258   : > { %v1048_v17 = vmul.f32 %v1040_v2, %v1783_v0  ;;  %v1026_v16 = vsub.f32 0.0, %v1010_v3  ;;  %v956_v0 = vadd.f32 0.2548296, %v948_v23  ;;  %v911_v35 = vadd.f32 -1.4531521, %v903_v40  ;;  %v1197_v40 = vld [vmem:[%s1893_s18 + $0x8] sm:$0xff] }
 0x259   : > { %v1033_v25 = vsel %vm1017_vm2, %v1009_v20, %v1025_v12  ;;  %v1011_v13 = vsub.f32 1.0, %v1003_v21  ;;  %v950_v38 = vmul.f32 %v1830_v62, %v942_v59  ;;  %v957_v44 = vadd.f32 0.2548296, %v949_v34 }
 0x25a   : > { %1427 = vmatprep.mubr.msk.f32.mxu1 %vm431_vm0, %v1048_v17  ;;  %v1041_v49 = vadd.f32 1.0, %v1033_v25  ;;  %v1034_v32 = vsel %vm1018_vm3, %v1010_v3, %v1026_v16  ;;  %v964_v37 = vmul.f32 %v1820_v1, %v956_v0  ;;  %v919_v28 = vmul.f32 %v1850_v7, %v911_v35 }
 0x25b   : > { %v1042_v33 = vadd.f32 1.0, %v1034_v32  ;;  %v1027_v41 = vsub.f32 0.0, %v1011_v13  ;;  %v958_v46 = vadd.f32 0.2548296, %v950_v38  ;;  %v965_v47 = vmul.f32 %v1827_v19, %v957_v44 }
 0x25c   : > { %v1049_v6 = vmul.f32 %v1041_v49, %v1789_v9  ;;  %v1004_v45 = vmul.f32 %v1522_v11, %v964_v37  ;;  %v843_v9 = vmul.f32 0.5, %v1750_v36  ;;  %v927_v22 = vadd.f32 1.4214138, %v919_v28  ;;  %v1196_v49 = vld [vmem:[%s1893_s18] sm:$0xff] }
 0x25d   : > { %v1050_v4 = vmul.f32 %v1042_v33, %v1816_v56  ;;  %v1035_v1 = vsel %vm1019_vm4, %v1011_v13, %v1027_v41  ;;  %v966_v52 = vmul.f32 %v1830_v62, %v958_v46  ;;  %v1005_v63 = vmul.f32 %v1526_v30, %v965_v47  ;;  %v1199_v13 = vld [vmem:[%s1893_s18 + $0x18] sm:$0xff]  ;;  %v1201_v41 = vld [vmem:[%s1893_s18 + $0x28] sm:$0xff] }
 0x25e   : > { %1428 = vmatmul.mubr.msk.f32.vlgmr.msra.gmra.mrb[4].mxu1 %vm431_vm0, %v1049_v6  ;;  %v1043_v56 = vadd.f32 1.0, %v1035_v1  ;;  %v1012_v27 = vsub.f32 1.0, %v1004_v45  ;;  %v935_v53 = vmul.f32 %v1850_v7, %v927_v22  ;;  %v845_v12 = vmul.f32 0.5, %v1768_v51  ;;  %v1530_v16 = vpop.eup %1529  ;;  %v1198_v6 = vld [vmem:[%s1893_s18 + $0x10] sm:$0xff]  ;;  %v1203_v47 = vld [vmem:[%s1893_s18 + $0x38] sm:$0xff] }
 0x25f   : > { %1430 = vmatprep.mubr.msk.f32.mxu1 %vm431_vm0, %v1050_v4  ;;  %v1006_v20 = vmul.f32 %v1528_v18, %v966_v52  ;;  %v1013_v57 = vsub.f32 1.0, %v1005_v63  ;;  %v846_v48 = vmul.f32 0.5, %v1772_v55  ;;  %v847_v55 = vmul.f32 0.5, %v1799_v29  ;;  %v1200_v18 = vld [vmem:[%s1893_s18 + $0x20] sm:$0xff] }
 0x260   : > { %v1051_v54 = vmul.f32 %v1043_v56, %v843_v9  ;;  %v1028_v42 = vsub.f32 0.0, %v1012_v27  ;;  %v943_v60 = vadd.f32 -0.28449672, %v935_v53 }
 0x261   : > { %v1014_v19 = vsub.f32 1.0, %v1006_v20  ;;  %v1029_v3 = vsub.f32 0.0, %v1013_v57 }
 0x262   : > { %1431 = vmatmul.mubr.msk.f32.gmra.mrb[6].mxu1 %vm431_vm0, %v1051_v54  ;;  %v1036_v36 = vsel %vm1020_vm5, %v1012_v27, %v1028_v42  ;;  %v951_v62 = vmul.f32 %v1850_v7, %v943_v60  ;;  %v1202_v27 = vld [vmem:[%s1893_s18 + $0x30] sm:$0xff] }
 0x263   : > { %v1044_v2 = vadd.f32 1.0, %v1036_v36  ;;  %v1030_v8 = vsub.f32 0.0, %v1014_v19  ;;  %v1037_v11 = vsel %vm1021_vm6, %v1013_v57, %v1029_v3 }
 0x264   : > { %v959_v50 = vadd.f32 0.2548296, %v951_v62  ;;  %v1045_v5 = vadd.f32 1.0, %v1037_v11 }
 0x265   : > { %v1052_v10 = vmul.f32 %v1044_v2, %v844_v31  ;;  %v1038_v15 = vsel %vm1022_vm7, %v1014_v19, %v1030_v8 }
 0x266   : > { %v1046_v14 = vadd.f32 1.0, %v1038_v15  ;;  %v967_v17 = vmul.f32 %v1850_v7, %v959_v50  ;;  %v1053_v58 = vmul.f32 %v1045_v5, %v845_v12  ;;  %v1332_v7 = vld [vmem:[%s1940_s9] ss:$0 sm:$0xff] }
 0x267   : > { %1433 = vmatprep.mubr.msk.f32.mxu1 %vm431_vm0, %v1052_v10 }
 0x268   : > { %v1054_v23 = vmul.f32 %v1046_v14, %v846_v48  ;;  %v1007_v24 = vmul.f32 %v1530_v16, %v967_v17  ;;  %1434 = vmatmul.mubr.msk.f32.gmra.mrb[8].mxu1 %vm431_vm0, %v1053_v58 }
 0x26a   : > { %1436 = vmatprep.mubr.msk.f32.mxu1 %vm431_vm0, %v1054_v23  ;;  %v1015_v51 = vsub.f32 1.0, %v1007_v24 }
 0x26c   : > { %v1031_v61 = vsub.f32 0.0, %v1015_v51 }
 0x26e   : > { %v1039_v25 = vsel %vm1023_vm8, %v1015_v51, %v1031_v61 }
 0x26f   : > { %v1047_v21 = vadd.f32 1.0, %v1039_v25 }
 0x271   : > { %v1055_v26 = vmul.f32 %v1047_v21, %v847_v55 }
 0x273   : > { %1437 = vmatmul.mubr.msk.f32.gmra.mrb[10].mxu1 %vm431_vm0, %v1055_v26 }
 0x331   : > { %v1429_v43 = vpop.f32.mrb[4].mxu1 }
 0x332   : > { %v1163_v29 = vadd.f32 %v1429_v43, %v1332_v7  ;;  %v1157_v30 = vpop.f32.mrb[5].mxu1 }
 0x333   : > { %v1158_v32 = vadd.f32 %v1332_v7, %v1157_v30 }
 0x334   : > { %v1205_v0 = vadd.f32 %v1197_v40, %v1163_v29 }
 0x335   : > { %v1204_v59 = vadd.f32 %v1196_v49, %v1158_v32  ;;  %v1432_v33 = vpop.f32.mrb[6].mxu1 }
 0x336   : > { %1213 = vst.msk [vmem:[%s1904_s23 + $0x8] sm:$0xff] %vm431_vm0, %v1205_v0  ;;  %v1173_v34 = vadd.f32 %v1432_v33, %v1332_v7  ;;  %v1167_v35 = vpop.f32.mrb[7].mxu1 }
 0x337   : > { %1212 = vst.msk [vmem:[%s1904_s23] sm:$0xff] %vm431_vm0, %v1204_v59  ;;  %v1168_v37 = vadd.f32 %v1332_v7, %v1167_v35 }
 0x338   : > { %v1207_v38 = vadd.f32 %v1199_v13, %v1173_v34 }
 0x339   : > { %v1206_v39 = vadd.f32 %v1198_v6, %v1168_v37 }
 0x33a   : > { %1215 = vst.msk [vmem:[%s1904_s23 + $0x18] sm:$0xff] %vm431_vm0, %v1207_v38 }
 0x33b   : > { %1214 = vst.msk [vmem:[%s1904_s23 + $0x10] sm:$0xff] %vm431_vm0, %v1206_v39  ;;  %v1435_v4 = vpop.f32.mrb[8].mxu1 }
 0x33c   : > { %v1183_v44 = vadd.f32 %v1435_v4, %v1332_v7  ;;  %v1177_v28 = vpop.f32.mrb[9].mxu1 }
 0x33d   : > { %v1178_v45 = vadd.f32 %v1332_v7, %v1177_v28 }
 0x33e   : > { %v1209_v46 = vadd.f32 %v1201_v41, %v1183_v44 }
 0x33f   : > { %v1208_v9 = vadd.f32 %v1200_v18, %v1178_v45 }
 0x340   : > { %1217 = vst.msk [vmem:[%s1904_s23 + $0x28] sm:$0xff] %vm431_vm0, %v1209_v46 }
 0x341   : > { %1216 = vst.msk [vmem:[%s1904_s23 + $0x20] sm:$0xff] %vm431_vm0, %v1208_v9 }
 0x346   : > { %v1438_v1 = vpop.f32.mrb[10].mxu1 }
 0x347   : > { %v1193_v22 = vadd.f32 %v1438_v1, %v1332_v7  ;;  %v1187_v56 = vpop.f32.mrb[11].mxu1 }
 0x348   : > { %v1188_v52 = vadd.f32 %v1332_v7, %v1187_v56 }
 0x349   : > { %v1211_v63 = vadd.f32 %v1203_v47, %v1193_v22 }
 0x34a   : > { %v1210_v53 = vadd.f32 %v1202_v27, %v1188_v52 }
 0x34b   : > { %1219 = vst.msk [vmem:[%s1904_s23 + $0x38] sm:$0xff] %vm431_vm0, %v1211_v63 }
 0x34c   : > { %1218 = vst.msk [vmem:[%s1904_s23 + $0x30] sm:$0xff] %vm431_vm0, %v1210_v53 }
 0x34d PF: > { %s20_s13 = sadd.s32 1, %s1537_s13  }
 0x34e   : > { %p17_p4 = scmp.ge.s32.totalorder %s20_s13, 4  }
 0x350   :  { %19 = sbr.rel (!%p17_p4) target bundleno = 1 (0x1), region = 96 }

// kernel: _lambda_.3
= control target key start
LH: loop header
LB: loop body
LE: loop exit
PB: predicated region body
PF: predicated region fallthrough
CT: control target
= control target key end

     0   :  { %s12636_s0 = inlined_call_operand.hbm [shape: f32[2,64,32], index: 0, kind: input, shape index: {}, may-alias: {0,1}]   ;;  %s12637_s1 = inlined_call_operand.hbm [shape: f32[2,64,32], index: 1, kind: input, shape index: {}, may-alias: {0,1}]   ;;  %s12638_s2 = inlined_call_operand.hbm [shape: f32[8,32,4], index: 2, kind: input, shape index: {}]   ;;  %s12639_s3 = inlined_call_operand.hbm [shape: f32[8,32,4], index: 3, kind: input, shape index: {}]   ;;  %s12640_s4 = inlined_call_operand.hbm [shape: f32[8,32,4], index: 4, kind: input, shape index: {}]   ;;  %s12641_s5 = inlined_call_operand.vmem [shape: f32[8,1,4], index: 5, kind: input, shape index: {}]   ;;  %s12642_s6 = inlined_call_operand.vmem [shape: f32[8,1,4], index: 6, kind: input, shape index: {}]   ;;  %s12643_s7 = inlined_call_operand.vmem [shape: f32[8,1,4], index: 7, kind: input, shape index: {}]   ;;  %s12644_s8 = inlined_call_operand.vmem [shape: f32[8,4,32], index: 8, kind: input, shape index: {}]   ;;  %s12645_s9 = inlined_call_operand.vmem [shape: f32[1,32], index: 9, kind: input, shape index: {}]   ;;  %s12646_s10 = inlined_call_operand.vmem [shape: f32[2,64,32], index: 10, kind: output, shape index: {}]  }
   0x1   :  { %12654 = sst [smem:[#allocation14_spill]] %s12636_s0 }
   0x2   :  { %12655 = sst [smem:[#allocation15_spill]] %s12638_s2 }
   0x3   :  { %12656 = sst [smem:[#allocation16_spill]] %s12645_s9 }
   0x4   :  { %12657 = sst [smem:[#allocation17_spill]] %s12646_s10 }
   0x5   :  { %15 = vsyncpa [#allocation3], 0 }
   0x6   :  { %17 = vsyncpa [#allocation3 + $0x1], 0 }
   0x7   :  { %18 = vsyncpa [#allocation5], 0 }
   0x8   :  { %20 = vsyncpa [#allocation5 + $0x1], 0 }
   0x9   :  { %21 = vsyncpa [#allocation8], 0  ;;  %s11051_s13 = smov 0   ;;  %s11053_s14 = smov 0  }
   0xa   :  { %s11055_s15 = smov 0   ;;  %s11057_s16 = smov 0  }
   0xb LB: > { %s11070_s17 = sadd.s32 4294967295, %s10987_s16   ;;  %p47_p0 = scmp.ne.s32.totalorder %s10979_s14, %s10975_s13  ;;  %s10987_s16 = sphi %s11057_s16, %s12680_s16   ;;  %s10983_s15 = sphi %s11055_s15, %s12679_s15   ;;  %s10979_s14 = sphi %s11053_s14, %s12678_s14   ;;  %s10975_s13 = sphi %s11051_s13, %s12677_s13  }
   0xc   : > { %p12647_p1 = scmp.eq.s32.totalorder %s11070_s17, 0  ;;  %p7651_p2 = scmp.ge.s32.totalorder %s10987_s16, 1 }
   0xd   : > { %p278_p3 = scmp.lt.s32.totalorder %s10987_s16, 3  ;;  %s10989_s20 = smov [#allocation6]  }
   0xe   : > { %p11078_p4 = por %p12647_p1, %p47_p0  ;;  %s290_s21 = sshll.u32 %s10989_s20, 4  ;;  %s11086_s21 = int_to_ptr.vmem [resolvable:$true] %s290_s21 }
   0xf   : > { %p11082_p5 = pnand %p7651_p2, %p278_p3  ;;  %s10990_s23 = smov [#allocation7]  }
  0x10   : > { %s12658_s18 = scalar_select %p11078_p4, 1, 0 }
  0x11   : > { %s12659_s19 = scalar_select %p11082_p5, 1, 0 }
  0x12   : > { %p10432_p6 = pneg %p11082_p5  ;;  %s303_s24 = sshll.u32 %s10990_s23, 4  ;;  %s11096_s24 = int_to_ptr.vmem [resolvable:$true] %s303_s24 }
  0x13   : > { %s10991_s25 = smov [#allocation9]   ;;  %s12661_s2 = sld [smem:[#allocation15_spill]] }
  0x14   : > { %p11092_p7 = pnand %p10432_p6, %p12647_p1  ;;  %s11098_s26 = sshll.u32 %s10991_s25, 4  ;;  %s317_s26 = int_to_ptr.vmem [resolvable:$true] %s11098_s26 }
  0x16   : > { %p11108_p9 = pneg %p11092_p7 }
  0x19   : > { %s10797_s29 = scalar_lea.hbm %s12661_s2, 4096 }
  0x1a   : > { %p10798_p8 = scmp.ne.s32.totalorder %s12661_s2, %s10797_s29  ;;  %p10804_p12 = scmp.lt.u32.totalorder %s10797_s29, %s12661_s2 }
  0x1c   : > { %p10800_p10 = pnand %p11108_p9, %p10798_p8 }
  0x1e   : > { %p10801_p11 = pneg %p10800_p10 }
  0x20   : > { %p10806_p13 = pnand %p10804_p12, %p10801_p11 }
  0x22   : > { %10809 = shalt.err (!%p10806_p13)
}
  0x23   : > { %s10810_s23 = scalar_lea.vmem %s11086_s21, 4096  ;;  %p10818_p6 = scmp.lt.s32.totalorder %s11086_s21, %s11086_s21 }
  0x24   : > { %p10811_p0 = scmp.ne.s32.totalorder %s11086_s21, %s10810_s23  ;;  %p10819_p1 = scmp.lt.s32.totalorder %s10810_s23, %s10810_s23 }
  0x26   : > { %p10813_p2 = pnand %p10811_p0, %p11108_p9  ;;  %p10820_p8 = por %p10819_p1, %p10818_p6 }
  0x28   : > { %p10814_p3 = pneg %p10813_p2 }
  0x2a   : > { %p10821_p10 = pnand %p10820_p8, %p10814_p3 }
  0x2c   : > { %10824 = shalt.err (!%p10821_p10)
}
  0x2d   : > { %s12650_s25 = smov 128   ;;  %s12652_s27 = smov 8  }
  0x2e   : > { %10435 = dma.hbm_to_vmem [thread:$0]  (!%p11092_p7), %s12661_s2, 4096, %s11086_s21, [#allocation5], %s12650_s25, %s12650_s25, %s12652_s27  }
  0x2f   : > { %s10825_s13 = scalar_lea.hbm %s12639_s3, 4096 }
  0x30   : > { %p10826_p1 = scmp.ne.s32.totalorder %s12639_s3, %s10825_s13  ;;  %p10832_p13 = scmp.lt.u32.totalorder %s10825_s13, %s12639_s3 }
  0x32   : > { %p10828_p11 = pnand %p10826_p1, %p11108_p9 }
  0x34   : > { %p10829_p12 = pneg %p10828_p11 }
  0x36   : > { %p10834_p0 = pnand %p10832_p13, %p10829_p12 }
  0x38   : > { %10837 = shalt.err (!%p10834_p0)
}
  0x39   : > { %s10838_s21 = scalar_lea.vmem %s11096_s24, 4096  ;;  %p10846_p8 = scmp.lt.s32.totalorder %s11096_s24, %s11096_s24 }
  0x3a   : > { %p10839_p2 = scmp.ne.s32.totalorder %s11096_s24, %s10838_s21  ;;  %p10847_p10 = scmp.lt.s32.totalorder %s10838_s21, %s10838_s21 }
  0x3c   : > { %p10841_p3 = pnand %p10839_p2, %p11108_p9  ;;  %p10848_p1 = por %p10847_p10, %p10846_p8 }
  0x3e   : > { %p10842_p6 = pneg %p10841_p3 }
  0x40   : > { %p10849_p11 = pnand %p10848_p1, %p10842_p6 }
  0x42   : > { %10852 = shalt.err (!%p10849_p11)
}
  0x43   : > { %10438 = dma.hbm_to_vmem [thread:$0]  (!%p11092_p7), %s12639_s3, 4096, %s11096_s24, [#allocation8], %s12650_s25, %s12650_s25, %s12652_s27  }
  0x44   : > { %s10853_s30 = scalar_lea.hbm %s12640_s4, 4096 }
  0x45   : > { %p10854_p12 = scmp.ne.s32.totalorder %s12640_s4, %s10853_s30  ;;  %p10860_p2 = scmp.lt.u32.totalorder %s10853_s30, %s12640_s4 }
  0x47   : > { %p10856_p13 = pnand %p10854_p12, %p11108_p9 }
  0x49   : > { %p10857_p0 = pneg %p10856_p13 }
  0x4b   : > { %p10862_p3 = pnand %p10860_p2, %p10857_p0 }
  0x4d   : > { %10865 = shalt.err (!%p10862_p3)
}
  0x4e   : > { %s10866_s21 = scalar_lea.vmem %s317_s26, 4096  ;;  %p10874_p1 = scmp.lt.s32.totalorder %s317_s26, %s317_s26 }
  0x4f   : > { %p10867_p6 = scmp.ne.s32.totalorder %s317_s26, %s10866_s21  ;;  %p10875_p11 = scmp.lt.s32.totalorder %s10866_s21, %s10866_s21 }
  0x51   : > { %p10869_p8 = pnand %p10867_p6, %p11108_p9  ;;  %p10876_p4 = por %p10875_p11, %p10874_p1 }
  0x53   : > { %p10870_p10 = pneg %p10869_p8 }
  0x55   : > { %p10877_p5 = pnand %p10876_p4, %p10870_p10 }
  0x57   : > { %10880 = shalt.err (!%p10877_p5)
}
  0x58   : > { %10441 = dma.hbm_to_vmem [thread:$0]  (!%p11092_p7), %s12640_s4, 4096, %s317_s26, [#allocation8], %s12650_s25, %s12650_s25, %s12652_s27  }
  0x59   : > { %s11181_s12 = sadd.s32 1, %s10987_s16   ;;  %s34_s10 = sadd.s32 1, %s10983_s15 }
  0x5a   : > { %s31_s22 = ssub.s32 %s10987_s16, %s11181_s12  ;;  %p41_p5 = scmp.ne.s32.totalorder %s10983_s15, %s10979_s14 }
  0x5b   : > { %p32_p4 = scmp.eq.s32.totalorder %s31_s22, 0  ;;  %p42_p9 = scmp.eq.s32.totalorder %s10987_s16, 0 }
  0x5c   : > { %p10452_p12 = scmp.lt.s32.totalorder %s10987_s16, 2  ;;  %s345_s29 = sand.u32 1, %s10983_s15  }
  0x5d   : > { %s11191_s28 = scalar_select %p32_p4, %s10983_s15, %s34_s10  }
  0x5e   : > { %p43_p13 = por %p42_p9, %p41_p5  ;;  %s7656_s30 = sshll.u32 %s345_s29, 6 }
  0x5f   : > { %s8181_s11 = sshll.u32 %s10987_s16, 10  ;;  %s12663_s0 = sld [smem:[#allocation14_spill]] }
  0x60   : > { %s349_s26 = scalar_lea.vmem [#allocation2], %s7656_s30  ;;  %p11202_p7 = pnand %p10452_p12, %p43_p13 }
  0x61   : > { %s356_s21 = sshll.u32 %s349_s26, 4  ;;  %s11209_s10 = scalar_lea.hbm %s12637_s1, %s8181_s11  ;;  %s11200_s21 = int_to_ptr.vmem [resolvable:$true] %s356_s21 }
  0x62   : > { %s370_s13 = scalar_lea.vmem [#allocation4], %s7656_s30  ;;  %s11213_s25 = scalar_lea.sflag [#allocation3], %s345_s29 }
  0x63   : > { %s11211_s20 = sshll.u32 %s370_s13, 4  ;;  %p10883_p2 = pneg %p11202_p7  ;;  %s11245_s20 = int_to_ptr.vmem [resolvable:$true] %s11211_s20 }
  0x65   : > { %s11198_s23 = scalar_lea.hbm %s12663_s0, %s8181_s11  ;;  %s10886_s9 = scalar_lea.hbm %s12663_s0, 2048 }
  0x66   : > { %s10881_s26 = scalar_lea.hbm %s11198_s23, 1024  ;;  %p10887_p8 = scmp.lt.u32.totalorder %s11198_s23, %s12663_s0 }
  0x67   : > { %p10882_p0 = scmp.ne.s32.totalorder %s11198_s23, %s10881_s26  ;;  %p10888_p10 = scmp.lt.u32.totalorder %s10886_s9, %s10881_s26 }
  0x68   : > { %p10890_p11 = scmp.lt.u32.totalorder %s10881_s26, %s11198_s23 }
  0x69   : > { %p10884_p3 = pnand %p10883_p2, %p10882_p0  ;;  %p10889_p1 = por %p10888_p10, %p10887_p8 }
  0x6b   : > { %p10885_p6 = pneg %p10884_p3  ;;  %p10891_p4 = por %p10890_p11, %p10889_p1 }
  0x6d   : > { %p10892_p5 = pnand %p10891_p4, %p10885_p6 }
  0x6f   : > { %10895 = shalt.err (!%p10892_p5)
}
  0x70   : > { %s10896_s29 = scalar_lea.vmem %s11200_s21, 1024  ;;  %s10994_s2 = smov [#allocation2]  }
  0x71   : > { %p10897_p9 = scmp.ne.s32.totalorder %s11200_s21, %s10896_s29  ;;  %s10901_s27 = sshll.u32 %s10994_s2, 4  ;;  %s10902_s27 = int_to_ptr.vmem [resolvable:$false] %s10901_s27 }
  0x72   : > { %s10903_s30 = scalar_lea.vmem %s10902_s27, 2048  ;;  %p10904_p0 = scmp.lt.s32.totalorder %s11200_s21, %s10902_s27 }
  0x73   : > { %p10899_p12 = pnand %p10897_p9, %p10883_p2  ;;  %p10905_p3 = scmp.lt.s32.totalorder %s10903_s30, %s10896_s29 }
  0x75   : > { %p10900_p13 = pneg %p10899_p12  ;;  %p10906_p8 = por %p10905_p3, %p10904_p0 }
  0x77   : > { %p10907_p10 = pnand %p10906_p8, %p10900_p13 }
  0x79   : > { %10910 = shalt.err (!%p10907_p10)
}
  0x7a   : > { %s12665_s13 = smov 8   ;;  %s12666_s26 = smov 128  }
  0x7b   : > { %10445 = dma.hbm_to_vmem [thread:$0]  (!%p11202_p7), %s11198_s23, 1024, %s11200_s21, %s11213_s25, %s12666_s26, %s12666_s26, %s12665_s13  }
  0x7c   : > { %s366_s9 = sand.u32 1, %s10987_s16   ;;  %s10911_s11 = scalar_lea.hbm %s11209_s10, 1024 }
  0x7d   : > { %s11248_s22 = scalar_lea.sflag [#allocation5], %s366_s9  ;;  %p10912_p6 = scmp.ne.s32.totalorder %s11209_s10, %s10911_s11 }
  0x7e   : > { %s10916_s27 = scalar_lea.hbm %s12637_s1, 2048  ;;  %p10917_p4 = scmp.lt.u32.totalorder %s11209_s10, %s12637_s1 }
  0x7f   : > { %p10914_p1 = pnand %p10912_p6, %p10883_p2  ;;  %p10918_p5 = scmp.lt.u32.totalorder %s10916_s27, %s10911_s11 }
  0x80   : > { %p10920_p12 = scmp.lt.u32.totalorder %s10911_s11, %s11209_s10 }
  0x81   : > { %p10915_p11 = pneg %p10914_p1  ;;  %p10919_p9 = por %p10918_p5, %p10917_p4 }
  0x83   : > { %p10921_p13 = por %p10920_p12, %p10919_p9 }
  0x85   : > { %p10922_p0 = pnand %p10921_p13, %p10915_p11 }
  0x87   : > { %10925 = shalt.err (!%p10922_p0)
}
  0x88   : > { %s10926_s16 = scalar_lea.vmem %s11245_s20, 1024  ;;  %s10995_s25 = smov [#allocation4]  }
  0x89   : > { %p10927_p3 = scmp.ne.s32.totalorder %s11245_s20, %s10926_s16  ;;  %s10931_s23 = sshll.u32 %s10995_s25, 4  ;;  %s10932_s23 = int_to_ptr.vmem [resolvable:$false] %s10931_s23 }
  0x8a   : > { %s10933_s0 = scalar_lea.vmem %s10932_s23, 2048  ;;  %p10934_p6 = scmp.lt.s32.totalorder %s11245_s20, %s10932_s23 }
  0x8b   : > { %p10929_p8 = pnand %p10927_p3, %p10883_p2  ;;  %p10935_p1 = scmp.lt.s32.totalorder %s10933_s0, %s10926_s16 }
  0x8d   : > { %p10930_p10 = pneg %p10929_p8  ;;  %p10936_p4 = por %p10935_p1, %p10934_p6 }
  0x8f   : > { %p10937_p5 = pnand %p10936_p4, %p10930_p10 }
  0x91   : > { %10940 = shalt.err (!%p10937_p5)
}
  0x92   : > { %10448 = dma.hbm_to_vmem [thread:$0]  (!%p11202_p7), %s11209_s10, 1024, %s11245_s20, %s11248_s22, %s12666_s26, %s12666_s26, %s12665_s13  }
  0x93   : > { %p12667_p2 = scmp.ne.s32.totalorder %s12659_s19, 0 }
  0x94   : > { %s391_s21 = sand.u32 (!%p12667_p2), 1, %s10979_s14   ;;  %p12668_p11 = scmp.ne.s32.totalorder (!%p12667_p2), %s12658_s18, 0 }
  0x95   : > { %389 = sbr.rel (%p12667_p2) target bundleno = 7886 (0x1ece), region = 60  ;;  %s7663_s9 = sshll.u32 (!%p12667_p2), %s391_s21, 6 }
  0x96   : > { %s392_s11 = scalar_lea.sflag (!%p12667_p2), [#allocation3], %s391_s21  ;;  %s11280_s29 = scalar_lea.vmem (!%p12667_p2), [#allocation2], %s7663_s9 }
  0x9c   : > { %10958 = dma.done.wait (%p12668_p11), %s392_s11, 1024  }
  0x9d   : > { %10960 = vsyncadd (%p12668_p11), %s392_s11, 4294966272  ;;  %s400_s24 = sand.u32 1, %s11070_s17   ;;  %s11287_s10 = scalar_lea.vmem [#allocation4], %s7663_s9 }
  0x9e   : > { %s401_s2 = scalar_lea.sflag [#allocation5], %s400_s24 }
  0x9f   : > { %10962 = dma.done.wait (%p12668_p11), %s401_s2, 1024  }
  0xa0   : > { %10964 = vsyncadd (%p12668_p11), %s401_s2, 4294966272  ;;  %p12669_p7 = scmp.eq.s32.totalorder %s11070_s17, 0 }
  0xa2   : > { %10966 = dma.done.wait (%p12669_p7), [#allocation5], 4096   ;;  %p12670_p9 = pmov %p12669_p7 }
  0xa3   : > { %p12671_p12 = pmov %p12669_p7 }
  0xa4   : > { %10968 = vsyncadd (%p12670_p9), [#allocation5], 4294963200 }
  0xa5   : > { %10970 = dma.done.wait (%p12671_p12), [#allocation8], 8192   ;;  %p12672_p13 = pmov %p12669_p7 }
  0xa6   : > { %vm498_vm0 = vcmask 261120   ;;  %v487_v0 = vld [vmem:[#allocation6] sm:$0xff]  ;;  %v488_v1 = vld [vmem:[#allocation6 + $0x8] sm:$0xff]  ;;  %v489_v2 = vld [vmem:[#allocation6 + $0x10] sm:$0xff]  ;;  %vm884_vm1 = vcmask 31744   ;;  %vm1046_vm3 = vcmask 523264  }
  0xa7   : > { %10972 = vsyncadd (%p12672_p13), [#allocation8], 4294959104  ;;  %v9840_v3 = vpack.c.bf16 %v488_v1, %v487_v0  ;;  %v490_v4 = vld [vmem:[#allocation6 + $0x18] sm:$0xff]  ;;  %v11302_v5 = vld [vmem:[%s11280_s29] sm:$0xff]  ;;  %vm1289_vm4 = vcmask 1043456   ;;  %p458_p0 = scmp.lt.s32.totalorder %s11070_s17, 1 }
  0xa8   : > { %v9844_v6 = vpack.c.bf16 %v490_v4, %v489_v2  ;;  %8808 = vmatprep.mubr.msk.f32.mxu1 %vm498_vm0, %v11302_v5  ;;  %v628_v7 = vld [vmem:[#allocation7] sm:$0xff]  ;;  %v629_v8 = vld [vmem:[#allocation7 + $0x8] sm:$0xff]  ;;  %v630_v11 = vld [vmem:[#allocation7 + $0x10] sm:$0xff]  ;;  %s12676_s24 = sld [smem:[#allocation17_spill]] }
  0xa9   : > { %9841 = vmatprep.subr.bf16.mxu1 %v9840_v3  ;;  %v9848_v9 = vpack.c.bf16 %v629_v8, %v628_v7  ;;  %v11307_v10 = vld [vmem:[%s11287_s10] sm:$0xff]  ;;  %v631_v12 = vld [vmem:[#allocation7 + $0x18] sm:$0xff]  ;;  %v11312_v13 = vld [vmem:[%s11280_s29 + $0x8] sm:$0xff]  ;;  %s12682_s17 = smov (!%p458_p0, %s11070_s17), 1 }
  0xaa   : > { %9843 = vmatpush3.bf16.msra.mxu1 %v9840_v3  ;;  %8848 = vmatprep.mubr.msk.f32.mxu0 %vm498_vm0, %v11307_v10  ;;  %v11315_v14 = vld [vmem:[%s11280_s29 + $0x10] sm:$0xff]  ;;  %v9852_v15 = vpack.c.bf16 %v631_v12, %v630_v11  ;;  %v11322_v16 = vld [vmem:[%s11280_s29 + $0x18] sm:$0xff]  ;;  %v11325_v17 = vld [vmem:[%s11280_s29 + $0x20] sm:$0xff]  ;;  %s8183_s0 = sshll.u32 %s12682_s17, 6 }
  0xab   : > { %9845 = vmatprep.subr.bf16.mxu1 %v9844_v6  ;;  %v11332_v18 = vld [vmem:[%s11280_s29 + $0x28] sm:$0xff]  ;;  %v11335_v19 = vld [vmem:[%s11280_s29 + $0x30] sm:$0xff]  ;;  %v11342_v20 = vld [vmem:[%s11280_s29 + $0x38] sm:$0xff] }
  0xac   : > { %v11349_v21 = vld [vmem:[%s11287_s10 + $0x8] sm:$0xff]  ;;  %v11352_v22 = vld [vmem:[%s11287_s10 + $0x10] sm:$0xff]  ;;  %v11359_v23 = vld [vmem:[%s11287_s10 + $0x18] sm:$0xff] }
  0xad   : > { %v11362_v24 = vld [vmem:[%s11287_s10 + $0x20] sm:$0xff]  ;;  %v11369_v25 = vld [vmem:[%s11287_s10 + $0x28] sm:$0xff]  ;;  %v11372_v26 = vld [vmem:[%s11287_s10 + $0x30] sm:$0xff] }
  0xae   : > { %9847 = vmatpush3.bf16.msra.mxu1 %v9844_v6  ;;  %v11379_v27 = vld [vmem:[%s11287_s10 + $0x38] sm:$0xff]  ;;  %v7671_v28 = vld [vmem:[%s12641_s5] ss:$0 sm:$0xff]  ;;  %vm11392_vm2 = vmpackc.low %vm884_vm1, %vm884_vm1  ;;  %s462_s2 = scalar_lea.vmem %s12676_s24, %s8183_s0 }
  0xaf   : > { %9849 = vmatprep.subr.bf16.mxu1 %v9848_v9  ;;  %v7680_v38 = vld [vmem:[%s12642_s6] ss:$0 sm:$0xff]  ;;  %v769_v4 = vld [vmem:[#allocation9 + $0x8] sm:$0xff]  ;;  %v770_v6 = vld [vmem:[#allocation9 + $0x10] sm:$0xff] }
  0xb0   : > { %v768_v3 = vld [vmem:[#allocation9] sm:$0xff]  ;;  %v771_v8 = vld [vmem:[#allocation9 + $0x18] sm:$0xff] }
  0xb1   : > { %8809 = vmatmul.mubr.msk.f32.vlgmr.msra.gmra.mrb[0].mxu1 %vm498_vm0, %v11312_v13  ;;  %v9856_v7 = vpack.c.bf16 %v769_v4, %v768_v3  ;;  %v6890_v43 = vld [vmem:[#allocation9 + $0xf8] sm:$0xff] }
  0xb2   : > { %9851 = vmatpush3.bf16.msra.mxu1 %v9848_v9  ;;  %8811 = vmatprep.mubr.msk.f32.mxu1 %vm498_vm0, %v11315_v14  ;;  %v9860_v9 = vpack.c.bf16 %v771_v8, %v770_v6 }
  0xb3   : > { %9853 = vmatprep.subr.bf16.mxu1 %v9852_v15  ;;  %9857 = vmatprep.subr.bf16.mxu0 %v9856_v7 }
  0xb4   : > { %9859 = vmatpush3.bf16.msra.mxu0 %v9856_v7 }
  0xb5   : > { %8812 = vmatmul.mubr.msk.f32.gmra.mrb[2].mxu1 %vm498_vm0, %v11322_v16  ;;  %9861 = vmatprep.subr.bf16.mxu0 %v9860_v9 }
  0xb6   : > { %8814 = vmatprep.mubr.msk.f32.mxu1 %vm498_vm0, %v11325_v17  ;;  %9855 = vmatpush3.bf16.msra.mxu1 %v9852_v15 }
  0xb8   : > { %9863 = vmatpush3.bf16.msra.mxu0 %v9860_v9 }
  0xb9   : > { %8815 = vmatmul.mubr.msk.f32.gmra.mrb[4].mxu1 %vm498_vm0, %v11332_v18 }
  0xba   : > { %8817 = vmatprep.mubr.msk.f32.mxu1 %vm498_vm0, %v11335_v19 }
  0xbb   : > { %8849 = vmatmul.mubr.msk.f32.vlgmr.msra.gmra.mrb[0].mxu0 %vm498_vm0, %v11349_v21 }
  0xbc   : > { %8851 = vmatprep.mubr.msk.f32.mxu0 %vm498_vm0, %v11352_v22 }
  0xbd   : > { %8818 = vmatmul.mubr.msk.f32.gmra.mrb[6].mxu1 %vm498_vm0, %v11342_v20 }
  0xbe   : > { %8828 = vmatprep.mubr.msk.f32.mxu1 %vm498_vm0, %v11307_v10 }
  0xbf   : > { %8852 = vmatmul.mubr.msk.f32.gmra.mrb[2].mxu0 %vm498_vm0, %v11359_v23 }
  0xc0   : > { %8854 = vmatprep.mubr.msk.f32.mxu0 %vm498_vm0, %v11362_v24 }
  0xc1   : > { %8829 = vmatmul.mubr.msk.f32.vlgmr.msra.gmra.mrb[8].mxu1 %vm498_vm0, %v11349_v21 }
  0xc2   : > { %8831 = vmatprep.mubr.msk.f32.mxu1 %vm498_vm0, %v11352_v22 }
  0xc3   : > { %8855 = vmatmul.mubr.msk.f32.gmra.mrb[4].mxu0 %vm498_vm0, %v11369_v25 }
  0xc4   : > { %8857 = vmatprep.mubr.msk.f32.mxu0 %vm498_vm0, %v11372_v26 }
  0xc5   : > { %8832 = vmatmul.mubr.msk.f32.gmra.mrb[10].mxu1 %vm498_vm0, %v11359_v23 }
  0xc6   : > { %8834 = vmatprep.mubr.msk.f32.mxu1 %vm498_vm0, %v11362_v24 }
  0xc7   : > { %8858 = vmatmul.mubr.msk.f32.gmra.mrb[6].mxu0 %vm498_vm0, %v11379_v27 }
  0xc9   : > { %8835 = vmatmul.mubr.msk.f32.gmra.mrb[12].mxu1 %vm498_vm0, %v11369_v25 }
  0xca   : > { %8837 = vmatprep.mubr.msk.f32.mxu1 %vm498_vm0, %v11372_v26 }
  0xcd   : > { %8838 = vmatmul.mubr.msk.f32.gmra.mrb[14].mxu1 %vm498_vm0, %v11379_v27 }
 0x184   : > { %v8810_v29 = vpop.f32.mrb[0].mxu1 }
 0x185   : > { %v589_v30 = vpop.f32.mrb[1].mxu1  ;;  %v595_v60 = vadd.f32 %v8810_v29, %v7671_v28 }
 0x186   : > { %v590_v31 = vadd.f32 %v7671_v28, %v589_v30 }
 0x188   : > { %v8813_v32 = vpop.f32.mrb[2].mxu1  ;;  %8876 = vmatprep.mubr.msk.f32.mxu1 %vm884_vm1, %v590_v31 }
 0x189   : > { %v599_v33 = vpop.f32.mrb[3].mxu1  ;;  %v605_v62 = vadd.f32 %v8813_v32, %v7671_v28 }
 0x18a   : > { %v600_v61 = vadd.f32 %v7671_v28, %v599_v33 }
 0x18c   : > { %v8816_v34 = vpop.f32.mrb[4].mxu1 }
 0x18d   : > { %v609_v35 = vpop.f32.mrb[5].mxu1  ;;  %v615_v0 = vadd.f32 %v8816_v34, %v7671_v28 }
 0x18e   : > { %v610_v63 = vadd.f32 %v7671_v28, %v609_v35 }
 0x190   : > { %v8819_v36 = vpop.f32.mrb[6].mxu1 }
 0x191   : > { %v619_v37 = vpop.f32.mrb[7].mxu1  ;;  %v625_v2 = vadd.f32 %v8819_v36, %v7671_v28 }
 0x192   : > { %v620_v1 = vadd.f32 %v7671_v28, %v619_v37 }
 0x194   : > { %v8830_v39 = vpop.f32.mrb[8].mxu1 }
 0x195   : > { %v735_v40 = vadd.f32 %v8830_v39, %v7680_v38  ;;  %v729_v41 = vpop.f32.mrb[9].mxu1 }
 0x196   : > { %v730_v42 = vadd.f32 %v7680_v38, %v729_v41 }
 0x198   : > { %v9864_v44 = vpack.c.bf16 %v735_v40, %v730_v42  ;;  %v8833_v45 = vpop.f32.mrb[10].mxu1 }
 0x199   : > { %v745_v46 = vadd.f32 %v8833_v45, %v7680_v38  ;;  %v739_v47 = vpop.f32.mrb[11].mxu1 }
 0x19a   : > { %9866 = vmatprep.subr.msk.bf16.mxu1 %vm11392_vm2, %v9864_v44  ;;  %v740_v48 = vadd.f32 %v7680_v38, %v739_v47 }
 0x19b   : > { %9869 = vmatpush3.bf16.xpose.msk.msra.mxu1 %vm11392_vm2, %v9864_v44 }
 0x19c   : > { %v9870_v49 = vpack.c.bf16 %v745_v46, %v740_v48  ;;  %v8836_v50 = vpop.f32.mrb[12].mxu1 }
 0x19d   : > { %v755_v51 = vadd.f32 %v8836_v50, %v7680_v38  ;;  %v749_v52 = vpop.f32.mrb[13].mxu1  ;;  %v8850_v50 = vpop.f32.mrb[0].mxu0 }
 0x19e   : > { %9872 = vmatprep.subr.msk.bf16.mxu1 %vm11392_vm2, %v9870_v49  ;;  %v750_v53 = vadd.f32 %v7680_v38, %v749_v52  ;;  %v845_v52 = vpop.f32.mrb[1].mxu0 }
 0x1a0   : > { %v9876_v54 = vpack.c.bf16 %v755_v51, %v750_v53  ;;  %v8839_v55 = vpop.f32.mrb[14].mxu1 }
 0x1a1   : > { %v765_v56 = vadd.f32 %v8839_v55, %v7680_v38  ;;  %v759_v57 = vpop.f32.mrb[15].mxu1  ;;  %v8853_v55 = vpop.f32.mrb[2].mxu0 }
 0x1a2   : > { %v760_v58 = vadd.f32 %v7680_v38, %v759_v57  ;;  %v855_v57 = vpop.f32.mrb[3].mxu0 }
 0x1a3   : > { %9875 = vmatpush3.bf16.xpose.msk.msra.mxu1 %vm11392_vm2, %v9870_v49  ;;  %v11446_v49 = vld [vmem:[%s12643_s7] ss:$0 sm:$0xff] }
 0x1a4   : > { %9878 = vmatprep.subr.msk.bf16.mxu1 %vm11392_vm2, %v9876_v54  ;;  %v9882_v59 = vpack.c.bf16 %v765_v56, %v760_v58  ;;  %v851_v51 = vadd.f32 %v8850_v50, %v11446_v49  ;;  %v846_v53 = vadd.f32 %v11446_v49, %v845_v52  ;;  %v861_v56 = vadd.f32 %v8853_v55, %v11446_v49  ;;  %v8856_v52 = vpop.f32.mrb[4].mxu0 }
 0x1a5   : > { %v856_v58 = vadd.f32 %v11446_v49, %v855_v57  ;;  %v865_v55 = vpop.f32.mrb[5].mxu0 }
 0x1ab   : > { %9881 = vmatpush3.bf16.xpose.msk.msra.mxu1 %vm11392_vm2, %v9876_v54  ;;  %v9888_v54 = vpack.c.bf16 %v851_v51, %v846_v53 }
 0x1ac   : > { %9884 = vmatprep.subr.msk.bf16.mxu1 %vm11392_vm2, %v9882_v59 }
 0x1ad   : > { %9889 = vmatprep.subr.bf16.mxu0 %v9888_v54 }
 0x1ae   : > { %9891 = vmatpush3.bf16.msra.mxu0 %v9888_v54  ;;  %v871_v54 = vadd.f32 %v8856_v52, %v11446_v49 }
 0x1b3   : > { %9887 = vmatpush3.bf16.xpose.msk.msra.mxu1 %vm11392_vm2, %v9882_v59  ;;  %v9892_v59 = vpack.c.bf16 %v861_v56, %v856_v58  ;;  %v866_v56 = vadd.f32 %v11446_v49, %v865_v55  ;;  %v8859_v58 = vpop.f32.mrb[6].mxu0 }
 0x1b5   : > { %9893 = vmatprep.subr.bf16.mxu0 %v9892_v59  ;;  %v9896_v57 = vpack.c.bf16 %v871_v54, %v866_v56 }
 0x1b6   : > { %9895 = vmatpush3.bf16.msra.mxu0 %v9892_v59  ;;  %v875_v59 = vpop.f32.mrb[7].mxu0 }
 0x1b7   : > { %9897 = vmatprep.subr.bf16.mxu0 %v9896_v57 }
 0x1ba   : > { %8877 = vmatmul.mubr.msk.f32.vlgmr.msra.gmra.mrb[16].mxu1 %vm884_vm1, %v595_v60  ;;  %9899 = vmatpush3.bf16.msra.mxu0 %v9896_v57 }
 0x1bb   : > { %8879 = vmatprep.mubr.msk.f32.mxu1 %vm884_vm1, %v600_v61 }
 0x1be   : > { %8880 = vmatmul.mubr.msk.f32.gmra.mrb[18].mxu1 %vm884_vm1, %v605_v62 }
 0x1bf   : > { %8882 = vmatprep.mubr.msk.f32.mxu1 %vm884_vm1, %v610_v63 }
 0x1c2   : > { %8883 = vmatmul.mubr.msk.f32.gmra.mrb[20].mxu1 %vm884_vm1, %v615_v0 }
 0x1c3   : > { %8885 = vmatprep.mubr.msk.f32.mxu1 %vm884_vm1, %v620_v1 }
 0x1c6   : > { %8886 = vmatmul.mubr.msk.f32.gmra.mrb[22].mxu1 %vm884_vm1, %v625_v2 }
 0x1c7   : > { %8938 = vmatprep.mubr.msk.f32.mxu1 %vm498_vm0, %v11302_v5 }
 0x28d   : > { %v8878_v5 = vpop.f32.mrb[16].mxu1 }
 0x28e   : > { %v999_v11 = vpop.f32.mrb[17].mxu1  ;;  %v1039_v15 = vmul.f32 0.5, %v8878_v5 }
 0x28f   : > { %v1038_v12 = vmul.f32 0.5, %v999_v11 }
 0x290   : > { %v1050_v34 = vsel %vm1046_vm3, %v1039_v15, -inf }
 0x291   : > { %v8881_v28 = vpop.f32.mrb[18].mxu1  ;;  %v1047_v29 = vsel %vm1046_vm3, %v1038_v12, -inf }
 0x292   : > { %1048 = vmax.xlane.f32.xlu0 %v1047_v29  ;;  %v1009_v30 = vpop.f32.mrb[19].mxu1  ;;  %v1041_v32 = vmul.f32 0.5, %v8881_v28 }
 0x293   : > { %v1040_v31 = vmul.f32 0.5, %v1009_v30 }
 0x294   : > { %v1056_v40 = vsel %vm1046_vm3, %v1041_v32, -inf }
 0x295   : > { %v8884_v33 = vpop.f32.mrb[20].mxu1  ;;  %v1053_v35 = vsel %vm1046_vm3, %v1040_v31, -inf }
 0x296   : > { %1051 = vmax.xlane.f32.xlu0 %v1050_v34  ;;  %1054 = vmax.xlane.f32.xlu1 %v1053_v35  ;;  %v1019_v36 = vpop.f32.mrb[21].mxu1  ;;  %v1043_v38 = vmul.f32 0.5, %v8884_v33 }
 0x297   : > { %v1042_v37 = vmul.f32 0.5, %v1019_v36 }
 0x298   : > { %v1062_v46 = vsel %vm1046_vm3, %v1043_v38, -inf }
 0x299   : > { %v8887_v39 = vpop.f32.mrb[22].mxu1  ;;  %v1059_v41 = vsel %vm1046_vm3, %v1042_v37, -inf }
 0x29a   : > { %1057 = vmax.xlane.f32.xlu1 %v1056_v40  ;;  %1060 = vmax.xlane.f32.xlu0 %v1059_v41  ;;  %v1029_v42 = vpop.f32.mrb[23].mxu1  ;;  %v1045_v45 = vmul.f32 0.5, %v8887_v39 }
 0x29b   : > { %v1044_v44 = vmul.f32 0.5, %v1029_v42 }
 0x29c   : > { %v1068_v48 = vsel %vm1046_vm3, %v1045_v45, -inf }
 0x29d   : > { %v1065_v47 = vsel %vm1046_vm3, %v1044_v44, -inf }
 0x29e   : > { %1063 = vmax.xlane.f32.xlu1 %v1062_v46  ;;  %1066 = vmax.xlane.f32.xlu0 %v1065_v47 }
 0x2a2   : > { %1069 = vmax.xlane.f32.xlu1 %v1068_v48 }
 0x31f   : > { %v1049_v60 = vpop.xlane.xlu0 %1048 }
 0x320   : > { %v1071_v61 = vsub.f32 %v1038_v12, %v1049_v60  ;;  %v881_v60 = vadd.f32 %v8859_v58, %v11446_v49 }
 0x322   : > { %v1079_v62 = vmul.f32 1.442695, %v1071_v61  ;;  %v876_v61 = vadd.f32 %v11446_v49, %v875_v59 }
 0x323   : > { %v1052_v63 = vpop.xlane.xlu0 %1051  ;;  %v1055_v0 = vpop.xlane.xlu1 %1054 }
 0x324   : > { %10493 = vpow2.f32 %v1079_v62  ;;  %v1072_v1 = vsub.f32 %v1039_v15, %v1052_v63  ;;  %v1073_v2 = vsub.f32 %v1040_v31, %v1055_v0  ;;  %v9900_v62 = vpack.c.bf16 %v881_v60, %v876_v61  ;;  %v1264_v63 = vld [vmem:[%s12644_s8] sm:$0xf] }
 0x326   : > { %v1081_v3 = vmul.f32 1.442695, %v1072_v1  ;;  %v1083_v4 = vmul.f32 1.442695, %v1073_v2  ;;  %9901 = vmatprep.subr.bf16.mxu0 %v9900_v62 }
 0x327   : > { %v1058_v6 = vpop.xlane.xlu1 %1057  ;;  %v1061_v7 = vpop.xlane.xlu0 %1060  ;;  %9903 = vmatpush3.bf16.msra.mxu0 %v9900_v62 }
 0x328   : > { %10495 = vpow2.f32 %v1081_v3  ;;  %v1074_v8 = vsub.f32 %v1041_v32, %v1058_v6  ;;  %v1075_v9 = vsub.f32 %v1042_v37, %v1061_v7  ;;  %8916 = vmatprep.subr.msk.mxu0 %vm1289_vm4, %v1264_v63 }
 0x329   : > { %10497 = vpow2.f32 %v1083_v4 }
 0x32a   : > { %v1085_v5 = vmul.f32 1.442695, %v1074_v8  ;;  %v1087_v11 = vmul.f32 1.442695, %v1075_v9 }
 0x32b   : > { %v1064_v28 = vpop.xlane.xlu1 %1063  ;;  %v1067_v29 = vpop.xlane.xlu0 %1066 }
 0x32c   : > { %10499 = vpow2.f32 %v1085_v5  ;;  %v1076_v12 = vsub.f32 %v1043_v38, %v1064_v28  ;;  %v1077_v30 = vsub.f32 %v1044_v44, %v1067_v29 }
 0x32d   : > { %10501 = vpow2.f32 %v1087_v11 }
 0x32e   : > { %v10494_v33 = vpop.eup %10493  ;;  %v1089_v34 = vmul.f32 1.442695, %v1076_v12  ;;  %v1091_v15 = vmul.f32 1.442695, %v1077_v30 }
 0x32f   : > { %v1070_v31 = vpop.xlane.xlu1 %1069  ;;  %v1095_v35 = vsel %vm1046_vm3, %v10494_v33, 0.0 }
 0x330   : > { %10503 = vpow2.f32 %v1089_v34  ;;  %v1078_v36 = vsub.f32 %v1045_v45, %v1070_v31  ;;  %1096 = vadd.xlane.f32.xlu0 %v1095_v35 }
 0x331   : > { %10505 = vpow2.f32 %v1091_v15 }
 0x332   : > { %v10496_v32 = vpop.eup %10495  ;;  %v1093_v37 = vmul.f32 1.442695, %v1078_v36 }
 0x333   : > { %v10498_v39 = vpop.eup %10497  ;;  %v1098_v40 = vsel %vm1046_vm3, %v10496_v32, 0.0 }
 0x334   : > { %10507 = vpow2.f32 %v1093_v37  ;;  %1099 = vadd.xlane.f32.xlu1 %v1098_v40  ;;  %v1101_v38 = vsel %vm1046_vm3, %v10498_v39, 0.0  ;;  %v1526_v40 = vld [vmem:[#allocation7 + $0x28] sm:$0xff] }
 0x335   : > { %1102 = vadd.xlane.f32.xlu0 %v1101_v38 }
 0x336   : > { %v10500_v41 = vpop.eup %10499 }
 0x337   : > { %v10502_v42 = vpop.eup %10501  ;;  %v1104_v44 = vsel %vm1046_vm3, %v10500_v41, 0.0 }
 0x338   : > { %1105 = vadd.xlane.f32.xlu1 %v1104_v44  ;;  %v1107_v46 = vsel %vm1046_vm3, %v10502_v42, 0.0 }
 0x339   : > { %1108 = vadd.xlane.f32.xlu0 %v1107_v46  ;;  %v1409_v46 = vld [vmem:[#allocation6 + $0x30] sm:$0xff] }
 0x33a   : > { %v10504_v45 = vpop.eup %10503 }
 0x33b   : > { %v10506_v47 = vpop.eup %10505  ;;  %v1110_v48 = vsel %vm1046_vm3, %v10504_v45, 0.0 }
 0x33c   : > { %1111 = vadd.xlane.f32.xlu1 %v1110_v48  ;;  %v1113_v50 = vsel %vm1046_vm3, %v10506_v47, 0.0 }
 0x33d   : > { %1114 = vadd.xlane.f32.xlu0 %v1113_v50 }
 0x33e   : > { %v10508_v51 = vpop.eup %10507 }
 0x33f   : > { %v1116_v53 = vsel %vm1046_vm3, %v10508_v51, 0.0 }
 0x340   : > { %1117 = vadd.xlane.f32.xlu1 %v1116_v53  ;;  %v7732_v53 = vld [vmem:[%s12641_s5 + $0x1] ss:$0 sm:$0xff] }
 0x3bd   : > { %v1097_v0 = vpop.xlane.xlu0 %1096 }
 0x3be   : > { %10509 = vrcp.f32 %v1097_v0 }
 0x3c1   : > { %v1100_v1 = vpop.xlane.xlu1 %1099 }
 0x3c2   : > { %10511 = vrcp.f32 %v1100_v1  ;;  %v1103_v2 = vpop.xlane.xlu0 %1102 }
 0x3c3   : > { %10513 = vrcp.f32 %v1103_v2 }
 0x3c5   : > { %v1106_v3 = vpop.xlane.xlu1 %1105 }
 0x3c6   : > { %10515 = vrcp.f32 %v1106_v3  ;;  %v1109_v4 = vpop.xlane.xlu0 %1108 }
 0x3c7   : > { %10517 = vrcp.f32 %v1109_v4 }
 0x3c8   : > { %v10510_v49 = vpop.eup %10509 }
 0x3c9   : > { %v1112_v6 = vpop.xlane.xlu1 %1111  ;;  %v1120_v7 = vmul.f32 %v10510_v49, %v10494_v33  ;;  %v7742_v49 = vld [vmem:[%s12642_s6 + $0x1] ss:$0 sm:$0xff] }
 0x3ca   : > { %10519 = vrcp.f32 %v1112_v6  ;;  %v1115_v8 = vpop.xlane.xlu0 %1114 }
 0x3cb   : > { %10521 = vrcp.f32 %v1115_v8  ;;  %8904 = vmatprep.mubr.msk.f32.mxu0 %vm1046_vm3, %v1120_v7 }
 0x3cc   : > { %v10512_v9 = vpop.eup %10511 }
 0x3cd   : > { %v10514_v5 = vpop.eup %10513  ;;  %v1122_v11 = vmul.f32 %v10512_v9, %v10496_v32  ;;  %v1118_v28 = vpop.xlane.xlu1 %1117 }
 0x3ce   : > { %10523 = vrcp.f32 %v1118_v28  ;;  %v1124_v29 = vmul.f32 %v10514_v5, %v10498_v39  ;;  %v1525_v39 = vld [vmem:[#allocation7 + $0x20] sm:$0xff] }
 0x3cf   : > { %8905 = vmatmul.mubr.msk.f32.vlgmr.msra.gmra.mrb[8].mxu0 %vm1046_vm3, %v1122_v11  ;;  %v9912_v38 = vpack.c.bf16 %v1526_v40, %v1525_v39 }
 0x3d0   : > { %v10516_v12 = vpop.eup %10515  ;;  %8907 = vmatprep.mubr.msk.f32.mxu0 %vm1046_vm3, %v1124_v29  ;;  %8917 = vmatpush3.msk.msra.mxu0 %vm1289_vm4, %v1264_v63 }
 0x3d1   : > { %v10518_v30 = vpop.eup %10517  ;;  %v1126_v33 = vmul.f32 %v10516_v12, %v10500_v41  ;;  %9913 = vmatprep.subr.bf16.mxu0 %v9912_v38  ;;  %v1407_v41 = vld [vmem:[#allocation6 + $0x20] sm:$0xff] }
 0x3d2   : > { %v1128_v34 = vmul.f32 %v10518_v30, %v10502_v42  ;;  %v1408_v42 = vld [vmem:[#allocation6 + $0x28] sm:$0xff] }
 0x3d3   : > { %8908 = vmatmul.mubr.msk.f32.gmra.mrb[10].mxu0 %vm1046_vm3, %v1126_v33  ;;  %v9904_v44 = vpack.c.bf16 %v1408_v42, %v1407_v41  ;;  %v1644_v41 = vld [vmem:[#allocation9 + $0x28] sm:$0xff]  ;;  %v1645_v42 = vld [vmem:[#allocation9 + $0x30] sm:$0xff] }
 0x3d4   : > { %v10520_v15 = vpop.eup %10519  ;;  %8910 = vmatprep.mubr.msk.f32.mxu0 %vm1046_vm3, %v1128_v34 }
 0x3d5   : > { %v10522_v31 = vpop.eup %10521  ;;  %v1130_v35 = vmul.f32 %v10520_v15, %v10504_v45  ;;  %9905 = vmatprep.subr.bf16.mxu1 %v9904_v44  ;;  %v1410_v45 = vld [vmem:[#allocation6 + $0x38] sm:$0xff] }
 0x3d6   : > { %v1132_v36 = vmul.f32 %v10522_v31, %v10506_v47  ;;  %9907 = vmatpush3.bf16.msra.mxu1 %v9904_v44  ;;  %v9908_v47 = vpack.c.bf16 %v1410_v45, %v1409_v46  ;;  %v1646_v46 = vld [vmem:[#allocation9 + $0x38] sm:$0xff] }
 0x3d7   : > { %8911 = vmatmul.mubr.msk.f32.gmra.mrb[12].mxu0 %vm1046_vm3, %v1130_v35  ;;  %v9924_v45 = vpack.c.bf16 %v1646_v46, %v1645_v42 }
 0x3d8   : > { %v10524_v32 = vpop.eup %10523  ;;  %8913 = vmatprep.mubr.msk.f32.mxu0 %vm1046_vm3, %v1132_v36  ;;  %9909 = vmatprep.subr.bf16.mxu1 %v9908_v47 }
 0x3d9   : > { %v1134_v37 = vmul.f32 %v10524_v32, %v10508_v51 }
 0x3da   : > { %9911 = vmatpush3.bf16.msra.mxu1 %v9908_v47 }
 0x3db   : > { %8914 = vmatmul.mubr.msk.f32.gmra.mrb[14].mxu0 %vm1046_vm3, %v1134_v37 }
 0x3dd   : > { %8939 = vmatmul.mubr.msk.f32.vlgmr.msra.gmra.mrb[24].mxu1 %vm498_vm0, %v11312_v13  ;;  %v1527_v13 = vld [vmem:[#allocation7 + $0x30] sm:$0xff] }
 0x3de   : > { %8941 = vmatprep.mubr.msk.f32.mxu1 %vm498_vm0, %v11315_v14  ;;  %v1528_v14 = vld [vmem:[#allocation7 + $0x38] sm:$0xff] }
 0x3e1   : > { %8942 = vmatmul.mubr.msk.f32.gmra.mrb[26].mxu1 %vm498_vm0, %v11322_v16  ;;  %v9916_v16 = vpack.c.bf16 %v1528_v14, %v1527_v13 }
 0x3e2   : > { %8944 = vmatprep.mubr.msk.f32.mxu1 %vm498_vm0, %v11325_v17 }
 0x3e5   : > { %8945 = vmatmul.mubr.msk.f32.gmra.mrb[28].mxu1 %vm498_vm0, %v11332_v18 }
 0x3e6   : > { %8947 = vmatprep.mubr.msk.f32.mxu1 %vm498_vm0, %v11335_v19 }
 0x3e9   : > { %8948 = vmatmul.mubr.msk.f32.gmra.mrb[30].mxu1 %vm498_vm0, %v11342_v20 }
 0x3ea   : > { %8978 = vmatprep.mubr.msk.f32.mxu1 %vm498_vm0, %v11307_v10 }
 0x4a2   : > { %v8906_v48 = vpop.f32.mrb[8].mxu0 }
 0x4a3   : > { %v1225_v50 = vpop.f32.mrb[9].mxu0 }
 0x4a4   : > { %8918 = vmatprep.mubr.msk.f32.mxu0 %vm884_vm1, %v1225_v50 }
 0x4a5   : > { %8919 = vmatmul.mubr.msk.f32.vlgmr.msra.gmra.mrb[16].mxu0 %vm884_vm1, %v8906_v48 }
 0x4a6   : > { %v8909_v17 = vpop.f32.mrb[10].mxu0  ;;  %9915 = vmatpush3.bf16.msra.mxu0 %v9912_v38  ;;  %v1643_v38 = vld [vmem:[#allocation9 + $0x20] sm:$0xff] }
 0x4a7   : > { %v1235_v18 = vpop.f32.mrb[11].mxu0  ;;  %9917 = vmatprep.subr.bf16.mxu0 %v9916_v16  ;;  %v9920_v44 = vpack.c.bf16 %v1644_v41, %v1643_v38 }
 0x4a8   : > { %8921 = vmatprep.mubr.msk.f32.mxu0 %vm884_vm1, %v1235_v18 }
 0x4a9   : > { %8922 = vmatmul.mubr.msk.f32.gmra.mrb[18].mxu0 %vm884_vm1, %v8909_v17  ;;  %9921 = vmatprep.subr.bf16.mxu1 %v9920_v44 }
 0x4aa   : > { %v8912_v19 = vpop.f32.mrb[12].mxu0  ;;  %9919 = vmatpush3.bf16.msra.mxu0 %v9916_v16  ;;  %9923 = vmatpush3.bf16.msra.mxu1 %v9920_v44 }
 0x4ab   : > { %v1245_v20 = vpop.f32.mrb[13].mxu0  ;;  %9925 = vmatprep.subr.bf16.mxu1 %v9924_v45 }
 0x4ac   : > { %8924 = vmatprep.mubr.msk.f32.mxu0 %vm884_vm1, %v1245_v20 }
 0x4ad   : > { %8925 = vmatmul.mubr.msk.f32.gmra.mrb[20].mxu0 %vm884_vm1, %v8912_v19 }
 0x4ae   : > { %v8915_v51 = vpop.f32.mrb[14].mxu0  ;;  %9927 = vmatpush3.bf16.msra.mxu1 %v9924_v45 }
 0x4af   : > { %v1255_v52 = vpop.f32.mrb[15].mxu0 }
 0x4b0   : > { %8927 = vmatprep.mubr.msk.f32.mxu0 %vm884_vm1, %v1255_v52 }
 0x4b1   : > { %8928 = vmatmul.mubr.msk.f32.gmra.mrb[22].mxu0 %vm884_vm1, %v8915_v51  ;;  %8979 = vmatmul.mubr.msk.f32.vlgmr.msra.gmra.mrb[32].mxu1 %vm498_vm0, %v11349_v21 }
 0x4b2   : > { %8958 = vmatprep.mubr.msk.f32.mxu0 %vm498_vm0, %v11307_v10  ;;  %v8940_v10 = vpop.f32.mrb[24].mxu1  ;;  %8981 = vmatprep.mubr.msk.f32.mxu1 %vm498_vm0, %v11352_v22 }
 0x4b3   : > { %v1491_v54 = vadd.f32 %v8940_v10, %v7732_v53  ;;  %v1485_v55 = vpop.f32.mrb[25].mxu1 }
 0x4b4   : > { %v1486_v56 = vadd.f32 %v7732_v53, %v1485_v55  ;;  %v8943_v57 = vpop.f32.mrb[26].mxu1 }
 0x4b5   : > { %8959 = vmatmul.mubr.msk.f32.vlgmr.msra.gmra.mrb[24].mxu0 %vm498_vm0, %v11349_v21  ;;  %v1501_v58 = vadd.f32 %v8943_v57, %v7732_v53  ;;  %v1495_v59 = vpop.f32.mrb[27].mxu1  ;;  %8982 = vmatmul.mubr.msk.f32.gmra.mrb[34].mxu1 %vm498_vm0, %v11359_v23  ;;  %v11572_v57 = vld [vmem:[%s12643_s7 + $0x1] ss:$0 sm:$0xff] }
 0x4b6   : > { %8961 = vmatprep.mubr.msk.f32.mxu0 %vm498_vm0, %v11352_v22  ;;  %v1496_v60 = vadd.f32 %v7732_v53, %v1495_v59  ;;  %8984 = vmatprep.mubr.msk.f32.mxu1 %vm498_vm0, %v11362_v24 }
 0x4b8   : > { %v8946_v61 = vpop.f32.mrb[28].mxu1 }
 0x4b9   : > { %8962 = vmatmul.mubr.msk.f32.gmra.mrb[26].mxu0 %vm498_vm0, %v11359_v23  ;;  %v1511_v62 = vadd.f32 %v8946_v61, %v7732_v53  ;;  %v1505_v63 = vpop.f32.mrb[29].mxu1  ;;  %8985 = vmatmul.mubr.msk.f32.gmra.mrb[36].mxu1 %vm498_vm0, %v11369_v25 }
 0x4ba   : > { %8964 = vmatprep.mubr.msk.f32.mxu0 %vm498_vm0, %v11362_v24  ;;  %v1506_v0 = vadd.f32 %v7732_v53, %v1505_v63  ;;  %8987 = vmatprep.mubr.msk.f32.mxu1 %vm498_vm0, %v11372_v26 }
 0x4bc   : > { %v8949_v1 = vpop.f32.mrb[30].mxu1 }
 0x4bd   : > { %8965 = vmatmul.mubr.msk.f32.gmra.mrb[28].mxu0 %vm498_vm0, %v11369_v25  ;;  %v1521_v2 = vadd.f32 %v8949_v1, %v7732_v53  ;;  %v1515_v3 = vpop.f32.mrb[31].mxu1  ;;  %8988 = vmatmul.mubr.msk.f32.gmra.mrb[38].mxu1 %vm498_vm0, %v11379_v27 }
 0x4be   : > { %8967 = vmatprep.mubr.msk.f32.mxu0 %vm498_vm0, %v11372_v26  ;;  %v1516_v4 = vadd.f32 %v7732_v53, %v1515_v3 }
 0x4c1   : > { %8968 = vmatmul.mubr.msk.f32.gmra.mrb[30].mxu0 %vm498_vm0, %v11379_v27 }
 0x4c2   : > { %9006 = vmatprep.mubr.msk.f32.mxu0 %vm884_vm1, %v1486_v56 }
 0x588   : > { %v8960_v6 = vpop.f32.mrb[24].mxu0 }
 0x589   : > { %v1609_v7 = vadd.f32 %v8960_v6, %v7742_v49  ;;  %v1603_v8 = vpop.f32.mrb[25].mxu0 }
 0x58a   : > { %v1604_v9 = vadd.f32 %v7742_v49, %v1603_v8 }
 0x58c   : > { %v9928_v5 = vpack.c.bf16 %v1609_v7, %v1604_v9  ;;  %v8963_v11 = vpop.f32.mrb[26].mxu0 }
 0x58d   : > { %v1619_v28 = vadd.f32 %v8963_v11, %v7742_v49  ;;  %v1613_v29 = vpop.f32.mrb[27].mxu0 }
 0x58e   : > { %9930 = vmatprep.subr.msk.bf16.mxu0 %vm11392_vm2, %v9928_v5  ;;  %v1614_v12 = vadd.f32 %v7742_v49, %v1613_v29 }
 0x58f   : > { %9933 = vmatpush3.bf16.xpose.msk.msra.mxu0 %vm11392_vm2, %v9928_v5 }
 0x590   : > { %v9934_v30 = vpack.c.bf16 %v1619_v28, %v1614_v12  ;;  %v8966_v33 = vpop.f32.mrb[28].mxu0 }
 0x591   : > { %v1629_v34 = vadd.f32 %v8966_v33, %v7742_v49  ;;  %v1623_v15 = vpop.f32.mrb[29].mxu0 }
 0x592   : > { %9936 = vmatprep.subr.msk.bf16.mxu0 %vm11392_vm2, %v9934_v30  ;;  %v1624_v31 = vadd.f32 %v7742_v49, %v1623_v15 }
 0x594   : > { %v9940_v35 = vpack.c.bf16 %v1629_v34, %v1624_v31  ;;  %v8969_v36 = vpop.f32.mrb[30].mxu0 }
 0x595   : > { %v1639_v32 = vadd.f32 %v8969_v36, %v7742_v49  ;;  %v1633_v37 = vpop.f32.mrb[31].mxu0 }
 0x596   : > { %v1634_v39 = vadd.f32 %v7742_v49, %v1633_v37 }
 0x597   : > { %9939 = vmatpush3.bf16.xpose.msk.msra.mxu0 %vm11392_vm2, %v9934_v30 }
 0x598   : > { %9942 = vmatprep.subr.msk.bf16.mxu0 %vm11392_vm2, %v9940_v35  ;;  %v9946_v40 = vpack.c.bf16 %v1639_v32, %v1634_v39 }
 0x59f   : > { %9945 = vmatpush3.bf16.xpose.msk.msra.mxu0 %vm11392_vm2, %v9940_v35 }
 0x5a0   : > { %9948 = vmatprep.subr.msk.bf16.mxu0 %vm11392_vm2, %v9946_v40 }
 0x5a7   : > { %9951 = vmatpush3.bf16.xpose.msk.msra.mxu0 %vm11392_vm2, %v9946_v40 }
 0x5ae   : > { %9007 = vmatmul.mubr.msk.f32.vlgmr.msra.gmra.mrb[32].mxu0 %vm884_vm1, %v1491_v54 }
 0x5af   : > { %9009 = vmatprep.mubr.msk.f32.mxu0 %vm884_vm1, %v1496_v60 }
 0x5b2   : > { %9010 = vmatmul.mubr.msk.f32.gmra.mrb[34].mxu0 %vm884_vm1, %v1501_v58  ;;  %v8980_v58 = vpop.f32.mrb[32].mxu1 }
 0x5b3   : > { %9012 = vmatprep.mubr.msk.f32.mxu0 %vm884_vm1, %v1506_v0  ;;  %v1727_v59 = vadd.f32 %v8980_v58, %v11572_v57  ;;  %v1721_v60 = vpop.f32.mrb[33].mxu1 }
 0x5b4   : > { %v1722_v61 = vadd.f32 %v11572_v57, %v1721_v60  ;;  %v8983_v63 = vpop.f32.mrb[34].mxu1 }
 0x5b5   : > { %v1737_v0 = vadd.f32 %v8983_v63, %v11572_v57  ;;  %v1731_v1 = vpop.f32.mrb[35].mxu1 }
 0x5b6   : > { %9013 = vmatmul.mubr.msk.f32.gmra.mrb[36].mxu0 %vm884_vm1, %v1511_v62  ;;  %v9952_v62 = vpack.c.bf16 %v1727_v59, %v1722_v61 }
 0x5b7   : > { %9015 = vmatprep.mubr.msk.f32.mxu0 %vm884_vm1, %v1516_v4  ;;  %v8986_v4 = vpop.f32.mrb[36].mxu1 }
 0x5b8   : > { %9953 = vmatprep.subr.bf16.mxu1 %v9952_v62 }
 0x5b9   : > { %9955 = vmatpush3.bf16.msra.mxu1 %v9952_v62 }
 0x5ba   : > { %9016 = vmatmul.mubr.msk.f32.gmra.mrb[38].mxu0 %vm884_vm1, %v1521_v2  ;;  %v1732_v2 = vadd.f32 %v11572_v57, %v1731_v1  ;;  %v2283_v1 = vld [vmem:[#allocation6 + $0x50] sm:$0xff] }
 0x5bc   : > { %v9956_v3 = vpack.c.bf16 %v1737_v0, %v1732_v2  ;;  %v2284_v2 = vld [vmem:[#allocation6 + $0x58] sm:$0xff] }
 0x5be   : > { %9957 = vmatprep.subr.bf16.mxu1 %v9956_v3 }
 0x5bf   : > { %9959 = vmatpush3.bf16.msra.mxu1 %v9956_v3 }
 0x681   : > { %v9008_v47 = vpop.f32.mrb[32].mxu0 }
 0x682   : > { %v1914_v21 = vmul.f32 0.5, %v9008_v47  ;;  %v1874_v13 = vpop.f32.mrb[33].mxu0 }
 0x683   : > { %v1913_v14 = vmul.f32 0.5, %v1874_v13 }
 0x684   : > { %v1924_v22 = vsel %vm1046_vm3, %v1914_v21, -inf }
 0x685   : > { %1925 = vmax.xlane.f32.xlu1 %v1924_v22  ;;  %v9011_v23 = vpop.f32.mrb[34].mxu0  ;;  %v1921_v48 = vsel %vm1046_vm3, %v1913_v14, -inf }
 0x686   : > { %v1916_v24 = vmul.f32 0.5, %v9011_v23  ;;  %1922 = vmax.xlane.f32.xlu0 %v1921_v48  ;;  %v1884_v50 = vpop.f32.mrb[35].mxu0 }
 0x687   : > { %v1915_v25 = vmul.f32 0.5, %v1884_v50 }
 0x688   : > { %v1930_v16 = vsel %vm1046_vm3, %v1916_v24, -inf }
 0x689   : > { %1931 = vmax.xlane.f32.xlu1 %v1930_v16  ;;  %v9014_v26 = vpop.f32.mrb[36].mxu0  ;;  %v1927_v27 = vsel %vm1046_vm3, %v1915_v25, -inf }
 0x68a   : > { %v1918_v17 = vmul.f32 0.5, %v9014_v26  ;;  %1928 = vmax.xlane.f32.xlu0 %v1927_v27  ;;  %v1894_v18 = vpop.f32.mrb[37].mxu0 }
 0x68b   : > { %v1917_v19 = vmul.f32 0.5, %v1894_v18  ;;  %v1741_v18 = vpop.f32.mrb[37].mxu1 }
 0x68c   : > { %v1936_v20 = vsel %vm1046_vm3, %v1918_v17, -inf }
 0x68d   : > { %1937 = vmax.xlane.f32.xlu1 %v1936_v20  ;;  %v9017_v51 = vpop.f32.mrb[38].mxu0  ;;  %v1933_v52 = vsel %vm1046_vm3, %v1917_v19, -inf }
 0x68e   : > { %v1920_v10 = vmul.f32 0.5, %v9017_v51  ;;  %1934 = vmax.xlane.f32.xlu0 %v1933_v52  ;;  %v1904_v53 = vpop.f32.mrb[39].mxu0  ;;  %v8989_v51 = vpop.f32.mrb[38].mxu1 }
 0x68f   : > { %v1919_v54 = vmul.f32 0.5, %v1904_v53  ;;  %v1751_v52 = vpop.f32.mrb[39].mxu1 }
 0x690   : > { %v1942_v55 = vsel %vm1046_vm3, %v1920_v10, -inf  ;;  %v1752_v53 = vadd.f32 %v11572_v57, %v1751_v52 }
 0x691   : > { %1943 = vmax.xlane.f32.xlu1 %v1942_v55  ;;  %v1939_v56 = vsel %vm1046_vm3, %v1919_v54, -inf  ;;  %v2281_v55 = vld [vmem:[#allocation6 + $0x40] sm:$0xff] }
 0x692   : > { %1940 = vmax.xlane.f32.xlu0 %v1939_v56  ;;  %v2282_v56 = vld [vmem:[#allocation6 + $0x48] sm:$0xff] }
 0x693   : > { %v9968_v58 = vpack.c.bf16 %v2282_v56, %v2281_v55 }
 0x712   : > { %v1926_v49 = vpop.xlane.xlu1 %1925 }
 0x713   : > { %v1946_v6 = vsub.f32 %v1914_v21, %v1926_v49  ;;  %v1923_v7 = vpop.xlane.xlu0 %1922 }
 0x714   : > { %v1945_v8 = vsub.f32 %v1913_v14, %v1923_v7 }
 0x715   : > { %v1955_v9 = vmul.f32 1.442695, %v1946_v6 }
 0x716   : > { %v1953_v5 = vmul.f32 1.442695, %v1945_v8  ;;  %v1932_v11 = vpop.xlane.xlu1 %1931  ;;  %v9972_v8 = vpack.c.bf16 %v2284_v2, %v2283_v1 }
 0x717   : > { %10525 = vpow2.f32 %v1955_v9  ;;  %v1948_v28 = vsub.f32 %v1916_v24, %v1932_v11  ;;  %v1929_v29 = vpop.xlane.xlu0 %1928  ;;  %v2400_v11 = vld [vmem:[#allocation7 + $0x48] sm:$0xff] }
 0x718   : > { %10527 = vpow2.f32 %v1953_v5  ;;  %v1947_v12 = vsub.f32 %v1915_v25, %v1929_v29  ;;  %v2399_v5 = vld [vmem:[#allocation7 + $0x40] sm:$0xff] }
 0x719   : > { %v1959_v30 = vmul.f32 1.442695, %v1948_v28 }
 0x71a   : > { %v1957_v33 = vmul.f32 1.442695, %v1947_v12  ;;  %v1938_v34 = vpop.xlane.xlu1 %1937 }
 0x71b   : > { %10529 = vpow2.f32 %v1959_v30  ;;  %v1950_v15 = vsub.f32 %v1918_v17, %v1938_v34  ;;  %v1935_v31 = vpop.xlane.xlu0 %1934  ;;  %v1747_v17 = vadd.f32 %v8986_v4, %v11572_v57  ;;  %v9976_v30 = vpack.c.bf16 %v2400_v11, %v2399_v5 }
 0x71c   : > { %10531 = vpow2.f32 %v1957_v33  ;;  %v1949_v35 = vsub.f32 %v1917_v19, %v1935_v31  ;;  %v1742_v19 = vadd.f32 %v11572_v57, %v1741_v18 }
 0x71d   : > { %v1963_v36 = vmul.f32 1.442695, %v1950_v15 }
 0x71e   : > { %v1961_v32 = vmul.f32 1.442695, %v1949_v35  ;;  %v1944_v37 = vpop.xlane.xlu1 %1943  ;;  %v9960_v20 = vpack.c.bf16 %v1747_v17, %v1742_v19 }
 0x71f   : > { %10533 = vpow2.f32 %v1963_v36  ;;  %v1952_v39 = vsub.f32 %v1920_v10, %v1944_v37  ;;  %v1941_v40 = vpop.xlane.xlu0 %1940  ;;  %v1757_v10 = vadd.f32 %v8989_v51, %v11572_v57 }
 0x720   : > { %10535 = vpow2.f32 %v1961_v32  ;;  %v1951_v38 = vsub.f32 %v1919_v54, %v1941_v40  ;;  %9961 = vmatprep.subr.bf16.mxu1 %v9960_v20  ;;  %v2402_v40 = vld [vmem:[#allocation7 + $0x58] sm:$0xff] }
 0x721   : > { %v11578_v41 = vpop.eup %10525  ;;  %v1967_v42 = vmul.f32 1.442695, %v1952_v39  ;;  %9963 = vmatpush3.bf16.msra.mxu1 %v9960_v20  ;;  %v9964_v54 = vpack.c.bf16 %v1757_v10, %v1752_v53  ;;  %v2401_v39 = vld [vmem:[#allocation7 + $0x50] sm:$0xff]  ;;  %v7796_v53 = vld [vmem:[%s12641_s5 + $0x2] ss:$0 sm:$0xff] }
 0x722   : > { %v10528_v44 = vpop.eup %10527  ;;  %v1965_v46 = vmul.f32 1.442695, %v1951_v38  ;;  %v1972_v45 = vsel %vm1046_vm3, %v11578_v41, 0.0  ;;  %v11627_v38 = vld [vmem:[%s11280_s29] sm:$0xff] }
 0x723   : > { %10537 = vpow2.f32 %v1967_v42  ;;  %1973 = vadd.xlane.f32.xlu1 %v1972_v45  ;;  %v1969_v47 = vsel %vm1046_vm3, %v10528_v44, 0.0  ;;  %9965 = vmatprep.subr.bf16.mxu1 %v9964_v54  ;;  %v11632_v42 = vld [vmem:[%s11280_s29 + $0x8] sm:$0xff]  ;;  %v11647_v45 = vld [vmem:[%s11280_s29 + $0x20] sm:$0xff] }
 0x724   : > { %10539 = vpow2.f32 %v1965_v46  ;;  %1970 = vadd.xlane.f32.xlu0 %v1969_v47  ;;  %v11642_v46 = vld [vmem:[%s11280_s29 + $0x18] sm:$0xff]  ;;  %v11652_v47 = vld [vmem:[%s11280_s29 + $0x28] sm:$0xff] }
 0x725   : > { %v11583_v21 = vpop.eup %10529  ;;  %9967 = vmatpush3.bf16.msra.mxu1 %v9964_v54 }
 0x726   : > { %v11585_v13 = vpop.eup %10531  ;;  %v1978_v14 = vsel %vm1046_vm3, %v11583_v21, 0.0  ;;  %9969 = vmatprep.subr.bf16.mxu1 %v9968_v58 }
 0x727   : > { %1979 = vadd.xlane.f32.xlu1 %v1978_v14  ;;  %v1975_v22 = vsel %vm1046_vm3, %v11585_v13, 0.0  ;;  %v11667_v14 = vld [vmem:[%s11287_s10] sm:$0xff] }
 0x728   : > { %1976 = vadd.xlane.f32.xlu0 %v1975_v22  ;;  %v11672_v22 = vld [vmem:[%s11287_s10 + $0x8] sm:$0xff] }
 0x729   : > { %v11591_v23 = vpop.eup %10533 }
 0x72a   : > { %v11593_v48 = vpop.eup %10535  ;;  %v1984_v24 = vsel %vm1046_vm3, %v11591_v23, 0.0 }
 0x72b   : > { %1985 = vadd.xlane.f32.xlu1 %v1984_v24  ;;  %v1981_v50 = vsel %vm1046_vm3, %v11593_v48, 0.0  ;;  %v11687_v24 = vld [vmem:[%s11287_s10 + $0x20] sm:$0xff] }
 0x72c   : > { %1982 = vadd.xlane.f32.xlu0 %v1981_v50  ;;  %v11692_v50 = vld [vmem:[%s11287_s10 + $0x28] sm:$0xff] }
 0x72d   : > { %v11599_v25 = vpop.eup %10537 }
 0x72e   : > { %v11601_v16 = vpop.eup %10539  ;;  %v1990_v26 = vsel %vm1046_vm3, %v11599_v25, 0.0 }
 0x72f   : > { %1991 = vadd.xlane.f32.xlu1 %v1990_v26  ;;  %v1987_v27 = vsel %vm1046_vm3, %v11601_v16, 0.0  ;;  %v7785_v26 = vld [vmem:[%s12644_s8 + $0x4] sm:$0xf] }
 0x730   : > { %1988 = vadd.xlane.f32.xlu0 %v1987_v27  ;;  %9046 = vmatprep.subr.msk.mxu0 %vm1289_vm4, %v7785_v26 }
 0x731   : > { %9047 = vmatpush3.msk.msra.mxu0 %vm1289_vm4, %v7785_v26  ;;  %v2517_v26 = vld [vmem:[#allocation9 + $0x40] sm:$0xff] }
 0x7b0   : > { %v1974_v59 = vpop.xlane.xlu1 %1973 }
 0x7b1   : > { %10541 = vrcp.f32 %v1974_v59  ;;  %v1971_v60 = vpop.xlane.xlu0 %1970 }
 0x7b2   : > { %10543 = vrcp.f32 %v1971_v60 }
 0x7b4   : > { %v1980_v61 = vpop.xlane.xlu1 %1979 }
 0x7b5   : > { %10545 = vrcp.f32 %v1980_v61  ;;  %v1977_v62 = vpop.xlane.xlu0 %1976 }
 0x7b6   : > { %10547 = vrcp.f32 %v1977_v62 }
 0x7b8   : > { %v1986_v63 = vpop.xlane.xlu1 %1985 }
 0x7b9   : > { %10549 = vrcp.f32 %v1986_v63  ;;  %v1983_v57 = vpop.xlane.xlu0 %1982 }
 0x7ba   : > { %10551 = vrcp.f32 %v1983_v57  ;;  %v7806_v57 = vld [vmem:[%s12642_s6 + $0x2] ss:$0 sm:$0xff] }
 0x7bb   : > { %v10542_v0 = vpop.eup %10541 }
 0x7bc   : > { %v10544_v3 = vpop.eup %10543  ;;  %v1992_v4 = vpop.xlane.xlu1 %1991  ;;  %v1996_v7 = vmul.f32 %v10542_v0, %v11578_v41  ;;  %v9980_v41 = vpack.c.bf16 %v2402_v40, %v2401_v39 }
 0x7bd   : > { %10553 = vrcp.f32 %v1992_v4  ;;  %v1989_v49 = vpop.xlane.xlu0 %1988  ;;  %v1994_v6 = vmul.f32 %v10544_v3, %v10528_v44  ;;  %v11637_v44 = vld [vmem:[%s11280_s29 + $0x10] sm:$0xff] }
 0x7be   : > { %10555 = vrcp.f32 %v1989_v49 }
 0x7bf   : > { %v10546_v9 = vpop.eup %10545  ;;  %9034 = vmatprep.mubr.msk.f32.mxu1 %vm1046_vm3, %v1994_v6 }
 0x7c0   : > { %v10548_v28 = vpop.eup %10547  ;;  %9035 = vmatmul.mubr.msk.f32.vlgmr.msra.gmra.mrb[40].mxu1 %vm1046_vm3, %v1996_v7  ;;  %v2000_v12 = vmul.f32 %v10546_v9, %v11583_v21  ;;  %v11657_v21 = vld [vmem:[%s11280_s29 + $0x30] sm:$0xff] }
 0x7c1   : > { %9971 = vmatpush3.bf16.msra.mxu1 %v9968_v58  ;;  %v1998_v29 = vmul.f32 %v10548_v28, %v11585_v13  ;;  %v11662_v13 = vld [vmem:[%s11280_s29 + $0x38] sm:$0xff] }
 0x7c2   : > { %9973 = vmatprep.subr.bf16.mxu1 %v9972_v8 }
 0x7c3   : > { %v10550_v33 = vpop.eup %10549  ;;  %9037 = vmatprep.mubr.msk.f32.mxu1 %vm1046_vm3, %v1998_v29 }
 0x7c4   : > { %v10552_v34 = vpop.eup %10551  ;;  %9038 = vmatmul.mubr.msk.f32.gmra.mrb[42].mxu1 %vm1046_vm3, %v2000_v12  ;;  %v2004_v31 = vmul.f32 %v10550_v33, %v11591_v23  ;;  %v11677_v23 = vld [vmem:[%s11287_s10 + $0x10] sm:$0xff] }
 0x7c5   : > { %v2002_v15 = vmul.f32 %v10552_v34, %v11593_v48  ;;  %9975 = vmatpush3.bf16.msra.mxu1 %v9972_v8  ;;  %v11682_v48 = vld [vmem:[%s11287_s10 + $0x18] sm:$0xff] }
 0x7c6   : > { %9977 = vmatprep.subr.bf16.mxu1 %v9976_v30 }
 0x7c7   : > { %v10554_v35 = vpop.eup %10553  ;;  %9040 = vmatprep.mubr.msk.f32.mxu1 %vm1046_vm3, %v2002_v15 }
 0x7c8   : > { %v10556_v36 = vpop.eup %10555  ;;  %9041 = vmatmul.mubr.msk.f32.gmra.mrb[44].mxu1 %vm1046_vm3, %v2004_v31  ;;  %v2008_v37 = vmul.f32 %v10554_v35, %v11599_v25  ;;  %v11697_v25 = vld [vmem:[%s11287_s10 + $0x30] sm:$0xff] }
 0x7c9   : > { %v2006_v32 = vmul.f32 %v10556_v36, %v11601_v16  ;;  %v11702_v16 = vld [vmem:[%s11287_s10 + $0x38] sm:$0xff] }
 0x7cb   : > { %9043 = vmatprep.mubr.msk.f32.mxu1 %vm1046_vm3, %v2006_v32 }
 0x7cc   : > { %9044 = vmatmul.mubr.msk.f32.gmra.mrb[46].mxu1 %vm1046_vm3, %v2008_v37 }
 0x7cd   : > { %9068 = vmatprep.mubr.msk.f32.mxu1 %vm498_vm0, %v11627_v38 }
 0x7d0   : > { %9069 = vmatmul.mubr.msk.f32.vlgmr.msra.gmra.mrb[48].mxu1 %vm498_vm0, %v11632_v42 }
 0x7d1   : > { %9979 = vmatpush3.bf16.msra.mxu1 %v9976_v30  ;;  %9071 = vmatprep.mubr.msk.f32.mxu1 %vm498_vm0, %v11637_v44 }
 0x7d2   : > { %9981 = vmatprep.subr.bf16.mxu1 %v9980_v41 }
 0x7d4   : > { %9072 = vmatmul.mubr.msk.f32.gmra.mrb[50].mxu1 %vm498_vm0, %v11642_v46 }
 0x7d5   : > { %9074 = vmatprep.mubr.msk.f32.mxu1 %vm498_vm0, %v11647_v45  ;;  %9983 = vmatpush3.bf16.msra.mxu1 %v9980_v41 }
 0x7d8   : > { %9075 = vmatmul.mubr.msk.f32.gmra.mrb[52].mxu1 %vm498_vm0, %v11652_v47 }
 0x7d9   : > { %9077 = vmatprep.mubr.msk.f32.mxu1 %vm498_vm0, %v11657_v21 }
 0x7dc   : > { %9078 = vmatmul.mubr.msk.f32.gmra.mrb[54].mxu1 %vm498_vm0, %v11662_v13 }
 0x7dd   : > { %9088 = vmatprep.mubr.msk.f32.mxu1 %vm498_vm0, %v11667_v14 }
 0x7e0   : > { %9089 = vmatmul.mubr.msk.f32.vlgmr.msra.gmra.mrb[56].mxu1 %vm498_vm0, %v11672_v22 }
 0x7e1   : > { %9091 = vmatprep.mubr.msk.f32.mxu1 %vm498_vm0, %v11677_v23 }
 0x7e4   : > { %9092 = vmatmul.mubr.msk.f32.gmra.mrb[58].mxu1 %vm498_vm0, %v11682_v48 }
 0x7e5   : > { %9094 = vmatprep.mubr.msk.f32.mxu1 %vm498_vm0, %v11687_v24 }
 0x7e8   : > { %9095 = vmatmul.mubr.msk.f32.gmra.mrb[60].mxu1 %vm498_vm0, %v11692_v50 }
 0x7e9   : > { %9097 = vmatprep.mubr.msk.f32.mxu1 %vm498_vm0, %v11697_v25 }
 0x7ec   : > { %9098 = vmatmul.mubr.msk.f32.gmra.mrb[62].mxu1 %vm498_vm0, %v11702_v16 }
 0x893   : > { %v9036_v27 = vpop.f32.mrb[40].mxu1 }
 0x894   : > { %v2099_v17 = vpop.f32.mrb[41].mxu1 }
 0x895   : > { %9048 = vmatprep.mubr.msk.f32.mxu0 %vm884_vm1, %v2099_v17  ;;  %v2519_v17 = vld [vmem:[#allocation9 + $0x50] sm:$0xff] }
 0x896   : > { %9049 = vmatmul.mubr.msk.f32.vlgmr.msra.gmra.mrb[16].mxu0 %vm884_vm1, %v9036_v27  ;;  %v2518_v27 = vld [vmem:[#allocation9 + $0x48] sm:$0xff] }
 0x897   : > { %v9039_v18 = vpop.f32.mrb[42].mxu1 }
 0x898   : > { %v2109_v19 = vpop.f32.mrb[43].mxu1 }
 0x899   : > { %9051 = vmatprep.mubr.msk.f32.mxu0 %vm884_vm1, %v2109_v19  ;;  %v2520_v19 = vld [vmem:[#allocation9 + $0x58] sm:$0xff] }
 0x89a   : > { %9052 = vmatmul.mubr.msk.f32.gmra.mrb[18].mxu0 %vm884_vm1, %v9039_v18  ;;  %v9984_v18 = vpack.c.bf16 %v2518_v27, %v2517_v26 }
 0x89b   : > { %v9042_v20 = vpop.f32.mrb[44].mxu1 }
 0x89c   : > { %v2119_v51 = vpop.f32.mrb[45].mxu1  ;;  %9985 = vmatprep.subr.bf16.mxu0 %v9984_v18 }
 0x89d   : > { %9054 = vmatprep.mubr.msk.f32.mxu0 %vm884_vm1, %v2119_v51  ;;  %9987 = vmatpush3.bf16.msra.mxu0 %v9984_v18 }
 0x89e   : > { %9055 = vmatmul.mubr.msk.f32.gmra.mrb[20].mxu0 %vm884_vm1, %v9042_v20  ;;  %v9988_v20 = vpack.c.bf16 %v2520_v19, %v2519_v17 }
 0x89f   : > { %v9045_v52 = vpop.f32.mrb[46].mxu1 }
 0x8a0   : > { %v2129_v10 = vpop.f32.mrb[47].mxu1  ;;  %9989 = vmatprep.subr.bf16.mxu0 %v9988_v20 }
 0x8a1   : > { %9057 = vmatprep.mubr.msk.f32.mxu0 %vm884_vm1, %v2129_v10  ;;  %9991 = vmatpush3.bf16.msra.mxu0 %v9988_v20 }
 0x8a2   : > { %9058 = vmatmul.mubr.msk.f32.gmra.mrb[22].mxu0 %vm884_vm1, %v9045_v52 }
 0x8a3   : > { %v9070_v54 = vpop.f32.mrb[48].mxu1  ;;  %9108 = vmatprep.mubr.msk.f32.mxu0 %vm498_vm0, %v11667_v14 }
 0x8a4   : > { %v2359_v55 = vpop.f32.mrb[49].mxu1  ;;  %v2365_v35 = vadd.f32 %v9070_v54, %v7796_v53 }
 0x8a5   : > { %v2360_v56 = vadd.f32 %v7796_v53, %v2359_v55 }
 0x8a6   : > { %9109 = vmatmul.mubr.msk.f32.vlgmr.msra.gmra.mrb[40].mxu0 %vm498_vm0, %v11672_v22 }
 0x8a7   : > { %v9073_v58 = vpop.f32.mrb[50].mxu1  ;;  %9136 = vmatprep.mubr.msk.f32.mxu1 %vm884_vm1, %v2360_v56  ;;  %9111 = vmatprep.mubr.msk.f32.mxu0 %vm498_vm0, %v11677_v23 }
 0x8a8   : > { %v2369_v59 = vpop.f32.mrb[51].mxu1  ;;  %v2375_v32 = vadd.f32 %v9073_v58, %v7796_v53 }
 0x8a9   : > { %v2370_v36 = vadd.f32 %v7796_v53, %v2369_v59 }
 0x8aa   : > { %9112 = vmatmul.mubr.msk.f32.gmra.mrb[42].mxu0 %vm498_vm0, %v11682_v48 }
 0x8ab   : > { %v9076_v60 = vpop.f32.mrb[52].mxu1  ;;  %9114 = vmatprep.mubr.msk.f32.mxu0 %vm498_vm0, %v11687_v24 }
 0x8ac   : > { %v2379_v61 = vpop.f32.mrb[53].mxu1  ;;  %v2385_v39 = vadd.f32 %v9076_v60, %v7796_v53 }
 0x8ad   : > { %v2380_v37 = vadd.f32 %v7796_v53, %v2379_v61 }
 0x8ae   : > { %9115 = vmatmul.mubr.msk.f32.gmra.mrb[44].mxu0 %vm498_vm0, %v11692_v50 }
 0x8af   : > { %v9079_v62 = vpop.f32.mrb[54].mxu1  ;;  %9117 = vmatprep.mubr.msk.f32.mxu0 %vm498_vm0, %v11697_v25 }
 0x8b0   : > { %v2389_v63 = vpop.f32.mrb[55].mxu1  ;;  %v2395_v41 = vadd.f32 %v9079_v62, %v7796_v53 }
 0x8b1   : > { %v2390_v40 = vadd.f32 %v7796_v53, %v2389_v63 }
 0x8b2   : > { %9118 = vmatmul.mubr.msk.f32.gmra.mrb[46].mxu0 %vm498_vm0, %v11702_v16 }
 0x8b3   : > { %v9090_v0 = vpop.f32.mrb[56].mxu1 }
 0x8b4   : > { %v2483_v1 = vadd.f32 %v9090_v0, %v7806_v57  ;;  %v2477_v2 = vpop.f32.mrb[57].mxu1 }
 0x8b5   : > { %v2478_v3 = vadd.f32 %v7806_v57, %v2477_v2 }
 0x8b7   : > { %v9992_v4 = vpack.c.bf16 %v2483_v1, %v2478_v3  ;;  %v9093_v49 = vpop.f32.mrb[58].mxu1 }
 0x8b8   : > { %v2493_v6 = vadd.f32 %v9093_v49, %v7806_v57  ;;  %v2487_v7 = vpop.f32.mrb[59].mxu1 }
 0x8b9   : > { %9994 = vmatprep.subr.msk.bf16.mxu1 %vm11392_vm2, %v9992_v4  ;;  %v2488_v8 = vadd.f32 %v7806_v57, %v2487_v7 }
 0x8ba   : > { %9997 = vmatpush3.bf16.xpose.msk.msra.mxu1 %vm11392_vm2, %v9992_v4 }
 0x8bb   : > { %v9998_v9 = vpack.c.bf16 %v2493_v6, %v2488_v8  ;;  %v9096_v5 = vpop.f32.mrb[60].mxu1 }
 0x8bc   : > { %v2503_v11 = vadd.f32 %v9096_v5, %v7806_v57  ;;  %v2497_v28 = vpop.f32.mrb[61].mxu1 }
 0x8bd   : > { %10000 = vmatprep.subr.msk.bf16.mxu1 %vm11392_vm2, %v9998_v9  ;;  %v2498_v29 = vadd.f32 %v7806_v57, %v2497_v28 }
 0x8bf   : > { %v10004_v12 = vpack.c.bf16 %v2503_v11, %v2498_v29  ;;  %v9099_v30 = vpop.f32.mrb[62].mxu1 }
 0x8c0   : > { %v2513_v33 = vadd.f32 %v9099_v30, %v7806_v57  ;;  %v2507_v34 = vpop.f32.mrb[63].mxu1 }
 0x8c1   : > { %v2508_v15 = vadd.f32 %v7806_v57, %v2507_v34 }
 0x8c2   : > { %10003 = vmatpush3.bf16.xpose.msk.msra.mxu1 %vm11392_vm2, %v9998_v9  ;;  %v11778_v9 = vld [vmem:[%s12643_s7 + $0x2] ss:$0 sm:$0xff] }
 0x8c3   : > { %10006 = vmatprep.subr.msk.bf16.mxu1 %vm11392_vm2, %v10004_v12  ;;  %v10010_v31 = vpack.c.bf16 %v2513_v33, %v2508_v15 }
 0x8ca   : > { %10009 = vmatpush3.bf16.xpose.msk.msra.mxu1 %vm11392_vm2, %v10004_v12 }
 0x8cb   : > { %10012 = vmatprep.subr.msk.bf16.mxu1 %vm11392_vm2, %v10010_v31 }
 0x8d2   : > { %10015 = vmatpush3.bf16.xpose.msk.msra.mxu1 %vm11392_vm2, %v10010_v31 }
 0x8d9   : > { %9137 = vmatmul.mubr.msk.f32.vlgmr.msra.gmra.mrb[64].mxu1 %vm884_vm1, %v2365_v35 }
 0x8da   : > { %9139 = vmatprep.mubr.msk.f32.mxu1 %vm884_vm1, %v2370_v36 }
 0x8dd   : > { %9140 = vmatmul.mubr.msk.f32.gmra.mrb[66].mxu1 %vm884_vm1, %v2375_v32 }
 0x8de   : > { %9142 = vmatprep.mubr.msk.f32.mxu1 %vm884_vm1, %v2380_v37 }
 0x8e1   : > { %9143 = vmatmul.mubr.msk.f32.gmra.mrb[68].mxu1 %vm884_vm1, %v2385_v39 }
 0x8e2   : > { %9145 = vmatprep.mubr.msk.f32.mxu1 %vm884_vm1, %v2390_v40 }
 0x8e5   : > { %9146 = vmatmul.mubr.msk.f32.gmra.mrb[70].mxu1 %vm884_vm1, %v2395_v41 }
 0x8e6   : > { %9198 = vmatprep.mubr.msk.f32.mxu1 %vm498_vm0, %v11627_v38 }
 0x979   : > { %v9110_v5 = vpop.f32.mrb[40].mxu0 }
 0x97a   : > { %v2601_v11 = vadd.f32 %v9110_v5, %v11778_v9  ;;  %v2595_v28 = vpop.f32.mrb[41].mxu0 }
 0x97b   : > { %v2596_v29 = vadd.f32 %v11778_v9, %v2595_v28 }
 0x97d   : > { %v10016_v12 = vpack.c.bf16 %v2601_v11, %v2596_v29  ;;  %v9113_v30 = vpop.f32.mrb[42].mxu0 }
 0x97e   : > { %v2611_v33 = vadd.f32 %v9113_v30, %v11778_v9  ;;  %v2605_v34 = vpop.f32.mrb[43].mxu0 }
 0x97f   : > { %v2606_v15 = vadd.f32 %v11778_v9, %v2605_v34  ;;  %10017 = vmatprep.subr.bf16.mxu0 %v10016_v12 }
 0x980   : > { %10019 = vmatpush3.bf16.msra.mxu0 %v10016_v12 }
 0x981   : > { %v10020_v31 = vpack.c.bf16 %v2611_v33, %v2606_v15  ;;  %v9116_v29 = vpop.f32.mrb[44].mxu0 }
 0x982   : > { %v2615_v12 = vpop.f32.mrb[45].mxu0  ;;  %v2621_v30 = vadd.f32 %v9116_v29, %v11778_v9  ;;  %v7860_v29 = vld [vmem:[%s12641_s5 + $0x3] ss:$0 sm:$0xff] }
 0x983   : > { %10021 = vmatprep.subr.bf16.mxu0 %v10020_v31  ;;  %v2616_v33 = vadd.f32 %v11778_v9, %v2615_v12 }
 0x984   : > { %10023 = vmatpush3.bf16.msra.mxu0 %v10020_v31 }
 0x985   : > { %v10024_v34 = vpack.c.bf16 %v2621_v30, %v2616_v33  ;;  %v9119_v15 = vpop.f32.mrb[46].mxu0 }
 0x986   : > { %v2625_v31 = vpop.f32.mrb[47].mxu0 }
 0x987   : > { %10025 = vmatprep.subr.bf16.mxu0 %v10024_v34 }
 0x988   : > { %10027 = vmatpush3.bf16.msra.mxu0 %v10024_v34 }
 0x9ac   : > { %v9138_v38 = vpop.f32.mrb[64].mxu1 }
 0x9ad   : > { %v2788_v51 = vmul.f32 0.5, %v9138_v38  ;;  %v2748_v52 = vpop.f32.mrb[65].mxu1 }
 0x9ae   : > { %v2787_v10 = vmul.f32 0.5, %v2748_v52 }
 0x9af   : > { %v2798_v53 = vsel %vm1046_vm3, %v2788_v51, -inf }
 0x9b0   : > { %2799 = vmax.xlane.f32.xlu1 %v2798_v53  ;;  %v9141_v54 = vpop.f32.mrb[66].mxu1  ;;  %v2795_v55 = vsel %vm1046_vm3, %v2787_v10, -inf }
 0x9b1   : > { %v2790_v56 = vmul.f32 0.5, %v9141_v54  ;;  %2796 = vmax.xlane.f32.xlu0 %v2795_v55  ;;  %v2758_v58 = vpop.f32.mrb[67].mxu1 }
 0x9b2   : > { %v2789_v59 = vmul.f32 0.5, %v2758_v58 }
 0x9b3   : > { %v2804_v60 = vsel %vm1046_vm3, %v2790_v56, -inf }
 0x9b4   : > { %2805 = vmax.xlane.f32.xlu1 %v2804_v60  ;;  %v9144_v61 = vpop.f32.mrb[68].mxu1  ;;  %v2801_v62 = vsel %vm1046_vm3, %v2789_v59, -inf }
 0x9b5   : > { %v2792_v63 = vmul.f32 0.5, %v9144_v61  ;;  %2802 = vmax.xlane.f32.xlu0 %v2801_v62  ;;  %v2768_v57 = vpop.f32.mrb[69].mxu1 }
 0x9b6   : > { %v2791_v0 = vmul.f32 0.5, %v2768_v57 }
 0x9b7   : > { %v2810_v1 = vsel %vm1046_vm3, %v2792_v63, -inf }
 0x9b8   : > { %2811 = vmax.xlane.f32.xlu1 %v2810_v1  ;;  %v9147_v2 = vpop.f32.mrb[70].mxu1  ;;  %v2807_v3 = vsel %vm1046_vm3, %v2791_v0, -inf }
 0x9b9   : > { %v2794_v4 = vmul.f32 0.5, %v9147_v2  ;;  %2808 = vmax.xlane.f32.xlu0 %v2807_v3  ;;  %v2778_v49 = vpop.f32.mrb[71].mxu1 }
 0x9ba   : > { %v2793_v6 = vmul.f32 0.5, %v2778_v49 }
 0x9bb   : > { %v2816_v7 = vsel %vm1046_vm3, %v2794_v4, -inf }
 0x9bc   : > { %2817 = vmax.xlane.f32.xlu1 %v2816_v7  ;;  %v2813_v8 = vsel %vm1046_vm3, %v2793_v6, -inf }
 0x9bd   : > { %2814 = vmax.xlane.f32.xlu0 %v2813_v8 }
 0xa3d   : > { %v2800_v35 = vpop.xlane.xlu1 %2799 }
 0xa3e   : > { %v2820_v36 = vsub.f32 %v2788_v51, %v2800_v35  ;;  %v2797_v32 = vpop.xlane.xlu0 %2796  ;;  %v2631_v35 = vadd.f32 %v9119_v15, %v11778_v9 }
 0xa3f   : > { %v2819_v37 = vsub.f32 %v2787_v10, %v2797_v32 }
 0xa40   : > { %v2829_v39 = vmul.f32 1.442695, %v2820_v36  ;;  %v2626_v36 = vadd.f32 %v11778_v9, %v2625_v31 }
 0xa41   : > { %v2827_v40 = vmul.f32 1.442695, %v2819_v37  ;;  %v2806_v41 = vpop.xlane.xlu1 %2805  ;;  %v7849_v37 = vld [vmem:[%s12644_s8 + $0x8] sm:$0xf] }
 0xa42   : > { %10557 = vpow2.f32 %v2829_v39  ;;  %v2822_v26 = vsub.f32 %v2790_v56, %v2806_v41  ;;  %v2803_v27 = vpop.xlane.xlu0 %2802  ;;  %v10028_v32 = vpack.c.bf16 %v2631_v35, %v2626_v36 }
 0xa43   : > { %10559 = vpow2.f32 %v2827_v40  ;;  %v2821_v17 = vsub.f32 %v2789_v59, %v2803_v27 }
 0xa44   : > { %v2833_v18 = vmul.f32 1.442695, %v2822_v26  ;;  %10029 = vmatprep.subr.bf16.mxu0 %v10028_v32 }
 0xa45   : > { %v2831_v19 = vmul.f32 1.442695, %v2821_v17  ;;  %v2812_v20 = vpop.xlane.xlu1 %2811  ;;  %10031 = vmatpush3.bf16.msra.mxu0 %v10028_v32 }
 0xa46   : > { %10561 = vpow2.f32 %v2833_v18  ;;  %v2824_v38 = vsub.f32 %v2792_v63, %v2812_v20  ;;  %v2809_v52 = vpop.xlane.xlu0 %2808  ;;  %9176 = vmatprep.subr.msk.mxu0 %vm1289_vm4, %v7849_v37 }
 0xa47   : > { %10563 = vpow2.f32 %v2831_v19  ;;  %v2823_v53 = vsub.f32 %v2791_v0, %v2809_v52 }
 0xa48   : > { %v2837_v54 = vmul.f32 1.442695, %v2824_v38 }
 0xa49   : > { %v2835_v51 = vmul.f32 1.442695, %v2823_v53  ;;  %v2818_v55 = vpop.xlane.xlu1 %2817 }
 0xa4a   : > { %10565 = vpow2.f32 %v2837_v54  ;;  %v2826_v10 = vsub.f32 %v2794_v4, %v2818_v55  ;;  %v2815_v58 = vpop.xlane.xlu0 %2814 }
 0xa4b   : > { %10567 = vpow2.f32 %v2835_v51  ;;  %v2825_v60 = vsub.f32 %v2793_v6, %v2815_v58 }
 0xa4c   : > { %v10558_v56 = vpop.eup %10557  ;;  %v2841_v61 = vmul.f32 1.442695, %v2826_v10 }
 0xa4d   : > { %v10560_v62 = vpop.eup %10559  ;;  %v2839_v59 = vmul.f32 1.442695, %v2825_v60  ;;  %v2846_v57 = vsel %vm1046_vm3, %v10558_v56, 0.0 }
 0xa4e   : > { %10569 = vpow2.f32 %v2841_v61  ;;  %2847 = vadd.xlane.f32.xlu1 %v2846_v57  ;;  %v2843_v63 = vsel %vm1046_vm3, %v10560_v62, 0.0 }
 0xa4f   : > { %10571 = vpow2.f32 %v2839_v59  ;;  %2844 = vadd.xlane.f32.xlu0 %v2843_v63  ;;  %v3273_v63 = vld [vmem:[#allocation7 + $0x60] sm:$0xff] }
 0xa50   : > { %v10562_v0 = vpop.eup %10561 }
 0xa51   : > { %v10564_v1 = vpop.eup %10563  ;;  %v2852_v2 = vsel %vm1046_vm3, %v10562_v0, 0.0 }
 0xa52   : > { %2853 = vadd.xlane.f32.xlu1 %v2852_v2  ;;  %v2849_v3 = vsel %vm1046_vm3, %v10564_v1, 0.0  ;;  %v3155_v2 = vld [vmem:[#allocation6 + $0x60] sm:$0xff] }
 0xa53   : > { %2850 = vadd.xlane.f32.xlu0 %v2849_v3  ;;  %v3156_v3 = vld [vmem:[#allocation6 + $0x68] sm:$0xff] }
 0xa54   : > { %v10566_v4 = vpop.eup %10565 }
 0xa55   : > { %v10568_v49 = vpop.eup %10567  ;;  %v2858_v6 = vsel %vm1046_vm3, %v10566_v4, 0.0 }
 0xa56   : > { %2859 = vadd.xlane.f32.xlu1 %v2858_v6  ;;  %v2855_v7 = vsel %vm1046_vm3, %v10568_v49, 0.0  ;;  %v3158_v6 = vld [vmem:[#allocation6 + $0x78] sm:$0xff] }
 0xa57   : > { %2856 = vadd.xlane.f32.xlu0 %v2855_v7 }
 0xa58   : > { %v10570_v8 = vpop.eup %10569 }
 0xa59   : > { %v10572_v5 = vpop.eup %10571  ;;  %v2864_v11 = vsel %vm1046_vm3, %v10570_v8, 0.0 }
 0xa5a   : > { %2865 = vadd.xlane.f32.xlu1 %v2864_v11  ;;  %v2861_v28 = vsel %vm1046_vm3, %v10572_v5, 0.0 }
 0xa5b   : > { %2862 = vadd.xlane.f32.xlu0 %v2861_v28 }
 0xadb   : > { %v2848_v39 = vpop.xlane.xlu1 %2847 }
 0xadc   : > { %10573 = vrcp.f32 %v2848_v39  ;;  %v2845_v40 = vpop.xlane.xlu0 %2844 }
 0xadd   : > { %10575 = vrcp.f32 %v2845_v40 }
 0xadf   : > { %v2854_v41 = vpop.xlane.xlu1 %2853 }
 0xae0   : > { %10577 = vrcp.f32 %v2854_v41  ;;  %v2851_v26 = vpop.xlane.xlu0 %2850 }
 0xae1   : > { %10579 = vrcp.f32 %v2851_v26 }
 0xae3   : > { %v2860_v9 = vpop.xlane.xlu1 %2859 }
 0xae4   : > { %10581 = vrcp.f32 %v2860_v9  ;;  %v2857_v27 = vpop.xlane.xlu0 %2856 }
 0xae5   : > { %10583 = vrcp.f32 %v2857_v27  ;;  %v7870_v27 = vld [vmem:[%s12642_s6 + $0x3] ss:$0 sm:$0xff] }
 0xae6   : > { %v10574_v17 = vpop.eup %10573 }
 0xae7   : > { %v10576_v18 = vpop.eup %10575  ;;  %v2866_v19 = vpop.xlane.xlu1 %2865  ;;  %v2870_v52 = vmul.f32 %v10574_v17, %v10558_v56 }
 0xae8   : > { %10585 = vrcp.f32 %v2866_v19  ;;  %v2863_v20 = vpop.xlane.xlu0 %2862  ;;  %v2868_v38 = vmul.f32 %v10576_v18, %v10560_v62 }
 0xae9   : > { %10587 = vrcp.f32 %v2863_v20 }
 0xaea   : > { %v10578_v53 = vpop.eup %10577  ;;  %9164 = vmatprep.mubr.msk.f32.mxu0 %vm1046_vm3, %v2868_v38 }
 0xaeb   : > { %v10580_v54 = vpop.eup %10579  ;;  %9165 = vmatmul.mubr.msk.f32.vlgmr.msra.gmra.mrb[48].mxu0 %vm1046_vm3, %v2870_v52  ;;  %v2874_v55 = vmul.f32 %v10578_v53, %v10562_v0  ;;  %v3274_v0 = vld [vmem:[#allocation7 + $0x68] sm:$0xff] }
 0xaec   : > { %v2872_v51 = vmul.f32 %v10580_v54, %v10564_v1  ;;  %9177 = vmatpush3.msk.msra.mxu0 %vm1289_vm4, %v7849_v37  ;;  %v10040_v1 = vpack.c.bf16 %v3274_v0, %v3273_v63 }
 0xaee   : > { %v10582_v10 = vpop.eup %10581  ;;  %9167 = vmatprep.mubr.msk.f32.mxu0 %vm1046_vm3, %v2872_v51  ;;  %10041 = vmatprep.subr.bf16.mxu0 %v10040_v1 }
 0xaef   : > { %v10584_v58 = vpop.eup %10583  ;;  %9168 = vmatmul.mubr.msk.f32.gmra.mrb[50].mxu0 %vm1046_vm3, %v2874_v55  ;;  %v2878_v61 = vmul.f32 %v10582_v10, %v10566_v4  ;;  %v3157_v4 = vld [vmem:[#allocation6 + $0x70] sm:$0xff] }
 0xaf0   : > { %v2876_v60 = vmul.f32 %v10584_v58, %v10568_v49  ;;  %v10032_v49 = vpack.c.bf16 %v3156_v3, %v3155_v2  ;;  %v10036_v7 = vpack.c.bf16 %v3158_v6, %v3157_v4  ;;  %v3392_v2 = vld [vmem:[#allocation9 + $0x68] sm:$0xff]  ;;  %v3393_v3 = vld [vmem:[#allocation9 + $0x70] sm:$0xff]  ;;  %v3394_v4 = vld [vmem:[#allocation9 + $0x78] sm:$0xff] }
 0xaf1   : > { %v10052_v6 = vpack.c.bf16 %v3394_v4, %v3393_v3 }
 0xaf2   : > { %v10586_v56 = vpop.eup %10585  ;;  %9170 = vmatprep.mubr.msk.f32.mxu0 %vm1046_vm3, %v2876_v60  ;;  %10033 = vmatprep.subr.bf16.mxu1 %v10032_v49 }
 0xaf3   : > { %v10588_v62 = vpop.eup %10587  ;;  %9171 = vmatmul.mubr.msk.f32.gmra.mrb[52].mxu0 %vm1046_vm3, %v2878_v61  ;;  %v2882_v57 = vmul.f32 %v10586_v56, %v10570_v8  ;;  %10035 = vmatpush3.bf16.msra.mxu1 %v10032_v49 }
 0xaf4   : > { %v2880_v59 = vmul.f32 %v10588_v62, %v10572_v5  ;;  %10037 = vmatprep.subr.bf16.mxu1 %v10036_v7 }
 0xaf6   : > { %9173 = vmatprep.mubr.msk.f32.mxu0 %vm1046_vm3, %v2880_v59 }
 0xaf7   : > { %9174 = vmatmul.mubr.msk.f32.gmra.mrb[54].mxu0 %vm1046_vm3, %v2882_v57  ;;  %10039 = vmatpush3.bf16.msra.mxu1 %v10036_v7 }
 0xafa   : > { %9199 = vmatmul.mubr.msk.f32.vlgmr.msra.gmra.mrb[72].mxu1 %vm498_vm0, %v11632_v42  ;;  %v3275_v42 = vld [vmem:[#allocation7 + $0x70] sm:$0xff] }
 0xafb   : > { %9201 = vmatprep.mubr.msk.f32.mxu1 %vm498_vm0, %v11637_v44  ;;  %v3276_v44 = vld [vmem:[#allocation7 + $0x78] sm:$0xff] }
 0xafe   : > { %9202 = vmatmul.mubr.msk.f32.gmra.mrb[74].mxu1 %vm498_vm0, %v11642_v46  ;;  %v10044_v46 = vpack.c.bf16 %v3276_v44, %v3275_v42 }
 0xaff   : > { %9204 = vmatprep.mubr.msk.f32.mxu1 %vm498_vm0, %v11647_v45 }
 0xb02   : > { %9205 = vmatmul.mubr.msk.f32.gmra.mrb[76].mxu1 %vm498_vm0, %v11652_v47 }
 0xb03   : > { %9207 = vmatprep.mubr.msk.f32.mxu1 %vm498_vm0, %v11657_v21 }
 0xb06   : > { %9208 = vmatmul.mubr.msk.f32.gmra.mrb[78].mxu1 %vm498_vm0, %v11662_v13 }
 0xb07   : > { %9238 = vmatprep.mubr.msk.f32.mxu1 %vm498_vm0, %v11667_v14 }
 0xbbe   : > { %v9166_v8 = vpop.f32.mrb[48].mxu0 }
 0xbbf   : > { %v2973_v5 = vpop.f32.mrb[49].mxu0 }
 0xbc0   : > { %9178 = vmatprep.mubr.msk.f32.mxu0 %vm884_vm1, %v2973_v5 }
 0xbc1   : > { %9179 = vmatmul.mubr.msk.f32.vlgmr.msra.gmra.mrb[16].mxu0 %vm884_vm1, %v9166_v8 }
 0xbc2   : > { %v9169_v45 = vpop.f32.mrb[50].mxu0  ;;  %10043 = vmatpush3.bf16.msra.mxu0 %v10040_v1  ;;  %v3391_v1 = vld [vmem:[#allocation9 + $0x60] sm:$0xff] }
 0xbc3   : > { %v2983_v47 = vpop.f32.mrb[51].mxu0  ;;  %10045 = vmatprep.subr.bf16.mxu0 %v10044_v46  ;;  %v10048_v49 = vpack.c.bf16 %v3392_v2, %v3391_v1 }
 0xbc4   : > { %9181 = vmatprep.mubr.msk.f32.mxu0 %vm884_vm1, %v2983_v47 }
 0xbc5   : > { %9182 = vmatmul.mubr.msk.f32.gmra.mrb[18].mxu0 %vm884_vm1, %v9169_v45  ;;  %10049 = vmatprep.subr.bf16.mxu1 %v10048_v49 }
 0xbc6   : > { %v9172_v21 = vpop.f32.mrb[52].mxu0  ;;  %10047 = vmatpush3.bf16.msra.mxu0 %v10044_v46  ;;  %10051 = vmatpush3.bf16.msra.mxu1 %v10048_v49 }
 0xbc7   : > { %v2993_v13 = vpop.f32.mrb[53].mxu0  ;;  %10053 = vmatprep.subr.bf16.mxu1 %v10052_v6 }
 0xbc8   : > { %9184 = vmatprep.mubr.msk.f32.mxu0 %vm884_vm1, %v2993_v13 }
 0xbc9   : > { %9185 = vmatmul.mubr.msk.f32.gmra.mrb[20].mxu0 %vm884_vm1, %v9172_v21 }
 0xbca   : > { %v9175_v11 = vpop.f32.mrb[54].mxu0  ;;  %10055 = vmatpush3.bf16.msra.mxu1 %v10052_v6 }
 0xbcb   : > { %v3003_v28 = vpop.f32.mrb[55].mxu0 }
 0xbcc   : > { %9187 = vmatprep.mubr.msk.f32.mxu0 %vm884_vm1, %v3003_v28 }
 0xbcd   : > { %9188 = vmatmul.mubr.msk.f32.gmra.mrb[22].mxu0 %vm884_vm1, %v9175_v11  ;;  %9239 = vmatmul.mubr.msk.f32.vlgmr.msra.gmra.mrb[80].mxu1 %vm498_vm0, %v11672_v22 }
 0xbce   : > { %9218 = vmatprep.mubr.msk.f32.mxu0 %vm498_vm0, %v11667_v14  ;;  %v9200_v14 = vpop.f32.mrb[72].mxu1  ;;  %9241 = vmatprep.mubr.msk.f32.mxu1 %vm498_vm0, %v11677_v23 }
 0xbcf   : > { %v3239_v12 = vadd.f32 %v9200_v14, %v7860_v29  ;;  %v3233_v30 = vpop.f32.mrb[73].mxu1 }
 0xbd0   : > { %v3234_v33 = vadd.f32 %v7860_v29, %v3233_v30 }
 0xbd1   : > { %9219 = vmatmul.mubr.msk.f32.vlgmr.msra.gmra.mrb[56].mxu0 %vm498_vm0, %v11672_v22  ;;  %v9203_v34 = vpop.f32.mrb[74].mxu1  ;;  %9242 = vmatmul.mubr.msk.f32.gmra.mrb[82].mxu1 %vm498_vm0, %v11682_v48 }
 0xbd2   : > { %9221 = vmatprep.mubr.msk.f32.mxu0 %vm498_vm0, %v11677_v23  ;;  %v3249_v15 = vadd.f32 %v9203_v34, %v7860_v29  ;;  %v3243_v31 = vpop.f32.mrb[75].mxu1  ;;  %9244 = vmatprep.mubr.msk.f32.mxu1 %vm498_vm0, %v11687_v24  ;;  %v11904_v34 = vld [vmem:[%s12643_s7 + $0x3] ss:$0 sm:$0xff] }
 0xbd3   : > { %v3244_v35 = vadd.f32 %v7860_v29, %v3243_v31 }
 0xbd5   : > { %9222 = vmatmul.mubr.msk.f32.gmra.mrb[58].mxu0 %vm498_vm0, %v11682_v48  ;;  %v9206_v36 = vpop.f32.mrb[76].mxu1  ;;  %9245 = vmatmul.mubr.msk.f32.gmra.mrb[84].mxu1 %vm498_vm0, %v11692_v50 }
 0xbd6   : > { %9224 = vmatprep.mubr.msk.f32.mxu0 %vm498_vm0, %v11687_v24  ;;  %v3259_v32 = vadd.f32 %v9206_v36, %v7860_v29  ;;  %v3253_v37 = vpop.f32.mrb[77].mxu1  ;;  %9247 = vmatprep.mubr.msk.f32.mxu1 %vm498_vm0, %v11697_v25 }
 0xbd7   : > { %v3254_v39 = vadd.f32 %v7860_v29, %v3253_v37 }
 0xbd9   : > { %9225 = vmatmul.mubr.msk.f32.gmra.mrb[60].mxu0 %vm498_vm0, %v11692_v50  ;;  %v9209_v40 = vpop.f32.mrb[78].mxu1  ;;  %9248 = vmatmul.mubr.msk.f32.gmra.mrb[86].mxu1 %vm498_vm0, %v11702_v16 }
 0xbda   : > { %9227 = vmatprep.mubr.msk.f32.mxu0 %vm498_vm0, %v11697_v25  ;;  %v3269_v41 = vadd.f32 %v9209_v40, %v7860_v29  ;;  %v3263_v26 = vpop.f32.mrb[79].mxu1 }
 0xbdb   : > { %v3264_v9 = vadd.f32 %v7860_v29, %v3263_v26 }
 0xbdd   : > { %9228 = vmatmul.mubr.msk.f32.gmra.mrb[62].mxu0 %vm498_vm0, %v11702_v16 }
 0xbde   : > { %9266 = vmatprep.mubr.msk.f32.mxu0 %vm884_vm1, %v3234_v33 }
 0xca4   : > { %v9220_v17 = vpop.f32.mrb[56].mxu0 }
 0xca5   : > { %v3357_v18 = vadd.f32 %v9220_v17, %v7870_v27  ;;  %v3351_v19 = vpop.f32.mrb[57].mxu0 }
 0xca6   : > { %v3352_v20 = vadd.f32 %v7870_v27, %v3351_v19 }
 0xca8   : > { %v10056_v38 = vpack.c.bf16 %v3357_v18, %v3352_v20  ;;  %v9223_v52 = vpop.f32.mrb[58].mxu0 }
 0xca9   : > { %v3367_v53 = vadd.f32 %v9223_v52, %v7870_v27  ;;  %v3361_v54 = vpop.f32.mrb[59].mxu0 }
 0xcaa   : > { %10058 = vmatprep.subr.msk.bf16.mxu0 %vm11392_vm2, %v10056_v38  ;;  %v3362_v51 = vadd.f32 %v7870_v27, %v3361_v54 }
 0xcab   : > { %10061 = vmatpush3.bf16.xpose.msk.msra.mxu0 %vm11392_vm2, %v10056_v38 }
 0xcac   : > { %v10062_v55 = vpack.c.bf16 %v3367_v53, %v3362_v51  ;;  %v9226_v10 = vpop.f32.mrb[60].mxu0 }
 0xcad   : > { %v3377_v58 = vadd.f32 %v9226_v10, %v7870_v27  ;;  %v3371_v60 = vpop.f32.mrb[61].mxu0 }
 0xcae   : > { %10064 = vmatprep.subr.msk.bf16.mxu0 %vm11392_vm2, %v10062_v55  ;;  %v3372_v61 = vadd.f32 %v7870_v27, %v3371_v60 }
 0xcb0   : > { %v10068_v56 = vpack.c.bf16 %v3377_v58, %v3372_v61  ;;  %v9229_v62 = vpop.f32.mrb[62].mxu0 }
 0xcb1   : > { %v3387_v59 = vadd.f32 %v9229_v62, %v7870_v27  ;;  %v3381_v57 = vpop.f32.mrb[63].mxu0 }
 0xcb2   : > { %v3382_v63 = vadd.f32 %v7870_v27, %v3381_v57 }
 0xcb3   : > { %10067 = vmatpush3.bf16.xpose.msk.msra.mxu0 %vm11392_vm2, %v10062_v55 }
 0xcb4   : > { %10070 = vmatprep.subr.msk.bf16.mxu0 %vm11392_vm2, %v10068_v56  ;;  %v10074_v0 = vpack.c.bf16 %v3387_v59, %v3382_v63 }
 0xcbb   : > { %10073 = vmatpush3.bf16.xpose.msk.msra.mxu0 %vm11392_vm2, %v10068_v56 }
 0xcbc   : > { %10076 = vmatprep.subr.msk.bf16.mxu0 %vm11392_vm2, %v10074_v0 }
 0xcc3   : > { %10079 = vmatpush3.bf16.xpose.msk.msra.mxu0 %vm11392_vm2, %v10074_v0 }
 0xcca   : > { %9267 = vmatmul.mubr.msk.f32.vlgmr.msra.gmra.mrb[64].mxu0 %vm884_vm1, %v3239_v12 }
 0xccb   : > { %9269 = vmatprep.mubr.msk.f32.mxu0 %vm884_vm1, %v3244_v35 }
 0xcce   : > { %9270 = vmatmul.mubr.msk.f32.gmra.mrb[66].mxu0 %vm884_vm1, %v3249_v15  ;;  %v9240_v15 = vpop.f32.mrb[80].mxu1 }
 0xccf   : > { %9272 = vmatprep.mubr.msk.f32.mxu0 %vm884_vm1, %v3254_v39  ;;  %v3475_v31 = vadd.f32 %v9240_v15, %v11904_v34  ;;  %v3469_v35 = vpop.f32.mrb[81].mxu1 }
 0xcd0   : > { %v3470_v36 = vadd.f32 %v11904_v34, %v3469_v35  ;;  %v9243_v37 = vpop.f32.mrb[82].mxu1 }
 0xcd1   : > { %v3485_v39 = vadd.f32 %v9243_v37, %v11904_v34  ;;  %v3479_v40 = vpop.f32.mrb[83].mxu1 }
 0xcd2   : > { %9273 = vmatmul.mubr.msk.f32.gmra.mrb[68].mxu0 %vm884_vm1, %v3259_v32  ;;  %v10080_v32 = vpack.c.bf16 %v3475_v31, %v3470_v36 }
 0xcd3   : > { %9275 = vmatprep.mubr.msk.f32.mxu0 %vm884_vm1, %v3264_v9  ;;  %v9246_v9 = vpop.f32.mrb[84].mxu1 }
 0xcd4   : > { %10081 = vmatprep.subr.bf16.mxu1 %v10080_v32 }
 0xcd5   : > { %10083 = vmatpush3.bf16.msra.mxu1 %v10080_v32 }
 0xcd6   : > { %9276 = vmatmul.mubr.msk.f32.gmra.mrb[70].mxu0 %vm884_vm1, %v3269_v41  ;;  %v3480_v41 = vadd.f32 %v11904_v34, %v3479_v40  ;;  %v4031_v40 = vld [vmem:[#allocation6 + $0x90] sm:$0xff] }
 0xcd8   : > { %v10084_v26 = vpack.c.bf16 %v3485_v39, %v3480_v41  ;;  %v4032_v41 = vld [vmem:[#allocation6 + $0x98] sm:$0xff] }
 0xcda   : > { %10085 = vmatprep.subr.bf16.mxu1 %v10084_v26 }
 0xcdb   : > { %10087 = vmatpush3.bf16.msra.mxu1 %v10084_v26 }
 0xd9d   : > { %v9268_v7 = vpop.f32.mrb[64].mxu0 }
 0xd9e   : > { %v3662_v22 = vmul.f32 0.5, %v9268_v7  ;;  %v3622_v42 = vpop.f32.mrb[65].mxu0 }
 0xd9f   : > { %v3661_v44 = vmul.f32 0.5, %v3622_v42 }
 0xda0   : > { %v3672_v23 = vsel %vm1046_vm3, %v3662_v22, -inf }
 0xda1   : > { %3673 = vmax.xlane.f32.xlu1 %v3672_v23  ;;  %v9271_v48 = vpop.f32.mrb[66].mxu0  ;;  %v3669_v8 = vsel %vm1046_vm3, %v3661_v44, -inf }
 0xda2   : > { %v3664_v24 = vmul.f32 0.5, %v9271_v48  ;;  %3670 = vmax.xlane.f32.xlu0 %v3669_v8  ;;  %v3632_v5 = vpop.f32.mrb[67].mxu0 }
 0xda3   : > { %v3663_v50 = vmul.f32 0.5, %v3632_v5 }
 0xda4   : > { %v3678_v46 = vsel %vm1046_vm3, %v3664_v24, -inf }
 0xda5   : > { %3679 = vmax.xlane.f32.xlu1 %v3678_v46  ;;  %v9274_v25 = vpop.f32.mrb[68].mxu0  ;;  %v3675_v16 = vsel %vm1046_vm3, %v3663_v50, -inf }
 0xda6   : > { %v3666_v45 = vmul.f32 0.5, %v9274_v25  ;;  %3676 = vmax.xlane.f32.xlu0 %v3675_v16  ;;  %v3642_v47 = vpop.f32.mrb[69].mxu0 }
 0xda7   : > { %v3665_v21 = vmul.f32 0.5, %v3642_v47  ;;  %v3489_v47 = vpop.f32.mrb[85].mxu1 }
 0xda8   : > { %v3684_v13 = vsel %vm1046_vm3, %v3666_v45, -inf }
 0xda9   : > { %3685 = vmax.xlane.f32.xlu1 %v3684_v13  ;;  %v9277_v11 = vpop.f32.mrb[70].mxu0  ;;  %v3681_v28 = vsel %vm1046_vm3, %v3665_v21, -inf }
 0xdaa   : > { %v3668_v14 = vmul.f32 0.5, %v9277_v11  ;;  %3682 = vmax.xlane.f32.xlu0 %v3681_v28  ;;  %v3652_v29 = vpop.f32.mrb[71].mxu0  ;;  %v9249_v11 = vpop.f32.mrb[86].mxu1 }
 0xdab   : > { %v3667_v12 = vmul.f32 0.5, %v3652_v29  ;;  %v3499_v28 = vpop.f32.mrb[87].mxu1 }
 0xdac   : > { %v3690_v30 = vsel %vm1046_vm3, %v3668_v14, -inf  ;;  %v3500_v29 = vadd.f32 %v11904_v34, %v3499_v28 }
 0xdad   : > { %3691 = vmax.xlane.f32.xlu1 %v3690_v30  ;;  %v3687_v33 = vsel %vm1046_vm3, %v3667_v12, -inf  ;;  %v4029_v30 = vld [vmem:[#allocation6 + $0x80] sm:$0xff] }
 0xdae   : > { %3688 = vmax.xlane.f32.xlu0 %v3687_v33  ;;  %v4030_v33 = vld [vmem:[#allocation6 + $0x88] sm:$0xff] }
 0xdaf   : > { %v10096_v15 = vpack.c.bf16 %v4030_v33, %v4029_v30 }
 0xe2e   : > { %v3674_v27 = vpop.xlane.xlu1 %3673 }
 0xe2f   : > { %v3694_v17 = vsub.f32 %v3662_v22, %v3674_v27  ;;  %v3671_v18 = vpop.xlane.xlu0 %3670 }
 0xe30   : > { %v3693_v19 = vsub.f32 %v3661_v44, %v3671_v18 }
 0xe31   : > { %v3703_v20 = vmul.f32 1.442695, %v3694_v17 }
 0xe32   : > { %v3701_v38 = vmul.f32 1.442695, %v3693_v19  ;;  %v3680_v52 = vpop.xlane.xlu1 %3679  ;;  %v10100_v19 = vpack.c.bf16 %v4032_v41, %v4031_v40 }
 0xe33   : > { %10589 = vpow2.f32 %v3703_v20  ;;  %v3696_v53 = vsub.f32 %v3664_v24, %v3680_v52  ;;  %v3677_v54 = vpop.xlane.xlu0 %3676  ;;  %v4148_v52 = vld [vmem:[#allocation7 + $0x88] sm:$0xff] }
 0xe34   : > { %10591 = vpow2.f32 %v3701_v38  ;;  %v3695_v51 = vsub.f32 %v3663_v50, %v3677_v54  ;;  %v4147_v38 = vld [vmem:[#allocation7 + $0x80] sm:$0xff] }
 0xe35   : > { %v3707_v55 = vmul.f32 1.442695, %v3696_v53 }
 0xe36   : > { %v3705_v10 = vmul.f32 1.442695, %v3695_v51  ;;  %v3686_v58 = vpop.xlane.xlu1 %3685 }
 0xe37   : > { %10593 = vpow2.f32 %v3707_v55  ;;  %v3698_v60 = vsub.f32 %v3666_v45, %v3686_v58  ;;  %v3683_v61 = vpop.xlane.xlu0 %3682  ;;  %v3495_v45 = vadd.f32 %v9246_v9, %v11904_v34  ;;  %v10104_v55 = vpack.c.bf16 %v4148_v52, %v4147_v38 }
 0xe38   : > { %10595 = vpow2.f32 %v3705_v10  ;;  %v3697_v56 = vsub.f32 %v3665_v21, %v3683_v61  ;;  %v3490_v21 = vadd.f32 %v11904_v34, %v3489_v47 }
 0xe39   : > { %v3711_v62 = vmul.f32 1.442695, %v3698_v60 }
 0xe3a   : > { %v3709_v59 = vmul.f32 1.442695, %v3697_v56  ;;  %v3692_v57 = vpop.xlane.xlu1 %3691  ;;  %v10088_v13 = vpack.c.bf16 %v3495_v45, %v3490_v21 }
 0xe3b   : > { %10597 = vpow2.f32 %v3711_v62  ;;  %v3700_v63 = vsub.f32 %v3668_v14, %v3692_v57  ;;  %v3689_v0 = vpop.xlane.xlu0 %3688  ;;  %v3505_v14 = vadd.f32 %v9249_v11, %v11904_v34 }
 0xe3c   : > { %10599 = vpow2.f32 %v3709_v59  ;;  %v3699_v1 = vsub.f32 %v3667_v12, %v3689_v0  ;;  %10089 = vmatprep.subr.bf16.mxu1 %v10088_v13  ;;  %v4150_v0 = vld [vmem:[#allocation7 + $0x98] sm:$0xff] }
 0xe3d   : > { %v11910_v2 = vpop.eup %10589  ;;  %v3715_v3 = vmul.f32 1.442695, %v3700_v63  ;;  %10091 = vmatpush3.bf16.msra.mxu1 %v10088_v13  ;;  %v10092_v12 = vpack.c.bf16 %v3505_v14, %v3500_v29  ;;  %v4149_v63 = vld [vmem:[#allocation7 + $0x90] sm:$0xff]  ;;  %v7924_v29 = vld [vmem:[%s12641_s5 + $0x4] ss:$0 sm:$0xff] }
 0xe3e   : > { %v10592_v49 = vpop.eup %10591  ;;  %v3713_v4 = vmul.f32 1.442695, %v3699_v1  ;;  %v3720_v6 = vsel %vm1046_vm3, %v11910_v2, 0.0  ;;  %v11959_v1 = vld [vmem:[%s11280_s29] sm:$0xff] }
 0xe3f   : > { %10601 = vpow2.f32 %v3715_v3  ;;  %3721 = vadd.xlane.f32.xlu1 %v3720_v6  ;;  %v3717_v7 = vsel %vm1046_vm3, %v10592_v49, 0.0  ;;  %10093 = vmatprep.subr.bf16.mxu1 %v10092_v12  ;;  %v11964_v3 = vld [vmem:[%s11280_s29 + $0x8] sm:$0xff]  ;;  %v11979_v6 = vld [vmem:[%s11280_s29 + $0x20] sm:$0xff] }
 0xe40   : > { %10603 = vpow2.f32 %v3713_v4  ;;  %3718 = vadd.xlane.f32.xlu0 %v3717_v7  ;;  %v11974_v4 = vld [vmem:[%s11280_s29 + $0x18] sm:$0xff]  ;;  %v11984_v7 = vld [vmem:[%s11280_s29 + $0x28] sm:$0xff] }
 0xe41   : > { %v11915_v22 = vpop.eup %10593  ;;  %10095 = vmatpush3.bf16.msra.mxu1 %v10092_v12 }
 0xe42   : > { %v11917_v42 = vpop.eup %10595  ;;  %v3726_v44 = vsel %vm1046_vm3, %v11915_v22, 0.0  ;;  %10097 = vmatprep.subr.bf16.mxu1 %v10096_v15 }
 0xe43   : > { %3727 = vadd.xlane.f32.xlu1 %v3726_v44  ;;  %v3723_v23 = vsel %vm1046_vm3, %v11917_v42, 0.0  ;;  %v11999_v44 = vld [vmem:[%s11287_s10] sm:$0xff] }
 0xe44   : > { %3724 = vadd.xlane.f32.xlu0 %v3723_v23  ;;  %v12004_v23 = vld [vmem:[%s11287_s10 + $0x8] sm:$0xff] }
 0xe45   : > { %v11923_v48 = vpop.eup %10597 }
 0xe46   : > { %v11925_v8 = vpop.eup %10599  ;;  %v3732_v24 = vsel %vm1046_vm3, %v11923_v48, 0.0 }
 0xe47   : > { %3733 = vadd.xlane.f32.xlu1 %v3732_v24  ;;  %v3729_v5 = vsel %vm1046_vm3, %v11925_v8, 0.0  ;;  %v12019_v24 = vld [vmem:[%s11287_s10 + $0x20] sm:$0xff] }
 0xe48   : > { %3730 = vadd.xlane.f32.xlu0 %v3729_v5  ;;  %v12024_v5 = vld [vmem:[%s11287_s10 + $0x28] sm:$0xff] }
 0xe49   : > { %v11931_v50 = vpop.eup %10601 }
 0xe4a   : > { %v11933_v46 = vpop.eup %10603  ;;  %v3738_v25 = vsel %vm1046_vm3, %v11931_v50, 0.0 }
 0xe4b   : > { %3739 = vadd.xlane.f32.xlu1 %v3738_v25  ;;  %v3735_v16 = vsel %vm1046_vm3, %v11933_v46, 0.0  ;;  %v7913_v25 = vld [vmem:[%s12644_s8 + $0xc] sm:$0xf] }
 0xe4c   : > { %3736 = vadd.xlane.f32.xlu0 %v3735_v16  ;;  %9306 = vmatprep.subr.msk.mxu0 %vm1289_vm4, %v7913_v25 }
 0xe4d   : > { %9307 = vmatpush3.msk.msra.mxu0 %vm1289_vm4, %v7913_v25  ;;  %v4265_v25 = vld [vmem:[#allocation9 + $0x80] sm:$0xff] }
 0xecc   : > { %v3722_v31 = vpop.xlane.xlu1 %3721 }
 0xecd   : > { %10605 = vrcp.f32 %v3722_v31  ;;  %v3719_v35 = vpop.xlane.xlu0 %3718 }
 0xece   : > { %10607 = vrcp.f32 %v3719_v35 }
 0xed0   : > { %v3728_v36 = vpop.xlane.xlu1 %3727 }
 0xed1   : > { %10609 = vrcp.f32 %v3728_v36  ;;  %v3725_v32 = vpop.xlane.xlu0 %3724 }
 0xed2   : > { %10611 = vrcp.f32 %v3725_v32 }
 0xed4   : > { %v3734_v37 = vpop.xlane.xlu1 %3733 }
 0xed5   : > { %10613 = vrcp.f32 %v3734_v37  ;;  %v3731_v34 = vpop.xlane.xlu0 %3730 }
 0xed6   : > { %10615 = vrcp.f32 %v3731_v34  ;;  %v7934_v34 = vld [vmem:[%s12642_s6 + $0x4] ss:$0 sm:$0xff] }
 0xed7   : > { %v10606_v39 = vpop.eup %10605 }
 0xed8   : > { %v10608_v26 = vpop.eup %10607  ;;  %v3740_v9 = vpop.xlane.xlu1 %3739  ;;  %v3744_v18 = vmul.f32 %v10606_v39, %v11910_v2  ;;  %v10108_v2 = vpack.c.bf16 %v4150_v0, %v4149_v63 }
 0xed9   : > { %10617 = vrcp.f32 %v3740_v9  ;;  %v3737_v27 = vpop.xlane.xlu0 %3736  ;;  %v3742_v17 = vmul.f32 %v10608_v26, %v10592_v49  ;;  %v11969_v49 = vld [vmem:[%s11280_s29 + $0x10] sm:$0xff] }
 0xeda   : > { %10619 = vrcp.f32 %v3737_v27 }
 0xedb   : > { %v10610_v20 = vpop.eup %10609  ;;  %9294 = vmatprep.mubr.msk.f32.mxu1 %vm1046_vm3, %v3742_v17 }
 0xedc   : > { %v10612_v53 = vpop.eup %10611  ;;  %9295 = vmatmul.mubr.msk.f32.vlgmr.msra.gmra.mrb[88].mxu1 %vm1046_vm3, %v3744_v18  ;;  %v3748_v51 = vmul.f32 %v10610_v20, %v11915_v22  ;;  %v11989_v22 = vld [vmem:[%s11280_s29 + $0x30] sm:$0xff] }
 0xedd   : > { %10099 = vmatpush3.bf16.msra.mxu1 %v10096_v15  ;;  %v3746_v54 = vmul.f32 %v10612_v53, %v11917_v42  ;;  %v11994_v42 = vld [vmem:[%s11280_s29 + $0x38] sm:$0xff] }
 0xede   : > { %10101 = vmatprep.subr.bf16.mxu1 %v10100_v19 }
 0xedf   : > { %v10614_v10 = vpop.eup %10613  ;;  %9297 = vmatprep.mubr.msk.f32.mxu1 %vm1046_vm3, %v3746_v54 }
 0xee0   : > { %v10616_v58 = vpop.eup %10615  ;;  %9298 = vmatmul.mubr.msk.f32.gmra.mrb[90].mxu1 %vm1046_vm3, %v3748_v51  ;;  %v3752_v61 = vmul.f32 %v10614_v10, %v11923_v48  ;;  %v12009_v48 = vld [vmem:[%s11287_s10 + $0x10] sm:$0xff] }
 0xee1   : > { %v3750_v60 = vmul.f32 %v10616_v58, %v11925_v8  ;;  %10103 = vmatpush3.bf16.msra.mxu1 %v10100_v19  ;;  %v12014_v8 = vld [vmem:[%s11287_s10 + $0x18] sm:$0xff] }
 0xee2   : > { %10105 = vmatprep.subr.bf16.mxu1 %v10104_v55 }
 0xee3   : > { %v10618_v56 = vpop.eup %10617  ;;  %9300 = vmatprep.mubr.msk.f32.mxu1 %vm1046_vm3, %v3750_v60 }
 0xee4   : > { %v10620_v62 = vpop.eup %10619  ;;  %9301 = vmatmul.mubr.msk.f32.gmra.mrb[92].mxu1 %vm1046_vm3, %v3752_v61  ;;  %v3756_v57 = vmul.f32 %v10618_v56, %v11931_v50  ;;  %v12029_v50 = vld [vmem:[%s11287_s10 + $0x30] sm:$0xff] }
 0xee5   : > { %v3754_v59 = vmul.f32 %v10620_v62, %v11933_v46  ;;  %v12034_v46 = vld [vmem:[%s11287_s10 + $0x38] sm:$0xff] }
 0xee7   : > { %9303 = vmatprep.mubr.msk.f32.mxu1 %vm1046_vm3, %v3754_v59 }
 0xee8   : > { %9304 = vmatmul.mubr.msk.f32.gmra.mrb[94].mxu1 %vm1046_vm3, %v3756_v57 }
 0xee9   : > { %9328 = vmatprep.mubr.msk.f32.mxu1 %vm498_vm0, %v11959_v1 }
 0xeec   : > { %9329 = vmatmul.mubr.msk.f32.vlgmr.msra.gmra.mrb[96].mxu1 %vm498_vm0, %v11964_v3 }
 0xeed   : > { %10107 = vmatpush3.bf16.msra.mxu1 %v10104_v55  ;;  %9331 = vmatprep.mubr.msk.f32.mxu1 %vm498_vm0, %v11969_v49 }
 0xeee   : > { %10109 = vmatprep.subr.bf16.mxu1 %v10108_v2 }
 0xef0   : > { %9332 = vmatmul.mubr.msk.f32.gmra.mrb[98].mxu1 %vm498_vm0, %v11974_v4 }
 0xef1   : > { %9334 = vmatprep.mubr.msk.f32.mxu1 %vm498_vm0, %v11979_v6  ;;  %10111 = vmatpush3.bf16.msra.mxu1 %v10108_v2 }
 0xef4   : > { %9335 = vmatmul.mubr.msk.f32.gmra.mrb[100].mxu1 %vm498_vm0, %v11984_v7 }
 0xef5   : > { %9337 = vmatprep.mubr.msk.f32.mxu1 %vm498_vm0, %v11989_v22 }
 0xef8   : > { %9338 = vmatmul.mubr.msk.f32.gmra.mrb[102].mxu1 %vm498_vm0, %v11994_v42 }
 0xef9   : > { %9348 = vmatprep.mubr.msk.f32.mxu1 %vm498_vm0, %v11999_v44 }
 0xefc   : > { %9349 = vmatmul.mubr.msk.f32.vlgmr.msra.gmra.mrb[104].mxu1 %vm498_vm0, %v12004_v23 }
 0xefd   : > { %9351 = vmatprep.mubr.msk.f32.mxu1 %vm498_vm0, %v12009_v48 }
 0xf00   : > { %9352 = vmatmul.mubr.msk.f32.gmra.mrb[106].mxu1 %vm498_vm0, %v12014_v8 }
 0xf01   : > { %9354 = vmatprep.mubr.msk.f32.mxu1 %vm498_vm0, %v12019_v24 }
 0xf04   : > { %9355 = vmatmul.mubr.msk.f32.gmra.mrb[108].mxu1 %vm498_vm0, %v12024_v5 }
 0xf05   : > { %9357 = vmatprep.mubr.msk.f32.mxu1 %vm498_vm0, %v12029_v50 }
 0xf08   : > { %9358 = vmatmul.mubr.msk.f32.gmra.mrb[110].mxu1 %vm498_vm0, %v12034_v46 }
 0xfaf   : > { %v9296_v16 = vpop.f32.mrb[88].mxu1 }
 0xfb0   : > { %v3847_v45 = vpop.f32.mrb[89].mxu1 }
 0xfb1   : > { %9308 = vmatprep.mubr.msk.f32.mxu0 %vm884_vm1, %v3847_v45  ;;  %v4267_v45 = vld [vmem:[#allocation9 + $0x90] sm:$0xff] }
 0xfb2   : > { %9309 = vmatmul.mubr.msk.f32.vlgmr.msra.gmra.mrb[16].mxu0 %vm884_vm1, %v9296_v16  ;;  %v4266_v16 = vld [vmem:[#allocation9 + $0x88] sm:$0xff] }
 0xfb3   : > { %v9299_v47 = vpop.f32.mrb[90].mxu1 }
 0xfb4   : > { %v3857_v21 = vpop.f32.mrb[91].mxu1 }
 0xfb5   : > { %9311 = vmatprep.mubr.msk.f32.mxu0 %vm884_vm1, %v3857_v21  ;;  %v4268_v21 = vld [vmem:[#allocation9 + $0x98] sm:$0xff] }
 0xfb6   : > { %9312 = vmatmul.mubr.msk.f32.gmra.mrb[18].mxu0 %vm884_vm1, %v9299_v47  ;;  %v10112_v47 = vpack.c.bf16 %v4266_v16, %v4265_v25 }
 0xfb7   : > { %v9302_v13 = vpop.f32.mrb[92].mxu1 }
 0xfb8   : > { %v3867_v11 = vpop.f32.mrb[93].mxu1  ;;  %10113 = vmatprep.subr.bf16.mxu0 %v10112_v47 }
 0xfb9   : > { %9314 = vmatprep.mubr.msk.f32.mxu0 %vm884_vm1, %v3867_v11  ;;  %10115 = vmatpush3.bf16.msra.mxu0 %v10112_v47 }
 0xfba   : > { %9315 = vmatmul.mubr.msk.f32.gmra.mrb[20].mxu0 %vm884_vm1, %v9302_v13  ;;  %v10116_v13 = vpack.c.bf16 %v4268_v21, %v4267_v45 }
 0xfbb   : > { %v9305_v28 = vpop.f32.mrb[94].mxu1 }
 0xfbc   : > { %v3877_v14 = vpop.f32.mrb[95].mxu1  ;;  %10117 = vmatprep.subr.bf16.mxu0 %v10116_v13 }
 0xfbd   : > { %9317 = vmatprep.mubr.msk.f32.mxu0 %vm884_vm1, %v3877_v14  ;;  %10119 = vmatpush3.bf16.msra.mxu0 %v10116_v13 }
 0xfbe   : > { %9318 = vmatmul.mubr.msk.f32.gmra.mrb[22].mxu0 %vm884_vm1, %v9305_v28 }
 0xfbf   : > { %v9330_v12 = vpop.f32.mrb[96].mxu1  ;;  %9368 = vmatprep.mubr.msk.f32.mxu0 %vm498_vm0, %v11999_v44 }
 0xfc0   : > { %v4107_v30 = vpop.f32.mrb[97].mxu1  ;;  %v4113_v56 = vadd.f32 %v9330_v12, %v7924_v29 }
 0xfc1   : > { %v4108_v33 = vadd.f32 %v7924_v29, %v4107_v30 }
 0xfc2   : > { %9369 = vmatmul.mubr.msk.f32.vlgmr.msra.gmra.mrb[72].mxu0 %vm498_vm0, %v12004_v23 }
 0xfc3   : > { %v9333_v15 = vpop.f32.mrb[98].mxu1  ;;  %9396 = vmatprep.mubr.msk.f32.mxu1 %vm884_vm1, %v4108_v33  ;;  %9371 = vmatprep.mubr.msk.f32.mxu0 %vm498_vm0, %v12009_v48 }
 0xfc4   : > { %v4117_v31 = vpop.f32.mrb[99].mxu1  ;;  %v4123_v59 = vadd.f32 %v9333_v15, %v7924_v29 }
 0xfc5   : > { %v4118_v62 = vadd.f32 %v7924_v29, %v4117_v31 }
 0xfc6   : > { %9372 = vmatmul.mubr.msk.f32.gmra.mrb[74].mxu0 %vm498_vm0, %v12014_v8 }
 0xfc7   : > { %v9336_v35 = vpop.f32.mrb[100].mxu1  ;;  %9374 = vmatprep.mubr.msk.f32.mxu0 %vm498_vm0, %v12019_v24 }
 0xfc8   : > { %v4127_v36 = vpop.f32.mrb[101].mxu1  ;;  %v4133_v63 = vadd.f32 %v9336_v35, %v7924_v29 }
 0xfc9   : > { %v4128_v57 = vadd.f32 %v7924_v29, %v4127_v36 }
 0xfca   : > { %9375 = vmatmul.mubr.msk.f32.gmra.mrb[76].mxu0 %vm498_vm0, %v12024_v5 }
 0xfcb   : > { %v9339_v32 = vpop.f32.mrb[102].mxu1  ;;  %9377 = vmatprep.mubr.msk.f32.mxu0 %vm498_vm0, %v12029_v50 }
 0xfcc   : > { %v4137_v37 = vpop.f32.mrb[103].mxu1  ;;  %v4143_v2 = vadd.f32 %v9339_v32, %v7924_v29 }
 0xfcd   : > { %v4138_v0 = vadd.f32 %v7924_v29, %v4137_v37 }
 0xfce   : > { %9378 = vmatmul.mubr.msk.f32.gmra.mrb[78].mxu0 %vm498_vm0, %v12034_v46 }
 0xfcf   : > { %v9350_v39 = vpop.f32.mrb[104].mxu1 }
 0xfd0   : > { %v4231_v40 = vadd.f32 %v9350_v39, %v7934_v34  ;;  %v4225_v41 = vpop.f32.mrb[105].mxu1 }
 0xfd1   : > { %v4226_v26 = vadd.f32 %v7934_v34, %v4225_v41 }
 0xfd3   : > { %v10120_v9 = vpack.c.bf16 %v4231_v40, %v4226_v26  ;;  %v9353_v27 = vpop.f32.mrb[106].mxu1 }
 0xfd4   : > { %v4241_v17 = vadd.f32 %v9353_v27, %v7934_v34  ;;  %v4235_v18 = vpop.f32.mrb[107].mxu1 }
 0xfd5   : > { %10122 = vmatprep.subr.msk.bf16.mxu1 %vm11392_vm2, %v10120_v9  ;;  %v4236_v19 = vadd.f32 %v7934_v34, %v4235_v18 }
 0xfd6   : > { %10125 = vmatpush3.bf16.xpose.msk.msra.mxu1 %vm11392_vm2, %v10120_v9 }
 0xfd7   : > { %v10126_v20 = vpack.c.bf16 %v4241_v17, %v4236_v19  ;;  %v9356_v38 = vpop.f32.mrb[108].mxu1 }
 0xfd8   : > { %v4251_v52 = vadd.f32 %v9356_v38, %v7934_v34  ;;  %v4245_v53 = vpop.f32.mrb[109].mxu1 }
 0xfd9   : > { %10128 = vmatprep.subr.msk.bf16.mxu1 %vm11392_vm2, %v10126_v20  ;;  %v4246_v54 = vadd.f32 %v7934_v34, %v4245_v53 }
 0xfdb   : > { %v10132_v51 = vpack.c.bf16 %v4251_v52, %v4246_v54  ;;  %v9359_v55 = vpop.f32.mrb[110].mxu1 }
 0xfdc   : > { %v4261_v10 = vadd.f32 %v9359_v55, %v7934_v34  ;;  %v4255_v58 = vpop.f32.mrb[111].mxu1 }
 0xfdd   : > { %v4256_v60 = vadd.f32 %v7934_v34, %v4255_v58 }
 0xfde   : > { %10131 = vmatpush3.bf16.xpose.msk.msra.mxu1 %vm11392_vm2, %v10126_v20  ;;  %v12110_v20 = vld [vmem:[%s12643_s7 + $0x4] ss:$0 sm:$0xff] }
 0xfdf   : > { %10134 = vmatprep.subr.msk.bf16.mxu1 %vm11392_vm2, %v10132_v51  ;;  %v10138_v61 = vpack.c.bf16 %v4261_v10, %v4256_v60 }
 0xfe6   : > { %10137 = vmatpush3.bf16.xpose.msk.msra.mxu1 %vm11392_vm2, %v10132_v51 }
 0xfe7   : > { %10140 = vmatprep.subr.msk.bf16.mxu1 %vm11392_vm2, %v10138_v61 }
 0xfee   : > { %10143 = vmatpush3.bf16.xpose.msk.msra.mxu1 %vm11392_vm2, %v10138_v61 }
 0xff5   : > { %9397 = vmatmul.mubr.msk.f32.vlgmr.msra.gmra.mrb[112].mxu1 %vm884_vm1, %v4113_v56 }
 0xff6   : > { %9399 = vmatprep.mubr.msk.f32.mxu1 %vm884_vm1, %v4118_v62 }
 0xff9   : > { %9400 = vmatmul.mubr.msk.f32.gmra.mrb[114].mxu1 %vm884_vm1, %v4123_v59 }
 0xffa   : > { %9402 = vmatprep.mubr.msk.f32.mxu1 %vm884_vm1, %v4128_v57 }
 0xffd   : > { %9403 = vmatmul.mubr.msk.f32.gmra.mrb[116].mxu1 %vm884_vm1, %v4133_v63 }
 0xffe   : > { %9405 = vmatprep.mubr.msk.f32.mxu1 %vm884_vm1, %v4138_v0 }
0x1001   : > { %9406 = vmatmul.mubr.msk.f32.gmra.mrb[118].mxu1 %vm884_vm1, %v4143_v2 }
0x1002   : > { %9458 = vmatprep.mubr.msk.f32.mxu1 %vm498_vm0, %v11959_v1 }
0x1095   : > { %v9370_v38 = vpop.f32.mrb[72].mxu0 }
0x1096   : > { %v4349_v52 = vadd.f32 %v9370_v38, %v12110_v20  ;;  %v4343_v53 = vpop.f32.mrb[73].mxu0 }
0x1097   : > { %v4344_v54 = vadd.f32 %v12110_v20, %v4343_v53 }
0x1099   : > { %v10144_v51 = vpack.c.bf16 %v4349_v52, %v4344_v54  ;;  %v9373_v55 = vpop.f32.mrb[74].mxu0 }
0x109a   : > { %v4359_v10 = vadd.f32 %v9373_v55, %v12110_v20  ;;  %v4353_v58 = vpop.f32.mrb[75].mxu0 }
0x109b   : > { %v4354_v60 = vadd.f32 %v12110_v20, %v4353_v58  ;;  %10145 = vmatprep.subr.bf16.mxu0 %v10144_v51 }
0x109c   : > { %10147 = vmatpush3.bf16.msra.mxu0 %v10144_v51 }
0x109d   : > { %v10148_v61 = vpack.c.bf16 %v4359_v10, %v4354_v60  ;;  %v9376_v54 = vpop.f32.mrb[76].mxu0 }
0x109e   : > { %v4363_v51 = vpop.f32.mrb[77].mxu0  ;;  %v4369_v55 = vadd.f32 %v9376_v54, %v12110_v20  ;;  %v7988_v54 = vld [vmem:[%s12641_s5 + $0x5] ss:$0 sm:$0xff] }
0x109f   : > { %10149 = vmatprep.subr.bf16.mxu0 %v10148_v61  ;;  %v4364_v10 = vadd.f32 %v12110_v20, %v4363_v51 }
0x10a0   : > { %10151 = vmatpush3.bf16.msra.mxu0 %v10148_v61 }
0x10a1   : > { %v10152_v58 = vpack.c.bf16 %v4369_v55, %v4364_v10  ;;  %v9379_v60 = vpop.f32.mrb[78].mxu0 }
0x10a2   : > { %v4373_v61 = vpop.f32.mrb[79].mxu0 }
0x10a3   : > { %10153 = vmatprep.subr.bf16.mxu0 %v10152_v58 }
0x10a4   : > { %10155 = vmatpush3.bf16.msra.mxu0 %v10152_v58 }
0x10c8   : > { %v9398_v1 = vpop.f32.mrb[112].mxu1 }
0x10c9   : > { %v4536_v11 = vmul.f32 0.5, %v9398_v1  ;;  %v4496_v28 = vpop.f32.mrb[113].mxu1 }
0x10ca   : > { %v4535_v14 = vmul.f32 0.5, %v4496_v28 }
0x10cb   : > { %v4546_v29 = vsel %vm1046_vm3, %v4536_v11, -inf }
0x10cc   : > { %4547 = vmax.xlane.f32.xlu1 %v4546_v29  ;;  %v9401_v12 = vpop.f32.mrb[114].mxu1  ;;  %v4543_v30 = vsel %vm1046_vm3, %v4535_v14, -inf }
0x10cd   : > { %v4538_v33 = vmul.f32 0.5, %v9401_v12  ;;  %4544 = vmax.xlane.f32.xlu0 %v4543_v30  ;;  %v4506_v15 = vpop.f32.mrb[115].mxu1 }
0x10ce   : > { %v4537_v31 = vmul.f32 0.5, %v4506_v15 }
0x10cf   : > { %v4552_v35 = vsel %vm1046_vm3, %v4538_v33, -inf }
0x10d0   : > { %4553 = vmax.xlane.f32.xlu1 %v4552_v35  ;;  %v9404_v36 = vpop.f32.mrb[116].mxu1  ;;  %v4549_v32 = vsel %vm1046_vm3, %v4537_v31, -inf }
0x10d1   : > { %v4540_v37 = vmul.f32 0.5, %v9404_v36  ;;  %4550 = vmax.xlane.f32.xlu0 %v4549_v32  ;;  %v4516_v34 = vpop.f32.mrb[117].mxu1 }
0x10d2   : > { %v4539_v39 = vmul.f32 0.5, %v4516_v34 }
0x10d3   : > { %v4558_v40 = vsel %vm1046_vm3, %v4540_v37, -inf }
0x10d4   : > { %4559 = vmax.xlane.f32.xlu1 %v4558_v40  ;;  %v9407_v41 = vpop.f32.mrb[118].mxu1  ;;  %v4555_v26 = vsel %vm1046_vm3, %v4539_v39, -inf }
0x10d5   : > { %v4542_v9 = vmul.f32 0.5, %v9407_v41  ;;  %4556 = vmax.xlane.f32.xlu0 %v4555_v26  ;;  %v4526_v27 = vpop.f32.mrb[119].mxu1 }
0x10d6   : > { %v4541_v17 = vmul.f32 0.5, %v4526_v27 }
0x10d7   : > { %v4564_v18 = vsel %vm1046_vm3, %v4542_v9, -inf }
0x10d8   : > { %4565 = vmax.xlane.f32.xlu1 %v4564_v18  ;;  %v4561_v19 = vsel %vm1046_vm3, %v4541_v17, -inf }
0x10d9   : > { %4562 = vmax.xlane.f32.xlu0 %v4561_v19 }
0x1159   : > { %v4548_v56 = vpop.xlane.xlu1 %4547 }
0x115a   : > { %v4568_v62 = vsub.f32 %v4536_v11, %v4548_v56  ;;  %v4545_v59 = vpop.xlane.xlu0 %4544  ;;  %v4379_v56 = vadd.f32 %v9379_v60, %v12110_v20 }
0x115b   : > { %v4567_v57 = vsub.f32 %v4535_v14, %v4545_v59 }
0x115c   : > { %v4577_v63 = vmul.f32 1.442695, %v4568_v62  ;;  %v4374_v62 = vadd.f32 %v12110_v20, %v4373_v61 }
0x115d   : > { %v4575_v0 = vmul.f32 1.442695, %v4567_v57  ;;  %v4554_v2 = vpop.xlane.xlu1 %4553  ;;  %v7977_v57 = vld [vmem:[%s12644_s8 + $0x10] sm:$0xf] }
0x115e   : > { %10621 = vpow2.f32 %v4577_v63  ;;  %v4570_v25 = vsub.f32 %v4538_v33, %v4554_v2  ;;  %v4551_v16 = vpop.xlane.xlu0 %4550  ;;  %v10156_v59 = vpack.c.bf16 %v4379_v56, %v4374_v62 }
0x115f   : > { %10623 = vpow2.f32 %v4575_v0  ;;  %v4569_v45 = vsub.f32 %v4537_v31, %v4551_v16 }
0x1160   : > { %v4581_v47 = vmul.f32 1.442695, %v4570_v25  ;;  %10157 = vmatprep.subr.bf16.mxu0 %v10156_v59 }
0x1161   : > { %v4579_v21 = vmul.f32 1.442695, %v4569_v45  ;;  %v4560_v13 = vpop.xlane.xlu1 %4559  ;;  %10159 = vmatpush3.bf16.msra.mxu0 %v10156_v59 }
0x1162   : > { %10625 = vpow2.f32 %v4581_v47  ;;  %v4572_v1 = vsub.f32 %v4540_v37, %v4560_v13  ;;  %v4557_v28 = vpop.xlane.xlu0 %4556  ;;  %9436 = vmatprep.subr.msk.mxu0 %vm1289_vm4, %v7977_v57 }
0x1163   : > { %10627 = vpow2.f32 %v4579_v21  ;;  %v4571_v29 = vsub.f32 %v4539_v39, %v4557_v28 }
0x1164   : > { %v4585_v12 = vmul.f32 1.442695, %v4572_v1 }
0x1165   : > { %v4583_v11 = vmul.f32 1.442695, %v4571_v29  ;;  %v4566_v30 = vpop.xlane.xlu1 %4565 }
0x1166   : > { %10629 = vpow2.f32 %v4585_v12  ;;  %v4574_v14 = vsub.f32 %v4542_v9, %v4566_v30  ;;  %v4563_v15 = vpop.xlane.xlu0 %4562 }
0x1167   : > { %10631 = vpow2.f32 %v4583_v11  ;;  %v4573_v35 = vsub.f32 %v4541_v17, %v4563_v15 }
0x1168   : > { %v10622_v33 = vpop.eup %10621  ;;  %v4589_v36 = vmul.f32 1.442695, %v4574_v14 }
0x1169   : > { %v10624_v32 = vpop.eup %10623  ;;  %v4587_v31 = vmul.f32 1.442695, %v4573_v35  ;;  %v4594_v34 = vsel %vm1046_vm3, %v10622_v33, 0.0 }
0x116a   : > { %10633 = vpow2.f32 %v4589_v36  ;;  %4595 = vadd.xlane.f32.xlu1 %v4594_v34  ;;  %v4591_v37 = vsel %vm1046_vm3, %v10624_v32, 0.0 }
0x116b   : > { %10635 = vpow2.f32 %v4587_v31  ;;  %4592 = vadd.xlane.f32.xlu0 %v4591_v37  ;;  %v5021_v37 = vld [vmem:[#allocation7 + $0xa0] sm:$0xff] }
0x116c   : > { %v10626_v39 = vpop.eup %10625 }
0x116d   : > { %v10628_v40 = vpop.eup %10627  ;;  %v4600_v41 = vsel %vm1046_vm3, %v10626_v39, 0.0 }
0x116e   : > { %4601 = vadd.xlane.f32.xlu1 %v4600_v41  ;;  %v4597_v26 = vsel %vm1046_vm3, %v10628_v40, 0.0  ;;  %v4903_v41 = vld [vmem:[#allocation6 + $0xa0] sm:$0xff] }
0x116f   : > { %4598 = vadd.xlane.f32.xlu0 %v4597_v26  ;;  %v4904_v26 = vld [vmem:[#allocation6 + $0xa8] sm:$0xff] }
0x1170   : > { %v10630_v9 = vpop.eup %10629 }
0x1171   : > { %v10632_v27 = vpop.eup %10631  ;;  %v4606_v17 = vsel %vm1046_vm3, %v10630_v9, 0.0 }
0x1172   : > { %4607 = vadd.xlane.f32.xlu1 %v4606_v17  ;;  %v4603_v18 = vsel %vm1046_vm3, %v10632_v27, 0.0  ;;  %v4906_v17 = vld [vmem:[#allocation6 + $0xb8] sm:$0xff] }
0x1173   : > { %4604 = vadd.xlane.f32.xlu0 %v4603_v18 }
0x1174   : > { %v10634_v19 = vpop.eup %10633 }
0x1175   : > { %v10636_v38 = vpop.eup %10635  ;;  %v4612_v52 = vsel %vm1046_vm3, %v10634_v19, 0.0 }
0x1176   : > { %4613 = vadd.xlane.f32.xlu1 %v4612_v52  ;;  %v4609_v53 = vsel %vm1046_vm3, %v10636_v38, 0.0 }
0x1177   : > { %4610 = vadd.xlane.f32.xlu0 %v4609_v53 }
0x11f7   : > { %v4596_v63 = vpop.xlane.xlu1 %4595 }
0x11f8   : > { %10637 = vrcp.f32 %v4596_v63  ;;  %v4593_v0 = vpop.xlane.xlu0 %4592 }
0x11f9   : > { %10639 = vrcp.f32 %v4593_v0 }
0x11fb   : > { %v4602_v2 = vpop.xlane.xlu1 %4601 }
0x11fc   : > { %10641 = vrcp.f32 %v4602_v2  ;;  %v4599_v25 = vpop.xlane.xlu0 %4598 }
0x11fd   : > { %10643 = vrcp.f32 %v4599_v25 }
0x11ff   : > { %v4608_v20 = vpop.xlane.xlu1 %4607 }
0x1200   : > { %10645 = vrcp.f32 %v4608_v20  ;;  %v4605_v16 = vpop.xlane.xlu0 %4604 }
0x1201   : > { %10647 = vrcp.f32 %v4605_v16  ;;  %v7998_v16 = vld [vmem:[%s12642_s6 + $0x5] ss:$0 sm:$0xff] }
0x1202   : > { %v10638_v45 = vpop.eup %10637 }
0x1203   : > { %v10640_v47 = vpop.eup %10639  ;;  %v4614_v21 = vpop.xlane.xlu1 %4613  ;;  %v4618_v28 = vmul.f32 %v10638_v45, %v10622_v33 }
0x1204   : > { %10649 = vrcp.f32 %v4614_v21  ;;  %v4611_v13 = vpop.xlane.xlu0 %4610  ;;  %v4616_v1 = vmul.f32 %v10640_v47, %v10624_v32 }
0x1205   : > { %10651 = vrcp.f32 %v4611_v13 }
0x1206   : > { %v10642_v29 = vpop.eup %10641  ;;  %9424 = vmatprep.mubr.msk.f32.mxu0 %vm1046_vm3, %v4616_v1 }
0x1207   : > { %v10644_v12 = vpop.eup %10643  ;;  %9425 = vmatmul.mubr.msk.f32.vlgmr.msra.gmra.mrb[80].mxu0 %vm1046_vm3, %v4618_v28  ;;  %v4622_v30 = vmul.f32 %v10642_v29, %v10626_v39  ;;  %v5022_v39 = vld [vmem:[#allocation7 + $0xa8] sm:$0xff] }
0x1208   : > { %v4620_v11 = vmul.f32 %v10644_v12, %v10628_v40  ;;  %9437 = vmatpush3.msk.msra.mxu0 %vm1289_vm4, %v7977_v57  ;;  %v10168_v40 = vpack.c.bf16 %v5022_v39, %v5021_v37 }
0x120a   : > { %v10646_v14 = vpop.eup %10645  ;;  %9427 = vmatprep.mubr.msk.f32.mxu0 %vm1046_vm3, %v4620_v11  ;;  %10169 = vmatprep.subr.bf16.mxu0 %v10168_v40 }
0x120b   : > { %v10648_v15 = vpop.eup %10647  ;;  %9428 = vmatmul.mubr.msk.f32.gmra.mrb[82].mxu0 %vm1046_vm3, %v4622_v30  ;;  %v4626_v36 = vmul.f32 %v10646_v14, %v10630_v9  ;;  %v4905_v9 = vld [vmem:[#allocation6 + $0xb0] sm:$0xff] }
0x120c   : > { %v4624_v35 = vmul.f32 %v10648_v15, %v10632_v27  ;;  %v10160_v27 = vpack.c.bf16 %v4904_v26, %v4903_v41  ;;  %v10164_v18 = vpack.c.bf16 %v4906_v17, %v4905_v9  ;;  %v5140_v41 = vld [vmem:[#allocation9 + $0xa8] sm:$0xff]  ;;  %v5141_v26 = vld [vmem:[#allocation9 + $0xb0] sm:$0xff]  ;;  %v5142_v9 = vld [vmem:[#allocation9 + $0xb8] sm:$0xff] }
0x120d   : > { %v10180_v17 = vpack.c.bf16 %v5142_v9, %v5141_v26 }
0x120e   : > { %v10650_v33 = vpop.eup %10649  ;;  %9430 = vmatprep.mubr.msk.f32.mxu0 %vm1046_vm3, %v4624_v35  ;;  %10161 = vmatprep.subr.bf16.mxu1 %v10160_v27 }
0x120f   : > { %v10652_v32 = vpop.eup %10651  ;;  %9431 = vmatmul.mubr.msk.f32.gmra.mrb[84].mxu0 %vm1046_vm3, %v4626_v36  ;;  %v4630_v34 = vmul.f32 %v10650_v33, %v10634_v19  ;;  %10163 = vmatpush3.bf16.msra.mxu1 %v10160_v27 }
0x1210   : > { %v4628_v31 = vmul.f32 %v10652_v32, %v10636_v38  ;;  %10165 = vmatprep.subr.bf16.mxu1 %v10164_v18 }
0x1212   : > { %9433 = vmatprep.mubr.msk.f32.mxu0 %vm1046_vm3, %v4628_v31 }
0x1213   : > { %9434 = vmatmul.mubr.msk.f32.gmra.mrb[86].mxu0 %vm1046_vm3, %v4630_v34  ;;  %10167 = vmatpush3.bf16.msra.mxu1 %v10164_v18 }
0x1216   : > { %9459 = vmatmul.mubr.msk.f32.vlgmr.msra.gmra.mrb[120].mxu1 %vm498_vm0, %v11964_v3  ;;  %v5023_v3 = vld [vmem:[#allocation7 + $0xb0] sm:$0xff] }
0x1217   : > { %9461 = vmatprep.mubr.msk.f32.mxu1 %vm498_vm0, %v11969_v49  ;;  %v5024_v49 = vld [vmem:[#allocation7 + $0xb8] sm:$0xff] }
0x121a   : > { %9462 = vmatmul.mubr.msk.f32.gmra.mrb[122].mxu1 %vm498_vm0, %v11974_v4  ;;  %v10172_v4 = vpack.c.bf16 %v5024_v49, %v5023_v3 }
0x121b   : > { %9464 = vmatprep.mubr.msk.f32.mxu1 %vm498_vm0, %v11979_v6 }
0x121e   : > { %9465 = vmatmul.mubr.msk.f32.gmra.mrb[124].mxu1 %vm498_vm0, %v11984_v7 }
0x121f   : > { %9467 = vmatprep.mubr.msk.f32.mxu1 %vm498_vm0, %v11989_v22 }
0x1222   : > { %9468 = vmatmul.mubr.msk.f32.gmra.mrb[126].mxu1 %vm498_vm0, %v11994_v42 }
0x1223   : > { %9498 = vmatprep.mubr.msk.f32.mxu1 %vm498_vm0, %v11999_v44 }
0x12da   : > { %v9426_v19 = vpop.f32.mrb[80].mxu0 }
0x12db   : > { %v4721_v38 = vpop.f32.mrb[81].mxu0 }
0x12dc   : > { %9438 = vmatprep.mubr.msk.f32.mxu0 %vm884_vm1, %v4721_v38 }
0x12dd   : > { %9439 = vmatmul.mubr.msk.f32.vlgmr.msra.gmra.mrb[16].mxu0 %vm884_vm1, %v9426_v19 }
0x12de   : > { %v9429_v6 = vpop.f32.mrb[82].mxu0  ;;  %10171 = vmatpush3.bf16.msra.mxu0 %v10168_v40  ;;  %v5139_v40 = vld [vmem:[#allocation9 + $0xa0] sm:$0xff] }
0x12df   : > { %v4731_v7 = vpop.f32.mrb[83].mxu0  ;;  %10173 = vmatprep.subr.bf16.mxu0 %v10172_v4  ;;  %v10176_v27 = vpack.c.bf16 %v5140_v41, %v5139_v40 }
0x12e0   : > { %9441 = vmatprep.mubr.msk.f32.mxu0 %vm884_vm1, %v4731_v7 }
0x12e1   : > { %9442 = vmatmul.mubr.msk.f32.gmra.mrb[18].mxu0 %vm884_vm1, %v9429_v6  ;;  %10177 = vmatprep.subr.bf16.mxu1 %v10176_v27 }
0x12e2   : > { %v9432_v22 = vpop.f32.mrb[84].mxu0  ;;  %10175 = vmatpush3.bf16.msra.mxu0 %v10172_v4  ;;  %10179 = vmatpush3.bf16.msra.mxu1 %v10176_v27 }
0x12e3   : > { %v4741_v42 = vpop.f32.mrb[85].mxu0  ;;  %10181 = vmatprep.subr.bf16.mxu1 %v10180_v17 }
0x12e4   : > { %9444 = vmatprep.mubr.msk.f32.mxu0 %vm884_vm1, %v4741_v42 }
0x12e5   : > { %9445 = vmatmul.mubr.msk.f32.gmra.mrb[20].mxu0 %vm884_vm1, %v9432_v22 }
0x12e6   : > { %v9435_v52 = vpop.f32.mrb[86].mxu0  ;;  %10183 = vmatpush3.bf16.msra.mxu1 %v10180_v17 }
0x12e7   : > { %v4751_v53 = vpop.f32.mrb[87].mxu0 }
0x12e8   : > { %9447 = vmatprep.mubr.msk.f32.mxu0 %vm884_vm1, %v4751_v53 }
0x12e9   : > { %9448 = vmatmul.mubr.msk.f32.gmra.mrb[22].mxu0 %vm884_vm1, %v9435_v52  ;;  %9499 = vmatmul.mubr.msk.f32.vlgmr.msra.gmra.mrb[128].mxu1 %vm498_vm0, %v12004_v23 }
0x12ea   : > { %9478 = vmatprep.mubr.msk.f32.mxu0 %vm498_vm0, %v11999_v44  ;;  %v9460_v44 = vpop.f32.mrb[120].mxu1  ;;  %9501 = vmatprep.mubr.msk.f32.mxu1 %vm498_vm0, %v12009_v48 }
0x12eb   : > { %v4987_v51 = vadd.f32 %v9460_v44, %v7988_v54  ;;  %v4981_v55 = vpop.f32.mrb[121].mxu1 }
0x12ec   : > { %v4982_v10 = vadd.f32 %v7988_v54, %v4981_v55 }
0x12ed   : > { %9479 = vmatmul.mubr.msk.f32.vlgmr.msra.gmra.mrb[88].mxu0 %vm498_vm0, %v12004_v23  ;;  %v9463_v58 = vpop.f32.mrb[122].mxu1  ;;  %9502 = vmatmul.mubr.msk.f32.gmra.mrb[130].mxu1 %vm498_vm0, %v12014_v8 }
0x12ee   : > { %9481 = vmatprep.mubr.msk.f32.mxu0 %vm498_vm0, %v12009_v48  ;;  %v4997_v60 = vadd.f32 %v9463_v58, %v7988_v54  ;;  %v4991_v61 = vpop.f32.mrb[123].mxu1  ;;  %9504 = vmatprep.mubr.msk.f32.mxu1 %vm498_vm0, %v12019_v24  ;;  %v12236_v58 = vld [vmem:[%s12643_s7 + $0x5] ss:$0 sm:$0xff] }
0x12ef   : > { %v4992_v56 = vadd.f32 %v7988_v54, %v4991_v61 }
0x12f1   : > { %9482 = vmatmul.mubr.msk.f32.gmra.mrb[90].mxu0 %vm498_vm0, %v12014_v8  ;;  %v9466_v62 = vpop.f32.mrb[124].mxu1  ;;  %9505 = vmatmul.mubr.msk.f32.gmra.mrb[132].mxu1 %vm498_vm0, %v12024_v5 }
0x12f2   : > { %9484 = vmatprep.mubr.msk.f32.mxu0 %vm498_vm0, %v12019_v24  ;;  %v5007_v59 = vadd.f32 %v9466_v62, %v7988_v54  ;;  %v5001_v57 = vpop.f32.mrb[125].mxu1  ;;  %9507 = vmatprep.mubr.msk.f32.mxu1 %vm498_vm0, %v12029_v50 }
0x12f3   : > { %v5002_v63 = vadd.f32 %v7988_v54, %v5001_v57 }
0x12f5   : > { %9485 = vmatmul.mubr.msk.f32.gmra.mrb[92].mxu0 %vm498_vm0, %v12024_v5  ;;  %v9469_v0 = vpop.f32.mrb[126].mxu1  ;;  %9508 = vmatmul.mubr.msk.f32.gmra.mrb[134].mxu1 %vm498_vm0, %v12034_v46 }
0x12f6   : > { %9487 = vmatprep.mubr.msk.f32.mxu0 %vm498_vm0, %v12029_v50  ;;  %v5017_v2 = vadd.f32 %v9469_v0, %v7988_v54  ;;  %v5011_v25 = vpop.f32.mrb[127].mxu1 }
0x12f7   : > { %v5012_v20 = vadd.f32 %v7988_v54, %v5011_v25 }
0x12f9   : > { %9488 = vmatmul.mubr.msk.f32.gmra.mrb[94].mxu0 %vm498_vm0, %v12034_v46 }
0x12fa   : > { %9526 = vmatprep.mubr.msk.f32.mxu0 %vm884_vm1, %v4982_v10 }
0x13c0   : > { %v9480_v45 = vpop.f32.mrb[88].mxu0 }
0x13c1   : > { %v5105_v47 = vadd.f32 %v9480_v45, %v7998_v16  ;;  %v5099_v21 = vpop.f32.mrb[89].mxu0 }
0x13c2   : > { %v5100_v13 = vadd.f32 %v7998_v16, %v5099_v21 }
0x13c4   : > { %v10184_v1 = vpack.c.bf16 %v5105_v47, %v5100_v13  ;;  %v9483_v28 = vpop.f32.mrb[90].mxu0 }
0x13c5   : > { %v5115_v29 = vadd.f32 %v9483_v28, %v7998_v16  ;;  %v5109_v12 = vpop.f32.mrb[91].mxu0 }
0x13c6   : > { %10186 = vmatprep.subr.msk.bf16.mxu0 %vm11392_vm2, %v10184_v1  ;;  %v5110_v11 = vadd.f32 %v7998_v16, %v5109_v12 }
0x13c7   : > { %10189 = vmatpush3.bf16.xpose.msk.msra.mxu0 %vm11392_vm2, %v10184_v1 }
0x13c8   : > { %v10190_v30 = vpack.c.bf16 %v5115_v29, %v5110_v11  ;;  %v9486_v14 = vpop.f32.mrb[92].mxu0 }
0x13c9   : > { %v5125_v15 = vadd.f32 %v9486_v14, %v7998_v16  ;;  %v5119_v35 = vpop.f32.mrb[93].mxu0 }
0x13ca   : > { %10192 = vmatprep.subr.msk.bf16.mxu0 %vm11392_vm2, %v10190_v30  ;;  %v5120_v36 = vadd.f32 %v7998_v16, %v5119_v35 }
0x13cc   : > { %v10196_v33 = vpack.c.bf16 %v5125_v15, %v5120_v36  ;;  %v9489_v32 = vpop.f32.mrb[94].mxu0 }
0x13cd   : > { %v5135_v31 = vadd.f32 %v9489_v32, %v7998_v16  ;;  %v5129_v34 = vpop.f32.mrb[95].mxu0 }
0x13ce   : > { %v5130_v37 = vadd.f32 %v7998_v16, %v5129_v34 }
0x13cf   : > { %10195 = vmatpush3.bf16.xpose.msk.msra.mxu0 %vm11392_vm2, %v10190_v30 }
0x13d0   : > { %10198 = vmatprep.subr.msk.bf16.mxu0 %vm11392_vm2, %v10196_v33  ;;  %v10202_v39 = vpack.c.bf16 %v5135_v31, %v5130_v37 }
0x13d7   : > { %10201 = vmatpush3.bf16.xpose.msk.msra.mxu0 %vm11392_vm2, %v10196_v33 }
0x13d8   : > { %10204 = vmatprep.subr.msk.bf16.mxu0 %vm11392_vm2, %v10202_v39 }
0x13df   : > { %10207 = vmatpush3.bf16.xpose.msk.msra.mxu0 %vm11392_vm2, %v10202_v39 }
0x13e6   : > { %9527 = vmatmul.mubr.msk.f32.vlgmr.msra.gmra.mrb[96].mxu0 %vm884_vm1, %v4987_v51 }
0x13e7   : > { %9529 = vmatprep.mubr.msk.f32.mxu0 %vm884_vm1, %v4992_v56 }
0x13ea   : > { %9530 = vmatmul.mubr.msk.f32.gmra.mrb[98].mxu0 %vm884_vm1, %v4997_v60  ;;  %v9500_v60 = vpop.f32.mrb[128].mxu1 }
0x13eb   : > { %9532 = vmatprep.mubr.msk.f32.mxu0 %vm884_vm1, %v5002_v63  ;;  %v5223_v61 = vadd.f32 %v9500_v60, %v12236_v58  ;;  %v5217_v56 = vpop.f32.mrb[129].mxu1 }
0x13ec   : > { %v5218_v62 = vadd.f32 %v12236_v58, %v5217_v56  ;;  %v9503_v57 = vpop.f32.mrb[130].mxu1 }
0x13ed   : > { %v5233_v63 = vadd.f32 %v9503_v57, %v12236_v58  ;;  %v5227_v0 = vpop.f32.mrb[131].mxu1 }
0x13ee   : > { %9533 = vmatmul.mubr.msk.f32.gmra.mrb[100].mxu0 %vm884_vm1, %v5007_v59  ;;  %v10208_v59 = vpack.c.bf16 %v5223_v61, %v5218_v62 }
0x13ef   : > { %9535 = vmatprep.mubr.msk.f32.mxu0 %vm884_vm1, %v5012_v20  ;;  %v9506_v20 = vpop.f32.mrb[132].mxu1 }
0x13f0   : > { %10209 = vmatprep.subr.bf16.mxu1 %v10208_v59 }
0x13f1   : > { %10211 = vmatpush3.bf16.msra.mxu1 %v10208_v59 }
0x13f2   : > { %9536 = vmatmul.mubr.msk.f32.gmra.mrb[102].mxu0 %vm884_vm1, %v5017_v2  ;;  %v5228_v2 = vadd.f32 %v12236_v58, %v5227_v0  ;;  %v5779_v0 = vld [vmem:[#allocation6 + $0xd0] sm:$0xff] }
0x13f4   : > { %v10212_v25 = vpack.c.bf16 %v5233_v63, %v5228_v2  ;;  %v5780_v2 = vld [vmem:[#allocation6 + $0xd8] sm:$0xff] }
0x13f6   : > { %10213 = vmatprep.subr.bf16.mxu1 %v10212_v25 }
0x13f7   : > { %10215 = vmatpush3.bf16.msra.mxu1 %v10212_v25 }
0x14b9   : > { %v9528_v18 = vpop.f32.mrb[96].mxu0 }
0x14ba   : > { %v5410_v23 = vmul.f32 0.5, %v9528_v18  ;;  %v5370_v3 = vpop.f32.mrb[97].mxu0 }
0x14bb   : > { %v5409_v49 = vmul.f32 0.5, %v5370_v3 }
0x14bc   : > { %v5420_v48 = vsel %vm1046_vm3, %v5410_v23, -inf }
0x14bd   : > { %5421 = vmax.xlane.f32.xlu1 %v5420_v48  ;;  %v9531_v8 = vpop.f32.mrb[98].mxu0  ;;  %v5417_v19 = vsel %vm1046_vm3, %v5409_v49, -inf }
0x14be   : > { %v5412_v24 = vmul.f32 0.5, %v9531_v8  ;;  %5418 = vmax.xlane.f32.xlu0 %v5417_v19  ;;  %v5380_v38 = vpop.f32.mrb[99].mxu0 }
0x14bf   : > { %v5411_v5 = vmul.f32 0.5, %v5380_v38 }
0x14c0   : > { %v5426_v4 = vsel %vm1046_vm3, %v5412_v24, -inf }
0x14c1   : > { %5427 = vmax.xlane.f32.xlu1 %v5426_v4  ;;  %v9534_v50 = vpop.f32.mrb[100].mxu0  ;;  %v5423_v46 = vsel %vm1046_vm3, %v5411_v5, -inf }
0x14c2   : > { %v5414_v6 = vmul.f32 0.5, %v9534_v50  ;;  %5424 = vmax.xlane.f32.xlu0 %v5423_v46  ;;  %v5390_v7 = vpop.f32.mrb[101].mxu0 }
0x14c3   : > { %v5413_v22 = vmul.f32 0.5, %v5390_v7  ;;  %v5237_v7 = vpop.f32.mrb[133].mxu1 }
0x14c4   : > { %v5432_v42 = vsel %vm1046_vm3, %v5414_v6, -inf }
0x14c5   : > { %5433 = vmax.xlane.f32.xlu1 %v5432_v42  ;;  %v9537_v52 = vpop.f32.mrb[102].mxu0  ;;  %v5429_v53 = vsel %vm1046_vm3, %v5413_v22, -inf }
0x14c6   : > { %v5416_v44 = vmul.f32 0.5, %v9537_v52  ;;  %5430 = vmax.xlane.f32.xlu0 %v5429_v53  ;;  %v5400_v54 = vpop.f32.mrb[103].mxu0  ;;  %v9509_v52 = vpop.f32.mrb[134].mxu1 }
0x14c7   : > { %v5415_v51 = vmul.f32 0.5, %v5400_v54  ;;  %v5247_v53 = vpop.f32.mrb[135].mxu1 }
0x14c8   : > { %v5438_v55 = vsel %vm1046_vm3, %v5416_v44, -inf  ;;  %v5248_v54 = vadd.f32 %v12236_v58, %v5247_v53 }
0x14c9   : > { %5439 = vmax.xlane.f32.xlu1 %v5438_v55  ;;  %v5435_v10 = vsel %vm1046_vm3, %v5415_v51, -inf  ;;  %v5777_v55 = vld [vmem:[#allocation6 + $0xc0] sm:$0xff] }
0x14ca   : > { %5436 = vmax.xlane.f32.xlu0 %v5435_v10  ;;  %v5778_v10 = vld [vmem:[#allocation6 + $0xc8] sm:$0xff] }
0x14cb   : > { %v10224_v60 = vpack.c.bf16 %v5778_v10, %v5777_v55 }
0x154a   : > { %v5422_v16 = vpop.xlane.xlu1 %5421 }
0x154b   : > { %v5442_v45 = vsub.f32 %v5410_v23, %v5422_v16  ;;  %v5419_v47 = vpop.xlane.xlu0 %5418 }
0x154c   : > { %v5441_v21 = vsub.f32 %v5409_v49, %v5419_v47 }
0x154d   : > { %v5451_v13 = vmul.f32 1.442695, %v5442_v45 }
0x154e   : > { %v5449_v1 = vmul.f32 1.442695, %v5441_v21  ;;  %v5428_v28 = vpop.xlane.xlu1 %5427  ;;  %v10228_v21 = vpack.c.bf16 %v5780_v2, %v5779_v0 }
0x154f   : > { %10653 = vpow2.f32 %v5451_v13  ;;  %v5444_v29 = vsub.f32 %v5412_v24, %v5428_v28  ;;  %v5425_v12 = vpop.xlane.xlu0 %5424  ;;  %v5896_v28 = vld [vmem:[#allocation7 + $0xc8] sm:$0xff] }
0x1550   : > { %10655 = vpow2.f32 %v5449_v1  ;;  %v5443_v11 = vsub.f32 %v5411_v5, %v5425_v12  ;;  %v5895_v1 = vld [vmem:[#allocation7 + $0xc0] sm:$0xff] }
0x1551   : > { %v5455_v30 = vmul.f32 1.442695, %v5444_v29 }
0x1552   : > { %v5453_v14 = vmul.f32 1.442695, %v5443_v11  ;;  %v5434_v15 = vpop.xlane.xlu1 %5433 }
0x1553   : > { %10657 = vpow2.f32 %v5455_v30  ;;  %v5446_v35 = vsub.f32 %v5414_v6, %v5434_v15  ;;  %v5431_v36 = vpop.xlane.xlu0 %5430  ;;  %v5243_v6 = vadd.f32 %v9506_v20, %v12236_v58  ;;  %v10232_v30 = vpack.c.bf16 %v5896_v28, %v5895_v1 }
0x1554   : > { %10659 = vpow2.f32 %v5453_v14  ;;  %v5445_v33 = vsub.f32 %v5413_v22, %v5431_v36  ;;  %v5238_v22 = vadd.f32 %v12236_v58, %v5237_v7 }
0x1555   : > { %v5459_v32 = vmul.f32 1.442695, %v5446_v35 }
0x1556   : > { %v5457_v31 = vmul.f32 1.442695, %v5445_v33  ;;  %v5440_v34 = vpop.xlane.xlu1 %5439  ;;  %v10216_v42 = vpack.c.bf16 %v5243_v6, %v5238_v22 }
0x1557   : > { %10661 = vpow2.f32 %v5459_v32  ;;  %v5448_v37 = vsub.f32 %v5416_v44, %v5440_v34  ;;  %v5437_v39 = vpop.xlane.xlu0 %5436  ;;  %v5253_v44 = vadd.f32 %v9509_v52, %v12236_v58 }
0x1558   : > { %10663 = vpow2.f32 %v5457_v31  ;;  %v5447_v40 = vsub.f32 %v5415_v51, %v5437_v39  ;;  %10217 = vmatprep.subr.bf16.mxu1 %v10216_v42  ;;  %v5898_v39 = vld [vmem:[#allocation7 + $0xd8] sm:$0xff] }
0x1559   : > { %v12242_v41 = vpop.eup %10653  ;;  %v5463_v26 = vmul.f32 1.442695, %v5448_v37  ;;  %10219 = vmatpush3.bf16.msra.mxu1 %v10216_v42  ;;  %v10220_v51 = vpack.c.bf16 %v5253_v44, %v5248_v54  ;;  %v5897_v37 = vld [vmem:[#allocation7 + $0xd0] sm:$0xff]  ;;  %v8052_v54 = vld [vmem:[%s12641_s5 + $0x6] ss:$0 sm:$0xff] }
0x155a   : > { %v10656_v27 = vpop.eup %10655  ;;  %v5461_v9 = vmul.f32 1.442695, %v5447_v40  ;;  %v5468_v17 = vsel %vm1046_vm3, %v12242_v41, 0.0  ;;  %v12291_v40 = vld [vmem:[%s11280_s29] sm:$0xff] }
0x155b   : > { %10665 = vpow2.f32 %v5463_v26  ;;  %5469 = vadd.xlane.f32.xlu1 %v5468_v17  ;;  %v5465_v18 = vsel %vm1046_vm3, %v10656_v27, 0.0  ;;  %10221 = vmatprep.subr.bf16.mxu1 %v10220_v51  ;;  %v12296_v26 = vld [vmem:[%s11280_s29 + $0x8] sm:$0xff]  ;;  %v12311_v17 = vld [vmem:[%s11280_s29 + $0x20] sm:$0xff] }
0x155c   : > { %10667 = vpow2.f32 %v5461_v9  ;;  %5466 = vadd.xlane.f32.xlu0 %v5465_v18  ;;  %v12306_v9 = vld [vmem:[%s11280_s29 + $0x18] sm:$0xff]  ;;  %v12316_v18 = vld [vmem:[%s11280_s29 + $0x28] sm:$0xff] }
0x155d   : > { %v12247_v23 = vpop.eup %10657  ;;  %10223 = vmatpush3.bf16.msra.mxu1 %v10220_v51 }
0x155e   : > { %v12249_v3 = vpop.eup %10659  ;;  %v5474_v49 = vsel %vm1046_vm3, %v12247_v23, 0.0  ;;  %10225 = vmatprep.subr.bf16.mxu1 %v10224_v60 }
0x155f   : > { %5475 = vadd.xlane.f32.xlu1 %v5474_v49  ;;  %v5471_v48 = vsel %vm1046_vm3, %v12249_v3, 0.0  ;;  %v12331_v49 = vld [vmem:[%s11287_s10] sm:$0xff] }
0x1560   : > { %5472 = vadd.xlane.f32.xlu0 %v5471_v48  ;;  %v12336_v48 = vld [vmem:[%s11287_s10 + $0x8] sm:$0xff] }
0x1561   : > { %v12255_v8 = vpop.eup %10661 }
0x1562   : > { %v12257_v19 = vpop.eup %10663  ;;  %v5480_v24 = vsel %vm1046_vm3, %v12255_v8, 0.0 }
0x1563   : > { %5481 = vadd.xlane.f32.xlu1 %v5480_v24  ;;  %v5477_v38 = vsel %vm1046_vm3, %v12257_v19, 0.0  ;;  %v12351_v24 = vld [vmem:[%s11287_s10 + $0x20] sm:$0xff] }
0x1564   : > { %5478 = vadd.xlane.f32.xlu0 %v5477_v38  ;;  %v12356_v38 = vld [vmem:[%s11287_s10 + $0x28] sm:$0xff] }
0x1565   : > { %v12263_v5 = vpop.eup %10665 }
0x1566   : > { %v12265_v4 = vpop.eup %10667  ;;  %v5486_v50 = vsel %vm1046_vm3, %v12263_v5, 0.0 }
0x1567   : > { %5487 = vadd.xlane.f32.xlu1 %v5486_v50  ;;  %v5483_v46 = vsel %vm1046_vm3, %v12265_v4, 0.0  ;;  %v8041_v50 = vld [vmem:[%s12644_s8 + $0x14] sm:$0xf] }
0x1568   : > { %5484 = vadd.xlane.f32.xlu0 %v5483_v46  ;;  %9566 = vmatprep.subr.msk.mxu0 %vm1289_vm4, %v8041_v50 }
0x1569   : > { %9567 = vmatpush3.msk.msra.mxu0 %vm1289_vm4, %v8041_v50  ;;  %v6013_v50 = vld [vmem:[#allocation9 + $0xc0] sm:$0xff] }
0x15e8   : > { %v5470_v61 = vpop.xlane.xlu1 %5469 }
0x15e9   : > { %10669 = vrcp.f32 %v5470_v61  ;;  %v5467_v56 = vpop.xlane.xlu0 %5466 }
0x15ea   : > { %10671 = vrcp.f32 %v5467_v56 }
0x15ec   : > { %v5476_v62 = vpop.xlane.xlu1 %5475 }
0x15ed   : > { %10673 = vrcp.f32 %v5476_v62  ;;  %v5473_v59 = vpop.xlane.xlu0 %5472 }
0x15ee   : > { %10675 = vrcp.f32 %v5473_v59 }
0x15f0   : > { %v5482_v57 = vpop.xlane.xlu1 %5481 }
0x15f1   : > { %10677 = vrcp.f32 %v5482_v57  ;;  %v5479_v58 = vpop.xlane.xlu0 %5478 }
0x15f2   : > { %10679 = vrcp.f32 %v5479_v58  ;;  %v8062_v58 = vld [vmem:[%s12642_s6 + $0x6] ss:$0 sm:$0xff] }
0x15f3   : > { %v10670_v63 = vpop.eup %10669 }
0x15f4   : > { %v10672_v25 = vpop.eup %10671  ;;  %v5488_v20 = vpop.xlane.xlu1 %5487  ;;  %v5492_v47 = vmul.f32 %v10670_v63, %v12242_v41  ;;  %v10236_v41 = vpack.c.bf16 %v5898_v39, %v5897_v37 }
0x15f5   : > { %10681 = vrcp.f32 %v5488_v20  ;;  %v5485_v16 = vpop.xlane.xlu0 %5484  ;;  %v5490_v45 = vmul.f32 %v10672_v25, %v10656_v27  ;;  %v12301_v27 = vld [vmem:[%s11280_s29 + $0x10] sm:$0xff] }
0x15f6   : > { %10683 = vrcp.f32 %v5485_v16 }
0x15f7   : > { %v10674_v13 = vpop.eup %10673  ;;  %9554 = vmatprep.mubr.msk.f32.mxu1 %vm1046_vm3, %v5490_v45 }
0x15f8   : > { %v10676_v29 = vpop.eup %10675  ;;  %9555 = vmatmul.mubr.msk.f32.vlgmr.msra.gmra.mrb[136].mxu1 %vm1046_vm3, %v5492_v47  ;;  %v5496_v11 = vmul.f32 %v10674_v13, %v12247_v23  ;;  %v12321_v23 = vld [vmem:[%s11280_s29 + $0x30] sm:$0xff] }
0x15f9   : > { %10227 = vmatpush3.bf16.msra.mxu1 %v10224_v60  ;;  %v5494_v12 = vmul.f32 %v10676_v29, %v12249_v3  ;;  %v12326_v3 = vld [vmem:[%s11280_s29 + $0x38] sm:$0xff] }
0x15fa   : > { %10229 = vmatprep.subr.bf16.mxu1 %v10228_v21 }
0x15fb   : > { %v10678_v14 = vpop.eup %10677  ;;  %9557 = vmatprep.mubr.msk.f32.mxu1 %vm1046_vm3, %v5494_v12 }
0x15fc   : > { %v10680_v15 = vpop.eup %10679  ;;  %9558 = vmatmul.mubr.msk.f32.gmra.mrb[138].mxu1 %vm1046_vm3, %v5496_v11  ;;  %v5500_v36 = vmul.f32 %v10678_v14, %v12255_v8  ;;  %v12341_v8 = vld [vmem:[%s11287_s10 + $0x10] sm:$0xff] }
0x15fd   : > { %v5498_v35 = vmul.f32 %v10680_v15, %v12257_v19  ;;  %10231 = vmatpush3.bf16.msra.mxu1 %v10228_v21  ;;  %v12346_v19 = vld [vmem:[%s11287_s10 + $0x18] sm:$0xff] }
0x15fe   : > { %10233 = vmatprep.subr.bf16.mxu1 %v10232_v30 }
0x15ff   : > { %v10682_v33 = vpop.eup %10681  ;;  %9560 = vmatprep.mubr.msk.f32.mxu1 %vm1046_vm3, %v5498_v35 }
0x1600   : > { %v10684_v32 = vpop.eup %10683  ;;  %9561 = vmatmul.mubr.msk.f32.gmra.mrb[140].mxu1 %vm1046_vm3, %v5500_v36  ;;  %v5504_v34 = vmul.f32 %v10682_v33, %v12263_v5  ;;  %v12361_v5 = vld [vmem:[%s11287_s10 + $0x30] sm:$0xff] }
0x1601   : > { %v5502_v31 = vmul.f32 %v10684_v32, %v12265_v4  ;;  %v12366_v4 = vld [vmem:[%s11287_s10 + $0x38] sm:$0xff]  ;;  %s12675_s10 = sld [smem:[#allocation16_spill]] }
0x1603   : > { %9563 = vmatprep.mubr.msk.f32.mxu1 %vm1046_vm3, %v5502_v31 }
0x1604   : > { %9564 = vmatmul.mubr.msk.f32.gmra.mrb[142].mxu1 %vm1046_vm3, %v5504_v34 }
0x1605   : > { %9588 = vmatprep.mubr.msk.f32.mxu1 %vm498_vm0, %v12291_v40 }
0x1608   : > { %9589 = vmatmul.mubr.msk.f32.vlgmr.msra.gmra.mrb[144].mxu1 %vm498_vm0, %v12296_v26 }
0x1609   : > { %10235 = vmatpush3.bf16.msra.mxu1 %v10232_v30  ;;  %9591 = vmatprep.mubr.msk.f32.mxu1 %vm498_vm0, %v12301_v27 }
0x160a   : > { %10237 = vmatprep.subr.bf16.mxu1 %v10236_v41 }
0x160c   : > { %9592 = vmatmul.mubr.msk.f32.gmra.mrb[146].mxu1 %vm498_vm0, %v12306_v9 }
0x160d   : > { %9594 = vmatprep.mubr.msk.f32.mxu1 %vm498_vm0, %v12311_v17  ;;  %10239 = vmatpush3.bf16.msra.mxu1 %v10236_v41 }
0x1610   : > { %9595 = vmatmul.mubr.msk.f32.gmra.mrb[148].mxu1 %vm498_vm0, %v12316_v18 }
0x1611   : > { %9597 = vmatprep.mubr.msk.f32.mxu1 %vm498_vm0, %v12321_v23 }
0x1614   : > { %9598 = vmatmul.mubr.msk.f32.gmra.mrb[150].mxu1 %vm498_vm0, %v12326_v3 }
0x1615   : > { %9608 = vmatprep.mubr.msk.f32.mxu1 %vm498_vm0, %v12331_v49 }
0x1618   : > { %9609 = vmatmul.mubr.msk.f32.vlgmr.msra.gmra.mrb[152].mxu1 %vm498_vm0, %v12336_v48 }
0x1619   : > { %9611 = vmatprep.mubr.msk.f32.mxu1 %vm498_vm0, %v12341_v8 }
0x161c   : > { %9612 = vmatmul.mubr.msk.f32.gmra.mrb[154].mxu1 %vm498_vm0, %v12346_v19 }
0x161d   : > { %9614 = vmatprep.mubr.msk.f32.mxu1 %vm498_vm0, %v12351_v24 }
0x1620   : > { %9615 = vmatmul.mubr.msk.f32.gmra.mrb[156].mxu1 %vm498_vm0, %v12356_v38 }
0x1621   : > { %9617 = vmatprep.mubr.msk.f32.mxu1 %vm498_vm0, %v12361_v5 }
0x1624   : > { %9618 = vmatmul.mubr.msk.f32.gmra.mrb[158].mxu1 %vm498_vm0, %v12366_v4 }
0x16cb   : > { %v9556_v46 = vpop.f32.mrb[136].mxu1 }
0x16cc   : > { %v5595_v6 = vpop.f32.mrb[137].mxu1 }
0x16cd   : > { %9568 = vmatprep.mubr.msk.f32.mxu0 %vm884_vm1, %v5595_v6  ;;  %v6015_v6 = vld [vmem:[#allocation9 + $0xd0] sm:$0xff] }
0x16ce   : > { %9569 = vmatmul.mubr.msk.f32.vlgmr.msra.gmra.mrb[16].mxu0 %vm884_vm1, %v9556_v46  ;;  %v6014_v46 = vld [vmem:[#allocation9 + $0xc8] sm:$0xff] }
0x16cf   : > { %v9559_v7 = vpop.f32.mrb[138].mxu1 }
0x16d0   : > { %v5605_v22 = vpop.f32.mrb[139].mxu1 }
0x16d1   : > { %9571 = vmatprep.mubr.msk.f32.mxu0 %vm884_vm1, %v5605_v22  ;;  %v6016_v22 = vld [vmem:[#allocation9 + $0xd8] sm:$0xff] }
0x16d2   : > { %9572 = vmatmul.mubr.msk.f32.gmra.mrb[18].mxu0 %vm884_vm1, %v9559_v7  ;;  %v10240_v7 = vpack.c.bf16 %v6014_v46, %v6013_v50 }
0x16d3   : > { %v9562_v42 = vpop.f32.mrb[140].mxu1 }
0x16d4   : > { %v5615_v52 = vpop.f32.mrb[141].mxu1  ;;  %10241 = vmatprep.subr.bf16.mxu0 %v10240_v7 }
0x16d5   : > { %9574 = vmatprep.mubr.msk.f32.mxu0 %vm884_vm1, %v5615_v52  ;;  %10243 = vmatpush3.bf16.msra.mxu0 %v10240_v7 }
0x16d6   : > { %9575 = vmatmul.mubr.msk.f32.gmra.mrb[20].mxu0 %vm884_vm1, %v9562_v42  ;;  %v10244_v42 = vpack.c.bf16 %v6016_v22, %v6015_v6 }
0x16d7   : > { %v9565_v53 = vpop.f32.mrb[142].mxu1 }
0x16d8   : > { %v5625_v44 = vpop.f32.mrb[143].mxu1  ;;  %10245 = vmatprep.subr.bf16.mxu0 %v10244_v42 }
0x16d9   : > { %9577 = vmatprep.mubr.msk.f32.mxu0 %vm884_vm1, %v5625_v44  ;;  %10247 = vmatpush3.bf16.msra.mxu0 %v10244_v42 }
0x16da   : > { %9578 = vmatmul.mubr.msk.f32.gmra.mrb[22].mxu0 %vm884_vm1, %v9565_v53 }
0x16db   : > { %v9590_v51 = vpop.f32.mrb[144].mxu1  ;;  %9628 = vmatprep.mubr.msk.f32.mxu0 %vm498_vm0, %v12331_v49 }
0x16dc   : > { %v5855_v55 = vpop.f32.mrb[145].mxu1  ;;  %v5861_v33 = vadd.f32 %v9590_v51, %v8052_v54 }
0x16dd   : > { %v5856_v10 = vadd.f32 %v8052_v54, %v5855_v55 }
0x16de   : > { %9629 = vmatmul.mubr.msk.f32.vlgmr.msra.gmra.mrb[104].mxu0 %vm498_vm0, %v12336_v48 }
0x16df   : > { %v9593_v60 = vpop.f32.mrb[146].mxu1  ;;  %9656 = vmatprep.mubr.msk.f32.mxu1 %vm884_vm1, %v5856_v10  ;;  %9631 = vmatprep.mubr.msk.f32.mxu0 %vm498_vm0, %v12341_v8 }
0x16e0   : > { %v5865_v61 = vpop.f32.mrb[147].mxu1  ;;  %v5871_v31 = vadd.f32 %v9593_v60, %v8052_v54 }
0x16e1   : > { %v5866_v32 = vadd.f32 %v8052_v54, %v5865_v61 }
0x16e2   : > { %9632 = vmatmul.mubr.msk.f32.gmra.mrb[106].mxu0 %vm498_vm0, %v12346_v19 }
0x16e3   : > { %v9596_v56 = vpop.f32.mrb[148].mxu1  ;;  %9634 = vmatprep.mubr.msk.f32.mxu0 %vm498_vm0, %v12351_v24 }
0x16e4   : > { %v5875_v62 = vpop.f32.mrb[149].mxu1  ;;  %v5881_v37 = vadd.f32 %v9596_v56, %v8052_v54 }
0x16e5   : > { %v5876_v34 = vadd.f32 %v8052_v54, %v5875_v62 }
0x16e6   : > { %9635 = vmatmul.mubr.msk.f32.gmra.mrb[108].mxu0 %vm498_vm0, %v12356_v38 }
0x16e7   : > { %v9599_v59 = vpop.f32.mrb[150].mxu1  ;;  %9637 = vmatprep.mubr.msk.f32.mxu0 %vm498_vm0, %v12361_v5 }
0x16e8   : > { %v5885_v57 = vpop.f32.mrb[151].mxu1  ;;  %v5891_v41 = vadd.f32 %v9599_v59, %v8052_v54 }
0x16e9   : > { %v5886_v39 = vadd.f32 %v8052_v54, %v5885_v57 }
0x16ea   : > { %9638 = vmatmul.mubr.msk.f32.gmra.mrb[110].mxu0 %vm498_vm0, %v12366_v4 }
0x16eb   : > { %v9610_v63 = vpop.f32.mrb[152].mxu1 }
0x16ec   : > { %v5979_v0 = vadd.f32 %v9610_v63, %v8062_v58  ;;  %v5973_v2 = vpop.f32.mrb[153].mxu1 }
0x16ed   : > { %v5974_v25 = vadd.f32 %v8062_v58, %v5973_v2 }
0x16ef   : > { %v10248_v20 = vpack.c.bf16 %v5979_v0, %v5974_v25  ;;  %v9613_v16 = vpop.f32.mrb[154].mxu1 }
0x16f0   : > { %v5989_v45 = vadd.f32 %v9613_v16, %v8062_v58  ;;  %v5983_v47 = vpop.f32.mrb[155].mxu1 }
0x16f1   : > { %10250 = vmatprep.subr.msk.bf16.mxu1 %vm11392_vm2, %v10248_v20  ;;  %v5984_v21 = vadd.f32 %v8062_v58, %v5983_v47 }
0x16f2   : > { %10253 = vmatpush3.bf16.xpose.msk.msra.mxu1 %vm11392_vm2, %v10248_v20 }
0x16f3   : > { %v10254_v13 = vpack.c.bf16 %v5989_v45, %v5984_v21  ;;  %v9616_v1 = vpop.f32.mrb[156].mxu1 }
0x16f4   : > { %v5999_v28 = vadd.f32 %v9616_v1, %v8062_v58  ;;  %v5993_v29 = vpop.f32.mrb[157].mxu1 }
0x16f5   : > { %10256 = vmatprep.subr.msk.bf16.mxu1 %vm11392_vm2, %v10254_v13  ;;  %v5994_v12 = vadd.f32 %v8062_v58, %v5993_v29 }
0x16f7   : > { %v10260_v11 = vpack.c.bf16 %v5999_v28, %v5994_v12  ;;  %v9619_v30 = vpop.f32.mrb[158].mxu1 }
0x16f8   : > { %v6009_v14 = vadd.f32 %v9619_v30, %v8062_v58  ;;  %v6003_v15 = vpop.f32.mrb[159].mxu1 }
0x16f9   : > { %v6004_v35 = vadd.f32 %v8062_v58, %v6003_v15 }
0x16fa   : > { %10259 = vmatpush3.bf16.xpose.msk.msra.mxu1 %vm11392_vm2, %v10254_v13  ;;  %v12442_v13 = vld [vmem:[%s12643_s7 + $0x6] ss:$0 sm:$0xff] }
0x16fb   : > { %10262 = vmatprep.subr.msk.bf16.mxu1 %vm11392_vm2, %v10260_v11  ;;  %v10266_v36 = vpack.c.bf16 %v6009_v14, %v6004_v35 }
0x1702   : > { %10265 = vmatpush3.bf16.xpose.msk.msra.mxu1 %vm11392_vm2, %v10260_v11 }
0x1703   : > { %10268 = vmatprep.subr.msk.bf16.mxu1 %vm11392_vm2, %v10266_v36 }
0x170a   : > { %10271 = vmatpush3.bf16.xpose.msk.msra.mxu1 %vm11392_vm2, %v10266_v36 }
0x1711   : > { %9657 = vmatmul.mubr.msk.f32.vlgmr.msra.gmra.mrb[160].mxu1 %vm884_vm1, %v5861_v33 }
0x1712   : > { %9659 = vmatprep.mubr.msk.f32.mxu1 %vm884_vm1, %v5866_v32 }
0x1715   : > { %9660 = vmatmul.mubr.msk.f32.gmra.mrb[162].mxu1 %vm884_vm1, %v5871_v31 }
0x1716   : > { %9662 = vmatprep.mubr.msk.f32.mxu1 %vm884_vm1, %v5876_v34 }
0x1719   : > { %9663 = vmatmul.mubr.msk.f32.gmra.mrb[164].mxu1 %vm884_vm1, %v5881_v37 }
0x171a   : > { %9665 = vmatprep.mubr.msk.f32.mxu1 %vm884_vm1, %v5886_v39 }
0x171d   : > { %9666 = vmatmul.mubr.msk.f32.gmra.mrb[166].mxu1 %vm884_vm1, %v5891_v41 }
0x171e   : > { %9718 = vmatprep.mubr.msk.f32.mxu1 %vm498_vm0, %v12291_v40 }
0x17b1   : > { %v9630_v1 = vpop.f32.mrb[104].mxu0 }
0x17b2   : > { %v6097_v28 = vadd.f32 %v9630_v1, %v12442_v13  ;;  %v6091_v29 = vpop.f32.mrb[105].mxu0 }
0x17b3   : > { %v6092_v12 = vadd.f32 %v12442_v13, %v6091_v29 }
0x17b5   : > { %v10272_v11 = vpack.c.bf16 %v6097_v28, %v6092_v12  ;;  %v9633_v30 = vpop.f32.mrb[106].mxu0 }
0x17b6   : > { %v6107_v14 = vadd.f32 %v9633_v30, %v12442_v13  ;;  %v6101_v15 = vpop.f32.mrb[107].mxu0 }
0x17b7   : > { %v6102_v35 = vadd.f32 %v12442_v13, %v6101_v15  ;;  %10273 = vmatprep.subr.bf16.mxu0 %v10272_v11 }
0x17b8   : > { %10275 = vmatpush3.bf16.msra.mxu0 %v10272_v11 }
0x17b9   : > { %v10276_v36 = vpack.c.bf16 %v6107_v14, %v6102_v35  ;;  %v9636_v12 = vpop.f32.mrb[108].mxu0 }
0x17ba   : > { %v6111_v11 = vpop.f32.mrb[109].mxu0  ;;  %v6117_v30 = vadd.f32 %v9636_v12, %v12442_v13  ;;  %v8116_v12 = vld [vmem:[%s12641_s5 + $0x7] ss:$0 sm:$0xff] }
0x17bb   : > { %10277 = vmatprep.subr.bf16.mxu0 %v10276_v36  ;;  %v6112_v14 = vadd.f32 %v12442_v13, %v6111_v11 }
0x17bc   : > { %10279 = vmatpush3.bf16.msra.mxu0 %v10276_v36 }
0x17bd   : > { %v10280_v15 = vpack.c.bf16 %v6117_v30, %v6112_v14  ;;  %v9639_v35 = vpop.f32.mrb[110].mxu0 }
0x17be   : > { %v6121_v36 = vpop.f32.mrb[111].mxu0 }
0x17bf   : > { %10281 = vmatprep.subr.bf16.mxu0 %v10280_v15 }
0x17c0   : > { %10283 = vmatpush3.bf16.msra.mxu0 %v10280_v15 }
0x17e4   : > { %v9658_v40 = vpop.f32.mrb[160].mxu1 }
0x17e5   : > { %v6284_v52 = vmul.f32 0.5, %v9658_v40  ;;  %v6244_v53 = vpop.f32.mrb[161].mxu1 }
0x17e6   : > { %v6283_v44 = vmul.f32 0.5, %v6244_v53 }
0x17e7   : > { %v6294_v54 = vsel %vm1046_vm3, %v6284_v52, -inf }
0x17e8   : > { %6295 = vmax.xlane.f32.xlu1 %v6294_v54  ;;  %v9661_v51 = vpop.f32.mrb[162].mxu1  ;;  %v6291_v55 = vsel %vm1046_vm3, %v6283_v44, -inf }
0x17e9   : > { %v6286_v10 = vmul.f32 0.5, %v9661_v51  ;;  %6292 = vmax.xlane.f32.xlu0 %v6291_v55  ;;  %v6254_v60 = vpop.f32.mrb[163].mxu1 }
0x17ea   : > { %v6285_v61 = vmul.f32 0.5, %v6254_v60 }
0x17eb   : > { %v6300_v56 = vsel %vm1046_vm3, %v6286_v10, -inf }
0x17ec   : > { %6301 = vmax.xlane.f32.xlu1 %v6300_v56  ;;  %v9664_v62 = vpop.f32.mrb[164].mxu1  ;;  %v6297_v59 = vsel %vm1046_vm3, %v6285_v61, -inf }
0x17ed   : > { %v6288_v57 = vmul.f32 0.5, %v9664_v62  ;;  %6298 = vmax.xlane.f32.xlu0 %v6297_v59  ;;  %v6264_v58 = vpop.f32.mrb[165].mxu1 }
0x17ee   : > { %v6287_v63 = vmul.f32 0.5, %v6264_v58 }
0x17ef   : > { %v6306_v0 = vsel %vm1046_vm3, %v6288_v57, -inf }
0x17f0   : > { %6307 = vmax.xlane.f32.xlu1 %v6306_v0  ;;  %v9667_v2 = vpop.f32.mrb[166].mxu1  ;;  %v6303_v25 = vsel %vm1046_vm3, %v6287_v63, -inf }
0x17f1   : > { %v6290_v20 = vmul.f32 0.5, %v9667_v2  ;;  %6304 = vmax.xlane.f32.xlu0 %v6303_v25  ;;  %v6274_v16 = vpop.f32.mrb[167].mxu1 }
0x17f2   : > { %v6289_v45 = vmul.f32 0.5, %v6274_v16 }
0x17f3   : > { %v6312_v47 = vsel %vm1046_vm3, %v6290_v20, -inf }
0x17f4   : > { %6313 = vmax.xlane.f32.xlu1 %v6312_v47  ;;  %v6309_v21 = vsel %vm1046_vm3, %v6289_v45, -inf }
0x17f5   : > { %6310 = vmax.xlane.f32.xlu0 %v6309_v21 }
0x1875   : > { %v6296_v33 = vpop.xlane.xlu1 %6295 }
0x1876   : > { %v6316_v32 = vsub.f32 %v6284_v52, %v6296_v33  ;;  %v6293_v31 = vpop.xlane.xlu0 %6292  ;;  %v6127_v33 = vadd.f32 %v9639_v35, %v12442_v13 }
0x1877   : > { %v6315_v34 = vsub.f32 %v6283_v44, %v6293_v31 }
0x1878   : > { %v6325_v37 = vmul.f32 1.442695, %v6316_v32  ;;  %v6122_v32 = vadd.f32 %v12442_v13, %v6121_v36 }
0x1879   : > { %v6323_v39 = vmul.f32 1.442695, %v6315_v34  ;;  %v6302_v41 = vpop.xlane.xlu1 %6301  ;;  %v8105_v34 = vld [vmem:[%s12644_s8 + $0x18] sm:$0xf] }
0x187a   : > { %10685 = vpow2.f32 %v6325_v37  ;;  %v6318_v50 = vsub.f32 %v6286_v10, %v6302_v41  ;;  %v6299_v46 = vpop.xlane.xlu0 %6298  ;;  %v10284_v31 = vpack.c.bf16 %v6127_v33, %v6122_v32 }
0x187b   : > { %10687 = vpow2.f32 %v6323_v39  ;;  %v6317_v6 = vsub.f32 %v6285_v61, %v6299_v46 }
0x187c   : > { %v6329_v7 = vmul.f32 1.442695, %v6318_v50  ;;  %10285 = vmatprep.subr.bf16.mxu0 %v10284_v31 }
0x187d   : > { %v6327_v22 = vmul.f32 1.442695, %v6317_v6  ;;  %v6308_v42 = vpop.xlane.xlu1 %6307  ;;  %10287 = vmatpush3.bf16.msra.mxu0 %v10284_v31 }
0x187e   : > { %10689 = vpow2.f32 %v6329_v7  ;;  %v6320_v40 = vsub.f32 %v6288_v57, %v6308_v42  ;;  %v6305_v53 = vpop.xlane.xlu0 %6304  ;;  %9696 = vmatprep.subr.msk.mxu0 %vm1289_vm4, %v8105_v34 }
0x187f   : > { %10691 = vpow2.f32 %v6327_v22  ;;  %v6319_v54 = vsub.f32 %v6287_v63, %v6305_v53 }
0x1880   : > { %v6333_v51 = vmul.f32 1.442695, %v6320_v40 }
0x1881   : > { %v6331_v52 = vmul.f32 1.442695, %v6319_v54  ;;  %v6314_v55 = vpop.xlane.xlu1 %6313 }
0x1882   : > { %10693 = vpow2.f32 %v6333_v51  ;;  %v6322_v44 = vsub.f32 %v6290_v20, %v6314_v55  ;;  %v6311_v60 = vpop.xlane.xlu0 %6310 }
0x1883   : > { %10695 = vpow2.f32 %v6331_v52  ;;  %v6321_v56 = vsub.f32 %v6289_v45, %v6311_v60 }
0x1884   : > { %v10686_v10 = vpop.eup %10685  ;;  %v6337_v62 = vmul.f32 1.442695, %v6322_v44 }
0x1885   : > { %v10688_v59 = vpop.eup %10687  ;;  %v6335_v61 = vmul.f32 1.442695, %v6321_v56  ;;  %v6342_v58 = vsel %vm1046_vm3, %v10686_v10, 0.0 }
0x1886   : > { %10697 = vpow2.f32 %v6337_v62  ;;  %6343 = vadd.xlane.f32.xlu1 %v6342_v58  ;;  %v6339_v57 = vsel %vm1046_vm3, %v10688_v59, 0.0 }
0x1887   : > { %10699 = vpow2.f32 %v6335_v61  ;;  %6340 = vadd.xlane.f32.xlu0 %v6339_v57  ;;  %v6769_v57 = vld [vmem:[#allocation7 + $0xe0] sm:$0xff] }
0x1888   : > { %v10690_v63 = vpop.eup %10689 }
0x1889   : > { %v10692_v0 = vpop.eup %10691  ;;  %v6348_v2 = vsel %vm1046_vm3, %v10690_v63, 0.0 }
0x188a   : > { %6349 = vadd.xlane.f32.xlu1 %v6348_v2  ;;  %v6345_v25 = vsel %vm1046_vm3, %v10692_v0, 0.0  ;;  %v6651_v2 = vld [vmem:[#allocation6 + $0xe0] sm:$0xff] }
0x188b   : > { %6346 = vadd.xlane.f32.xlu0 %v6345_v25  ;;  %v6652_v25 = vld [vmem:[#allocation6 + $0xe8] sm:$0xff] }
0x188c   : > { %v10694_v20 = vpop.eup %10693 }
0x188d   : > { %v10696_v16 = vpop.eup %10695  ;;  %v6354_v45 = vsel %vm1046_vm3, %v10694_v20, 0.0 }
0x188e   : > { %6355 = vadd.xlane.f32.xlu1 %v6354_v45  ;;  %v6351_v47 = vsel %vm1046_vm3, %v10696_v16, 0.0  ;;  %v6654_v45 = vld [vmem:[#allocation6 + $0xf8] sm:$0xff] }
0x188f   : > { %6352 = vadd.xlane.f32.xlu0 %v6351_v47 }
0x1890   : > { %v10698_v21 = vpop.eup %10697 }
0x1891   : > { %v10700_v1 = vpop.eup %10699  ;;  %v6360_v28 = vsel %vm1046_vm3, %v10698_v21, 0.0 }
0x1892   : > { %6361 = vadd.xlane.f32.xlu1 %v6360_v28  ;;  %v6357_v29 = vsel %vm1046_vm3, %v10700_v1, 0.0 }
0x1893   : > { %6358 = vadd.xlane.f32.xlu0 %v6357_v29 }
0x1913   : > { %v6344_v37 = vpop.xlane.xlu1 %6343 }
0x1914   : > { %10701 = vrcp.f32 %v6344_v37  ;;  %v6341_v39 = vpop.xlane.xlu0 %6340 }
0x1915   : > { %10703 = vrcp.f32 %v6341_v39 }
0x1917   : > { %v6350_v41 = vpop.xlane.xlu1 %6349 }
0x1918   : > { %10705 = vrcp.f32 %v6350_v41  ;;  %v6347_v50 = vpop.xlane.xlu0 %6346 }
0x1919   : > { %10707 = vrcp.f32 %v6347_v50 }
0x191b   : > { %v6356_v13 = vpop.xlane.xlu1 %6355 }
0x191c   : > { %10709 = vrcp.f32 %v6356_v13  ;;  %v6353_v46 = vpop.xlane.xlu0 %6352 }
0x191d   : > { %10711 = vrcp.f32 %v6353_v46  ;;  %v8126_v46 = vld [vmem:[%s12642_s6 + $0x7] ss:$0 sm:$0xff] }
0x191e   : > { %v10702_v6 = vpop.eup %10701 }
0x191f   : > { %v10704_v7 = vpop.eup %10703  ;;  %v6362_v22 = vpop.xlane.xlu1 %6361  ;;  %v6366_v53 = vmul.f32 %v10702_v6, %v10686_v10 }
0x1920   : > { %10713 = vrcp.f32 %v6362_v22  ;;  %v6359_v42 = vpop.xlane.xlu0 %6358  ;;  %v6364_v40 = vmul.f32 %v10704_v7, %v10688_v59 }
0x1921   : > { %10715 = vrcp.f32 %v6359_v42 }
0x1922   : > { %v10706_v54 = vpop.eup %10705  ;;  %9684 = vmatprep.mubr.msk.f32.mxu0 %vm1046_vm3, %v6364_v40 }
0x1923   : > { %v10708_v51 = vpop.eup %10707  ;;  %9685 = vmatmul.mubr.msk.f32.vlgmr.msra.gmra.mrb[112].mxu0 %vm1046_vm3, %v6366_v53  ;;  %v6370_v55 = vmul.f32 %v10706_v54, %v10690_v63  ;;  %v6770_v63 = vld [vmem:[#allocation7 + $0xe8] sm:$0xff] }
0x1924   : > { %v6368_v52 = vmul.f32 %v10708_v51, %v10692_v0  ;;  %9697 = vmatpush3.msk.msra.mxu0 %vm1289_vm4, %v8105_v34  ;;  %v10296_v0 = vpack.c.bf16 %v6770_v63, %v6769_v57 }
0x1926   : > { %v10710_v44 = vpop.eup %10709  ;;  %9687 = vmatprep.mubr.msk.f32.mxu0 %vm1046_vm3, %v6368_v52  ;;  %10297 = vmatprep.subr.bf16.mxu0 %v10296_v0 }
0x1927   : > { %v10712_v60 = vpop.eup %10711  ;;  %9688 = vmatmul.mubr.msk.f32.gmra.mrb[114].mxu0 %vm1046_vm3, %v6370_v55  ;;  %v6374_v62 = vmul.f32 %v10710_v44, %v10694_v20  ;;  %v6653_v20 = vld [vmem:[#allocation6 + $0xf0] sm:$0xff] }
0x1928   : > { %v6372_v56 = vmul.f32 %v10712_v60, %v10696_v16  ;;  %v10288_v16 = vpack.c.bf16 %v6652_v25, %v6651_v2  ;;  %v10292_v47 = vpack.c.bf16 %v6654_v45, %v6653_v20  ;;  %v6888_v2 = vld [vmem:[#allocation9 + $0xe8] sm:$0xff]  ;;  %v6889_v25 = vld [vmem:[#allocation9 + $0xf0] sm:$0xff] }
0x1929   : > { %v10308_v20 = vpack.c.bf16 %v6890_v43, %v6889_v25 }
0x192a   : > { %v10714_v10 = vpop.eup %10713  ;;  %9690 = vmatprep.mubr.msk.f32.mxu0 %vm1046_vm3, %v6372_v56  ;;  %10289 = vmatprep.subr.bf16.mxu1 %v10288_v16 }
0x192b   : > { %v10716_v59 = vpop.eup %10715  ;;  %9691 = vmatmul.mubr.msk.f32.gmra.mrb[116].mxu0 %vm1046_vm3, %v6374_v62  ;;  %v6378_v58 = vmul.f32 %v10714_v10, %v10698_v21  ;;  %10291 = vmatpush3.bf16.msra.mxu1 %v10288_v16 }
0x192c   : > { %v6376_v61 = vmul.f32 %v10716_v59, %v10700_v1  ;;  %10293 = vmatprep.subr.bf16.mxu1 %v10292_v47 }
0x192e   : > { %9693 = vmatprep.mubr.msk.f32.mxu0 %vm1046_vm3, %v6376_v61 }
0x192f   : > { %9694 = vmatmul.mubr.msk.f32.gmra.mrb[118].mxu0 %vm1046_vm3, %v6378_v58  ;;  %10295 = vmatpush3.bf16.msra.mxu1 %v10292_v47 }
0x1932   : > { %9719 = vmatmul.mubr.msk.f32.vlgmr.msra.gmra.mrb[168].mxu1 %vm498_vm0, %v12296_v26  ;;  %v6771_v26 = vld [vmem:[#allocation7 + $0xf0] sm:$0xff] }
0x1933   : > { %9721 = vmatprep.mubr.msk.f32.mxu1 %vm498_vm0, %v12301_v27  ;;  %v6772_v27 = vld [vmem:[#allocation7 + $0xf8] sm:$0xff] }
0x1936   : > { %9722 = vmatmul.mubr.msk.f32.gmra.mrb[170].mxu1 %vm498_vm0, %v12306_v9  ;;  %v10300_v9 = vpack.c.bf16 %v6772_v27, %v6771_v26 }
0x1937   : > { %9724 = vmatprep.mubr.msk.f32.mxu1 %vm498_vm0, %v12311_v17 }
0x193a   : > { %9725 = vmatmul.mubr.msk.f32.gmra.mrb[172].mxu1 %vm498_vm0, %v12316_v18 }
0x193b   : > { %9727 = vmatprep.mubr.msk.f32.mxu1 %vm498_vm0, %v12321_v23 }
0x193e   : > { %9728 = vmatmul.mubr.msk.f32.gmra.mrb[174].mxu1 %vm498_vm0, %v12326_v3 }
0x193f   : > { %9758 = vmatprep.mubr.msk.f32.mxu1 %vm498_vm0, %v12331_v49 }
0x19f6   : > { %v9686_v21 = vpop.f32.mrb[112].mxu0 }
0x19f7   : > { %v6469_v1 = vpop.f32.mrb[113].mxu0 }
0x19f8   : > { %9698 = vmatprep.mubr.msk.f32.mxu0 %vm884_vm1, %v6469_v1 }
0x19f9   : > { %9699 = vmatmul.mubr.msk.f32.vlgmr.msra.gmra.mrb[16].mxu0 %vm884_vm1, %v9686_v21 }
0x19fa   : > { %v9689_v17 = vpop.f32.mrb[114].mxu0  ;;  %10299 = vmatpush3.bf16.msra.mxu0 %v10296_v0  ;;  %v6887_v0 = vld [vmem:[#allocation9 + $0xe0] sm:$0xff] }
0x19fb   : > { %v6479_v18 = vpop.f32.mrb[115].mxu0  ;;  %10301 = vmatprep.subr.bf16.mxu0 %v10300_v9  ;;  %v10304_v16 = vpack.c.bf16 %v6888_v2, %v6887_v0 }
0x19fc   : > { %9701 = vmatprep.mubr.msk.f32.mxu0 %vm884_vm1, %v6479_v18 }
0x19fd   : > { %9702 = vmatmul.mubr.msk.f32.gmra.mrb[18].mxu0 %vm884_vm1, %v9689_v17  ;;  %10305 = vmatprep.subr.bf16.mxu1 %v10304_v16 }
0x19fe   : > { %v9692_v23 = vpop.f32.mrb[116].mxu0  ;;  %10303 = vmatpush3.bf16.msra.mxu0 %v10300_v9  ;;  %10307 = vmatpush3.bf16.msra.mxu1 %v10304_v16 }
0x19ff   : > { %v6489_v3 = vpop.f32.mrb[117].mxu0  ;;  %10309 = vmatprep.subr.bf16.mxu1 %v10308_v20 }
0x1a00   : > { %9704 = vmatprep.mubr.msk.f32.mxu0 %vm884_vm1, %v6489_v3 }
0x1a01   : > { %9705 = vmatmul.mubr.msk.f32.gmra.mrb[20].mxu0 %vm884_vm1, %v9692_v23 }
0x1a02   : > { %v9695_v28 = vpop.f32.mrb[118].mxu0  ;;  %10311 = vmatpush3.bf16.msra.mxu1 %v10308_v20 }
0x1a03   : > { %v6499_v29 = vpop.f32.mrb[119].mxu0 }
0x1a04   : > { %9707 = vmatprep.mubr.msk.f32.mxu0 %vm884_vm1, %v6499_v29 }
0x1a05   : > { %9708 = vmatmul.mubr.msk.f32.gmra.mrb[22].mxu0 %vm884_vm1, %v9695_v28  ;;  %9759 = vmatmul.mubr.msk.f32.vlgmr.msra.gmra.mrb[176].mxu1 %vm498_vm0, %v12336_v48 }
0x1a06   : > { %9738 = vmatprep.mubr.msk.f32.mxu0 %vm498_vm0, %v12331_v49  ;;  %v9720_v49 = vpop.f32.mrb[168].mxu1  ;;  %9761 = vmatprep.mubr.msk.f32.mxu1 %vm498_vm0, %v12341_v8 }
0x1a07   : > { %v6735_v11 = vadd.f32 %v9720_v49, %v8116_v12  ;;  %v6729_v30 = vpop.f32.mrb[169].mxu1 }
0x1a08   : > { %v6730_v14 = vadd.f32 %v8116_v12, %v6729_v30 }
0x1a09   : > { %9739 = vmatmul.mubr.msk.f32.vlgmr.msra.gmra.mrb[120].mxu0 %vm498_vm0, %v12336_v48  ;;  %v9723_v15 = vpop.f32.mrb[170].mxu1  ;;  %9762 = vmatmul.mubr.msk.f32.gmra.mrb[178].mxu1 %vm498_vm0, %v12346_v19 }
0x1a0a   : > { %9741 = vmatprep.mubr.msk.f32.mxu0 %vm498_vm0, %v12341_v8  ;;  %v6745_v35 = vadd.f32 %v9723_v15, %v8116_v12  ;;  %v6739_v36 = vpop.f32.mrb[171].mxu1  ;;  %9764 = vmatprep.mubr.msk.f32.mxu1 %vm498_vm0, %v12351_v24 }
0x1a0b   : > { %v6740_v33 = vadd.f32 %v8116_v12, %v6739_v36 }
0x1a0d   : > { %9742 = vmatmul.mubr.msk.f32.gmra.mrb[122].mxu0 %vm498_vm0, %v12346_v19  ;;  %v9726_v32 = vpop.f32.mrb[172].mxu1  ;;  %9765 = vmatmul.mubr.msk.f32.gmra.mrb[180].mxu1 %vm498_vm0, %v12356_v38 }
0x1a0e   : > { %9744 = vmatprep.mubr.msk.f32.mxu0 %vm498_vm0, %v12351_v24  ;;  %v6755_v31 = vadd.f32 %v9726_v32, %v8116_v12  ;;  %v6749_v34 = vpop.f32.mrb[173].mxu1  ;;  %9767 = vmatprep.mubr.msk.f32.mxu1 %vm498_vm0, %v12361_v5 }
0x1a0f   : > { %v6750_v37 = vadd.f32 %v8116_v12, %v6749_v34 }
0x1a11   : > { %9745 = vmatmul.mubr.msk.f32.gmra.mrb[124].mxu0 %vm498_vm0, %v12356_v38  ;;  %v9729_v39 = vpop.f32.mrb[174].mxu1  ;;  %9768 = vmatmul.mubr.msk.f32.gmra.mrb[182].mxu1 %vm498_vm0, %v12366_v4 }
0x1a12   : > { %9747 = vmatprep.mubr.msk.f32.mxu0 %vm498_vm0, %v12361_v5  ;;  %v6765_v41 = vadd.f32 %v9729_v39, %v8116_v12  ;;  %v6759_v50 = vpop.f32.mrb[175].mxu1 }
0x1a13   : > { %v6760_v13 = vadd.f32 %v8116_v12, %v6759_v50 }
0x1a15   : > { %9748 = vmatmul.mubr.msk.f32.gmra.mrb[126].mxu0 %vm498_vm0, %v12366_v4 }
0x1a16   : > { %9786 = vmatprep.mubr.msk.f32.mxu0 %vm884_vm1, %v6730_v14  ;;  %v12568_v14 = vld [vmem:[%s12643_s7 + $0x7] ss:$0 sm:$0xff] }
0x1ad8   : > { %v9760_v15 = vpop.f32.mrb[176].mxu1 }
0x1ad9   : > { %v6965_v36 = vpop.f32.mrb[177].mxu1 }
0x1adc   : > { %v9740_v6 = vpop.f32.mrb[120].mxu0 }
0x1add   : > { %v6853_v7 = vadd.f32 %v9740_v6, %v8126_v46  ;;  %v6847_v22 = vpop.f32.mrb[121].mxu0 }
0x1ade   : > { %v6848_v42 = vadd.f32 %v8126_v46, %v6847_v22 }
0x1ae0   : > { %v10312_v40 = vpack.c.bf16 %v6853_v7, %v6848_v42  ;;  %v9743_v53 = vpop.f32.mrb[122].mxu0 }
0x1ae1   : > { %v6863_v54 = vadd.f32 %v9743_v53, %v8126_v46  ;;  %v6857_v51 = vpop.f32.mrb[123].mxu0 }
0x1ae2   : > { %10314 = vmatprep.subr.msk.bf16.mxu0 %vm11392_vm2, %v10312_v40  ;;  %v6858_v52 = vadd.f32 %v8126_v46, %v6857_v51 }
0x1ae3   : > { %10317 = vmatpush3.bf16.xpose.msk.msra.mxu0 %vm11392_vm2, %v10312_v40 }
0x1ae4   : > { %v10318_v55 = vpack.c.bf16 %v6863_v54, %v6858_v52  ;;  %v9746_v44 = vpop.f32.mrb[124].mxu0 }
0x1ae5   : > { %v6873_v60 = vadd.f32 %v9746_v44, %v8126_v46  ;;  %v6867_v56 = vpop.f32.mrb[125].mxu0 }
0x1ae6   : > { %10320 = vmatprep.subr.msk.bf16.mxu0 %vm11392_vm2, %v10318_v55  ;;  %v6868_v62 = vadd.f32 %v8126_v46, %v6867_v56 }
0x1ae8   : > { %v10324_v10 = vpack.c.bf16 %v6873_v60, %v6868_v62  ;;  %v9749_v59 = vpop.f32.mrb[126].mxu0 }
0x1ae9   : > { %v6883_v61 = vadd.f32 %v9749_v59, %v8126_v46  ;;  %v6877_v58 = vpop.f32.mrb[127].mxu0 }
0x1aea   : > { %v6878_v57 = vadd.f32 %v8126_v46, %v6877_v58 }
0x1aeb   : > { %10323 = vmatpush3.bf16.xpose.msk.msra.mxu0 %vm11392_vm2, %v10318_v55 }
0x1aec   : > { %10326 = vmatprep.subr.msk.bf16.mxu0 %vm11392_vm2, %v10324_v10  ;;  %v10330_v63 = vpack.c.bf16 %v6883_v61, %v6878_v57 }
0x1af3   : > { %10329 = vmatpush3.bf16.xpose.msk.msra.mxu0 %vm11392_vm2, %v10324_v10 }
0x1af4   : > { %10332 = vmatprep.subr.msk.bf16.mxu0 %vm11392_vm2, %v10330_v63 }
0x1afb   : > { %10335 = vmatpush3.bf16.xpose.msk.msra.mxu0 %vm11392_vm2, %v10330_v63 }
0x1b02   : > { %9787 = vmatmul.mubr.msk.f32.vlgmr.msra.gmra.mrb[128].mxu0 %vm884_vm1, %v6735_v11 }
0x1b03   : > { %9789 = vmatprep.mubr.msk.f32.mxu0 %vm884_vm1, %v6740_v33  ;;  %v6966_v33 = vadd.f32 %v12568_v14, %v6965_v36 }
0x1b06   : > { %9790 = vmatmul.mubr.msk.f32.gmra.mrb[130].mxu0 %vm884_vm1, %v6745_v35  ;;  %v6971_v35 = vadd.f32 %v9760_v15, %v12568_v14 }
0x1b07   : > { %9792 = vmatprep.mubr.msk.f32.mxu0 %vm884_vm1, %v6750_v37 }
0x1b08   : > { %v10336_v32 = vpack.c.bf16 %v6971_v35, %v6966_v33 }
0x1b0a   : > { %9793 = vmatmul.mubr.msk.f32.gmra.mrb[132].mxu0 %vm884_vm1, %v6755_v31  ;;  %v9763_v31 = vpop.f32.mrb[178].mxu1  ;;  %10337 = vmatprep.subr.bf16.mxu1 %v10336_v32 }
0x1b0b   : > { %9795 = vmatprep.mubr.msk.f32.mxu0 %vm884_vm1, %v6760_v13  ;;  %v6981_v34 = vadd.f32 %v9763_v31, %v12568_v14  ;;  %v6975_v37 = vpop.f32.mrb[179].mxu1  ;;  %10339 = vmatpush3.bf16.msra.mxu1 %v10336_v32 }
0x1b0c   : > { %v6976_v39 = vadd.f32 %v12568_v14, %v6975_v37  ;;  %v9766_v50 = vpop.f32.mrb[180].mxu1 }
0x1b0e   : > { %9796 = vmatmul.mubr.msk.f32.gmra.mrb[134].mxu0 %vm884_vm1, %v6765_v41  ;;  %v10340_v41 = vpack.c.bf16 %v6981_v34, %v6976_v39 }
0x1b10   : > { %10341 = vmatprep.subr.bf16.mxu1 %v10340_v41 }
0x1b11   : > { %10343 = vmatpush3.bf16.msra.mxu1 %v10340_v41 }
0x1bd5   : > { %v9788_v45 = vpop.f32.mrb[128].mxu0 }
0x1bd6   : > { %v7158_v48 = vmul.f32 0.5, %v9788_v45  ;;  %v7118_v47 = vpop.f32.mrb[129].mxu0 }
0x1bd7   : > { %v7157_v26 = vmul.f32 0.5, %v7118_v47 }
0x1bd8   : > { %v7168_v8 = vsel %vm1046_vm3, %v7158_v48, -inf }
0x1bd9   : > { %7169 = vmax.xlane.f32.xlu1 %v7168_v8  ;;  %v9791_v19 = vpop.f32.mrb[130].mxu0  ;;  %v7165_v27 = vsel %vm1046_vm3, %v7157_v26, -inf }
0x1bda   : > { %v7160_v24 = vmul.f32 0.5, %v9791_v19  ;;  %7166 = vmax.xlane.f32.xlu0 %v7165_v27  ;;  %v7128_v21 = vpop.f32.mrb[131].mxu0 }
0x1bdb   : > { %v7159_v38 = vmul.f32 0.5, %v7128_v21 }
0x1bdc   : > { %v7174_v1 = vsel %vm1046_vm3, %v7160_v24, -inf }
0x1bdd   : > { %7175 = vmax.xlane.f32.xlu1 %v7174_v1  ;;  %v9794_v5 = vpop.f32.mrb[132].mxu0  ;;  %v7171_v4 = vsel %vm1046_vm3, %v7159_v38, -inf }
0x1bde   : > { %v7162_v9 = vmul.f32 0.5, %v9794_v5  ;;  %7172 = vmax.xlane.f32.xlu0 %v7171_v4  ;;  %v7138_v17 = vpop.f32.mrb[133].mxu0  ;;  %v6991_v4 = vadd.f32 %v9766_v50, %v12568_v14 }
0x1bdf   : > { %v7161_v18 = vmul.f32 0.5, %v7138_v17 }
0x1be0   : > { %v7180_v23 = vsel %vm1046_vm3, %v7162_v9, -inf }
0x1be1   : > { %7181 = vmax.xlane.f32.xlu1 %v7180_v23  ;;  %v9797_v3 = vpop.f32.mrb[134].mxu0  ;;  %v7177_v28 = vsel %vm1046_vm3, %v7161_v18, -inf }
0x1be2   : > { %v7164_v29 = vmul.f32 0.5, %v9797_v3  ;;  %7178 = vmax.xlane.f32.xlu0 %v7177_v28  ;;  %v7148_v49 = vpop.f32.mrb[135].mxu0 }
0x1be3   : > { %v7163_v12 = vmul.f32 0.5, %v7148_v49 }
0x1be4   : > { %v7186_v11 = vsel %vm1046_vm3, %v7164_v29, -inf }
0x1be5   : > { %7187 = vmax.xlane.f32.xlu1 %v7186_v11  ;;  %v7183_v30 = vsel %vm1046_vm3, %v7163_v12, -inf }
0x1be6   : > { %7184 = vmax.xlane.f32.xlu0 %v7183_v30 }
0x1c66   : > { %v7170_v13 = vpop.xlane.xlu1 %7169 }
0x1c67   : > { %v7190_v46 = vsub.f32 %v7158_v48, %v7170_v13  ;;  %v7167_v6 = vpop.xlane.xlu0 %7166 }
0x1c68   : > { %v7189_v7 = vsub.f32 %v7157_v26, %v7167_v6 }
0x1c69   : > { %v7199_v22 = vmul.f32 1.442695, %v7190_v46 }
0x1c6a   : > { %v7197_v42 = vmul.f32 1.442695, %v7189_v7  ;;  %v7176_v40 = vpop.xlane.xlu1 %7175 }
0x1c6b   : > { %10717 = vpow2.f32 %v7199_v22  ;;  %v7192_v53 = vsub.f32 %v7160_v24, %v7176_v40  ;;  %v7173_v54 = vpop.xlane.xlu0 %7172 }
0x1c6c   : > { %10719 = vpow2.f32 %v7197_v42  ;;  %v7191_v51 = vsub.f32 %v7159_v38, %v7173_v54 }
0x1c6d   : > { %v7203_v52 = vmul.f32 1.442695, %v7192_v53 }
0x1c6e   : > { %v7201_v55 = vmul.f32 1.442695, %v7191_v51  ;;  %v7182_v44 = vpop.xlane.xlu1 %7181 }
0x1c6f   : > { %10721 = vpow2.f32 %v7203_v52  ;;  %v7194_v60 = vsub.f32 %v7162_v9, %v7182_v44  ;;  %v7179_v56 = vpop.xlane.xlu0 %7178  ;;  %v6985_v9 = vpop.f32.mrb[181].mxu1 }
0x1c70   : > { %10723 = vpow2.f32 %v7201_v55  ;;  %v7193_v62 = vsub.f32 %v7161_v18, %v7179_v56  ;;  %v6986_v17 = vadd.f32 %v12568_v14, %v6985_v9  ;;  %v9769_v23 = vpop.f32.mrb[182].mxu1 }
0x1c71   : > { %v7207_v10 = vmul.f32 1.442695, %v7194_v60  ;;  %v6995_v3 = vpop.f32.mrb[183].mxu1  ;;  %v7001_v28 = vadd.f32 %v9769_v23, %v12568_v14 }
0x1c72   : > { %v7205_v59 = vmul.f32 1.442695, %v7193_v62  ;;  %v7188_v61 = vpop.xlane.xlu1 %7187  ;;  %v10344_v18 = vpack.c.bf16 %v6991_v4, %v6986_v17 }
0x1c73   : > { %10725 = vpow2.f32 %v7207_v10  ;;  %v7196_v58 = vsub.f32 %v7164_v29, %v7188_v61  ;;  %v7185_v57 = vpop.xlane.xlu0 %7184  ;;  %v6996_v29 = vadd.f32 %v12568_v14, %v6995_v3  ;;  %v7670_v61 = vld [vmem:[%s12675_s10] ss:$0 sm:$0xff] }
0x1c74   : > { %10727 = vpow2.f32 %v7205_v59  ;;  %v7195_v63 = vsub.f32 %v7163_v12, %v7185_v57  ;;  %10345 = vmatprep.subr.bf16.mxu1 %v10344_v18  ;;  %v8169_v12 = vld [vmem:[%s12644_s8 + $0x1c] sm:$0xf] }
0x1c75   : > { %v10718_v0 = vpop.eup %10717  ;;  %v7211_v2 = vmul.f32 1.442695, %v7196_v58  ;;  %10347 = vmatpush3.bf16.msra.mxu1 %v10344_v18  ;;  %v10348_v49 = vpack.c.bf16 %v7001_v28, %v6996_v29  ;;  %9826 = vmatprep.subr.msk.mxu0 %vm1289_vm4, %v8169_v12 }
0x1c76   : > { %v10720_v25 = vpop.eup %10719  ;;  %v7209_v16 = vmul.f32 1.442695, %v7195_v63  ;;  %v7216_v43 = vsel %vm1046_vm3, %v10718_v0, 0.0  ;;  %9827 = vmatpush3.msk.msra.mxu0 %vm1289_vm4, %v8169_v12 }
0x1c77   : > { %10729 = vpow2.f32 %v7211_v2  ;;  %7217 = vadd.xlane.f32.xlu1 %v7216_v43  ;;  %v7213_v20 = vsel %vm1046_vm3, %v10720_v25, 0.0  ;;  %10349 = vmatprep.subr.bf16.mxu1 %v10348_v49 }
0x1c78   : > { %10731 = vpow2.f32 %v7209_v16  ;;  %7214 = vadd.xlane.f32.xlu0 %v7213_v20 }
0x1c79   : > { %v10722_v45 = vpop.eup %10721  ;;  %10351 = vmatpush3.bf16.msra.mxu1 %v10348_v49 }
0x1c7a   : > { %v10724_v48 = vpop.eup %10723  ;;  %v7222_v47 = vsel %vm1046_vm3, %v10722_v45, 0.0 }
0x1c7b   : > { %7223 = vadd.xlane.f32.xlu1 %v7222_v47  ;;  %v7219_v26 = vsel %vm1046_vm3, %v10724_v48, 0.0 }
0x1c7c   : > { %7220 = vadd.xlane.f32.xlu0 %v7219_v26 }
0x1c7d   : > { %v10726_v8 = vpop.eup %10725 }
0x1c7e   : > { %v10728_v19 = vpop.eup %10727  ;;  %v7228_v27 = vsel %vm1046_vm3, %v10726_v8, 0.0 }
0x1c7f   : > { %7229 = vadd.xlane.f32.xlu1 %v7228_v27  ;;  %v7225_v24 = vsel %vm1046_vm3, %v10728_v19, 0.0 }
0x1c80   : > { %7226 = vadd.xlane.f32.xlu0 %v7225_v24 }
0x1c81   : > { %v10730_v21 = vpop.eup %10729 }
0x1c82   : > { %v10732_v38 = vpop.eup %10731  ;;  %v7234_v1 = vsel %vm1046_vm3, %v10730_v21, 0.0 }
0x1c83   : > { %7235 = vadd.xlane.f32.xlu1 %v7234_v1  ;;  %v7231_v5 = vsel %vm1046_vm3, %v10732_v38, 0.0 }
0x1c84   : > { %7232 = vadd.xlane.f32.xlu0 %v7231_v5 }
0x1d04   : > { %v7218_v11 = vpop.xlane.xlu1 %7217 }
0x1d05   : > { %10733 = vrcp.f32 %v7218_v11  ;;  %v7215_v30 = vpop.xlane.xlu0 %7214 }
0x1d06   : > { %10735 = vrcp.f32 %v7215_v30 }
0x1d08   : > { %v7224_v15 = vpop.xlane.xlu1 %7223 }
0x1d09   : > { %10737 = vrcp.f32 %v7224_v15  ;;  %v7221_v14 = vpop.xlane.xlu0 %7220 }
0x1d0a   : > { %10739 = vrcp.f32 %v7221_v14 }
0x1d0c   : > { %v7230_v35 = vpop.xlane.xlu1 %7229 }
0x1d0d   : > { %10741 = vrcp.f32 %v7230_v35  ;;  %v7227_v36 = vpop.xlane.xlu0 %7226 }
0x1d0e   : > { %10743 = vrcp.f32 %v7227_v36 }
0x1d0f   : > { %v10734_v33 = vpop.eup %10733 }
0x1d10   : > { %v10736_v32 = vpop.eup %10735  ;;  %v7236_v31 = vpop.xlane.xlu1 %7235  ;;  %v7240_v39 = vmul.f32 %v10734_v33, %v10718_v0 }
0x1d11   : > { %10745 = vrcp.f32 %v7236_v31  ;;  %v7233_v34 = vpop.xlane.xlu0 %7232  ;;  %v7238_v37 = vmul.f32 %v10736_v32, %v10720_v25 }
0x1d12   : > { %10747 = vrcp.f32 %v7233_v34 }
0x1d13   : > { %v10738_v41 = vpop.eup %10737  ;;  %9814 = vmatprep.mubr.msk.f32.mxu1 %vm1046_vm3, %v7238_v37 }
0x1d14   : > { %v10740_v50 = vpop.eup %10739  ;;  %9815 = vmatmul.mubr.msk.f32.vlgmr.msra.gmra.mrb[184].mxu1 %vm1046_vm3, %v7240_v39  ;;  %v7244_v46 = vmul.f32 %v10738_v41, %v10722_v45 }
0x1d15   : > { %v7242_v13 = vmul.f32 %v10740_v50, %v10724_v48 }
0x1d17   : > { %v10742_v6 = vpop.eup %10741  ;;  %9817 = vmatprep.mubr.msk.f32.mxu1 %vm1046_vm3, %v7242_v13 }
0x1d18   : > { %v10744_v7 = vpop.eup %10743  ;;  %9818 = vmatmul.mubr.msk.f32.gmra.mrb[186].mxu1 %vm1046_vm3, %v7244_v46  ;;  %v7248_v42 = vmul.f32 %v10742_v6, %v10726_v8 }
0x1d19   : > { %v7246_v22 = vmul.f32 %v10744_v7, %v10728_v19 }
0x1d1b   : > { %v10746_v40 = vpop.eup %10745  ;;  %9820 = vmatprep.mubr.msk.f32.mxu1 %vm1046_vm3, %v7246_v22 }
0x1d1c   : > { %v10748_v53 = vpop.eup %10747  ;;  %9821 = vmatmul.mubr.msk.f32.gmra.mrb[188].mxu1 %vm1046_vm3, %v7248_v42  ;;  %v7252_v51 = vmul.f32 %v10746_v40, %v10730_v21 }
0x1d1d   : > { %v7250_v54 = vmul.f32 %v10748_v53, %v10732_v38 }
0x1d1f   : > { %9823 = vmatprep.mubr.msk.f32.mxu1 %vm1046_vm3, %v7250_v54 }
0x1d20   : > { %9824 = vmatmul.mubr.msk.f32.gmra.mrb[190].mxu1 %vm1046_vm3, %v7252_v51 }
0x1de7   : > { %v9816_v52 = vpop.f32.mrb[184].mxu1 }
0x1de8   : > { %v7343_v55 = vpop.f32.mrb[185].mxu1 }
0x1de9   : > { %9828 = vmatprep.mubr.msk.f32.mxu0 %vm884_vm1, %v7343_v55 }
0x1dea   : > { %9829 = vmatmul.mubr.msk.f32.vlgmr.msra.gmra.mrb[16].mxu0 %vm884_vm1, %v9816_v52 }
0x1deb   : > { %v9819_v44 = vpop.f32.mrb[186].mxu1 }
0x1dec   : > { %v7353_v60 = vpop.f32.mrb[187].mxu1 }
0x1ded   : > { %9831 = vmatprep.mubr.msk.f32.mxu0 %vm884_vm1, %v7353_v60 }
0x1dee   : > { %9832 = vmatmul.mubr.msk.f32.gmra.mrb[18].mxu0 %vm884_vm1, %v9819_v44 }
0x1def   : > { %v9822_v56 = vpop.f32.mrb[188].mxu1 }
0x1df0   : > { %v7363_v62 = vpop.f32.mrb[189].mxu1 }
0x1df1   : > { %9834 = vmatprep.mubr.msk.f32.mxu0 %vm884_vm1, %v7363_v62 }
0x1df2   : > { %9835 = vmatmul.mubr.msk.f32.gmra.mrb[20].mxu0 %vm884_vm1, %v9822_v56 }
0x1df3   : > { %v9825_v10 = vpop.f32.mrb[190].mxu1 }
0x1df4   : > { %v7373_v59 = vpop.f32.mrb[191].mxu1 }
0x1df5   : > { %9837 = vmatprep.mubr.msk.f32.mxu0 %vm884_vm1, %v7373_v59 }
0x1df6   : > { %9838 = vmatmul.mubr.msk.f32.gmra.mrb[22].mxu0 %vm884_vm1, %v9825_v10 }
0x1ebd   : > { %v9830_v58 = vpop.f32.mrb[16].mxu0 }
0x1ebe   : > { %v10352_v57 = vadd.f32 %v9830_v58, %v7670_v61  ;;  %v7477_v63 = vpop.f32.mrb[17].mxu0 }
0x1ebf   : > { %v10353_v0 = vadd.f32 %v7670_v61, %v7477_v63 }
0x1ec0   : > { %7525 = vst.msk [vmem:[%s462_s2 + $0x8] sm:$0xff] %vm498_vm0, %v10352_v57 }
0x1ec1   : > { %7524 = vst.msk [vmem:[%s462_s2] sm:$0xff] %vm498_vm0, %v10353_v0  ;;  %v9833_v2 = vpop.f32.mrb[18].mxu0 }
0x1ec2   : > { %v10354_v25 = vadd.f32 %v9833_v2, %v7670_v61  ;;  %v7487_v16 = vpop.f32.mrb[19].mxu0 }
0x1ec3   : > { %v10355_v43 = vadd.f32 %v7670_v61, %v7487_v16 }
0x1ec4   : > { %7527 = vst.msk [vmem:[%s462_s2 + $0x18] sm:$0xff] %vm498_vm0, %v10354_v25 }
0x1ec5   : > { %7526 = vst.msk [vmem:[%s462_s2 + $0x10] sm:$0xff] %vm498_vm0, %v10355_v43  ;;  %v9836_v20 = vpop.f32.mrb[20].mxu0 }
0x1ec6   : > { %v10356_v45 = vadd.f32 %v9836_v20, %v7670_v61  ;;  %v7497_v48 = vpop.f32.mrb[21].mxu0 }
0x1ec7   : > { %v10357_v47 = vadd.f32 %v7670_v61, %v7497_v48 }
0x1ec8   : > { %7529 = vst.msk [vmem:[%s462_s2 + $0x28] sm:$0xff] %vm498_vm0, %v10356_v45 }
0x1ec9   : > { %7528 = vst.msk [vmem:[%s462_s2 + $0x20] sm:$0xff] %vm498_vm0, %v10357_v47  ;;  %v9839_v26 = vpop.f32.mrb[22].mxu0 }
0x1eca   : > { %v10358_v8 = vadd.f32 %v9839_v26, %v7670_v61  ;;  %v7507_v19 = vpop.f32.mrb[23].mxu0 }
0x1ecb   : > { %v10359_v27 = vadd.f32 %v7670_v61, %v7507_v19 }
0x1ecc   : > { %7531 = vst.msk [vmem:[%s462_s2 + $0x38] sm:$0xff] %vm498_vm0, %v10358_v8 }
0x1ecd   : > { %7530 = vst.msk [vmem:[%s462_s2 + $0x30] sm:$0xff] %vm498_vm0, %v10359_v27 }
0x1ece PF: > { %p24_p3 = scmp.ge.s32.totalorder %s11181_s12, 4   ;;  %s12677_s13 = smov %s10979_s14 }
0x1ecf   : > { %s12678_s14 = smov %s10983_s15  ;;  %s12679_s15 = smov %s11191_s28 }
0x1ed0   : > { %s12680_s16 = smov %s11181_s12  ;;  %26 = sbr.rel (!%p24_p3) target bundleno = 11 (0xb), region = 174 }
0x1ed7   :  { %7553 = vsyncpa [#allocation3], 1 }
0x1ed8   :  { %7555 = vsyncpa [#allocation3 + $0x1], 1 }
0x1ed9   :  { %7556 = vsyncpa [#allocation5], 1 }
0x1eda   :  { %7558 = vsyncpa [#allocation5 + $0x1], 1 }
0x1edb   :  { %7559 = vsyncpa [#allocation8], 1 }

</bundles_post_ra>
